<compile_context>
chip_gen: v5e
topology: v5e:2x2
jax: 0.10.0
libtpu: 0.0.40
codegen_flags: <defaults>
</compile_context>

<pallas_src>
import functools

import jax
import jax.numpy as jnp
from jax.experimental import pallas as pl
from jax.experimental.pallas import tpu as pltpu

LANES = 128


def _round_up(x, m):
    return (x + m - 1) // m * m


# ----------------------------------------------------------------------------
# Pallas kernels
# ----------------------------------------------------------------------------
def _matmul_bias_relu_kernel(x_ref, w_ref, b_ref, o_ref, *, relu):
    """o = relu?(x @ w + b).  x:(bm,K) bf16, w:(K,N) bf16, b:(1,N) f32."""
    acc = jnp.dot(x_ref[...], w_ref[...], preferred_element_type=jnp.float32)
    acc = acc + b_ref[...]
    if relu:
        acc = jnp.maximum(acc, 0.0)
    o_ref[...] = acc.astype(o_ref.dtype)


def _conv_pool_kernel(x_ref, w_ref, b_ref, o_ref, acc_ref, *, ow, n_groups):
    """Fused conv-as-matmul + bias + ReLU + MaxPool2d(2,2).

    x_ref:   (M, K)   bf16 im2col patches, rows ordered (b, i, j)
    w_ref:   (K, 128) bf16 weights (Cout zero-padded to 128 lanes)
    b_ref:   (1, 128) f32 bias
    acc_ref: (M, 128) f32 VMEM scratch (pre-pool activation)
    o_ref:   (M//4, 128) f32 pooled output, rows ordered (b, ii, jj)
    """
    acc = jnp.dot(x_ref[...], w_ref[...], preferred_element_type=jnp.float32)
    acc_ref[...] = jnp.maximum(acc + b_ref[...], 0.0)

    pw = ow // 2
    # One group = one (batch, pooled-row) pair = 2*ow consecutive rows of acc.
    for p in range(n_groups):
        base = p * 2 * ow
        r00 = acc_ref[pl.ds(base, pw, stride=2), :]            # i even, j even
        r01 = acc_ref[pl.ds(base + 1, pw, stride=2), :]        # i even, j odd
        r10 = acc_ref[pl.ds(base + ow, pw, stride=2), :]       # i odd,  j even
        r11 = acc_ref[pl.ds(base + ow + 1, pw, stride=2), :]   # i odd,  j odd
        pooled = jnp.maximum(jnp.maximum(r00, r01), jnp.maximum(r10, r11))
        o_ref[pl.ds(p * pw, pw), :] = pooled.astype(o_ref.dtype)


def _fc_chain_kernel(x_ref, w1_ref, b1_ref, w2_ref, b2_ref, w3_ref, b3_ref,
                     o_ref):
    """fc1 -> fc2 -> fc3 chained in VMEM.

    The reference forward has NO ReLU after fc1/fc2, so none is applied."""
    h = jnp.dot(x_ref[...], w1_ref[...],
                preferred_element_type=jnp.float32) + b1_ref[...]
    h = jnp.dot(h.astype(jnp.bfloat16), w2_ref[...],
                preferred_element_type=jnp.float32) + b2_ref[...]
    h = jnp.dot(h.astype(jnp.bfloat16), w3_ref[...],
                preferred_element_type=jnp.float32) + b3_ref[...]
    o_ref[...] = h


# ----------------------------------------------------------------------------
# Kernel wrappers
# ----------------------------------------------------------------------------
def pallas_matmul_bias_relu(x, w_p, b_p, *, relu=True, out_dtype=jnp.bfloat16,
                            block_m=512):
    """x:(M,K) @ w_p:(Kp,128) + b_p:(1,128); M tiled with a parallel grid."""
    m, k = x.shape
    kp, n = w_p.shape
    bm = min(block_m, _round_up(m, 16))
    mp = _round_up(m, bm)
    x_p = jnp.pad(x.astype(jnp.bfloat16), ((0, mp - m), (0, kp - k)))
    out = pl.pallas_call(
        functools.partial(_matmul_bias_relu_kernel, relu=relu),
        out_shape=jax.ShapeDtypeStruct((mp, n), out_dtype),
        grid=(mp // bm,),
        in_specs=[
            pl.BlockSpec((bm, kp), lambda i: (i, 0)),
            pl.BlockSpec((kp, n), lambda i: (0, 0)),
            pl.BlockSpec((1, n), lambda i: (0, 0)),
        ],
        out_specs=pl.BlockSpec((bm, n), lambda i: (i, 0)),
        compiler_params=pltpu.CompilerParams(
            dimension_semantics=("parallel",)),
    )(x_p, w_p, b_p)
    return out[:m]


def _im2col_nhwc(x, kh, kw, pad):
    """x:(B,H,W,C) NHWC -> (B*OH*OW, kh*kw*C); feature order (kh, kw, C)."""
    if pad > 0:
        x = jnp.pad(x, ((0, 0), (pad, pad), (pad, pad), (0, 0)))
    b, h, w, c = x.shape
    oh, ow = h - kh + 1, w - kw + 1
    cols = []
    for i in range(kh):
        for j in range(kw):
            cols.append(x[:, i:i + oh, j:j + ow, :])
    p = jnp.stack(cols, axis=3)                      # (B, OH, OW, kh*kw, C)
    return p.reshape(b * oh * ow, kh * kw * c), oh, ow


def conv_bn_relu_pool(x_nhwc, w_p, b_p, *, ksize, pad):
    """conv(k, stride 1, pad) + folded BN + ReLU + MaxPool2d(2,2), one kernel.

    Returns (B, OH//2, OW//2, 128) f32 with channels zero-padded to 128."""
    bsz = x_nhwc.shape[0]
    patches, oh, ow = _im2col_nhwc(x_nhwc, ksize, ksize, pad)
    assert oh % 2 == 0 and ow % 2 == 0
    m, k = patches.shape
    kp, n = w_p.shape
    patches = jnp.pad(patches.astype(jnp.bfloat16), ((0, 0), (0, kp - k)))
    ph, pw = oh // 2, ow // 2
    out = pl.pallas_call(
        functools.partial(_conv_pool_kernel, ow=ow, n_groups=bsz * ph),
        out_shape=jax.ShapeDtypeStruct((bsz * ph * pw, n), jnp.float32),
        grid=(1,),
        in_specs=[
            pl.BlockSpec((m, kp), lambda i: (0, 0)),
            pl.BlockSpec((kp, n), lambda i: (0, 0)),
            pl.BlockSpec((1, n), lambda i: (0, 0)),
        ],
        out_specs=pl.BlockSpec((bsz * ph * pw, n), lambda i: (0, 0)),
        scratch_shapes=[pltpu.VMEM((m, n), jnp.float32)],
        compiler_params=pltpu.CompilerParams(
            dimension_semantics=("arbitrary",)),
    )(patches, w_p, b_p)
    return out.reshape(bsz, ph, pw, n)


def pallas_fc_chain(x, fc1, fc2, fc3):
    """All three Linear layers fused into one kernel. Output lanes padded."""
    w1, b1 = fc1
    w2, b2 = fc2
    w3, b3 = fc3
    bsz, k = x.shape
    kp = w1.shape[0]
    n = w3.shape[1]
    x_p = jnp.pad(x.astype(jnp.bfloat16), ((0, 0), (0, kp - k)))

    def _full(a):
        return pl.BlockSpec(a.shape, lambda i: (0, 0))

    out = pl.pallas_call(
        _fc_chain_kernel,
        out_shape=jax.ShapeDtypeStruct((bsz, n), jnp.float32),
        grid=(1,),
        in_specs=[_full(x_p), _full(w1), _full(b1), _full(w2), _full(b2),
                  _full(w3), _full(b3)],
        out_specs=pl.BlockSpec((bsz, n), lambda i: (0, 0)),
        compiler_params=pltpu.CompilerParams(
            dimension_semantics=("arbitrary",)),
    )(x_p, w1, b1, w2, b2, w3, b3)
    return out


# ----------------------------------------------------------------------------
# Parameter construction (deterministic, synthetic; BN folded at inference)
# ----------------------------------------------------------------------------
def _fold_bn(w, b, gamma, beta, mean, var, eps=1e-5):
    scale = gamma / jnp.sqrt(var + eps)
    return w * scale[:, None, None, None], (b - mean) * scale + beta


def _make_conv_bn(key, cout, cin, k):
    ks = jax.random.split(key, 6)
    w = jax.random.normal(ks[0], (cout, cin, k, k), jnp.float32) * 0.1
    b = jax.random.normal(ks[1], (cout,), jnp.float32) * 0.1
    gamma = 1.0 + 0.1 * jax.random.normal(ks[2], (cout,), jnp.float32)
    beta = 0.1 * jax.random.normal(ks[3], (cout,), jnp.float32)
    mean = 0.1 * jax.random.normal(ks[4], (cout,), jnp.float32)
    var = jax.random.uniform(ks[5], (cout,), jnp.float32, 0.5, 1.5)
    return _fold_bn(w, b, gamma, beta, mean, var)


def _make_linear(key, out_f, in_f):
    ks = jax.random.split(key, 2)
    w = jax.random.normal(ks[0], (out_f, in_f), jnp.float32) * 0.1
    b = jax.random.normal(ks[1], (out_f,), jnp.float32) * 0.1
    return w, b


def _pack_conv(w_oihw, b):
    """(Cout,Cin,kh,kw) -> ((Kp,128) bf16 weight, (1,128) f32 bias).
    Row order matches _im2col_nhwc's (kh,kw,C) feature order; K padded to a
    multiple of 128, Cout zero-padded to 128 lanes (lane-dense output)."""
    cout, cin, kh, kw = w_oihw.shape
    wmat = w_oihw.transpose(2, 3, 1, 0).reshape(kh * kw * cin, cout)
    kp = _round_up(wmat.shape[0], LANES)
    wmat = jnp.pad(wmat, ((0, kp - wmat.shape[0]), (0, LANES - cout)))
    bias = jnp.pad(b, (0, LANES - cout)).reshape(1, LANES)
    return wmat.astype(jnp.bfloat16), bias.astype(jnp.float32)


def _pack_linear(w_oi, b):
    out_f, in_f = w_oi.shape
    wmat = w_oi.T
    kp = _round_up(in_f, LANES)
    wmat = jnp.pad(wmat, ((0, kp - in_f), (0, LANES - out_f)))
    bias = jnp.pad(b, (0, LANES - out_f)).reshape(1, LANES)
    return wmat.astype(jnp.bfloat16), bias.astype(jnp.float32)


def init_params(key, num_classes):
    keys = jax.random.split(key, 8)
    # conv1_1 (1x1), conv1_2 (3x3,pad1), conv1_3 (5x5,pad2): fold their BNs,
    # embed the 1x1/3x3 taps into 5x5 kernels, and merge into a single
    # 18-channel 5x5 conv (pad 2).  Channel order == torch.cat((x1,x2,x3),1).
    w11, b11 = _make_conv_bn(keys[0], 6, 3, 1)
    w12, b12 = _make_conv_bn(keys[1], 6, 3, 3)
    w13, b13 = _make_conv_bn(keys[2], 6, 3, 5)
    w11_5 = jnp.zeros((6, 3, 5, 5), jnp.float32).at[:, :, 2:3, 2:3].set(w11)
    w12_5 = jnp.zeros((6, 3, 5, 5), jnp.float32).at[:, :, 1:4, 1:4].set(w12)
    w_branch = jnp.concatenate([w11_5, w12_5, w13], axis=0)      # (18,3,5,5)
    b_branch = jnp.concatenate([b11, b12, b13], axis=0)          # (18,)

    return {
        "branch": _pack_conv(w_branch, b_branch),
        "c1": _pack_conv(*_make_conv_bn(keys[3], 6, 18, 5)),
        "c2": _pack_conv(*_make_conv_bn(keys[4], 16, 6, 5)),
        "fc1": _pack_linear(*_make_linear(keys[5], 120, 400)),
        "fc2": _pack_linear(*_make_linear(keys[6], 84, 120)),
        "fc3": _pack_linear(*_make_linear(keys[7], num_classes, 84)),
    }


# ----------------------------------------------------------------------------
# Forward pass (mirrors LeNet_MergeConv.forward)
# ----------------------------------------------------------------------------
@functools.partial(jax.jit, static_argnames=("num_classes",))
def lenet_mergeconv_forward(params, x, *, num_classes):
    """x: (B, 3, 32, 32) NCHW -> (B, num_classes) logits."""
    bsz = x.shape[0]
    x = x.transpose(0, 2, 3, 1)                               # NHWC

    # conv1_1 / conv1_2 / conv1_3 (+BN+ReLU) + concat as ONE gridded kernel.
    patches, oh, ow = _im2col_nhwc(x, 5, 5, 2)                # (B*32*32, 75)
    w_br, b_br = params["branch"]
    mer = pallas_matmul_bias_relu(patches, w_br, b_br, relu=True)
    mer = mer[:, :18].reshape(bsz, oh, ow, 18)                # (B,32,32,18)

    # conv1 + BN + ReLU + pool1, fused.
    w1, b1 = params["c1"]
    y = conv_bn_relu_pool(mer, w1, b1, ksize=5, pad=0)        # (B,14,14,128)
    y = y[..., :6]

    # conv2 + BN + ReLU + pool2, fused.
    w2, b2 = params["c2"]
    y = conv_bn_relu_pool(y, w2, b2, ksize=5, pad=0)          # (B,5,5,128)
    y = y[..., :16]

    # PyTorch NCHW flatten order: reshape(-1, 400) on (B,16,5,5).
    y = y.transpose(0, 3, 1, 2).reshape(bsz, 400)

    # fc1 -> fc2 -> fc3 fused (no ReLUs, matching the reference forward).
    logits = pallas_fc_chain(y, params["fc1"], params["fc2"], params["fc3"])
    return logits[:, :num_classes]


if __name__ == "__main__":
    # image_size must be 32 so the conv/pool stack yields 16*5*5 = 400
    # features for fc1 (nn.Linear(400, 120)).
    batch, num_classes = 2, 10
    key = jax.random.PRNGKey(0)
    k_x, k_p = jax.random.split(key)
    x = jax.random.normal(k_x, (batch, 3, 32, 32), jnp.float32)
    params = init_params(k_p, num_classes)

    out = lenet_mergeconv_forward(params, x, num_classes=num_classes)
    out = jax.block_until_ready(out)
    assert out.shape == (batch, num_classes), out.shape
    print("KERNEL_OK")
</pallas_src>

<mosaic_0001>
module attributes {stable_mosaic.version = 11 : i64} {
  func.func @_matmul_bias_relu_kernel(%arg0: i32, %arg1: memref<512x128xbf16, #tpu.memory_space<vmem>>, %arg2: memref<128x128xbf16, #tpu.memory_space<vmem>>, %arg3: memref<1x128xf32, #tpu.memory_space<vmem>>, %arg4: memref<512x128xbf16, #tpu.memory_space<vmem>>) attributes {dimension_semantics = [#tpu.dimension_semantics<parallel>], iteration_bounds = array<i64: 4>, scalar_prefetch = 0 : i64, scratch_operands = 0 : i64, tpu.core_type = #tpu.core_type<tc>, window_params = [{transform_indices = @transform_0, window_bounds = array<i64: 512, 128>}, {pipeline_mode = #tpu.pipeline_mode<synchronous>, transform_indices = @transform_1, window_bounds = array<i64: 128, 128>}, {pipeline_mode = #tpu.pipeline_mode<synchronous>, transform_indices = @transform_2, window_bounds = array<i64: 1, 128>}, {transform_indices = @transform_3, window_bounds = array<i64: 512, 128>}]} {
    %c0 = arith.constant 0 : index
    %c0_0 = arith.constant 0 : index
    %0 = vector.load %arg1[%c0, %c0_0] : memref<512x128xbf16, #tpu.memory_space<vmem>>, vector<512x128xbf16>
    %c0_1 = arith.constant 0 : index
    %c0_2 = arith.constant 0 : index
    %1 = vector.load %arg2[%c0_1, %c0_2] : memref<128x128xbf16, #tpu.memory_space<vmem>>, vector<128x128xbf16>
    %cst = arith.constant dense<0.000000e+00> : vector<512x128xf32>
    %2 = tpu.matmul %0, %1, %cst {dimension_numbers = #tpu.dot_dimension_numbers<[1], [0], [0], [1], [0, 0, 1, 1], [], []>} : vector<512x128xbf16>, vector<128x128xbf16>, vector<512x128xf32> -> vector<512x128xf32>
    %c0_3 = arith.constant 0 : index
    %c0_4 = arith.constant 0 : index
    %3 = vector.load %arg3[%c0_3, %c0_4] : memref<1x128xf32, #tpu.memory_space<vmem>>, vector<1x128xf32>
    %4 = vector.broadcast %3 : vector<1x128xf32> to vector<512x128xf32>
    %5 = arith.addf %2, %4 : vector<512x128xf32>
    %cst_5 = arith.constant 0.000000e+00 : f32
    %6 = vector.broadcast %cst_5 : f32 to vector<512x128xf32>
    %7 = arith.maximumf %5, %6 : vector<512x128xf32>
    %8 = arith.truncf %7 : vector<512x128xf32> to vector<512x128xbf16>
    %c0_6 = arith.constant 0 : index
    %c0_7 = arith.constant 0 : index
    %9 = vector.load %arg4[%c0_6, %c0_7] : memref<512x128xbf16, #tpu.memory_space<vmem>>, vector<512x128xbf16>
    tpu.vector_store %arg4[%c0_6, %c0_7], %8 {strides = array<i32>} : memref<512x128xbf16, #tpu.memory_space<vmem>>, vector<512x128xbf16>,
    return
  }
  func.func @transform_0(%arg0: i32) -> (i32, i32) {
    %c0_i32 = arith.constant 0 : i32
    %c0_i32_0 = arith.constant 0 : i32
    return %arg0, %c0_i32 : i32, i32
  }
  func.func @transform_1(%arg0: i32) -> (i32, i32) {
    %c0_i32 = arith.constant 0 : i32
    %c0_i32_0 = arith.constant 0 : i32
    %c0_i32_1 = arith.constant 0 : i32
    return %c0_i32, %c0_i32_0 : i32, i32
  }
  func.func @transform_2(%arg0: i32) -> (i32, i32) {
    %c0_i32 = arith.constant 0 : i32
    %c0_i32_0 = arith.constant 0 : i32
    %c0_i32_1 = arith.constant 0 : i32
    return %c0_i32, %c0_i32_0 : i32, i32
  }
  func.func @transform_3(%arg0: i32) -> (i32, i32) {
    %c0_i32 = arith.constant 0 : i32
    %c0_i32_0 = arith.constant 0 : i32
    return %arg0, %c0_i32 : i32, i32
  }
}

module attributes {stable_mosaic.version = 11 : i64} {
  func.func @_conv_pool_kernel(%arg0: i32, %arg1: memref<1568x512xbf16, #tpu.memory_space<vmem>>, %arg2: memref<512x128xbf16, #tpu.memory_space<vmem>>, %arg3: memref<1x128xf32, #tpu.memory_space<vmem>>, %arg4: memref<392x128xf32, #tpu.memory_space<vmem>>, %arg5: memref<1568x128xf32, #tpu.memory_space<vmem>>) attributes {dimension_semantics = [#tpu.dimension_semantics<arbitrary>], iteration_bounds = array<i64: 1>, scalar_prefetch = 0 : i64, scratch_operands = 1 : i64, tpu.core_type = #tpu.core_type<tc>, window_params = [{pipeline_mode = #tpu.pipeline_mode<synchronous>, transform_indices = @transform_0, window_bounds = array<i64: 1568, 512>}, {pipeline_mode = #tpu.pipeline_mode<synchronous>, transform_indices = @transform_1, window_bounds = array<i64: 512, 128>}, {pipeline_mode = #tpu.pipeline_mode<synchronous>, transform_indices = @transform_2, window_bounds = array<i64: 1, 128>}, {pipeline_mode = #tpu.pipeline_mode<synchronous>, transform_indices = @transform_3, window_bounds = array<i64: 392, 128>}]} {
    %c0 = arith.constant 0 : index
    %c0_0 = arith.constant 0 : index
    %0 = vector.load %arg1[%c0, %c0_0] : memref<1568x512xbf16, #tpu.memory_space<vmem>>, vector<1568x512xbf16>
    %c0_1 = arith.constant 0 : index
    %c0_2 = arith.constant 0 : index
    %1 = vector.load %arg2[%c0_1, %c0_2] : memref<512x128xbf16, #tpu.memory_space<vmem>>, vector<512x128xbf16>
    %cst = arith.constant dense<0.000000e+00> : vector<1568x128xf32>
    %2 = tpu.matmul %0, %1, %cst {dimension_numbers = #tpu.dot_dimension_numbers<[1], [0], [0], [1], [0, 0, 1, 1], [], []>} : vector<1568x512xbf16>, vector<512x128xbf16>, vector<1568x128xf32> -> vector<1568x128xf32>
    %c0_3 = arith.constant 0 : index
    %c0_4 = arith.constant 0 : index
    %3 = vector.load %arg3[%c0_3, %c0_4] : memref<1x128xf32, #tpu.memory_space<vmem>>, vector<1x128xf32>
    %4 = vector.broadcast %3 : vector<1x128xf32> to vector<1568x128xf32>
    %5 = arith.addf %2, %4 : vector<1568x128xf32>
    %cst_5 = arith.constant 0.000000e+00 : f32
    %6 = vector.broadcast %cst_5 : f32 to vector<1568x128xf32>
    %7 = arith.maximumf %5, %6 : vector<1568x128xf32>
    %c0_6 = arith.constant 0 : index
    %c0_7 = arith.constant 0 : index
    %8 = vector.load %arg5[%c0_6, %c0_7] : memref<1568x128xf32, #tpu.memory_space<vmem>>, vector<1568x128xf32>
    tpu.vector_store %arg5[%c0_6, %c0_7], %7 {strides = array<i32>} : memref<1568x128xf32, #tpu.memory_space<vmem>>, vector<1568x128xf32>,
    %c0_8 = arith.constant 0 : index
    %c0_9 = arith.constant 0 : index
    %9 = tpu.strided_load %arg5[%c0_8, %c0_9] {strides = array<i32: 2, 1>} : memref<1568x128xf32, #tpu.memory_space<vmem>>, vector<14x128xf32>
    %c1 = arith.constant 1 : index
    %c0_10 = arith.constant 0 : index
    %10 = tpu.strided_load %arg5[%c1, %c0_10] {strides = array<i32: 2, 1>} : memref<1568x128xf32, #tpu.memory_space<vmem>>, vector<14x128xf32>
    %c28 = arith.constant 28 : index
    %c0_11 = arith.constant 0 : index
    %11 = tpu.strided_load %arg5[%c28, %c0_11] {strides = array<i32: 2, 1>} : memref<1568x128xf32, #tpu.memory_space<vmem>>, vector<14x128xf32>
    %c29 = arith.constant 29 : index
    %c0_12 = arith.constant 0 : index
    %12 = tpu.strided_load %arg5[%c29, %c0_12] {strides = array<i32: 2, 1>} : memref<1568x128xf32, #tpu.memory_space<vmem>>, vector<14x128xf32>
    %13 = arith.maximumf %9, %10 : vector<14x128xf32>
    %14 = arith.maximumf %11, %12 : vector<14x128xf32>
    %15 = arith.maximumf %13, %14 : vector<14x128xf32>
    %c0_13 = arith.constant 0 : index
    %c0_14 = arith.constant 0 : index
    %16 = vector.load %arg4[%c0_13, %c0_14] : memref<392x128xf32, #tpu.memory_space<vmem>>, vector<14x128xf32>
    tpu.vector_store %arg4[%c0_13, %c0_14], %15 {strides = array<i32>} : memref<392x128xf32, #tpu.memory_space<vmem>>, vector<14x128xf32>,
    %c56 = arith.constant 56 : index
    %c0_15 = arith.constant 0 : index
    %17 = tpu.strided_load %arg5[%c56, %c0_15] {strides = array<i32: 2, 1>} : memref<1568x128xf32, #tpu.memory_space<vmem>>, vector<14x128xf32>
    %c57 = arith.constant 57 : index
    %c0_16 = arith.constant 0 : index
    %18 = tpu.strided_load %arg5[%c57, %c0_16] {strides = array<i32: 2, 1>} : memref<1568x128xf32, #tpu.memory_space<vmem>>, vector<14x128xf32>
    %c84 = arith.constant 84 : index
    %c0_17 = arith.constant 0 : index
    %19 = tpu.strided_load %arg5[%c84, %c0_17] {strides = array<i32: 2, 1>} : memref<1568x128xf32, #tpu.memory_space<vmem>>, vector<14x128xf32>
    %c85 = arith.constant 85 : index
    %c0_18 = arith.constant 0 : index
    %20 = tpu.strided_load %arg5[%c85, %c0_18] {strides = array<i32: 2, 1>} : memref<1568x128xf32, #tpu.memory_space<vmem>>, vector<14x128xf32>
    %21 = arith.maximumf %17, %18 : vector<14x128xf32>
    %22 = arith.maximumf %19, %20 : vector<14x128xf32>
    %23 = arith.maximumf %21, %22 : vector<14x128xf32>
    %c14 = arith.constant 14 : index
    %c0_19 = arith.constant 0 : index
    %24 = vector.load %arg4[%c14, %c0_19] : memref<392x128xf32, #tpu.memory_space<vmem>>, vector<14x128xf32>
    tpu.vector_store %arg4[%c14, %c0_19], %23 {strides = array<i32>} : memref<392x128xf32, #tpu.memory_space<vmem>>, vector<14x128xf32>,
    %c112 = arith.constant 112 : index
    %c0_20 = arith.constant 0 : index
    %25 = tpu.strided_load %arg5[%c112, %c0_20] {strides = array<i32: 2, 1>} : memref<1568x128xf32, #tpu.memory_space<vmem>>, vector<14x128xf32>
    %c113 = arith.constant 113 : index
    %c0_21 = arith.constant 0 : index
    %26 = tpu.strided_load %arg5[%c113, %c0_21] {strides = array<i32: 2, 1>} : memref<1568x128xf32, #tpu.memory_space<vmem>>, vector<14x128xf32>
    %c140 = arith.constant 140 : index
    %c0_22 = arith.constant 0 : index
    %27 = tpu.strided_load %arg5[%c140, %c0_22] {strides = array<i32: 2, 1>} : memref<1568x128xf32, #tpu.memory_space<vmem>>, vector<14x128xf32>
    %c141 = arith.constant 141 : index
    %c0_23 = arith.constant 0 : index
    %28 = tpu.strided_load %arg5[%c141, %c0_23] {strides = array<i32: 2, 1>} : memref<1568x128xf32, #tpu.memory_space<vmem>>, vector<14x128xf32>
    %29 = arith.maximumf %25, %26 : vector<14x128xf32>
    %30 = arith.maximumf %27, %28 : vector<14x128xf32>
    %31 = arith.maximumf %29, %30 : vector<14x128xf32>
    %c28_24 = arith.constant 28 : index
    %c0_25 = arith.constant 0 : index
    %32 = vector.load %arg4[%c28_24, %c0_25] : memref<392x128xf32, #tpu.memory_space<vmem>>, vector<14x128xf32>
    tpu.vector_store %arg4[%c28_24, %c0_25], %31 {strides = array<i32>} : memref<392x128xf32, #tpu.memory_space<vmem>>, vector<14x128xf32>,
    %c168 = arith.constant 168 : index
    %c0_26 = arith.constant 0 : index
    %33 = tpu.strided_load %arg5[%c168, %c0_26] {strides = array<i32: 2, 1>} : memref<1568x128xf32, #tpu.memory_space<vmem>>, vector<14x128xf32>
    %c169 = arith.constant 169 : index
    %c0_27 = arith.constant 0 : index
    %34 = tpu.strided_load %arg5[%c169, %c0_27] {strides = array<i32: 2, 1>} : memref<1568x128xf32, #tpu.memory_space<vmem>>, vector<14x128xf32>
    %c196 = arith.constant 196 : index
    %c0_28 = arith.constant 0 : index
    %35 = tpu.strided_load %arg5[%c196, %c0_28] {strides = array<i32: 2, 1>} : memref<1568x128xf32, #tpu.memory_space<vmem>>, vector<14x128xf32>
    %c197 = arith.constant 197 : index
    %c0_29 = arith.constant 0 : index
    %36 = tpu.strided_load %arg5[%c197, %c0_29] {strides = array<i32: 2, 1>} : memref<1568x128xf32, #tpu.memory_space<vmem>>, vector<14x128xf32>
    %37 = arith.maximumf %33, %34 : vector<14x128xf32>
    %38 = arith.maximumf %35, %36 : vector<14x128xf32>
    %39 = arith.maximumf %37, %38 : vector<14x128xf32>
    %c42 = arith.constant 42 : index
    %c0_30 = arith.constant 0 : index
    %40 = vector.load %arg4[%c42, %c0_30] : memref<392x128xf32, #tpu.memory_space<vmem>>, vector<14x128xf32>
    tpu.vector_store %arg4[%c42, %c0_30], %39 {strides = array<i32>} : memref<392x128xf32, #tpu.memory_space<vmem>>, vector<14x128xf32>,
    %c224 = arith.constant 224 : index
    %c0_31 = arith.constant 0 : index
    %41 = tpu.strided_load %arg5[%c224, %c0_31] {strides = array<i32: 2, 1>} : memref<1568x128xf32, #tpu.memory_space<vmem>>, vector<14x128xf32>
    %c225 = arith.constant 225 : index
    %c0_32 = arith.constant 0 : index
    %42 = tpu.strided_load %arg5[%c225, %c0_32] {strides = array<i32: 2, 1>} : memref<1568x128xf32, #tpu.memory_space<vmem>>, vector<14x128xf32>
    %c252 = arith.constant 252 : index
    %c0_33 = arith.constant 0 : index
    %43 = tpu.strided_load %arg5[%c252, %c0_33] {strides = array<i32: 2, 1>} : memref<1568x128xf32, #tpu.memory_space<vmem>>, vector<14x128xf32>
    %c253 = arith.constant 253 : index
    %c0_34 = arith.constant 0 : index
    %44 = tpu.strided_load %arg5[%c253, %c0_34] {strides = array<i32: 2, 1>} : memref<1568x128xf32, #tpu.memory_space<vmem>>, vector<14x128xf32>
    %45 = arith.maximumf %41, %42 : vector<14x128xf32>
    %46 = arith.maximumf %43, %44 : vector<14x128xf32>
    %47 = arith.maximumf %45, %46 : vector<14x128xf32>
    %c56_35 = arith.constant 56 : index
    %c0_36 = arith.constant 0 : index
    %48 = vector.load %arg4[%c56_35, %c0_36] : memref<392x128xf32, #tpu.memory_space<vmem>>, vector<14x128xf32>
    tpu.vector_store %arg4[%c56_35, %c0_36], %47 {strides = array<i32>} : memref<392x128xf32, #tpu.memory_space<vmem>>, vector<14x128xf32>,
    %c280 = arith.constant 280 : index
    %c0_37 = arith.constant 0 : index
    %49 = tpu.strided_load %arg5[%c280, %c0_37] {strides = array<i32: 2, 1>} : memref<1568x128xf32, #tpu.memory_space<vmem>>, vector<14x128xf32>
    %c281 = arith.constant 281 : index
    %c0_38 = arith.constant 0 : index
    %50 = tpu.strided_load %arg5[%c281, %c0_38] {strides = array<i32: 2, 1>} : memref<1568x128xf32, #tpu.memory_space<vmem>>, vector<14x128xf32>
    %c308 = arith.constant 308 : index
    %c0_39 = arith.constant 0 : index
    %51 = tpu.strided_load %arg5[%c308, %c0_39] {strides = array<i32: 2, 1>} : memref<1568x128xf32, #tpu.memory_space<vmem>>, vector<14x128xf32>
    %c309 = arith.constant 309 : index
    %c0_40 = arith.constant 0 : index
    %52 = tpu.strided_load %arg5[%c309, %c0_40] {strides = array<i32: 2, 1>} : memref<1568x128xf32, #tpu.memory_space<vmem>>, vector<14x128xf32>
    %53 = arith.maximumf %49, %50 : vector<14x128xf32>
    %54 = arith.maximumf %51, %52 : vector<14x128xf32>
    %55 = arith.maximumf %53, %54 : vector<14x128xf32>
    %c70 = arith.constant 70 : index
    %c0_41 = arith.constant 0 : index
    %56 = vector.load %arg4[%c70, %c0_41] : memref<392x128xf32, #tpu.memory_space<vmem>>, vector<14x128xf32>
    tpu.vector_store %arg4[%c70, %c0_41], %55 {strides = array<i32>} : memref<392x128xf32, #tpu.memory_space<vmem>>, vector<14x128xf32>,
    %c336 = arith.constant 336 : index
    %c0_42 = arith.constant 0 : index
    %57 = tpu.strided_load %arg5[%c336, %c0_42] {strides = array<i32: 2, 1>} : memref<1568x128xf32, #tpu.memory_space<vmem>>, vector<14x128xf32>
    %c337 = arith.constant 337 : index
    %c0_43 = arith.constant 0 : index
    %58 = tpu.strided_load %arg5[%c337, %c0_43] {strides = array<i32: 2, 1>} : memref<1568x128xf32, #tpu.memory_space<vmem>>, vector<14x128xf32>
    %c364 = arith.constant 364 : index
    %c0_44 = arith.constant 0 : index
    %59 = tpu.strided_load %arg5[%c364, %c0_44] {strides = array<i32: 2, 1>} : memref<1568x128xf32, #tpu.memory_space<vmem>>, vector<14x128xf32>
    %c365 = arith.constant 365 : index
    %c0_45 = arith.constant 0 : index
    %60 = tpu.strided_load %arg5[%c365, %c0_45] {strides = array<i32: 2, 1>} : memref<1568x128xf32, #tpu.memory_space<vmem>>, vector<14x128xf32>
    %61 = arith.maximumf %57, %58 : vector<14x128xf32>
    %62 = arith.maximumf %59, %60 : vector<14x128xf32>
    %63 = arith.maximumf %61, %62 : vector<14x128xf32>
    %c84_46 = arith.constant 84 : index
    %c0_47 = arith.constant 0 : index
    %64 = vector.load %arg4[%c84_46, %c0_47] : memref<392x128xf32, #tpu.memory_space<vmem>>, vector<14x128xf32>
    tpu.vector_store %arg4[%c84_46, %c0_47], %63 {strides = array<i32>} : memref<392x128xf32, #tpu.memory_space<vmem>>, vector<14x128xf32>,
    %c392 = arith.constant 392 : index
    %c0_48 = arith.constant 0 : index
    %65 = tpu.strided_load %arg5[%c392, %c0_48] {strides = array<i32: 2, 1>} : memref<1568x128xf32, #tpu.memory_space<vmem>>, vector<14x128xf32>
    %c393 = arith.constant 393 : index
    %c0_49 = arith.constant 0 : index
    %66 = tpu.strided_load %arg5[%c393, %c0_49] {strides = array<i32: 2, 1>} : memref<1568x128xf32, #tpu.memory_space<vmem>>, vector<14x128xf32>
    %c420 = arith.constant 420 : index
    %c0_50 = arith.constant 0 : index
    %67 = tpu.strided_load %arg5[%c420, %c0_50] {strides = array<i32: 2, 1>} : memref<1568x128xf32, #tpu.memory_space<vmem>>, vector<14x128xf32>
    %c421 = arith.constant 421 : index
    %c0_51 = arith.constant 0 : index
    %68 = tpu.strided_load %arg5[%c421, %c0_51] {strides = array<i32: 2, 1>} : memref<1568x128xf32, #tpu.memory_space<vmem>>, vector<14x128xf32>
    %69 = arith.maximumf %65, %66 : vector<14x128xf32>
    %70 = arith.maximumf %67, %68 : vector<14x128xf32>
    %71 = arith.maximumf %69, %70 : vector<14x128xf32>
    %c98 = arith.constant 98 : index
    %c0_52 = arith.constant 0 : index
    %72 = vector.load %arg4[%c98, %c0_52] : memref<392x128xf32, #tpu.memory_space<vmem>>, vector<14x128xf32>
    tpu.vector_store %arg4[%c98, %c0_52], %71 {strides = array<i32>} : memref<392x128xf32, #tpu.memory_space<vmem>>, vector<14x128xf32>,
    %c448 = arith.constant 448 : index
    %c0_53 = arith.constant 0 : index
    %73 = tpu.strided_load %arg5[%c448, %c0_53] {strides = array<i32: 2, 1>} : memref<1568x128xf32, #tpu.memory_space<vmem>>, vector<14x128xf32>
    %c449 = arith.constant 449 : index
    %c0_54 = arith.constant 0 : index
    %74 = tpu.strided_load %arg5[%c449, %c0_54] {strides = array<i32: 2, 1>} : memref<1568x128xf32, #tpu.memory_space<vmem>>, vector<14x128xf32>
    %c476 = arith.constant 476 : index
    %c0_55 = arith.constant 0 : index
    %75 = tpu.strided_load %arg5[%c476, %c0_55] {strides = array<i32: 2, 1>} : memref<1568x128xf32, #tpu.memory_space<vmem>>, vector<14x128xf32>
    %c477 = arith.constant 477 : index
    %c0_56 = arith.constant 0 : index
    %76 = tpu.strided_load %arg5[%c477, %c0_56] {strides = array<i32: 2, 1>} : memref<1568x128xf32, #tpu.memory_space<vmem>>, vector<14x128xf32>
    %77 = arith.maximumf %73, %74 : vector<14x128xf32>
    %78 = arith.maximumf %75, %76 : vector<14x128xf32>
    %79 = arith.maximumf %77, %78 : vector<14x128xf32>
    %c112_57 = arith.constant 112 : index
    %c0_58 = arith.constant 0 : index
    %80 = vector.load %arg4[%c112_57, %c0_58] : memref<392x128xf32, #tpu.memory_space<vmem>>, vector<14x128xf32>
    tpu.vector_store %arg4[%c112_57, %c0_58], %79 {strides = array<i32>} : memref<392x128xf32, #tpu.memory_space<vmem>>, vector<14x128xf32>,
    %c504 = arith.constant 504 : index
    %c0_59 = arith.constant 0 : index
    %81 = tpu.strided_load %arg5[%c504, %c0_59] {strides = array<i32: 2, 1>} : memref<1568x128xf32, #tpu.memory_space<vmem>>, vector<14x128xf32>
    %c505 = arith.constant 505 : index
    %c0_60 = arith.constant 0 : index
    %82 = tpu.strided_load %arg5[%c505, %c0_60] {strides = array<i32: 2, 1>} : memref<1568x128xf32, #tpu.memory_space<vmem>>, vector<14x128xf32>
    %c532 = arith.constant 532 : index
    %c0_61 = arith.constant 0 : index
    %83 = tpu.strided_load %arg5[%c532, %c0_61] {strides = array<i32: 2, 1>} : memref<1568x128xf32, #tpu.memory_space<vmem>>, vector<14x128xf32>
    %c533 = arith.constant 533 : index
    %c0_62 = arith.constant 0 : index
    %84 = tpu.strided_load %arg5[%c533, %c0_62] {strides = array<i32: 2, 1>} : memref<1568x128xf32, #tpu.memory_space<vmem>>, vector<14x128xf32>
    %85 = arith.maximumf %81, %82 : vector<14x128xf32>
    %86 = arith.maximumf %83, %84 : vector<14x128xf32>
    %87 = arith.maximumf %85, %86 : vector<14x128xf32>
    %c126 = arith.constant 126 : index
    %c0_63 = arith.constant 0 : index
    %88 = vector.load %arg4[%c126, %c0_63] : memref<392x128xf32, #tpu.memory_space<vmem>>, vector<14x128xf32>
    tpu.vector_store %arg4[%c126, %c0_63], %87 {strides = array<i32>} : memref<392x128xf32, #tpu.memory_space<vmem>>, vector<14x128xf32>,
    %c560 = arith.constant 560 : index
    %c0_64 = arith.constant 0 : index
    %89 = tpu.strided_load %arg5[%c560, %c0_64] {strides = array<i32: 2, 1>} : memref<1568x128xf32, #tpu.memory_space<vmem>>, vector<14x128xf32>
    %c561 = arith.constant 561 : index
    %c0_65 = arith.constant 0 : index
    %90 = tpu.strided_load %arg5[%c561, %c0_65] {strides = array<i32: 2, 1>} : memref<1568x128xf32, #tpu.memory_space<vmem>>, vector<14x128xf32>
    %c588 = arith.constant 588 : index
    %c0_66 = arith.constant 0 : index
    %91 = tpu.strided_load %arg5[%c588, %c0_66] {strides = array<i32: 2, 1>} : memref<1568x128xf32, #tpu.memory_space<vmem>>, vector<14x128xf32>
    %c589 = arith.constant 589 : index
    %c0_67 = arith.constant 0 : index
    %92 = tpu.strided_load %arg5[%c589, %c0_67] {strides = array<i32: 2, 1>} : memref<1568x128xf32, #tpu.memory_space<vmem>>, vector<14x128xf32>
    %93 = arith.maximumf %89, %90 : vector<14x128xf32>
    %94 = arith.maximumf %91, %92 : vector<14x128xf32>
    %95 = arith.maximumf %93, %94 : vector<14x128xf32>
    %c140_68 = arith.constant 140 : index
    %c0_69 = arith.constant 0 : index
    %96 = vector.load %arg4[%c140_68, %c0_69] : memref<392x128xf32, #tpu.memory_space<vmem>>, vector<14x128xf32>
    tpu.vector_store %arg4[%c140_68, %c0_69], %95 {strides = array<i32>} : memref<392x128xf32, #tpu.memory_space<vmem>>, vector<14x128xf32>,
    %c616 = arith.constant 616 : index
    %c0_70 = arith.constant 0 : index
    %97 = tpu.strided_load %arg5[%c616, %c0_70] {strides = array<i32: 2, 1>} : memref<1568x128xf32, #tpu.memory_space<vmem>>, vector<14x128xf32>
    %c617 = arith.constant 617 : index
    %c0_71 = arith.constant 0 : index
    %98 = tpu.strided_load %arg5[%c617, %c0_71] {strides = array<i32: 2, 1>} : memref<1568x128xf32, #tpu.memory_space<vmem>>, vector<14x128xf32>
    %c644 = arith.constant 644 : index
    %c0_72 = arith.constant 0 : index
    %99 = tpu.strided_load %arg5[%c644, %c0_72] {strides = array<i32: 2, 1>} : memref<1568x128xf32, #tpu.memory_space<vmem>>, vector<14x128xf32>
    %c645 = arith.constant 645 : index
    %c0_73 = arith.constant 0 : index
    %100 = tpu.strided_load %arg5[%c645, %c0_73] {strides = array<i32: 2, 1>} : memref<1568x128xf32, #tpu.memory_space<vmem>>, vector<14x128xf32>
    %101 = arith.maximumf %97, %98 : vector<14x128xf32>
    %102 = arith.maximumf %99, %100 : vector<14x128xf32>
    %103 = arith.maximumf %101, %102 : vector<14x128xf32>
    %c154 = arith.constant 154 : index
    %c0_74 = arith.constant 0 : index
    %104 = vector.load %arg4[%c154, %c0_74] : memref<392x128xf32, #tpu.memory_space<vmem>>, vector<14x128xf32>
    tpu.vector_store %arg4[%c154, %c0_74], %103 {strides = array<i32>} : memref<392x128xf32, #tpu.memory_space<vmem>>, vector<14x128xf32>,
    %c672 = arith.constant 672 : index
    %c0_75 = arith.constant 0 : index
    %105 = tpu.strided_load %arg5[%c672, %c0_75] {strides = array<i32: 2, 1>} : memref<1568x128xf32, #tpu.memory_space<vmem>>, vector<14x128xf32>
    %c673 = arith.constant 673 : index
    %c0_76 = arith.constant 0 : index
    %106 = tpu.strided_load %arg5[%c673, %c0_76] {strides = array<i32: 2, 1>} : memref<1568x128xf32, #tpu.memory_space<vmem>>, vector<14x128xf32>
    %c700 = arith.constant 700 : index
    %c0_77 = arith.constant 0 : index
    %107 = tpu.strided_load %arg5[%c700, %c0_77] {strides = array<i32: 2, 1>} : memref<1568x128xf32, #tpu.memory_space<vmem>>, vector<14x128xf32>
    %c701 = arith.constant 701 : index
    %c0_78 = arith.constant 0 : index
    %108 = tpu.strided_load %arg5[%c701, %c0_78] {strides = array<i32: 2, 1>} : memref<1568x128xf32, #tpu.memory_space<vmem>>, vector<14x128xf32>
    %109 = arith.maximumf %105, %106 : vector<14x128xf32>
    %110 = arith.maximumf %107, %108 : vector<14x128xf32>
    %111 = arith.maximumf %109, %110 : vector<14x128xf32>
    %c168_79 = arith.constant 168 : index
    %c0_80 = arith.constant 0 : index
    %112 = vector.load %arg4[%c168_79, %c0_80] : memref<392x128xf32, #tpu.memory_space<vmem>>, vector<14x128xf32>
    tpu.vector_store %arg4[%c168_79, %c0_80], %111 {strides = array<i32>} : memref<392x128xf32, #tpu.memory_space<vmem>>, vector<14x128xf32>,
    %c728 = arith.constant 728 : index
    %c0_81 = arith.constant 0 : index
    %113 = tpu.strided_load %arg5[%c728, %c0_81] {strides = array<i32: 2, 1>} : memref<1568x128xf32, #tpu.memory_space<vmem>>, vector<14x128xf32>
    %c729 = arith.constant 729 : index
    %c0_82 = arith.constant 0 : index
    %114 = tpu.strided_load %arg5[%c729, %c0_82] {strides = array<i32: 2, 1>} : memref<1568x128xf32, #tpu.memory_space<vmem>>, vector<14x128xf32>
    %c756 = arith.constant 756 : index
    %c0_83 = arith.constant 0 : index
    %115 = tpu.strided_load %arg5[%c756, %c0_83] {strides = array<i32: 2, 1>} : memref<1568x128xf32, #tpu.memory_space<vmem>>, vector<14x128xf32>
    %c757 = arith.constant 757 : index
    %c0_84 = arith.constant 0 : index
    %116 = tpu.strided_load %arg5[%c757, %c0_84] {strides = array<i32: 2, 1>} : memref<1568x128xf32, #tpu.memory_space<vmem>>, vector<14x128xf32>
    %117 = arith.maximumf %113, %114 : vector<14x128xf32>
    %118 = arith.maximumf %115, %116 : vector<14x128xf32>
    %119 = arith.maximumf %117, %118 : vector<14x128xf32>
    %c182 = arith.constant 182 : index
    %c0_85 = arith.constant 0 : index
    %120 = vector.load %arg4[%c182, %c0_85] : memref<392x128xf32, #tpu.memory_space<vmem>>, vector<14x128xf32>
    tpu.vector_store %arg4[%c182, %c0_85], %119 {strides = array<i32>} : memref<392x128xf32, #tpu.memory_space<vmem>>, vector<14x128xf32>,
    %c784 = arith.constant 784 : index
    %c0_86 = arith.constant 0 : index
    %121 = tpu.strided_load %arg5[%c784, %c0_86] {strides = array<i32: 2, 1>} : memref<1568x128xf32, #tpu.memory_space<vmem>>, vector<14x128xf32>
    %c785 = arith.constant 785 : index
    %c0_87 = arith.constant 0 : index
    %122 = tpu.strided_load %arg5[%c785, %c0_87] {strides = array<i32: 2, 1>} : memref<1568x128xf32, #tpu.memory_space<vmem>>, vector<14x128xf32>
    %c812 = arith.constant 812 : index
    %c0_88 = arith.constant 0 : index
    %123 = tpu.strided_load %arg5[%c812, %c0_88] {strides = array<i32: 2, 1>} : memref<1568x128xf32, #tpu.memory_space<vmem>>, vector<14x128xf32>
    %c813 = arith.constant 813 : index
    %c0_89 = arith.constant 0 : index
    %124 = tpu.strided_load %arg5[%c813, %c0_89] {strides = array<i32: 2, 1>} : memref<1568x128xf32, #tpu.memory_space<vmem>>, vector<14x128xf32>
    %125 = arith.maximumf %121, %122 : vector<14x128xf32>
    %126 = arith.maximumf %123, %124 : vector<14x128xf32>
    %127 = arith.maximumf %125, %126 : vector<14x128xf32>
    %c196_90 = arith.constant 196 : index
    %c0_91 = arith.constant 0 : index
    %128 = vector.load %arg4[%c196_90, %c0_91] : memref<392x128xf32, #tpu.memory_space<vmem>>, vector<14x128xf32>
    tpu.vector_store %arg4[%c196_90, %c0_91], %127 {strides = array<i32>} : memref<392x128xf32, #tpu.memory_space<vmem>>, vector<14x128xf32>,
    %c840 = arith.constant 840 : index
    %c0_92 = arith.constant 0 : index
    %129 = tpu.strided_load %arg5[%c840, %c0_92] {strides = array<i32: 2, 1>} : memref<1568x128xf32, #tpu.memory_space<vmem>>, vector<14x128xf32>
    %c841 = arith.constant 841 : index
    %c0_93 = arith.constant 0 : index
    %130 = tpu.strided_load %arg5[%c841, %c0_93] {strides = array<i32: 2, 1>} : memref<1568x128xf32, #tpu.memory_space<vmem>>, vector<14x128xf32>
    %c868 = arith.constant 868 : index
    %c0_94 = arith.constant 0 : index
    %131 = tpu.strided_load %arg5[%c868, %c0_94] {strides = array<i32: 2, 1>} : memref<1568x128xf32, #tpu.memory_space<vmem>>, vector<14x128xf32>
    %c869 = arith.constant 869 : index
    %c0_95 = arith.constant 0 : index
    %132 = tpu.strided_load %arg5[%c869, %c0_95] {strides = array<i32: 2, 1>} : memref<1568x128xf32, #tpu.memory_space<vmem>>, vector<14x128xf32>
    %133 = arith.maximumf %129, %130 : vector<14x128xf32>
    %134 = arith.maximumf %131, %132 : vector<14x128xf32>
    %135 = arith.maximumf %133, %134 : vector<14x128xf32>
    %c210 = arith.constant 210 : index
    %c0_96 = arith.constant 0 : index
    %136 = vector.load %arg4[%c210, %c0_96] : memref<392x128xf32, #tpu.memory_space<vmem>>, vector<14x128xf32>
    tpu.vector_store %arg4[%c210, %c0_96], %135 {strides = array<i32>} : memref<392x128xf32, #tpu.memory_space<vmem>>, vector<14x128xf32>,
    %c896 = arith.constant 896 : index
    %c0_97 = arith.constant 0 : index
    %137 = tpu.strided_load %arg5[%c896, %c0_97] {strides = array<i32: 2, 1>} : memref<1568x128xf32, #tpu.memory_space<vmem>>, vector<14x128xf32>
    %c897 = arith.constant 897 : index
    %c0_98 = arith.constant 0 : index
    %138 = tpu.strided_load %arg5[%c897, %c0_98] {strides = array<i32: 2, 1>} : memref<1568x128xf32, #tpu.memory_space<vmem>>, vector<14x128xf32>
    %c924 = arith.constant 924 : index
    %c0_99 = arith.constant 0 : index
    %139 = tpu.strided_load %arg5[%c924, %c0_99] {strides = array<i32: 2, 1>} : memref<1568x128xf32, #tpu.memory_space<vmem>>, vector<14x128xf32>
    %c925 = arith.constant 925 : index
    %c0_100 = arith.constant 0 : index
    %140 = tpu.strided_load %arg5[%c925, %c0_100] {strides = array<i32: 2, 1>} : memref<1568x128xf32, #tpu.memory_space<vmem>>, vector<14x128xf32>
    %141 = arith.maximumf %137, %138 : vector<14x128xf32>
    %142 = arith.maximumf %139, %140 : vector<14x128xf32>
    %143 = arith.maximumf %141, %142 : vector<14x128xf32>
    %c224_101 = arith.constant 224 : index
    %c0_102 = arith.constant 0 : index
    %144 = vector.load %arg4[%c224_101, %c0_102] : memref<392x128xf32, #tpu.memory_space<vmem>>, vector<14x128xf32>
    tpu.vector_store %arg4[%c224_101, %c0_102], %143 {strides = array<i32>} : memref<392x128xf32, #tpu.memory_space<vmem>>, vector<14x128xf32>,
    %c952 = arith.constant 952 : index
    %c0_103 = arith.constant 0 : index
    %145 = tpu.strided_load %arg5[%c952, %c0_103] {strides = array<i32: 2, 1>} : memref<1568x128xf32, #tpu.memory_space<vmem>>, vector<14x128xf32>
    %c953 = arith.constant 953 : index
    %c0_104 = arith.constant 0 : index
    %146 = tpu.strided_load %arg5[%c953, %c0_104] {strides = array<i32: 2, 1>} : memref<1568x128xf32, #tpu.memory_space<vmem>>, vector<14x128xf32>
    %c980 = arith.constant 980 : index
    %c0_105 = arith.constant 0 : index
    %147 = tpu.strided_load %arg5[%c980, %c0_105] {strides = array<i32: 2, 1>} : memref<1568x128xf32, #tpu.memory_space<vmem>>, vector<14x128xf32>
    %c981 = arith.constant 981 : index
    %c0_106 = arith.constant 0 : index
    %148 = tpu.strided_load %arg5[%c981, %c0_106] {strides = array<i32: 2, 1>} : memref<1568x128xf32, #tpu.memory_space<vmem>>, vector<14x128xf32>
    %149 = arith.maximumf %145, %146 : vector<14x128xf32>
    %150 = arith.maximumf %147, %148 : vector<14x128xf32>
    %151 = arith.maximumf %149, %150 : vector<14x128xf32>
    %c238 = arith.constant 238 : index
    %c0_107 = arith.constant 0 : index
    %152 = vector.load %arg4[%c238, %c0_107] : memref<392x128xf32, #tpu.memory_space<vmem>>, vector<14x128xf32>
    tpu.vector_store %arg4[%c238, %c0_107], %151 {strides = array<i32>} : memref<392x128xf32, #tpu.memory_space<vmem>>, vector<14x128xf32>,
    %c1008 = arith.constant 1008 : index
    %c0_108 = arith.constant 0 : index
    %153 = tpu.strided_load %arg5[%c1008, %c0_108] {strides = array<i32: 2, 1>} : memref<1568x128xf32, #tpu.memory_space<vmem>>, vector<14x128xf32>
    %c1009 = arith.constant 1009 : index
    %c0_109 = arith.constant 0 : index
    %154 = tpu.strided_load %arg5[%c1009, %c0_109] {strides = array<i32: 2, 1>} : memref<1568x128xf32, #tpu.memory_space<vmem>>, vector<14x128xf32>
    %c1036 = arith.constant 1036 : index
    %c0_110 = arith.constant 0 : index
    %155 = tpu.strided_load %arg5[%c1036, %c0_110] {strides = array<i32: 2, 1>} : memref<1568x128xf32, #tpu.memory_space<vmem>>, vector<14x128xf32>
    %c1037 = arith.constant 1037 : index
    %c0_111 = arith.constant 0 : index
    %156 = tpu.strided_load %arg5[%c1037, %c0_111] {strides = array<i32: 2, 1>} : memref<1568x128xf32, #tpu.memory_space<vmem>>, vector<14x128xf32>
    %157 = arith.maximumf %153, %154 : vector<14x128xf32>
    %158 = arith.maximumf %155, %156 : vector<14x128xf32>
    %159 = arith.maximumf %157, %158 : vector<14x128xf32>
    %c252_112 = arith.constant 252 : index
    %c0_113 = arith.constant 0 : index
    %160 = vector.load %arg4[%c252_112, %c0_113] : memref<392x128xf32, #tpu.memory_space<vmem>>, vector<14x128xf32>
    tpu.vector_store %arg4[%c252_112, %c0_113], %159 {strides = array<i32>} : memref<392x128xf32, #tpu.memory_space<vmem>>, vector<14x128xf32>,
    %c1064 = arith.constant 1064 : index
    %c0_114 = arith.constant 0 : index
    %161 = tpu.strided_load %arg5[%c1064, %c0_114] {strides = array<i32: 2, 1>} : memref<1568x128xf32, #tpu.memory_space<vmem>>, vector<14x128xf32>
    %c1065 = arith.constant 1065 : index
    %c0_115 = arith.constant 0 : index
    %162 = tpu.strided_load %arg5[%c1065, %c0_115] {strides = array<i32: 2, 1>} : memref<1568x128xf32, #tpu.memory_space<vmem>>, vector<14x128xf32>
    %c1092 = arith.constant 1092 : index
    %c0_116 = arith.constant 0 : index
    %163 = tpu.strided_load %arg5[%c1092, %c0_116] {strides = array<i32: 2, 1>} : memref<1568x128xf32, #tpu.memory_space<vmem>>, vector<14x128xf32>
    %c1093 = arith.constant 1093 : index
    %c0_117 = arith.constant 0 : index
    %164 = tpu.strided_load %arg5[%c1093, %c0_117] {strides = array<i32: 2, 1>} : memref<1568x128xf32, #tpu.memory_space<vmem>>, vector<14x128xf32>
    %165 = arith.maximumf %161, %162 : vector<14x128xf32>
    %166 = arith.maximumf %163, %164 : vector<14x128xf32>
    %167 = arith.maximumf %165, %166 : vector<14x128xf32>
    %c266 = arith.constant 266 : index
    %c0_118 = arith.constant 0 : index
    %168 = vector.load %arg4[%c266, %c0_118] : memref<392x128xf32, #tpu.memory_space<vmem>>, vector<14x128xf32>
    tpu.vector_store %arg4[%c266, %c0_118], %167 {strides = array<i32>} : memref<392x128xf32, #tpu.memory_space<vmem>>, vector<14x128xf32>,
    %c1120 = arith.constant 1120 : index
    %c0_119 = arith.constant 0 : index
    %169 = tpu.strided_load %arg5[%c1120, %c0_119] {strides = array<i32: 2, 1>} : memref<1568x128xf32, #tpu.memory_space<vmem>>, vector<14x128xf32>
    %c1121 = arith.constant 1121 : index
    %c0_120 = arith.constant 0 : index
    %170 = tpu.strided_load %arg5[%c1121, %c0_120] {strides = array<i32: 2, 1>} : memref<1568x128xf32, #tpu.memory_space<vmem>>, vector<14x128xf32>
    %c1148 = arith.constant 1148 : index
    %c0_121 = arith.constant 0 : index
    %171 = tpu.strided_load %arg5[%c1148, %c0_121] {strides = array<i32: 2, 1>} : memref<1568x128xf32, #tpu.memory_space<vmem>>, vector<14x128xf32>
    %c1149 = arith.constant 1149 : index
    %c0_122 = arith.constant 0 : index
    %172 = tpu.strided_load %arg5[%c1149, %c0_122] {strides = array<i32: 2, 1>} : memref<1568x128xf32, #tpu.memory_space<vmem>>, vector<14x128xf32>
    %173 = arith.maximumf %169, %170 : vector<14x128xf32>
    %174 = arith.maximumf %171, %172 : vector<14x128xf32>
    %175 = arith.maximumf %173, %174 : vector<14x128xf32>
    %c280_123 = arith.constant 280 : index
    %c0_124 = arith.constant 0 : index
    %176 = vector.load %arg4[%c280_123, %c0_124] : memref<392x128xf32, #tpu.memory_space<vmem>>, vector<14x128xf32>
    tpu.vector_store %arg4[%c280_123, %c0_124], %175 {strides = array<i32>} : memref<392x128xf32, #tpu.memory_space<vmem>>, vector<14x128xf32>,
    %c1176 = arith.constant 1176 : index
    %c0_125 = arith.constant 0 : index
    %177 = tpu.strided_load %arg5[%c1176, %c0_125] {strides = array<i32: 2, 1>} : memref<1568x128xf32, #tpu.memory_space<vmem>>, vector<14x128xf32>
    %c1177 = arith.constant 1177 : index
    %c0_126 = arith.constant 0 : index
    %178 = tpu.strided_load %arg5[%c1177, %c0_126] {strides = array<i32: 2, 1>} : memref<1568x128xf32, #tpu.memory_space<vmem>>, vector<14x128xf32>
    %c1204 = arith.constant 1204 : index
    %c0_127 = arith.constant 0 : index
    %179 = tpu.strided_load %arg5[%c1204, %c0_127] {strides = array<i32: 2, 1>} : memref<1568x128xf32, #tpu.memory_space<vmem>>, vector<14x128xf32>
    %c1205 = arith.constant 1205 : index
    %c0_128 = arith.constant 0 : index
    %180 = tpu.strided_load %arg5[%c1205, %c0_128] {strides = array<i32: 2, 1>} : memref<1568x128xf32, #tpu.memory_space<vmem>>, vector<14x128xf32>
    %181 = arith.maximumf %177, %178 : vector<14x128xf32>
    %182 = arith.maximumf %179, %180 : vector<14x128xf32>
    %183 = arith.maximumf %181, %182 : vector<14x128xf32>
    %c294 = arith.constant 294 : index
    %c0_129 = arith.constant 0 : index
    %184 = vector.load %arg4[%c294, %c0_129] : memref<392x128xf32, #tpu.memory_space<vmem>>, vector<14x128xf32>
    tpu.vector_store %arg4[%c294, %c0_129], %183 {strides = array<i32>} : memref<392x128xf32, #tpu.memory_space<vmem>>, vector<14x128xf32>,
    %c1232 = arith.constant 1232 : index
    %c0_130 = arith.constant 0 : index
    %185 = tpu.strided_load %arg5[%c1232, %c0_130] {strides = array<i32: 2, 1>} : memref<1568x128xf32, #tpu.memory_space<vmem>>, vector<14x128xf32>
    %c1233 = arith.constant 1233 : index
    %c0_131 = arith.constant 0 : index
    %186 = tpu.strided_load %arg5[%c1233, %c0_131] {strides = array<i32: 2, 1>} : memref<1568x128xf32, #tpu.memory_space<vmem>>, vector<14x128xf32>
    %c1260 = arith.constant 1260 : index
    %c0_132 = arith.constant 0 : index
    %187 = tpu.strided_load %arg5[%c1260, %c0_132] {strides = array<i32: 2, 1>} : memref<1568x128xf32, #tpu.memory_space<vmem>>, vector<14x128xf32>
    %c1261 = arith.constant 1261 : index
    %c0_133 = arith.constant 0 : index
    %188 = tpu.strided_load %arg5[%c1261, %c0_133] {strides = array<i32: 2, 1>} : memref<1568x128xf32, #tpu.memory_space<vmem>>, vector<14x128xf32>
    %189 = arith.maximumf %185, %186 : vector<14x128xf32>
    %190 = arith.maximumf %187, %188 : vector<14x128xf32>
    %191 = arith.maximumf %189, %190 : vector<14x128xf32>
    %c308_134 = arith.constant 308 : index
    %c0_135 = arith.constant 0 : index
    %192 = vector.load %arg4[%c308_134, %c0_135] : memref<392x128xf32, #tpu.memory_space<vmem>>, vector<14x128xf32>
    tpu.vector_store %arg4[%c308_134, %c0_135], %191 {strides = array<i32>} : memref<392x128xf32, #tpu.memory_space<vmem>>, vector<14x128xf32>,
    %c1288 = arith.constant 1288 : index
    %c0_136 = arith.constant 0 : index
    %193 = tpu.strided_load %arg5[%c1288, %c0_136] {strides = array<i32: 2, 1>} : memref<1568x128xf32, #tpu.memory_space<vmem>>, vector<14x128xf32>
    %c1289 = arith.constant 1289 : index
    %c0_137 = arith.constant 0 : index
    %194 = tpu.strided_load %arg5[%c1289, %c0_137] {strides = array<i32: 2, 1>} : memref<1568x128xf32, #tpu.memory_space<vmem>>, vector<14x128xf32>
    %c1316 = arith.constant 1316 : index
    %c0_138 = arith.constant 0 : index
    %195 = tpu.strided_load %arg5[%c1316, %c0_138] {strides = array<i32: 2, 1>} : memref<1568x128xf32, #tpu.memory_space<vmem>>, vector<14x128xf32>
    %c1317 = arith.constant 1317 : index
    %c0_139 = arith.constant 0 : index
    %196 = tpu.strided_load %arg5[%c1317, %c0_139] {strides = array<i32: 2, 1>} : memref<1568x128xf32, #tpu.memory_space<vmem>>, vector<14x128xf32>
    %197 = arith.maximumf %193, %194 : vector<14x128xf32>
    %198 = arith.maximumf %195, %196 : vector<14x128xf32>
    %199 = arith.maximumf %197, %198 : vector<14x128xf32>
    %c322 = arith.constant 322 : index
    %c0_140 = arith.constant 0 : index
    %200 = vector.load %arg4[%c322, %c0_140] : memref<392x128xf32, #tpu.memory_space<vmem>>, vector<14x128xf32>
    tpu.vector_store %arg4[%c322, %c0_140], %199 {strides = array<i32>} : memref<392x128xf32, #tpu.memory_space<vmem>>, vector<14x128xf32>,
    %c1344 = arith.constant 1344 : index
    %c0_141 = arith.constant 0 : index
    %201 = tpu.strided_load %arg5[%c1344, %c0_141] {strides = array<i32: 2, 1>} : memref<1568x128xf32, #tpu.memory_space<vmem>>, vector<14x128xf32>
    %c1345 = arith.constant 1345 : index
    %c0_142 = arith.constant 0 : index
    %202 = tpu.strided_load %arg5[%c1345, %c0_142] {strides = array<i32: 2, 1>} : memref<1568x128xf32, #tpu.memory_space<vmem>>, vector<14x128xf32>
    %c1372 = arith.constant 1372 : index
    %c0_143 = arith.constant 0 : index
    %203 = tpu.strided_load %arg5[%c1372, %c0_143] {strides = array<i32: 2, 1>} : memref<1568x128xf32, #tpu.memory_space<vmem>>, vector<14x128xf32>
    %c1373 = arith.constant 1373 : index
    %c0_144 = arith.constant 0 : index
    %204 = tpu.strided_load %arg5[%c1373, %c0_144] {strides = array<i32: 2, 1>} : memref<1568x128xf32, #tpu.memory_space<vmem>>, vector<14x128xf32>
    %205 = arith.maximumf %201, %202 : vector<14x128xf32>
    %206 = arith.maximumf %203, %204 : vector<14x128xf32>
    %207 = arith.maximumf %205, %206 : vector<14x128xf32>
    %c336_145 = arith.constant 336 : index
    %c0_146 = arith.constant 0 : index
    %208 = vector.load %arg4[%c336_145, %c0_146] : memref<392x128xf32, #tpu.memory_space<vmem>>, vector<14x128xf32>
    tpu.vector_store %arg4[%c336_145, %c0_146], %207 {strides = array<i32>} : memref<392x128xf32, #tpu.memory_space<vmem>>, vector<14x128xf32>,
    %c1400 = arith.constant 1400 : index
    %c0_147 = arith.constant 0 : index
    %209 = tpu.strided_load %arg5[%c1400, %c0_147] {strides = array<i32: 2, 1>} : memref<1568x128xf32, #tpu.memory_space<vmem>>, vector<14x128xf32>
    %c1401 = arith.constant 1401 : index
    %c0_148 = arith.constant 0 : index
    %210 = tpu.strided_load %arg5[%c1401, %c0_148] {strides = array<i32: 2, 1>} : memref<1568x128xf32, #tpu.memory_space<vmem>>, vector<14x128xf32>
    %c1428 = arith.constant 1428 : index
    %c0_149 = arith.constant 0 : index
    %211 = tpu.strided_load %arg5[%c1428, %c0_149] {strides = array<i32: 2, 1>} : memref<1568x128xf32, #tpu.memory_space<vmem>>, vector<14x128xf32>
    %c1429 = arith.constant 1429 : index
    %c0_150 = arith.constant 0 : index
    %212 = tpu.strided_load %arg5[%c1429, %c0_150] {strides = array<i32: 2, 1>} : memref<1568x128xf32, #tpu.memory_space<vmem>>, vector<14x128xf32>
    %213 = arith.maximumf %209, %210 : vector<14x128xf32>
    %214 = arith.maximumf %211, %212 : vector<14x128xf32>
    %215 = arith.maximumf %213, %214 : vector<14x128xf32>
    %c350 = arith.constant 350 : index
    %c0_151 = arith.constant 0 : index
    %216 = vector.load %arg4[%c350, %c0_151] : memref<392x128xf32, #tpu.memory_space<vmem>>, vector<14x128xf32>
    tpu.vector_store %arg4[%c350, %c0_151], %215 {strides = array<i32>} : memref<392x128xf32, #tpu.memory_space<vmem>>, vector<14x128xf32>,
    %c1456 = arith.constant 1456 : index
    %c0_152 = arith.constant 0 : index
    %217 = tpu.strided_load %arg5[%c1456, %c0_152] {strides = array<i32: 2, 1>} : memref<1568x128xf32, #tpu.memory_space<vmem>>, vector<14x128xf32>
    %c1457 = arith.constant 1457 : index
    %c0_153 = arith.constant 0 : index
    %218 = tpu.strided_load %arg5[%c1457, %c0_153] {strides = array<i32: 2, 1>} : memref<1568x128xf32, #tpu.memory_space<vmem>>, vector<14x128xf32>
    %c1484 = arith.constant 1484 : index
    %c0_154 = arith.constant 0 : index
    %219 = tpu.strided_load %arg5[%c1484, %c0_154] {strides = array<i32: 2, 1>} : memref<1568x128xf32, #tpu.memory_space<vmem>>, vector<14x128xf32>
    %c1485 = arith.constant 1485 : index
    %c0_155 = arith.constant 0 : index
    %220 = tpu.strided_load %arg5[%c1485, %c0_155] {strides = array<i32: 2, 1>} : memref<1568x128xf32, #tpu.memory_space<vmem>>, vector<14x128xf32>
    %221 = arith.maximumf %217, %218 : vector<14x128xf32>
    %222 = arith.maximumf %219, %220 : vector<14x128xf32>
    %223 = arith.maximumf %221, %222 : vector<14x128xf32>
    %c364_156 = arith.constant 364 : index
    %c0_157 = arith.constant 0 : index
    %224 = vector.load %arg4[%c364_156, %c0_157] : memref<392x128xf32, #tpu.memory_space<vmem>>, vector<14x128xf32>
    tpu.vector_store %arg4[%c364_156, %c0_157], %223 {strides = array<i32>} : memref<392x128xf32, #tpu.memory_space<vmem>>, vector<14x128xf32>,
    %c1512 = arith.constant 1512 : index
    %c0_158 = arith.constant 0 : index
    %225 = tpu.strided_load %arg5[%c1512, %c0_158] {strides = array<i32: 2, 1>} : memref<1568x128xf32, #tpu.memory_space<vmem>>, vector<14x128xf32>
    %c1513 = arith.constant 1513 : index
    %c0_159 = arith.constant 0 : index
    %226 = tpu.strided_load %arg5[%c1513, %c0_159] {strides = array<i32: 2, 1>} : memref<1568x128xf32, #tpu.memory_space<vmem>>, vector<14x128xf32>
    %c1540 = arith.constant 1540 : index
    %c0_160 = arith.constant 0 : index
    %227 = tpu.strided_load %arg5[%c1540, %c0_160] {strides = array<i32: 2, 1>} : memref<1568x128xf32, #tpu.memory_space<vmem>>, vector<14x128xf32>
    %c1541 = arith.constant 1541 : index
    %c0_161 = arith.constant 0 : index
    %228 = tpu.strided_load %arg5[%c1541, %c0_161] {strides = array<i32: 2, 1>} : memref<1568x128xf32, #tpu.memory_space<vmem>>, vector<14x128xf32>
    %229 = arith.maximumf %225, %226 : vector<14x128xf32>
    %230 = arith.maximumf %227, %228 : vector<14x128xf32>
    %231 = arith.maximumf %229, %230 : vector<14x128xf32>
    %c378 = arith.constant 378 : index
    %c0_162 = arith.constant 0 : index
    %232 = vector.load %arg4[%c378, %c0_162] : memref<392x128xf32, #tpu.memory_space<vmem>>, vector<14x128xf32>
    tpu.vector_store %arg4[%c378, %c0_162], %231 {strides = array<i32>} : memref<392x128xf32, #tpu.memory_space<vmem>>, vector<14x128xf32>,
    return
  }
  func.func @transform_0(%arg0: i32) -> (i32, i32) {
    %c0_i32 = arith.constant 0 : i32
    %c0_i32_0 = arith.constant 0 : i32
    %c0_i32_1 = arith.constant 0 : i32
    return %c0_i32, %c0_i32_0 : i32, i32
  }
  func.func @transform_1(%arg0: i32) -> (i32, i32) {
    %c0_i32 = arith.constant 0 : i32
    %c0_i32_0 = arith.constant 0 : i32
    %c0_i32_1 = arith.constant 0 : i32
    return %c0_i32, %c0_i32_0 : i32, i32
  }
  func.func @transform_2(%arg0: i32) -> (i32, i32) {
    %c0_i32 = arith.constant 0 : i32
    %c0_i32_0 = arith.constant 0 : i32
    %c0_i32_1 = arith.constant 0 : i32
    return %c0_i32, %c0_i32_0 : i32, i32
  }
  func.func @transform_3(%arg0: i32) -> (i32, i32) {
    %c0_i32 = arith.constant 0 : i32
    %c0_i32_0 = arith.constant 0 : i32
    %c0_i32_1 = arith.constant 0 : i32
    return %c0_i32, %c0_i32_0 : i32, i32
  }
}

module attributes {stable_mosaic.version = 11 : i64} {
  func.func @_conv_pool_kernel(%arg0: i32, %arg1: memref<200x256xbf16, #tpu.memory_space<vmem>>, %arg2: memref<256x128xbf16, #tpu.memory_space<vmem>>, %arg3: memref<1x128xf32, #tpu.memory_space<vmem>>, %arg4: memref<50x128xf32, #tpu.memory_space<vmem>>, %arg5: memref<200x128xf32, #tpu.memory_space<vmem>>) attributes {dimension_semantics = [#tpu.dimension_semantics<arbitrary>], iteration_bounds = array<i64: 1>, scalar_prefetch = 0 : i64, scratch_operands = 1 : i64, tpu.core_type = #tpu.core_type<tc>, window_params = [{pipeline_mode = #tpu.pipeline_mode<synchronous>, transform_indices = @transform_0, window_bounds = array<i64: 200, 256>}, {pipeline_mode = #tpu.pipeline_mode<synchronous>, transform_indices = @transform_1, window_bounds = array<i64: 256, 128>}, {pipeline_mode = #tpu.pipeline_mode<synchronous>, transform_indices = @transform_2, window_bounds = array<i64: 1, 128>}, {pipeline_mode = #tpu.pipeline_mode<synchronous>, transform_indices = @transform_3, window_bounds = array<i64: 50, 128>}]} {
    %c0 = arith.constant 0 : index
    %c0_0 = arith.constant 0 : index
    %0 = vector.load %arg1[%c0, %c0_0] : memref<200x256xbf16, #tpu.memory_space<vmem>>, vector<200x256xbf16>
    %c0_1 = arith.constant 0 : index
    %c0_2 = arith.constant 0 : index
    %1 = vector.load %arg2[%c0_1, %c0_2] : memref<256x128xbf16, #tpu.memory_space<vmem>>, vector<256x128xbf16>
    %cst = arith.constant dense<0.000000e+00> : vector<200x128xf32>
    %2 = tpu.matmul %0, %1, %cst {dimension_numbers = #tpu.dot_dimension_numbers<[1], [0], [0], [1], [0, 0, 1, 1], [], []>} : vector<200x256xbf16>, vector<256x128xbf16>, vector<200x128xf32> -> vector<200x128xf32>
    %c0_3 = arith.constant 0 : index
    %c0_4 = arith.constant 0 : index
    %3 = vector.load %arg3[%c0_3, %c0_4] : memref<1x128xf32, #tpu.memory_space<vmem>>, vector<1x128xf32>
    %4 = vector.broadcast %3 : vector<1x128xf32> to vector<200x128xf32>
    %5 = arith.addf %2, %4 : vector<200x128xf32>
    %cst_5 = arith.constant 0.000000e+00 : f32
    %6 = vector.broadcast %cst_5 : f32 to vector<200x128xf32>
    %7 = arith.maximumf %5, %6 : vector<200x128xf32>
    %c0_6 = arith.constant 0 : index
    %c0_7 = arith.constant 0 : index
    %8 = vector.load %arg5[%c0_6, %c0_7] : memref<200x128xf32, #tpu.memory_space<vmem>>, vector<200x128xf32>
    tpu.vector_store %arg5[%c0_6, %c0_7], %7 {strides = array<i32>} : memref<200x128xf32, #tpu.memory_space<vmem>>, vector<200x128xf32>,
    %c0_8 = arith.constant 0 : index
    %c0_9 = arith.constant 0 : index
    %9 = tpu.strided_load %arg5[%c0_8, %c0_9] {strides = array<i32: 2, 1>} : memref<200x128xf32, #tpu.memory_space<vmem>>, vector<5x128xf32>
    %c1 = arith.constant 1 : index
    %c0_10 = arith.constant 0 : index
    %10 = tpu.strided_load %arg5[%c1, %c0_10] {strides = array<i32: 2, 1>} : memref<200x128xf32, #tpu.memory_space<vmem>>, vector<5x128xf32>
    %c10 = arith.constant 10 : index
    %c0_11 = arith.constant 0 : index
    %11 = tpu.strided_load %arg5[%c10, %c0_11] {strides = array<i32: 2, 1>} : memref<200x128xf32, #tpu.memory_space<vmem>>, vector<5x128xf32>
    %c11 = arith.constant 11 : index
    %c0_12 = arith.constant 0 : index
    %12 = tpu.strided_load %arg5[%c11, %c0_12] {strides = array<i32: 2, 1>} : memref<200x128xf32, #tpu.memory_space<vmem>>, vector<5x128xf32>
    %13 = arith.maximumf %9, %10 : vector<5x128xf32>
    %14 = arith.maximumf %11, %12 : vector<5x128xf32>
    %15 = arith.maximumf %13, %14 : vector<5x128xf32>
    %c0_13 = arith.constant 0 : index
    %c0_14 = arith.constant 0 : index
    %16 = vector.load %arg4[%c0_13, %c0_14] : memref<50x128xf32, #tpu.memory_space<vmem>>, vector<5x128xf32>
    tpu.vector_store %arg4[%c0_13, %c0_14], %15 {strides = array<i32>} : memref<50x128xf32, #tpu.memory_space<vmem>>, vector<5x128xf32>,
    %c20 = arith.constant 20 : index
    %c0_15 = arith.constant 0 : index
    %17 = tpu.strided_load %arg5[%c20, %c0_15] {strides = array<i32: 2, 1>} : memref<200x128xf32, #tpu.memory_space<vmem>>, vector<5x128xf32>
    %c21 = arith.constant 21 : index
    %c0_16 = arith.constant 0 : index
    %18 = tpu.strided_load %arg5[%c21, %c0_16] {strides = array<i32: 2, 1>} : memref<200x128xf32, #tpu.memory_space<vmem>>, vector<5x128xf32>
    %c30 = arith.constant 30 : index
    %c0_17 = arith.constant 0 : index
    %19 = tpu.strided_load %arg5[%c30, %c0_17] {strides = array<i32: 2, 1>} : memref<200x128xf32, #tpu.memory_space<vmem>>, vector<5x128xf32>
    %c31 = arith.constant 31 : index
    %c0_18 = arith.constant 0 : index
    %20 = tpu.strided_load %arg5[%c31, %c0_18] {strides = array<i32: 2, 1>} : memref<200x128xf32, #tpu.memory_space<vmem>>, vector<5x128xf32>
    %21 = arith.maximumf %17, %18 : vector<5x128xf32>
    %22 = arith.maximumf %19, %20 : vector<5x128xf32>
    %23 = arith.maximumf %21, %22 : vector<5x128xf32>
    %c5 = arith.constant 5 : index
    %c0_19 = arith.constant 0 : index
    %24 = vector.load %arg4[%c5, %c0_19] : memref<50x128xf32, #tpu.memory_space<vmem>>, vector<5x128xf32>
    tpu.vector_store %arg4[%c5, %c0_19], %23 {strides = array<i32>} : memref<50x128xf32, #tpu.memory_space<vmem>>, vector<5x128xf32>,
    %c40 = arith.constant 40 : index
    %c0_20 = arith.constant 0 : index
    %25 = tpu.strided_load %arg5[%c40, %c0_20] {strides = array<i32: 2, 1>} : memref<200x128xf32, #tpu.memory_space<vmem>>, vector<5x128xf32>
    %c41 = arith.constant 41 : index
    %c0_21 = arith.constant 0 : index
    %26 = tpu.strided_load %arg5[%c41, %c0_21] {strides = array<i32: 2, 1>} : memref<200x128xf32, #tpu.memory_space<vmem>>, vector<5x128xf32>
    %c50 = arith.constant 50 : index
    %c0_22 = arith.constant 0 : index
    %27 = tpu.strided_load %arg5[%c50, %c0_22] {strides = array<i32: 2, 1>} : memref<200x128xf32, #tpu.memory_space<vmem>>, vector<5x128xf32>
    %c51 = arith.constant 51 : index
    %c0_23 = arith.constant 0 : index
    %28 = tpu.strided_load %arg5[%c51, %c0_23] {strides = array<i32: 2, 1>} : memref<200x128xf32, #tpu.memory_space<vmem>>, vector<5x128xf32>
    %29 = arith.maximumf %25, %26 : vector<5x128xf32>
    %30 = arith.maximumf %27, %28 : vector<5x128xf32>
    %31 = arith.maximumf %29, %30 : vector<5x128xf32>
    %c10_24 = arith.constant 10 : index
    %c0_25 = arith.constant 0 : index
    %32 = vector.load %arg4[%c10_24, %c0_25] : memref<50x128xf32, #tpu.memory_space<vmem>>, vector<5x128xf32>
    tpu.vector_store %arg4[%c10_24, %c0_25], %31 {strides = array<i32>} : memref<50x128xf32, #tpu.memory_space<vmem>>, vector<5x128xf32>,
    %c60 = arith.constant 60 : index
    %c0_26 = arith.constant 0 : index
    %33 = tpu.strided_load %arg5[%c60, %c0_26] {strides = array<i32: 2, 1>} : memref<200x128xf32, #tpu.memory_space<vmem>>, vector<5x128xf32>
    %c61 = arith.constant 61 : index
    %c0_27 = arith.constant 0 : index
    %34 = tpu.strided_load %arg5[%c61, %c0_27] {strides = array<i32: 2, 1>} : memref<200x128xf32, #tpu.memory_space<vmem>>, vector<5x128xf32>
    %c70 = arith.constant 70 : index
    %c0_28 = arith.constant 0 : index
    %35 = tpu.strided_load %arg5[%c70, %c0_28] {strides = array<i32: 2, 1>} : memref<200x128xf32, #tpu.memory_space<vmem>>, vector<5x128xf32>
    %c71 = arith.constant 71 : index
    %c0_29 = arith.constant 0 : index
    %36 = tpu.strided_load %arg5[%c71, %c0_29] {strides = array<i32: 2, 1>} : memref<200x128xf32, #tpu.memory_space<vmem>>, vector<5x128xf32>
    %37 = arith.maximumf %33, %34 : vector<5x128xf32>
    %38 = arith.maximumf %35, %36 : vector<5x128xf32>
    %39 = arith.maximumf %37, %38 : vector<5x128xf32>
    %c15 = arith.constant 15 : index
    %c0_30 = arith.constant 0 : index
    %40 = vector.load %arg4[%c15, %c0_30] : memref<50x128xf32, #tpu.memory_space<vmem>>, vector<5x128xf32>
    tpu.vector_store %arg4[%c15, %c0_30], %39 {strides = array<i32>} : memref<50x128xf32, #tpu.memory_space<vmem>>, vector<5x128xf32>,
    %c80 = arith.constant 80 : index
    %c0_31 = arith.constant 0 : index
    %41 = tpu.strided_load %arg5[%c80, %c0_31] {strides = array<i32: 2, 1>} : memref<200x128xf32, #tpu.memory_space<vmem>>, vector<5x128xf32>
    %c81 = arith.constant 81 : index
    %c0_32 = arith.constant 0 : index
    %42 = tpu.strided_load %arg5[%c81, %c0_32] {strides = array<i32: 2, 1>} : memref<200x128xf32, #tpu.memory_space<vmem>>, vector<5x128xf32>
    %c90 = arith.constant 90 : index
    %c0_33 = arith.constant 0 : index
    %43 = tpu.strided_load %arg5[%c90, %c0_33] {strides = array<i32: 2, 1>} : memref<200x128xf32, #tpu.memory_space<vmem>>, vector<5x128xf32>
    %c91 = arith.constant 91 : index
    %c0_34 = arith.constant 0 : index
    %44 = tpu.strided_load %arg5[%c91, %c0_34] {strides = array<i32: 2, 1>} : memref<200x128xf32, #tpu.memory_space<vmem>>, vector<5x128xf32>
    %45 = arith.maximumf %41, %42 : vector<5x128xf32>
    %46 = arith.maximumf %43, %44 : vector<5x128xf32>
    %47 = arith.maximumf %45, %46 : vector<5x128xf32>
    %c20_35 = arith.constant 20 : index
    %c0_36 = arith.constant 0 : index
    %48 = vector.load %arg4[%c20_35, %c0_36] : memref<50x128xf32, #tpu.memory_space<vmem>>, vector<5x128xf32>
    tpu.vector_store %arg4[%c20_35, %c0_36], %47 {strides = array<i32>} : memref<50x128xf32, #tpu.memory_space<vmem>>, vector<5x128xf32>,
    %c100 = arith.constant 100 : index
    %c0_37 = arith.constant 0 : index
    %49 = tpu.strided_load %arg5[%c100, %c0_37] {strides = array<i32: 2, 1>} : memref<200x128xf32, #tpu.memory_space<vmem>>, vector<5x128xf32>
    %c101 = arith.constant 101 : index
    %c0_38 = arith.constant 0 : index
    %50 = tpu.strided_load %arg5[%c101, %c0_38] {strides = array<i32: 2, 1>} : memref<200x128xf32, #tpu.memory_space<vmem>>, vector<5x128xf32>
    %c110 = arith.constant 110 : index
    %c0_39 = arith.constant 0 : index
    %51 = tpu.strided_load %arg5[%c110, %c0_39] {strides = array<i32: 2, 1>} : memref<200x128xf32, #tpu.memory_space<vmem>>, vector<5x128xf32>
    %c111 = arith.constant 111 : index
    %c0_40 = arith.constant 0 : index
    %52 = tpu.strided_load %arg5[%c111, %c0_40] {strides = array<i32: 2, 1>} : memref<200x128xf32, #tpu.memory_space<vmem>>, vector<5x128xf32>
    %53 = arith.maximumf %49, %50 : vector<5x128xf32>
    %54 = arith.maximumf %51, %52 : vector<5x128xf32>
    %55 = arith.maximumf %53, %54 : vector<5x128xf32>
    %c25 = arith.constant 25 : index
    %c0_41 = arith.constant 0 : index
    %56 = vector.load %arg4[%c25, %c0_41] : memref<50x128xf32, #tpu.memory_space<vmem>>, vector<5x128xf32>
    tpu.vector_store %arg4[%c25, %c0_41], %55 {strides = array<i32>} : memref<50x128xf32, #tpu.memory_space<vmem>>, vector<5x128xf32>,
    %c120 = arith.constant 120 : index
    %c0_42 = arith.constant 0 : index
    %57 = tpu.strided_load %arg5[%c120, %c0_42] {strides = array<i32: 2, 1>} : memref<200x128xf32, #tpu.memory_space<vmem>>, vector<5x128xf32>
    %c121 = arith.constant 121 : index
    %c0_43 = arith.constant 0 : index
    %58 = tpu.strided_load %arg5[%c121, %c0_43] {strides = array<i32: 2, 1>} : memref<200x128xf32, #tpu.memory_space<vmem>>, vector<5x128xf32>
    %c130 = arith.constant 130 : index
    %c0_44 = arith.constant 0 : index
    %59 = tpu.strided_load %arg5[%c130, %c0_44] {strides = array<i32: 2, 1>} : memref<200x128xf32, #tpu.memory_space<vmem>>, vector<5x128xf32>
    %c131 = arith.constant 131 : index
    %c0_45 = arith.constant 0 : index
    %60 = tpu.strided_load %arg5[%c131, %c0_45] {strides = array<i32: 2, 1>} : memref<200x128xf32, #tpu.memory_space<vmem>>, vector<5x128xf32>
    %61 = arith.maximumf %57, %58 : vector<5x128xf32>
    %62 = arith.maximumf %59, %60 : vector<5x128xf32>
    %63 = arith.maximumf %61, %62 : vector<5x128xf32>
    %c30_46 = arith.constant 30 : index
    %c0_47 = arith.constant 0 : index
    %64 = vector.load %arg4[%c30_46, %c0_47] : memref<50x128xf32, #tpu.memory_space<vmem>>, vector<5x128xf32>
    tpu.vector_store %arg4[%c30_46, %c0_47], %63 {strides = array<i32>} : memref<50x128xf32, #tpu.memory_space<vmem>>, vector<5x128xf32>,
    %c140 = arith.constant 140 : index
    %c0_48 = arith.constant 0 : index
    %65 = tpu.strided_load %arg5[%c140, %c0_48] {strides = array<i32: 2, 1>} : memref<200x128xf32, #tpu.memory_space<vmem>>, vector<5x128xf32>
    %c141 = arith.constant 141 : index
    %c0_49 = arith.constant 0 : index
    %66 = tpu.strided_load %arg5[%c141, %c0_49] {strides = array<i32: 2, 1>} : memref<200x128xf32, #tpu.memory_space<vmem>>, vector<5x128xf32>
    %c150 = arith.constant 150 : index
    %c0_50 = arith.constant 0 : index
    %67 = tpu.strided_load %arg5[%c150, %c0_50] {strides = array<i32: 2, 1>} : memref<200x128xf32, #tpu.memory_space<vmem>>, vector<5x128xf32>
    %c151 = arith.constant 151 : index
    %c0_51 = arith.constant 0 : index
    %68 = tpu.strided_load %arg5[%c151, %c0_51] {strides = array<i32: 2, 1>} : memref<200x128xf32, #tpu.memory_space<vmem>>, vector<5x128xf32>
    %69 = arith.maximumf %65, %66 : vector<5x128xf32>
    %70 = arith.maximumf %67, %68 : vector<5x128xf32>
    %71 = arith.maximumf %69, %70 : vector<5x128xf32>
    %c35 = arith.constant 35 : index
    %c0_52 = arith.constant 0 : index
    %72 = vector.load %arg4[%c35, %c0_52] : memref<50x128xf32, #tpu.memory_space<vmem>>, vector<5x128xf32>
    tpu.vector_store %arg4[%c35, %c0_52], %71 {strides = array<i32>} : memref<50x128xf32, #tpu.memory_space<vmem>>, vector<5x128xf32>,
    %c160 = arith.constant 160 : index
    %c0_53 = arith.constant 0 : index
    %73 = tpu.strided_load %arg5[%c160, %c0_53] {strides = array<i32: 2, 1>} : memref<200x128xf32, #tpu.memory_space<vmem>>, vector<5x128xf32>
    %c161 = arith.constant 161 : index
    %c0_54 = arith.constant 0 : index
    %74 = tpu.strided_load %arg5[%c161, %c0_54] {strides = array<i32: 2, 1>} : memref<200x128xf32, #tpu.memory_space<vmem>>, vector<5x128xf32>
    %c170 = arith.constant 170 : index
    %c0_55 = arith.constant 0 : index
    %75 = tpu.strided_load %arg5[%c170, %c0_55] {strides = array<i32: 2, 1>} : memref<200x128xf32, #tpu.memory_space<vmem>>, vector<5x128xf32>
    %c171 = arith.constant 171 : index
    %c0_56 = arith.constant 0 : index
    %76 = tpu.strided_load %arg5[%c171, %c0_56] {strides = array<i32: 2, 1>} : memref<200x128xf32, #tpu.memory_space<vmem>>, vector<5x128xf32>
    %77 = arith.maximumf %73, %74 : vector<5x128xf32>
    %78 = arith.maximumf %75, %76 : vector<5x128xf32>
    %79 = arith.maximumf %77, %78 : vector<5x128xf32>
    %c40_57 = arith.constant 40 : index
    %c0_58 = arith.constant 0 : index
    %80 = vector.load %arg4[%c40_57, %c0_58] : memref<50x128xf32, #tpu.memory_space<vmem>>, vector<5x128xf32>
    tpu.vector_store %arg4[%c40_57, %c0_58], %79 {strides = array<i32>} : memref<50x128xf32, #tpu.memory_space<vmem>>, vector<5x128xf32>,
    %c180 = arith.constant 180 : index
    %c0_59 = arith.constant 0 : index
    %81 = tpu.strided_load %arg5[%c180, %c0_59] {strides = array<i32: 2, 1>} : memref<200x128xf32, #tpu.memory_space<vmem>>, vector<5x128xf32>
    %c181 = arith.constant 181 : index
    %c0_60 = arith.constant 0 : index
    %82 = tpu.strided_load %arg5[%c181, %c0_60] {strides = array<i32: 2, 1>} : memref<200x128xf32, #tpu.memory_space<vmem>>, vector<5x128xf32>
    %c190 = arith.constant 190 : index
    %c0_61 = arith.constant 0 : index
    %83 = tpu.strided_load %arg5[%c190, %c0_61] {strides = array<i32: 2, 1>} : memref<200x128xf32, #tpu.memory_space<vmem>>, vector<5x128xf32>
    %c191 = arith.constant 191 : index
    %c0_62 = arith.constant 0 : index
    %84 = tpu.strided_load %arg5[%c191, %c0_62] {strides = array<i32: 2, 1>} : memref<200x128xf32, #tpu.memory_space<vmem>>, vector<5x128xf32>
    %85 = arith.maximumf %81, %82 : vector<5x128xf32>
    %86 = arith.maximumf %83, %84 : vector<5x128xf32>
    %87 = arith.maximumf %85, %86 : vector<5x128xf32>
    %c45 = arith.constant 45 : index
    %c0_63 = arith.constant 0 : index
    %88 = vector.load %arg4[%c45, %c0_63] : memref<50x128xf32, #tpu.memory_space<vmem>>, vector<5x128xf32>
    tpu.vector_store %arg4[%c45, %c0_63], %87 {strides = array<i32>} : memref<50x128xf32, #tpu.memory_space<vmem>>, vector<5x128xf32>,
    return
  }
  func.func @transform_0(%arg0: i32) -> (i32, i32) {
    %c0_i32 = arith.constant 0 : i32
    %c0_i32_0 = arith.constant 0 : i32
    %c0_i32_1 = arith.constant 0 : i32
    return %c0_i32, %c0_i32_0 : i32, i32
  }
  func.func @transform_1(%arg0: i32) -> (i32, i32) {
    %c0_i32 = arith.constant 0 : i32
    %c0_i32_0 = arith.constant 0 : i32
    %c0_i32_1 = arith.constant 0 : i32
    return %c0_i32, %c0_i32_0 : i32, i32
  }
  func.func @transform_2(%arg0: i32) -> (i32, i32) {
    %c0_i32 = arith.constant 0 : i32
    %c0_i32_0 = arith.constant 0 : i32
    %c0_i32_1 = arith.constant 0 : i32
    return %c0_i32, %c0_i32_0 : i32, i32
  }
  func.func @transform_3(%arg0: i32) -> (i32, i32) {
    %c0_i32 = arith.constant 0 : i32
    %c0_i32_0 = arith.constant 0 : i32
    %c0_i32_1 = arith.constant 0 : i32
    return %c0_i32, %c0_i32_0 : i32, i32
  }
}

module attributes {stable_mosaic.version = 11 : i64} {
  func.func @_fc_chain_kernel(%arg0: i32, %arg1: memref<2x512xbf16, #tpu.memory_space<vmem>>, %arg2: memref<512x128xbf16, #tpu.memory_space<vmem>>, %arg3: memref<1x128xf32, #tpu.memory_space<vmem>>, %arg4: memref<128x128xbf16, #tpu.memory_space<vmem>>, %arg5: memref<1x128xf32, #tpu.memory_space<vmem>>, %arg6: memref<128x128xbf16, #tpu.memory_space<vmem>>, %arg7: memref<1x128xf32, #tpu.memory_space<vmem>>, %arg8: memref<2x128xf32, #tpu.memory_space<vmem>>) attributes {dimension_semantics = [#tpu.dimension_semantics<arbitrary>], iteration_bounds = array<i64: 1>, scalar_prefetch = 0 : i64, scratch_operands = 0 : i64, tpu.core_type = #tpu.core_type<tc>, window_params = [{pipeline_mode = #tpu.pipeline_mode<synchronous>, transform_indices = @transform_0, window_bounds = array<i64: 2, 512>}, {pipeline_mode = #tpu.pipeline_mode<synchronous>, transform_indices = @transform_1, window_bounds = array<i64: 512, 128>}, {pipeline_mode = #tpu.pipeline_mode<synchronous>, transform_indices = @transform_2, window_bounds = array<i64: 1, 128>}, {pipeline_mode = #tpu.pipeline_mode<synchronous>, transform_indices = @transform_3, window_bounds = array<i64: 128, 128>}, {pipeline_mode = #tpu.pipeline_mode<synchronous>, transform_indices = @transform_4, window_bounds = array<i64: 1, 128>}, {pipeline_mode = #tpu.pipeline_mode<synchronous>, transform_indices = @transform_5, window_bounds = array<i64: 128, 128>}, {pipeline_mode = #tpu.pipeline_mode<synchronous>, transform_indices = @transform_6, window_bounds = array<i64: 1, 128>}, {pipeline_mode = #tpu.pipeline_mode<synchronous>, transform_indices = @transform_7, window_bounds = array<i64: 2, 128>}]} {
    %c0 = arith.constant 0 : index
    %c0_0 = arith.constant 0 : index
    %0 = vector.load %arg1[%c0, %c0_0] : memref<2x512xbf16, #tpu.memory_space<vmem>>, vector<2x512xbf16>
    %c0_1 = arith.constant 0 : index
    %c0_2 = arith.constant 0 : index
    %1 = vector.load %arg2[%c0_1, %c0_2] : memref<512x128xbf16, #tpu.memory_space<vmem>>, vector<512x128xbf16>
    %cst = arith.constant dense<0.000000e+00> : vector<2x128xf32>
    %2 = tpu.matmul %0, %1, %cst {dimension_numbers = #tpu.dot_dimension_numbers<[1], [0], [0], [1], [0, 0, 1, 1], [], []>} : vector<2x512xbf16>, vector<512x128xbf16>, vector<2x128xf32> -> vector<2x128xf32>
    %c0_3 = arith.constant 0 : index
    %c0_4 = arith.constant 0 : index
    %3 = vector.load %arg3[%c0_3, %c0_4] : memref<1x128xf32, #tpu.memory_space<vmem>>, vector<1x128xf32>
    %4 = vector.broadcast %3 : vector<1x128xf32> to vector<2x128xf32>
    %5 = arith.addf %2, %4 : vector<2x128xf32>
    %6 = arith.truncf %5 : vector<2x128xf32> to vector<2x128xbf16>
    %c0_5 = arith.constant 0 : index
    %c0_6 = arith.constant 0 : index
    %7 = vector.load %arg4[%c0_5, %c0_6] : memref<128x128xbf16, #tpu.memory_space<vmem>>, vector<128x128xbf16>
    %cst_7 = arith.constant dense<0.000000e+00> : vector<2x128xf32>
    %8 = tpu.matmul %6, %7, %cst_7 {dimension_numbers = #tpu.dot_dimension_numbers<[1], [0], [0], [1], [0, 0, 1, 1], [], []>} : vector<2x128xbf16>, vector<128x128xbf16>, vector<2x128xf32> -> vector<2x128xf32>
    %c0_8 = arith.constant 0 : index
    %c0_9 = arith.constant 0 : index
    %9 = vector.load %arg5[%c0_8, %c0_9] : memref<1x128xf32, #tpu.memory_space<vmem>>, vector<1x128xf32>
    %10 = vector.broadcast %9 : vector<1x128xf32> to vector<2x128xf32>
    %11 = arith.addf %8, %10 : vector<2x128xf32>
    %12 = arith.truncf %11 : vector<2x128xf32> to vector<2x128xbf16>
    %c0_10 = arith.constant 0 : index
    %c0_11 = arith.constant 0 : index
    %13 = vector.load %arg6[%c0_10, %c0_11] : memref<128x128xbf16, #tpu.memory_space<vmem>>, vector<128x128xbf16>
    %cst_12 = arith.constant dense<0.000000e+00> : vector<2x128xf32>
    %14 = tpu.matmul %12, %13, %cst_12 {dimension_numbers = #tpu.dot_dimension_numbers<[1], [0], [0], [1], [0, 0, 1, 1], [], []>} : vector<2x128xbf16>, vector<128x128xbf16>, vector<2x128xf32> -> vector<2x128xf32>
    %c0_13 = arith.constant 0 : index
    %c0_14 = arith.constant 0 : index
    %15 = vector.load %arg7[%c0_13, %c0_14] : memref<1x128xf32, #tpu.memory_space<vmem>>, vector<1x128xf32>
    %16 = vector.broadcast %15 : vector<1x128xf32> to vector<2x128xf32>
    %17 = arith.addf %14, %16 : vector<2x128xf32>
    %c0_15 = arith.constant 0 : index
    %c0_16 = arith.constant 0 : index
    %18 = vector.load %arg8[%c0_15, %c0_16] : memref<2x128xf32, #tpu.memory_space<vmem>>, vector<2x128xf32>
    tpu.vector_store %arg8[%c0_15, %c0_16], %17 {strides = array<i32>} : memref<2x128xf32, #tpu.memory_space<vmem>>, vector<2x128xf32>,
    return
  }
  func.func @transform_0(%arg0: i32) -> (i32, i32) {
    %c0_i32 = arith.constant 0 : i32
    %c0_i32_0 = arith.constant 0 : i32
    %c0_i32_1 = arith.constant 0 : i32
    return %c0_i32, %c0_i32_0 : i32, i32
  }
  func.func @transform_1(%arg0: i32) -> (i32, i32) {
    %c0_i32 = arith.constant 0 : i32
    %c0_i32_0 = arith.constant 0 : i32
    %c0_i32_1 = arith.constant 0 : i32
    return %c0_i32, %c0_i32_0 : i32, i32
  }
  func.func @transform_2(%arg0: i32) -> (i32, i32) {
    %c0_i32 = arith.constant 0 : i32
    %c0_i32_0 = arith.constant 0 : i32
    %c0_i32_1 = arith.constant 0 : i32
    return %c0_i32, %c0_i32_0 : i32, i32
  }
  func.func @transform_3(%arg0: i32) -> (i32, i32) {
    %c0_i32 = arith.constant 0 : i32
    %c0_i32_0 = arith.constant 0 : i32
    %c0_i32_1 = arith.constant 0 : i32
    return %c0_i32, %c0_i32_0 : i32, i32
  }
  func.func @transform_4(%arg0: i32) -> (i32, i32) {
    %c0_i32 = arith.constant 0 : i32
    %c0_i32_0 = arith.constant 0 : i32
    %c0_i32_1 = arith.constant 0 : i32
    return %c0_i32, %c0_i32_0 : i32, i32
  }
  func.func @transform_5(%arg0: i32) -> (i32, i32) {
    %c0_i32 = arith.constant 0 : i32
    %c0_i32_0 = arith.constant 0 : i32
    %c0_i32_1 = arith.constant 0 : i32
    return %c0_i32, %c0_i32_0 : i32, i32
  }
  func.func @transform_6(%arg0: i32) -> (i32, i32) {
    %c0_i32 = arith.constant 0 : i32
    %c0_i32_0 = arith.constant 0 : i32
    %c0_i32_1 = arith.constant 0 : i32
    return %c0_i32, %c0_i32_0 : i32, i32
  }
  func.func @transform_7(%arg0: i32) -> (i32, i32) {
    %c0_i32 = arith.constant 0 : i32
    %c0_i32_0 = arith.constant 0 : i32
    %c0_i32_1 = arith.constant 0 : i32
    return %c0_i32, %c0_i32_0 : i32, i32
  }
}

</mosaic_0001>

<bundles_post_ra>
// kernel: lenet_mergeconv_forward.4
= control target key start
LH: loop header
LB: loop body
LE: loop exit
PB: predicated region body
PF: predicated region fallthrough
CT: control target
= control target key end

     0   :  { %s1378_s12 = smov 0   ;;  %s1563_s0 = inlined_call_operand.vmem [shape: bf16[2048,128], index: 0, kind: input, shape index: {}]   ;;  %s1564_s1 = inlined_call_operand.vmem [shape: bf16[128,128], index: 1, kind: input, shape index: {}]   ;;  %s1565_s2 = inlined_call_operand.vmem [shape: f32[1,128], index: 2, kind: input, shape index: {}]   ;;  %s1566_s3 = inlined_call_operand.vmem [shape: bf16[2048,128], index: 3, kind: output, shape index: {}]  }
   0x1 LB: > { %s915_s13 = sadd.s32 4294967295, %s1356_s12   ;;  %p919_p0 = scmp.ge.s32.totalorder %s1356_s12, 1  ;;  %s1356_s12 = sphi %s1378_s12, %s13_s12  }
   0x2   : > { %p138_p1 = scmp.lt.s32.totalorder %s1356_s12, 5 }
   0x4   : > { %p139_p2 = pnand %p919_p0, %p138_p1 }
   0x5   : > { %s920_s22 = sshll.u32 (!%p139_p2), %s915_s13, 6 }
   0x6   : > { %142 = sbr.rel (%p139_p2) target bundleno = 304 (0x130), region = 32  ;;  %p163_p3 = scmp.lt.s32.totalorder (!%p139_p2), %s920_s22, 255 }
   0xb   : > { %v1125_v0 = vld [vmem:[%s1564_s1 + $0x38] sm:$0xff]  ;;  %v1124_v1 = vld [vmem:[%s1564_s1 + $0x30] sm:$0xff]  ;;  %v1123_v2 = vld [vmem:[%s1564_s1 + $0x28] sm:$0xff]  ;;  %s1568_s22 = smov (!%p163_p3, %s920_s22), 255 }
   0xc   : > { %498 = vmatpush.bf16.msra.mxu0 %v1125_v0  ;;  %1317 = vmatpush.bf16.msra.mxu1 %v1125_v0  ;;  %v1122_v3 = vld [vmem:[%s1564_s1 + $0x20] sm:$0xff]  ;;  %v1121_v4 = vld [vmem:[%s1564_s1 + $0x18] sm:$0xff]  ;;  %v1120_v5 = vld [vmem:[%s1564_s1 + $0x10] sm:$0xff]  ;;  %s921_s29 = sshll.u32 %s1568_s22, 2 }
   0xd   : > { %1318 = vmatpush.bf16.msra.mxu2 %v1125_v0  ;;  %1319 = vmatpush.bf16.msra.mxu3 %v1125_v0  ;;  %v1119_v6 = vld [vmem:[%s1564_s1 + $0x8] sm:$0xff]  ;;  %v1118_v7 = vld [vmem:[%s1564_s1] sm:$0xff]  ;;  %s1418_s7 = scalar_lea.vmem %s1563_s0, %s921_s29  ;;  %s1466_s13 = scalar_lea.vmem %s1566_s3, %s921_s29 }
   0xe   : > { %v1086_v8 = vld [vmem:[%s1418_s7] sm:$0xff]  ;;  %v1087_v12 = vld [vmem:[%s1418_s7 + $0x8] sm:$0xff]  ;;  %v1088_v16 = vld [vmem:[%s1418_s7 + $0x10] sm:$0xff] }
   0xf   : > { %v1094_v9 = vld [vmem:[%s1418_s7 + $0x40] sm:$0xff]  ;;  %v1095_v13 = vld [vmem:[%s1418_s7 + $0x48] sm:$0xff]  ;;  %v1096_v17 = vld [vmem:[%s1418_s7 + $0x50] sm:$0xff] }
  0x10   : > { %499 = vmatpush.bf16.msra.mxu0 %v1124_v1  ;;  %1320 = vmatpush.bf16.msra.mxu1 %v1124_v1  ;;  %v1102_v10 = vld [vmem:[%s1418_s7 + $0x80] sm:$0xff]  ;;  %v1103_v14 = vld [vmem:[%s1418_s7 + $0x88] sm:$0xff]  ;;  %v1104_v18 = vld [vmem:[%s1418_s7 + $0x90] sm:$0xff] }
  0x11   : > { %1321 = vmatpush.bf16.msra.mxu2 %v1124_v1  ;;  %1322 = vmatpush.bf16.msra.mxu3 %v1124_v1  ;;  %v1110_v11 = vld [vmem:[%s1418_s7 + $0xc0] sm:$0xff]  ;;  %v1111_v15 = vld [vmem:[%s1418_s7 + $0xc8] sm:$0xff]  ;;  %v1112_v19 = vld [vmem:[%s1418_s7 + $0xd0] sm:$0xff] }
  0x12   : > { %v1089_v20 = vld [vmem:[%s1418_s7 + $0x18] sm:$0xff]  ;;  %v1090_v24 = vld [vmem:[%s1418_s7 + $0x20] sm:$0xff]  ;;  %v1091_v28 = vld [vmem:[%s1418_s7 + $0x28] sm:$0xff] }
  0x13   : > { %v1097_v21 = vld [vmem:[%s1418_s7 + $0x58] sm:$0xff]  ;;  %v1098_v25 = vld [vmem:[%s1418_s7 + $0x60] sm:$0xff]  ;;  %v1099_v29 = vld [vmem:[%s1418_s7 + $0x68] sm:$0xff] }
  0x14   : > { %500 = vmatpush.bf16.msra.mxu0 %v1123_v2  ;;  %1323 = vmatpush.bf16.msra.mxu1 %v1123_v2  ;;  %v1105_v22 = vld [vmem:[%s1418_s7 + $0x98] sm:$0xff]  ;;  %v1106_v26 = vld [vmem:[%s1418_s7 + $0xa0] sm:$0xff]  ;;  %v1107_v30 = vld [vmem:[%s1418_s7 + $0xa8] sm:$0xff] }
  0x15   : > { %1324 = vmatpush.bf16.msra.mxu2 %v1123_v2  ;;  %1325 = vmatpush.bf16.msra.mxu3 %v1123_v2  ;;  %v1113_v23 = vld [vmem:[%s1418_s7 + $0xd8] sm:$0xff]  ;;  %v1114_v27 = vld [vmem:[%s1418_s7 + $0xe0] sm:$0xff]  ;;  %v1115_v31 = vld [vmem:[%s1418_s7 + $0xe8] sm:$0xff] }
  0x16   : > { %v1092_v32 = vld [vmem:[%s1418_s7 + $0x30] sm:$0xff]  ;;  %v1093_v36 = vld [vmem:[%s1418_s7 + $0x38] sm:$0xff]  ;;  %v1455_v42 = vld [vmem:[%s1565_s2] ss:$0 sm:$0xff] }
  0x17   : > { %v1100_v33 = vld [vmem:[%s1418_s7 + $0x70] sm:$0xff]  ;;  %v1101_v37 = vld [vmem:[%s1418_s7 + $0x78] sm:$0xff] }
  0x18   : > { %501 = vmatpush.bf16.msra.mxu0 %v1122_v3  ;;  %1326 = vmatpush.bf16.msra.mxu1 %v1122_v3  ;;  %v1108_v34 = vld [vmem:[%s1418_s7 + $0xb0] sm:$0xff]  ;;  %v1109_v38 = vld [vmem:[%s1418_s7 + $0xb8] sm:$0xff] }
  0x19   : > { %1327 = vmatpush.bf16.msra.mxu2 %v1122_v3  ;;  %1328 = vmatpush.bf16.msra.mxu3 %v1122_v3  ;;  %v1116_v35 = vld [vmem:[%s1418_s7 + $0xf0] sm:$0xff]  ;;  %v1117_v39 = vld [vmem:[%s1418_s7 + $0xf8] sm:$0xff] }
  0x1c   : > { %502 = vmatpush.bf16.msra.mxu0 %v1121_v4  ;;  %1329 = vmatpush.bf16.msra.mxu1 %v1121_v4 }
  0x1d   : > { %1330 = vmatpush.bf16.msra.mxu2 %v1121_v4  ;;  %1331 = vmatpush.bf16.msra.mxu3 %v1121_v4 }
  0x20   : > { %503 = vmatpush.bf16.msra.mxu0 %v1120_v5  ;;  %1332 = vmatpush.bf16.msra.mxu1 %v1120_v5 }
  0x21   : > { %1333 = vmatpush.bf16.msra.mxu2 %v1120_v5  ;;  %1334 = vmatpush.bf16.msra.mxu3 %v1120_v5 }
  0x24   : > { %504 = vmatpush.bf16.msra.mxu0 %v1119_v6  ;;  %1335 = vmatpush.bf16.msra.mxu1 %v1119_v6 }
  0x25   : > { %1336 = vmatpush.bf16.msra.mxu2 %v1119_v6  ;;  %1337 = vmatpush.bf16.msra.mxu3 %v1119_v6 }
  0x28   : > { %505 = vmatpush.bf16.msra.mxu0 %v1118_v7  ;;  %1338 = vmatpush.bf16.msra.mxu1 %v1118_v7 }
  0x29   : > { %1339 = vmatpush.bf16.msra.mxu2 %v1118_v7  ;;  %1340 = vmatpush.bf16.msra.mxu3 %v1118_v7 }
  0x2b   : > { %506 = vmatmul.bf16.vlgmr.msra.gmra.mxu0 %v1086_v8  ;;  %546 = vmatmul.bf16.vlgmr.msra.gmra.mxu1 %v1094_v9 }
  0x2c   : > { %586 = vmatmul.bf16.vlgmr.msra.gmra.mxu2 %v1102_v10  ;;  %626 = vmatmul.bf16.vlgmr.msra.gmra.mxu3 %v1110_v11 }
  0x3b   : > { %511 = vmatmul.bf16.gmra.mxu0 %v1087_v12  ;;  %551 = vmatmul.bf16.gmra.mxu1 %v1095_v13 }
  0x3c   : > { %591 = vmatmul.bf16.gmra.mxu2 %v1103_v14  ;;  %631 = vmatmul.bf16.gmra.mxu3 %v1111_v15 }
  0x4b   : > { %516 = vmatmul.bf16.gmra.mxu0 %v1088_v16  ;;  %556 = vmatmul.bf16.gmra.mxu1 %v1096_v17 }
  0x4c   : > { %596 = vmatmul.bf16.gmra.mxu2 %v1104_v18  ;;  %636 = vmatmul.bf16.gmra.mxu3 %v1112_v19 }
  0x5b   : > { %521 = vmatmul.bf16.gmra.mxu0 %v1089_v20  ;;  %561 = vmatmul.bf16.gmra.mxu1 %v1097_v21 }
  0x5c   : > { %601 = vmatmul.bf16.gmra.mxu2 %v1105_v22  ;;  %641 = vmatmul.bf16.gmra.mxu3 %v1113_v23 }
  0x6b   : > { %526 = vmatmul.bf16.gmra.mxu0 %v1090_v24  ;;  %566 = vmatmul.bf16.gmra.mxu1 %v1098_v25 }
  0x6c   : > { %606 = vmatmul.bf16.gmra.mxu2 %v1106_v26  ;;  %646 = vmatmul.bf16.gmra.mxu3 %v1114_v27 }
  0x7b   : > { %531 = vmatmul.bf16.gmra.mxu0 %v1091_v28  ;;  %571 = vmatmul.bf16.gmra.mxu1 %v1099_v29 }
  0x7c   : > { %611 = vmatmul.bf16.gmra.mxu2 %v1107_v30  ;;  %651 = vmatmul.bf16.gmra.mxu3 %v1115_v31 }
  0x8b   : > { %536 = vmatmul.bf16.gmra.mxu0 %v1092_v32  ;;  %576 = vmatmul.bf16.gmra.mxu1 %v1100_v33 }
  0x8c   : > { %616 = vmatmul.bf16.gmra.mxu2 %v1108_v34  ;;  %656 = vmatmul.bf16.gmra.mxu3 %v1116_v35 }
  0x9b   : > { %541 = vmatmul.bf16.gmra.mxu0 %v1093_v36  ;;  %581 = vmatmul.bf16.gmra.mxu1 %v1101_v37 }
  0x9c   : > { %621 = vmatmul.bf16.gmra.mxu2 %v1109_v38  ;;  %661 = vmatmul.bf16.gmra.mxu3 %v1117_v39 }
  0xa8   : > { %v507_v40 = vpop.f32.mrf.mxu0  ;;  %v547_v41 = vpop.f32.mrf.mxu1 }
  0xa9   : > { %v508_v43 = vadd.f32 %v1455_v42, %v507_v40  ;;  %v548_v44 = vadd.f32 %v1455_v42, %v547_v41 }
  0xab   : > { %v667_v51 = vmax.f32 %v508_v43, 0.0  ;;  %v683_v52 = vmax.f32 %v548_v44, 0.0 }
  0xaf   : > { %v587_v45 = vpop.f32.mrf.mxu2  ;;  %v627_v46 = vpop.f32.mrf.mxu3 }
  0xb0   : > { %v509_v47 = vpop.f32.mrf.mxu0  ;;  %v549_v48 = vpop.f32.mrf.mxu1  ;;  %v588_v57 = vadd.f32 %v1455_v42, %v587_v45  ;;  %v628_v58 = vadd.f32 %v1455_v42, %v627_v46 }
  0xb1   : > { %v510_v49 = vadd.f32 %v1455_v42, %v509_v47  ;;  %v550_v50 = vadd.f32 %v1455_v42, %v549_v48 }
  0xb2   : > { %v699_v1 = vmax.f32 %v588_v57, 0.0  ;;  %v715_v2 = vmax.f32 %v628_v58, 0.0 }
  0xb3   : > { %v668_v53 = vmax.f32 %v510_v49, 0.0  ;;  %v684_v54 = vmax.f32 %v550_v50, 0.0 }
  0xb5   : > { %v1129_v55 = vpack.c.bf16 %v668_v53, %v667_v51  ;;  %v1169_v56 = vpack.c.bf16 %v684_v54, %v683_v52 }
  0xb7   : > { %1130 = vst [vmem:[%s1466_s13] sm:$0xff] %v1129_v55   ;;  %v589_v59 = vpop.f32.mrf.mxu2  ;;  %v629_v60 = vpop.f32.mrf.mxu3 }
  0xb8   : > { %1293 = vst [vmem:[%s1466_s13 + $0x40] sm:$0xff] %v1169_v56   ;;  %v590_v61 = vadd.f32 %v1455_v42, %v589_v59  ;;  %v630_v62 = vadd.f32 %v1455_v42, %v629_v60  ;;  %v512_v63 = vpop.f32.mrf.mxu0  ;;  %v552_v0 = vpop.f32.mrf.mxu1 }
  0xb9   : > { %v513_v7 = vadd.f32 %v1455_v42, %v512_v63  ;;  %v553_v8 = vadd.f32 %v1455_v42, %v552_v0 }
  0xba   : > { %v700_v3 = vmax.f32 %v590_v61, 0.0  ;;  %v716_v4 = vmax.f32 %v630_v62, 0.0 }
  0xbb   : > { %v669_v15 = vmax.f32 %v513_v7, 0.0  ;;  %v685_v16 = vmax.f32 %v553_v8, 0.0 }
  0xbc   : > { %v1209_v5 = vpack.c.bf16 %v700_v3, %v699_v1  ;;  %v1249_v6 = vpack.c.bf16 %v716_v4, %v715_v2 }
  0xbe   : > { %1301 = vst [vmem:[%s1466_s13 + $0x80] sm:$0xff] %v1209_v5  }
  0xbf   : > { %1309 = vst [vmem:[%s1466_s13 + $0xc0] sm:$0xff] %v1249_v6   ;;  %v592_v9 = vpop.f32.mrf.mxu2  ;;  %v632_v10 = vpop.f32.mrf.mxu3 }
  0xc0   : > { %v514_v11 = vpop.f32.mrf.mxu0  ;;  %v554_v12 = vpop.f32.mrf.mxu1  ;;  %v593_v21 = vadd.f32 %v1455_v42, %v592_v9  ;;  %v633_v22 = vadd.f32 %v1455_v42, %v632_v10 }
  0xc1   : > { %v515_v13 = vadd.f32 %v1455_v42, %v514_v11  ;;  %v555_v14 = vadd.f32 %v1455_v42, %v554_v12 }
  0xc2   : > { %v701_v29 = vmax.f32 %v593_v21, 0.0  ;;  %v717_v30 = vmax.f32 %v633_v22, 0.0 }
  0xc3   : > { %v670_v17 = vmax.f32 %v515_v13, 0.0  ;;  %v686_v18 = vmax.f32 %v555_v14, 0.0 }
  0xc5   : > { %v1134_v19 = vpack.c.bf16 %v670_v17, %v669_v15  ;;  %v1174_v20 = vpack.c.bf16 %v686_v18, %v685_v16 }
  0xc7   : > { %1286 = vst [vmem:[%s1466_s13 + $0x8] sm:$0xff] %v1134_v19   ;;  %v594_v23 = vpop.f32.mrf.mxu2  ;;  %v634_v24 = vpop.f32.mrf.mxu3 }
  0xc8   : > { %1294 = vst [vmem:[%s1466_s13 + $0x48] sm:$0xff] %v1174_v20   ;;  %v595_v25 = vadd.f32 %v1455_v42, %v594_v23  ;;  %v635_v26 = vadd.f32 %v1455_v42, %v634_v24  ;;  %v517_v27 = vpop.f32.mrf.mxu0  ;;  %v557_v28 = vpop.f32.mrf.mxu1 }
  0xc9   : > { %v518_v35 = vadd.f32 %v1455_v42, %v517_v27  ;;  %v558_v36 = vadd.f32 %v1455_v42, %v557_v28 }
  0xca   : > { %v702_v31 = vmax.f32 %v595_v25, 0.0  ;;  %v718_v32 = vmax.f32 %v635_v26, 0.0 }
  0xcb   : > { %v671_v44 = vmax.f32 %v518_v35, 0.0  ;;  %v687_v45 = vmax.f32 %v558_v36, 0.0 }
  0xcc   : > { %v1214_v33 = vpack.c.bf16 %v702_v31, %v701_v29  ;;  %v1254_v34 = vpack.c.bf16 %v718_v32, %v717_v30 }
  0xce   : > { %1302 = vst [vmem:[%s1466_s13 + $0x88] sm:$0xff] %v1214_v33  }
  0xcf   : > { %1310 = vst [vmem:[%s1466_s13 + $0xc8] sm:$0xff] %v1254_v34   ;;  %v597_v37 = vpop.f32.mrf.mxu2  ;;  %v637_v38 = vpop.f32.mrf.mxu3 }
  0xd0   : > { %v519_v39 = vpop.f32.mrf.mxu0  ;;  %v559_v40 = vpop.f32.mrf.mxu1  ;;  %v598_v50 = vadd.f32 %v1455_v42, %v597_v37  ;;  %v638_v51 = vadd.f32 %v1455_v42, %v637_v38 }
  0xd1   : > { %v520_v41 = vadd.f32 %v1455_v42, %v519_v39  ;;  %v560_v43 = vadd.f32 %v1455_v42, %v559_v40 }
  0xd2   : > { %v703_v58 = vmax.f32 %v598_v50, 0.0  ;;  %v719_v59 = vmax.f32 %v638_v51, 0.0 }
  0xd3   : > { %v672_v46 = vmax.f32 %v520_v41, 0.0  ;;  %v688_v47 = vmax.f32 %v560_v43, 0.0 }
  0xd5   : > { %v1139_v48 = vpack.c.bf16 %v672_v46, %v671_v44  ;;  %v1179_v49 = vpack.c.bf16 %v688_v47, %v687_v45 }
  0xd7   : > { %1287 = vst [vmem:[%s1466_s13 + $0x10] sm:$0xff] %v1139_v48   ;;  %v599_v52 = vpop.f32.mrf.mxu2  ;;  %v639_v53 = vpop.f32.mrf.mxu3 }
  0xd8   : > { %1295 = vst [vmem:[%s1466_s13 + $0x50] sm:$0xff] %v1179_v49   ;;  %v600_v54 = vadd.f32 %v1455_v42, %v599_v52  ;;  %v640_v55 = vadd.f32 %v1455_v42, %v639_v53  ;;  %v522_v56 = vpop.f32.mrf.mxu0  ;;  %v562_v57 = vpop.f32.mrf.mxu1 }
  0xd9   : > { %v523_v0 = vadd.f32 %v1455_v42, %v522_v56  ;;  %v563_v1 = vadd.f32 %v1455_v42, %v562_v57 }
  0xda   : > { %v704_v60 = vmax.f32 %v600_v54, 0.0  ;;  %v720_v61 = vmax.f32 %v640_v55, 0.0 }
  0xdb   : > { %v673_v8 = vmax.f32 %v523_v0, 0.0  ;;  %v689_v9 = vmax.f32 %v563_v1, 0.0 }
  0xdc   : > { %v1219_v62 = vpack.c.bf16 %v704_v60, %v703_v58  ;;  %v1259_v63 = vpack.c.bf16 %v720_v61, %v719_v59 }
  0xde   : > { %1303 = vst [vmem:[%s1466_s13 + $0x90] sm:$0xff] %v1219_v62  }
  0xdf   : > { %1311 = vst [vmem:[%s1466_s13 + $0xd0] sm:$0xff] %v1259_v63   ;;  %v602_v2 = vpop.f32.mrf.mxu2  ;;  %v642_v3 = vpop.f32.mrf.mxu3 }
  0xe0   : > { %v524_v4 = vpop.f32.mrf.mxu0  ;;  %v564_v5 = vpop.f32.mrf.mxu1  ;;  %v603_v14 = vadd.f32 %v1455_v42, %v602_v2  ;;  %v643_v15 = vadd.f32 %v1455_v42, %v642_v3 }
  0xe1   : > { %v525_v6 = vadd.f32 %v1455_v42, %v524_v4  ;;  %v565_v7 = vadd.f32 %v1455_v42, %v564_v5 }
  0xe2   : > { %v705_v22 = vmax.f32 %v603_v14, 0.0  ;;  %v721_v23 = vmax.f32 %v643_v15, 0.0 }
  0xe3   : > { %v674_v10 = vmax.f32 %v525_v6, 0.0  ;;  %v690_v11 = vmax.f32 %v565_v7, 0.0 }
  0xe5   : > { %v1144_v12 = vpack.c.bf16 %v674_v10, %v673_v8  ;;  %v1184_v13 = vpack.c.bf16 %v690_v11, %v689_v9 }
  0xe7   : > { %1288 = vst [vmem:[%s1466_s13 + $0x18] sm:$0xff] %v1144_v12   ;;  %v604_v16 = vpop.f32.mrf.mxu2  ;;  %v644_v17 = vpop.f32.mrf.mxu3 }
  0xe8   : > { %1296 = vst [vmem:[%s1466_s13 + $0x58] sm:$0xff] %v1184_v13   ;;  %v605_v18 = vadd.f32 %v1455_v42, %v604_v16  ;;  %v645_v19 = vadd.f32 %v1455_v42, %v644_v17  ;;  %v527_v20 = vpop.f32.mrf.mxu0  ;;  %v567_v21 = vpop.f32.mrf.mxu1 }
  0xe9   : > { %v528_v28 = vadd.f32 %v1455_v42, %v527_v20  ;;  %v568_v29 = vadd.f32 %v1455_v42, %v567_v21 }
  0xea   : > { %v706_v24 = vmax.f32 %v605_v18, 0.0  ;;  %v722_v25 = vmax.f32 %v645_v19, 0.0 }
  0xeb   : > { %v675_v36 = vmax.f32 %v528_v28, 0.0  ;;  %v691_v37 = vmax.f32 %v568_v29, 0.0 }
  0xec   : > { %v1224_v26 = vpack.c.bf16 %v706_v24, %v705_v22  ;;  %v1264_v27 = vpack.c.bf16 %v722_v25, %v721_v23 }
  0xee   : > { %1304 = vst [vmem:[%s1466_s13 + $0x98] sm:$0xff] %v1224_v26  }
  0xef   : > { %1312 = vst [vmem:[%s1466_s13 + $0xd8] sm:$0xff] %v1264_v27   ;;  %v607_v30 = vpop.f32.mrf.mxu2  ;;  %v647_v31 = vpop.f32.mrf.mxu3 }
  0xf0   : > { %v529_v32 = vpop.f32.mrf.mxu0  ;;  %v569_v33 = vpop.f32.mrf.mxu1  ;;  %v608_v43 = vadd.f32 %v1455_v42, %v607_v30  ;;  %v648_v44 = vadd.f32 %v1455_v42, %v647_v31 }
  0xf1   : > { %v530_v34 = vadd.f32 %v1455_v42, %v529_v32  ;;  %v570_v35 = vadd.f32 %v1455_v42, %v569_v33 }
  0xf2   : > { %v707_v51 = vmax.f32 %v608_v43, 0.0  ;;  %v723_v52 = vmax.f32 %v648_v44, 0.0 }
  0xf3   : > { %v676_v38 = vmax.f32 %v530_v34, 0.0  ;;  %v692_v39 = vmax.f32 %v570_v35, 0.0 }
  0xf5   : > { %v1149_v40 = vpack.c.bf16 %v676_v38, %v675_v36  ;;  %v1189_v41 = vpack.c.bf16 %v692_v39, %v691_v37 }
  0xf7   : > { %1289 = vst [vmem:[%s1466_s13 + $0x20] sm:$0xff] %v1149_v40   ;;  %v609_v45 = vpop.f32.mrf.mxu2  ;;  %v649_v46 = vpop.f32.mrf.mxu3 }
  0xf8   : > { %1297 = vst [vmem:[%s1466_s13 + $0x60] sm:$0xff] %v1189_v41   ;;  %v610_v47 = vadd.f32 %v1455_v42, %v609_v45  ;;  %v650_v48 = vadd.f32 %v1455_v42, %v649_v46  ;;  %v532_v49 = vpop.f32.mrf.mxu0  ;;  %v572_v50 = vpop.f32.mrf.mxu1 }
  0xf9   : > { %v533_v57 = vadd.f32 %v1455_v42, %v532_v49  ;;  %v573_v58 = vadd.f32 %v1455_v42, %v572_v50 }
  0xfa   : > { %v708_v53 = vmax.f32 %v610_v47, 0.0  ;;  %v724_v54 = vmax.f32 %v650_v48, 0.0 }
  0xfb   : > { %v677_v1 = vmax.f32 %v533_v57, 0.0  ;;  %v693_v2 = vmax.f32 %v573_v58, 0.0 }
  0xfc   : > { %v1229_v55 = vpack.c.bf16 %v708_v53, %v707_v51  ;;  %v1269_v56 = vpack.c.bf16 %v724_v54, %v723_v52 }
  0xfe   : > { %1305 = vst [vmem:[%s1466_s13 + $0xa0] sm:$0xff] %v1229_v55  }
  0xff   : > { %1313 = vst [vmem:[%s1466_s13 + $0xe0] sm:$0xff] %v1269_v56   ;;  %v612_v59 = vpop.f32.mrf.mxu2  ;;  %v652_v60 = vpop.f32.mrf.mxu3 }
 0x100   : > { %v534_v61 = vpop.f32.mrf.mxu0  ;;  %v574_v62 = vpop.f32.mrf.mxu1  ;;  %v613_v7 = vadd.f32 %v1455_v42, %v612_v59  ;;  %v653_v8 = vadd.f32 %v1455_v42, %v652_v60 }
 0x101   : > { %v535_v63 = vadd.f32 %v1455_v42, %v534_v61  ;;  %v575_v0 = vadd.f32 %v1455_v42, %v574_v62 }
 0x102   : > { %v709_v15 = vmax.f32 %v613_v7, 0.0  ;;  %v725_v16 = vmax.f32 %v653_v8, 0.0 }
 0x103   : > { %v678_v3 = vmax.f32 %v535_v63, 0.0  ;;  %v694_v4 = vmax.f32 %v575_v0, 0.0 }
 0x105   : > { %v1154_v5 = vpack.c.bf16 %v678_v3, %v677_v1  ;;  %v1194_v6 = vpack.c.bf16 %v694_v4, %v693_v2 }
 0x107   : > { %1290 = vst [vmem:[%s1466_s13 + $0x28] sm:$0xff] %v1154_v5   ;;  %v614_v9 = vpop.f32.mrf.mxu2  ;;  %v654_v10 = vpop.f32.mrf.mxu3 }
 0x108   : > { %1298 = vst [vmem:[%s1466_s13 + $0x68] sm:$0xff] %v1194_v6   ;;  %v615_v11 = vadd.f32 %v1455_v42, %v614_v9  ;;  %v655_v12 = vadd.f32 %v1455_v42, %v654_v10  ;;  %v537_v13 = vpop.f32.mrf.mxu0  ;;  %v577_v14 = vpop.f32.mrf.mxu1 }
 0x109   : > { %v538_v21 = vadd.f32 %v1455_v42, %v537_v13  ;;  %v578_v22 = vadd.f32 %v1455_v42, %v577_v14 }
 0x10a   : > { %v710_v17 = vmax.f32 %v615_v11, 0.0  ;;  %v726_v18 = vmax.f32 %v655_v12, 0.0 }
 0x10b   : > { %v679_v29 = vmax.f32 %v538_v21, 0.0  ;;  %v695_v30 = vmax.f32 %v578_v22, 0.0 }
 0x10c   : > { %v1234_v19 = vpack.c.bf16 %v710_v17, %v709_v15  ;;  %v1274_v20 = vpack.c.bf16 %v726_v18, %v725_v16 }
 0x10e   : > { %1306 = vst [vmem:[%s1466_s13 + $0xa8] sm:$0xff] %v1234_v19  }
 0x10f   : > { %1314 = vst [vmem:[%s1466_s13 + $0xe8] sm:$0xff] %v1274_v20   ;;  %v617_v23 = vpop.f32.mrf.mxu2  ;;  %v657_v24 = vpop.f32.mrf.mxu3 }
 0x110   : > { %v539_v25 = vpop.f32.mrf.mxu0  ;;  %v579_v26 = vpop.f32.mrf.mxu1  ;;  %v618_v35 = vadd.f32 %v1455_v42, %v617_v23  ;;  %v658_v36 = vadd.f32 %v1455_v42, %v657_v24 }
 0x111   : > { %v540_v27 = vadd.f32 %v1455_v42, %v539_v25  ;;  %v580_v28 = vadd.f32 %v1455_v42, %v579_v26 }
 0x112   : > { %v711_v44 = vmax.f32 %v618_v35, 0.0  ;;  %v727_v45 = vmax.f32 %v658_v36, 0.0 }
 0x113   : > { %v680_v31 = vmax.f32 %v540_v27, 0.0  ;;  %v696_v32 = vmax.f32 %v580_v28, 0.0 }
 0x115   : > { %v1159_v33 = vpack.c.bf16 %v680_v31, %v679_v29  ;;  %v1199_v34 = vpack.c.bf16 %v696_v32, %v695_v30 }
 0x117   : > { %1291 = vst [vmem:[%s1466_s13 + $0x30] sm:$0xff] %v1159_v33   ;;  %v619_v37 = vpop.f32.mrf.mxu2  ;;  %v659_v38 = vpop.f32.mrf.mxu3 }
 0x118   : > { %1299 = vst [vmem:[%s1466_s13 + $0x70] sm:$0xff] %v1199_v34   ;;  %v620_v39 = vadd.f32 %v1455_v42, %v619_v37  ;;  %v660_v40 = vadd.f32 %v1455_v42, %v659_v38  ;;  %v542_v41 = vpop.f32.mrf.mxu0  ;;  %v582_v43 = vpop.f32.mrf.mxu1 }
 0x119   : > { %v543_v50 = vadd.f32 %v1455_v42, %v542_v41  ;;  %v583_v51 = vadd.f32 %v1455_v42, %v582_v43 }
 0x11a   : > { %v712_v46 = vmax.f32 %v620_v39, 0.0  ;;  %v728_v47 = vmax.f32 %v660_v40, 0.0 }
 0x11b   : > { %v681_v58 = vmax.f32 %v543_v50, 0.0  ;;  %v697_v59 = vmax.f32 %v583_v51, 0.0 }
 0x11c   : > { %v1239_v48 = vpack.c.bf16 %v712_v46, %v711_v44  ;;  %v1279_v49 = vpack.c.bf16 %v728_v47, %v727_v45 }
 0x11e   : > { %1307 = vst [vmem:[%s1466_s13 + $0xb0] sm:$0xff] %v1239_v48  }
 0x11f   : > { %1315 = vst [vmem:[%s1466_s13 + $0xf0] sm:$0xff] %v1279_v49   ;;  %v622_v52 = vpop.f32.mrf.mxu2  ;;  %v662_v53 = vpop.f32.mrf.mxu3 }
 0x120   : > { %v544_v54 = vpop.f32.mrf.mxu0  ;;  %v584_v55 = vpop.f32.mrf.mxu1  ;;  %v623_v0 = vadd.f32 %v1455_v42, %v622_v52  ;;  %v663_v1 = vadd.f32 %v1455_v42, %v662_v53 }
 0x121   : > { %v545_v56 = vadd.f32 %v1455_v42, %v544_v54  ;;  %v585_v57 = vadd.f32 %v1455_v42, %v584_v55 }
 0x122   : > { %v713_v6 = vmax.f32 %v623_v0, 0.0  ;;  %v729_v7 = vmax.f32 %v663_v1, 0.0 }
 0x123   : > { %v682_v60 = vmax.f32 %v545_v56, 0.0  ;;  %v698_v61 = vmax.f32 %v585_v57, 0.0 }
 0x125   : > { %v1164_v62 = vpack.c.bf16 %v682_v60, %v681_v58  ;;  %v1204_v63 = vpack.c.bf16 %v698_v61, %v697_v59 }
 0x127   : > { %1292 = vst [vmem:[%s1466_s13 + $0x38] sm:$0xff] %v1164_v62   ;;  %v624_v2 = vpop.f32.mrf.mxu2  ;;  %v664_v3 = vpop.f32.mrf.mxu3 }
 0x128   : > { %1300 = vst [vmem:[%s1466_s13 + $0x78] sm:$0xff] %v1204_v63   ;;  %v625_v4 = vadd.f32 %v1455_v42, %v624_v2  ;;  %v665_v5 = vadd.f32 %v1455_v42, %v664_v3 }
 0x12a   : > { %v714_v8 = vmax.f32 %v625_v4, 0.0  ;;  %v730_v9 = vmax.f32 %v665_v5, 0.0 }
 0x12c   : > { %v1244_v10 = vpack.c.bf16 %v714_v8, %v713_v6  ;;  %v1284_v11 = vpack.c.bf16 %v730_v9, %v729_v7 }
 0x12e   : > { %1308 = vst [vmem:[%s1466_s13 + $0xb8] sm:$0xff] %v1244_v10  }
 0x12f   : > { %1316 = vst [vmem:[%s1466_s13 + $0xf8] sm:$0xff] %v1284_v11  }
 0x130 PF: > { %s13_s12 = sadd.s32 1, %s1356_s12  }
 0x131   : > { %p10_p4 = scmp.ge.s32.totalorder %s13_s12, 6  }
 0x133   :  { %12 = sbr.rel (!%p10_p4) target bundleno = 1 (0x1), region = 62 }

// kernel: lenet_mergeconv_forward.5
= control target key start
LH: loop header
LB: loop body
LE: loop exit
PB: predicated region body
PF: predicated region fallthrough
CT: control target
= control target key end

     0   :  { %s10689_s1 = inlined_call_operand.vmem [shape: bf16[512,128], index: 1, kind: input, shape index: {}]   ;;  %s10690_s2 = inlined_call_operand.vmem [shape: f32[1,128], index: 2, kind: input, shape index: {}]   ;;  %s10691_s0 = inlined_call_operand.vmem [shape: bf16[1568,512], index: 0, kind: input, shape index: {}]   ;;  %s10692_s3 = inlined_call_operand.vmem [shape: f32[392,128], index: 3, kind: output, shape index: {}]  }
   0x1   :  { %v7784_v0 = vld [vmem:[%s10689_s1 + $0x38] sm:$0xff]  ;;  %v7783_v4 = vld [vmem:[%s10689_s1 + $0x30] sm:$0xff]  ;;  %v7782_v8 = vld [vmem:[%s10689_s1 + $0x28] sm:$0xff] }
   0x2   :  { %v7792_v1 = vld [vmem:[%s10689_s1 + $0x78] sm:$0xff]  ;;  %2626 = vmatpush.bf16.msra.mxu0 %v7784_v0  ;;  %v7791_v5 = vld [vmem:[%s10689_s1 + $0x70] sm:$0xff]  ;;  %v7790_v9 = vld [vmem:[%s10689_s1 + $0x68] sm:$0xff] }
   0x3   :  { %v7800_v2 = vld [vmem:[%s10689_s1 + $0xb8] sm:$0xff]  ;;  %3125 = vmatpush.bf16.msra.mxu1 %v7792_v1  ;;  %v7799_v6 = vld [vmem:[%s10689_s1 + $0xb0] sm:$0xff]  ;;  %v7798_v10 = vld [vmem:[%s10689_s1 + $0xa8] sm:$0xff] }
   0x4   :  { %v7808_v3 = vld [vmem:[%s10689_s1 + $0xf8] sm:$0xff]  ;;  %3624 = vmatpush.bf16.msra.mxu2 %v7800_v2  ;;  %v7807_v7 = vld [vmem:[%s10689_s1 + $0xf0] sm:$0xff]  ;;  %v7806_v11 = vld [vmem:[%s10689_s1 + $0xe8] sm:$0xff] }
   0x5   :  { %4123 = vmatpush.bf16.msra.mxu3 %v7808_v3  ;;  %v7781_v12 = vld [vmem:[%s10689_s1 + $0x20] sm:$0xff]  ;;  %v7780_v16 = vld [vmem:[%s10689_s1 + $0x18] sm:$0xff]  ;;  %v7779_v20 = vld [vmem:[%s10689_s1 + $0x10] sm:$0xff] }
   0x6   :  { %2627 = vmatpush.bf16.msra.mxu0 %v7783_v4  ;;  %v7789_v13 = vld [vmem:[%s10689_s1 + $0x60] sm:$0xff]  ;;  %v7788_v17 = vld [vmem:[%s10689_s1 + $0x58] sm:$0xff]  ;;  %v7787_v21 = vld [vmem:[%s10689_s1 + $0x50] sm:$0xff] }
   0x7   :  { %3126 = vmatpush.bf16.msra.mxu1 %v7791_v5  ;;  %v7797_v14 = vld [vmem:[%s10689_s1 + $0xa0] sm:$0xff]  ;;  %v7796_v18 = vld [vmem:[%s10689_s1 + $0x98] sm:$0xff]  ;;  %v7795_v22 = vld [vmem:[%s10689_s1 + $0x90] sm:$0xff] }
   0x8   :  { %3625 = vmatpush.bf16.msra.mxu2 %v7799_v6  ;;  %v7805_v15 = vld [vmem:[%s10689_s1 + $0xe0] sm:$0xff]  ;;  %v7804_v19 = vld [vmem:[%s10689_s1 + $0xd8] sm:$0xff]  ;;  %v7803_v23 = vld [vmem:[%s10689_s1 + $0xd0] sm:$0xff] }
   0x9   :  { %4124 = vmatpush.bf16.msra.mxu3 %v7807_v7  ;;  %v7778_v24 = vld [vmem:[%s10689_s1 + $0x8] sm:$0xff]  ;;  %v7777_v28 = vld [vmem:[%s10689_s1] sm:$0xff]  ;;  %v7387_v33 = vld [vmem:[%s10691_s0 + $0xc] sm:$0xf0] }
   0xa   :  { %2628 = vmatpush.bf16.msra.mxu0 %v7782_v8  ;;  %v7786_v25 = vld [vmem:[%s10689_s1 + $0x48] sm:$0xff]  ;;  %v7785_v29 = vld [vmem:[%s10689_s1 + $0x40] sm:$0xff]  ;;  %v5693_v35 = vld [vmem:[%s10691_s0 + $0x10] sm:$0xf0] }
   0xb   :  { %3127 = vmatpush.bf16.msra.mxu1 %v7790_v9  ;;  %v7794_v26 = vld [vmem:[%s10689_s1 + $0x88] sm:$0xff]  ;;  %v7793_v30 = vld [vmem:[%s10689_s1 + $0x80] sm:$0xff]  ;;  %v7388_v37 = vld [vmem:[%s10691_s0 + $0x14] sm:$0xf0] }
   0xc   :  { %3626 = vmatpush.bf16.msra.mxu2 %v7798_v10  ;;  %v7802_v27 = vld [vmem:[%s10689_s1 + $0xc8] sm:$0xff]  ;;  %v7801_v31 = vld [vmem:[%s10689_s1 + $0xc0] sm:$0xff]  ;;  %v5701_v39 = vld [vmem:[%s10691_s0 + $0x18] sm:$0xf0] }
   0xd   :  { %4125 = vmatpush.bf16.msra.mxu3 %v7806_v11  ;;  %v5691_v32 = vld [vmem:[%s10691_s0] sm:$0xf]  ;;  %v7385_v34 = vld [vmem:[%s10691_s0 + $0x4] sm:$0xf]  ;;  %v5699_v36 = vld [vmem:[%s10691_s0 + $0x8] sm:$0xf] }
   0xe   :  { %2629 = vmatpush.bf16.msra.mxu0 %v7781_v12  ;;  %v7386_v38 = vld [vmem:[%s10691_s0 + $0xc] sm:$0xf]  ;;  %v5692_v40 = vor.u32 %v7387_v33, %v5691_v32  ;;  %v5696_v41 = vor.u32 %v7385_v34, %v5693_v35  ;;  %v5700_v42 = vor.u32 %v7388_v37, %v5699_v36  ;;  %v5707_v44 = vld [vmem:[%s10691_s0 + $0x20] sm:$0xf]  ;;  %v7391_v45 = vld [vmem:[%s10691_s0 + $0x2c] sm:$0xf0] }
   0xf   :  { %3128 = vmatpush.bf16.msra.mxu1 %v7789_v13  ;;  %v5704_v43 = vor.u32 %v7386_v38, %v5701_v39  ;;  %v7389_v46 = vld [vmem:[%s10691_s0 + $0x24] sm:$0xf]  ;;  %v5709_v47 = vld [vmem:[%s10691_s0 + $0x30] sm:$0xf0]  ;;  %v5715_v48 = vld [vmem:[%s10691_s0 + $0x28] sm:$0xf]  ;;  %v5708_v52 = vor.u32 %v7391_v45, %v5707_v44 }
  0x10   :  { %3627 = vmatpush.bf16.msra.mxu2 %v7797_v14  ;;  %v7392_v49 = vld [vmem:[%s10691_s0 + $0x34] sm:$0xf0]  ;;  %v7390_v50 = vld [vmem:[%s10691_s0 + $0x2c] sm:$0xf]  ;;  %v5717_v51 = vld [vmem:[%s10691_s0 + $0x38] sm:$0xf0]  ;;  %v5712_v53 = vor.u32 %v7389_v46, %v5709_v47 }
  0x11   :  { %4126 = vmatpush.bf16.msra.mxu3 %v7805_v15  ;;  %v5716_v54 = vor.u32 %v7392_v49, %v5715_v48  ;;  %v5720_v55 = vor.u32 %v7390_v50, %v5717_v51  ;;  %v5723_v56 = vld [vmem:[%s10691_s0 + $0x40] sm:$0xf]  ;;  %v7395_v57 = vld [vmem:[%s10691_s0 + $0x4c] sm:$0xf0]  ;;  %v7393_v58 = vld [vmem:[%s10691_s0 + $0x44] sm:$0xf] }
  0x12   :  { %2630 = vmatpush.bf16.msra.mxu0 %v7780_v16  ;;  %v5725_v59 = vld [vmem:[%s10691_s0 + $0x50] sm:$0xf0]  ;;  %v5731_v60 = vld [vmem:[%s10691_s0 + $0x48] sm:$0xf]  ;;  %v7396_v61 = vld [vmem:[%s10691_s0 + $0x54] sm:$0xf0]  ;;  %v5724_v0 = vor.u32 %v7395_v57, %v5723_v56 }
  0x13   :  { %3129 = vmatpush.bf16.msra.mxu1 %v7788_v17  ;;  %v7394_v62 = vld [vmem:[%s10691_s0 + $0x4c] sm:$0xf]  ;;  %v5733_v63 = vld [vmem:[%s10691_s0 + $0x58] sm:$0xf0]  ;;  %v5728_v1 = vor.u32 %v7393_v58, %v5725_v59  ;;  %v5732_v2 = vor.u32 %v7396_v61, %v5731_v60  ;;  %v5739_v4 = vld [vmem:[%s10691_s0 + $0x60] sm:$0xf] }
  0x14   :  { %3628 = vmatpush.bf16.msra.mxu2 %v7796_v18  ;;  %v5736_v3 = vor.u32 %v7394_v62, %v5733_v63  ;;  %v7399_v5 = vld [vmem:[%s10691_s0 + $0x6c] sm:$0xf0]  ;;  %v7397_v6 = vld [vmem:[%s10691_s0 + $0x64] sm:$0xf]  ;;  %v5741_v7 = vld [vmem:[%s10691_s0 + $0x70] sm:$0xf0] }
  0x15   :  { %4127 = vmatpush.bf16.msra.mxu3 %v7804_v19  ;;  %v5747_v8 = vld [vmem:[%s10691_s0 + $0x68] sm:$0xf]  ;;  %v7400_v9 = vld [vmem:[%s10691_s0 + $0x74] sm:$0xf0]  ;;  %v7398_v10 = vld [vmem:[%s10691_s0 + $0x6c] sm:$0xf]  ;;  %v5740_v12 = vor.u32 %v7399_v5, %v5739_v4  ;;  %v5744_v13 = vor.u32 %v7397_v6, %v5741_v7 }
  0x16   :  { %2631 = vmatpush.bf16.msra.mxu0 %v7779_v20  ;;  %v5749_v11 = vld [vmem:[%s10691_s0 + $0x78] sm:$0xf0]  ;;  %v5748_v14 = vor.u32 %v7400_v9, %v5747_v8  ;;  %v5755_v16 = vld [vmem:[%s10691_s0 + $0x80] sm:$0xf]  ;;  %v7403_v17 = vld [vmem:[%s10691_s0 + $0x8c] sm:$0xf0] }
  0x17   :  { %3130 = vmatpush.bf16.msra.mxu1 %v7787_v21  ;;  %v5752_v15 = vor.u32 %v7398_v10, %v5749_v11  ;;  %v7401_v18 = vld [vmem:[%s10691_s0 + $0x84] sm:$0xf]  ;;  %v5757_v19 = vld [vmem:[%s10691_s0 + $0x90] sm:$0xf0]  ;;  %v5763_v20 = vld [vmem:[%s10691_s0 + $0x88] sm:$0xf] }
  0x18   :  { %3629 = vmatpush.bf16.msra.mxu2 %v7795_v22  ;;  %v7404_v21 = vld [vmem:[%s10691_s0 + $0x94] sm:$0xf0]  ;;  %v7402_v22 = vld [vmem:[%s10691_s0 + $0x8c] sm:$0xf]  ;;  %v5779_v32 = vld [vmem:[%s10691_s0 + $0xa8] sm:$0xf] }
  0x19   :  { %4128 = vmatpush.bf16.msra.mxu3 %v7803_v23  ;;  %v5765_v23 = vld [vmem:[%s10691_s0 + $0x98] sm:$0xf0]  ;;  %v7408_v33 = vld [vmem:[%s10691_s0 + $0xb4] sm:$0xf0]  ;;  %v7406_v34 = vld [vmem:[%s10691_s0 + $0xac] sm:$0xf] }
  0x1a   :  { %2632 = vmatpush.bf16.msra.mxu0 %v7778_v24  ;;  %v5756_v24 = vor.u32 %v7403_v17, %v5755_v16  ;;  %v5781_v35 = vld [vmem:[%s10691_s0 + $0xb8] sm:$0xf0]  ;;  %v5780_v38 = vor.u32 %v7408_v33, %v5779_v32  ;;  %v5795_v44 = vld [vmem:[%s10691_s0 + $0xc8] sm:$0xf]  ;;  %v7412_v45 = vld [vmem:[%s10691_s0 + $0xd4] sm:$0xf0] }
  0x1b   :  { %3131 = vmatpush.bf16.msra.mxu1 %v7786_v25  ;;  %v5760_v25 = vor.u32 %v7401_v18, %v5757_v19  ;;  %v5784_v39 = vor.u32 %v7406_v34, %v5781_v35  ;;  %v7410_v46 = vld [vmem:[%s10691_s0 + $0xcc] sm:$0xf]  ;;  %v5797_v47 = vld [vmem:[%s10691_s0 + $0xd8] sm:$0xf0]  ;;  %v5796_v50 = vor.u32 %v7412_v45, %v5795_v44  ;;  %v5811_v56 = vld [vmem:[%s10691_s0 + $0xe8] sm:$0xf] }
  0x1c   :  { %3630 = vmatpush.bf16.msra.mxu2 %v7794_v26  ;;  %v5764_v26 = vor.u32 %v7404_v21, %v5763_v20  ;;  %v5800_v51 = vor.u32 %v7410_v46, %v5797_v47  ;;  %v7416_v57 = vld [vmem:[%s10691_s0 + $0xf4] sm:$0xf0]  ;;  %v7414_v58 = vld [vmem:[%s10691_s0 + $0xec] sm:$0xf]  ;;  %v5813_v59 = vld [vmem:[%s10691_s0 + $0xf8] sm:$0xf0] }
  0x1d   :  { %4129 = vmatpush.bf16.msra.mxu3 %v7802_v27  ;;  %v5768_v27 = vor.u32 %v7402_v22, %v5765_v23  ;;  %v5812_v62 = vor.u32 %v7416_v57, %v5811_v56  ;;  %v5816_v63 = vor.u32 %v7414_v58, %v5813_v59  ;;  %v5821_v4 = vld [vmem:[%s10691_s0 + $0x110] sm:$0xf0]  ;;  %v5827_v5 = vld [vmem:[%s10691_s0 + $0x108] sm:$0xf]  ;;  %v7420_v6 = vld [vmem:[%s10691_s0 + $0x114] sm:$0xf0] }
  0x1e   :  { %2633 = vmatpush.bf16.msra.mxu0 %v7777_v28  ;;  %v5771_v28 = vld [vmem:[%s10691_s0 + $0xa0] sm:$0xf]  ;;  %v7418_v7 = vld [vmem:[%s10691_s0 + $0x10c] sm:$0xf]  ;;  %v5829_v8 = vld [vmem:[%s10691_s0 + $0x118] sm:$0xf0] }
  0x1f   :  { %3132 = vmatpush.bf16.msra.mxu1 %v7785_v29  ;;  %v7407_v29 = vld [vmem:[%s10691_s0 + $0xac] sm:$0xf0]  ;;  %v5845_v32 = vld [vmem:[%s10691_s0 + $0x138] sm:$0xf0]  ;;  %v7425_v56 = vld [vmem:[%s10691_s0 + $0x144] sm:$0xf] }
  0x20   :  { %3631 = vmatpush.bf16.msra.mxu2 %v7793_v30  ;;  %v7405_v30 = vld [vmem:[%s10691_s0 + $0xa4] sm:$0xf]  ;;  %v5772_v36 = vor.u32 %v7407_v29, %v5771_v28  ;;  %v5837_v28 = vld [vmem:[%s10691_s0 + $0x130] sm:$0xf0]  ;;  %v5843_v29 = vld [vmem:[%s10691_s0 + $0x128] sm:$0xf] }
  0x21   :  { %4130 = vmatpush.bf16.msra.mxu3 %v7801_v31  ;;  %2634 = vmatmul.bf16.vlgmr.msra.gmra.mxu0 %v5692_v40  ;;  %v5773_v31 = vld [vmem:[%s10691_s0 + $0xb0] sm:$0xf0]  ;;  %v5787_v40 = vld [vmem:[%s10691_s0 + $0xc0] sm:$0xf]  ;;  %v5859_v59 = vld [vmem:[%s10691_s0 + $0x148] sm:$0xf] }
  0x22   :  { %3133 = vmatmul.bf16.vlgmr.msra.gmra.mxu1 %v5696_v41  ;;  %v5776_v37 = vor.u32 %v7405_v30, %v5773_v31  ;;  %v7411_v41 = vld [vmem:[%s10691_s0 + $0xcc] sm:$0xf0]  ;;  %v7424_v30 = vld [vmem:[%s10691_s0 + $0x134] sm:$0xf0]  ;;  %v7422_v31 = vld [vmem:[%s10691_s0 + $0x12c] sm:$0xf] }
  0x23   :  { %3632 = vmatmul.bf16.vlgmr.msra.gmra.mxu2 %v5700_v42  ;;  %v7409_v42 = vld [vmem:[%s10691_s0 + $0xc4] sm:$0xf]  ;;  %v5788_v48 = vor.u32 %v7411_v41, %v5787_v40  ;;  %v5844_v41 = vor.u32 %v7424_v30, %v5843_v29  ;;  %v5853_v58 = vld [vmem:[%s10691_s0 + $0x150] sm:$0xf0]  ;;  %v5877_v29 = vld [vmem:[%s10691_s0 + $0x178] sm:$0xf0] }
  0x24   :  { %4131 = vmatmul.bf16.vlgmr.msra.gmra.mxu3 %v5704_v43  ;;  %v5789_v43 = vld [vmem:[%s10691_s0 + $0xd0] sm:$0xf0] }
  0x25   :  { %v5792_v49 = vor.u32 %v7409_v42, %v5789_v43  ;;  %v5848_v42 = vor.u32 %v7422_v31, %v5845_v32 }
  0x31   :  { %2639 = vmatmul.bf16.gmra.mxu0 %v5708_v52  ;;  %v5803_v52 = vld [vmem:[%s10691_s0 + $0xe0] sm:$0xf] }
  0x32   :  { %3138 = vmatmul.bf16.gmra.mxu1 %v5712_v53  ;;  %v7415_v53 = vld [vmem:[%s10691_s0 + $0xec] sm:$0xf0] }
  0x33   :  { %3637 = vmatmul.bf16.gmra.mxu2 %v5716_v54  ;;  %v7413_v54 = vld [vmem:[%s10691_s0 + $0xe4] sm:$0xf]  ;;  %v5804_v60 = vor.u32 %v7415_v53, %v5803_v52 }
  0x34   :  { %4136 = vmatmul.bf16.gmra.mxu3 %v5720_v55  ;;  %v5805_v55 = vld [vmem:[%s10691_s0 + $0xf0] sm:$0xf0] }
  0x35   :  { %v5808_v61 = vor.u32 %v7413_v54, %v5805_v55  ;;  %v5851_v54 = vld [vmem:[%s10691_s0 + $0x140] sm:$0xf]  ;;  %v7427_v55 = vld [vmem:[%s10691_s0 + $0x14c] sm:$0xf0] }
  0x41   :  { %2644 = vmatmul.bf16.gmra.mxu0 %v5724_v0  ;;  %v8128_v0 = vld [vmem:[%s10690_s2] ss:$0 sm:$0xff] }
  0x42   :  { %3143 = vmatmul.bf16.gmra.mxu1 %v5728_v1  ;;  %v5819_v1 = vld [vmem:[%s10691_s0 + $0x100] sm:$0xf] }
  0x43   :  { %3642 = vmatmul.bf16.gmra.mxu2 %v5732_v2  ;;  %v7419_v2 = vld [vmem:[%s10691_s0 + $0x10c] sm:$0xf0] }
  0x44   :  { %4141 = vmatmul.bf16.gmra.mxu3 %v5736_v3  ;;  %v7417_v3 = vld [vmem:[%s10691_s0 + $0x104] sm:$0xf]  ;;  %v5820_v9 = vor.u32 %v7419_v2, %v5819_v1 }
  0x45   :  { %v5824_v10 = vor.u32 %v7417_v3, %v5821_v4  ;;  %v5852_v3 = vor.u32 %v7427_v55, %v5851_v54  ;;  %v5856_v4 = vor.u32 %v7425_v56, %v5853_v58  ;;  %v7435_v54 = vld [vmem:[%s10691_s0 + $0x18c] sm:$0xf0]  ;;  %v7433_v55 = vld [vmem:[%s10691_s0 + $0x184] sm:$0xf]  ;;  %v5885_v56 = vld [vmem:[%s10691_s0 + $0x190] sm:$0xf0] }
  0x51   :  { %2649 = vmatmul.bf16.gmra.mxu0 %v5740_v12 }
  0x52   :  { %3148 = vmatmul.bf16.gmra.mxu1 %v5744_v13  ;;  %v5828_v13 = vor.u32 %v7420_v6, %v5827_v5 }
  0x53   :  { %3647 = vmatmul.bf16.gmra.mxu2 %v5748_v14  ;;  %v5832_v14 = vor.u32 %v7418_v7, %v5829_v8 }
  0x54   :  { %4146 = vmatmul.bf16.gmra.mxu3 %v5752_v15 }
  0x61   :  { %2654 = vmatmul.bf16.gmra.mxu0 %v5756_v24  ;;  %v5835_v24 = vld [vmem:[%s10691_s0 + $0x120] sm:$0xf] }
  0x62   :  { %3153 = vmatmul.bf16.gmra.mxu1 %v5760_v25  ;;  %v7423_v25 = vld [vmem:[%s10691_s0 + $0x12c] sm:$0xf0] }
  0x63   :  { %3652 = vmatmul.bf16.gmra.mxu2 %v5764_v26  ;;  %v7421_v26 = vld [vmem:[%s10691_s0 + $0x124] sm:$0xf] }
  0x64   :  { %4151 = vmatmul.bf16.gmra.mxu3 %v5768_v27 }
  0x71   :  { %2659 = vmatmul.bf16.gmra.mxu0 %v5772_v36  ;;  %v5836_v36 = vor.u32 %v7423_v25, %v5835_v24  ;;  %v5869_v25 = vld [vmem:[%s10691_s0 + $0x170] sm:$0xf0] }
  0x72   :  { %3158 = vmatmul.bf16.gmra.mxu1 %v5776_v37  ;;  %v5840_v37 = vor.u32 %v7421_v26, %v5837_v28  ;;  %v5875_v26 = vld [vmem:[%s10691_s0 + $0x168] sm:$0xf]  ;;  %v7430_v28 = vld [vmem:[%s10691_s0 + $0x16c] sm:$0xf] }
  0x73   :  { %3657 = vmatmul.bf16.gmra.mxu2 %v5780_v38 }
  0x74   :  { %4156 = vmatmul.bf16.gmra.mxu3 %v5784_v39 }
  0x81   :  { %2664 = vmatmul.bf16.gmra.mxu0 %v5788_v48 }
  0x82   :  { %3163 = vmatmul.bf16.gmra.mxu1 %v5792_v49 }
  0x83   :  { %3662 = vmatmul.bf16.gmra.mxu2 %v5796_v50 }
  0x84   :  { %4161 = vmatmul.bf16.gmra.mxu3 %v5800_v51 }
  0x91   :  { %2669 = vmatmul.bf16.gmra.mxu0 %v5804_v60  ;;  %v7428_v60 = vld [vmem:[%s10691_s0 + $0x154] sm:$0xf0] }
  0x92   :  { %3168 = vmatmul.bf16.gmra.mxu1 %v5808_v61  ;;  %v7426_v61 = vld [vmem:[%s10691_s0 + $0x14c] sm:$0xf]  ;;  %v5860_v8 = vor.u32 %v7428_v60, %v5859_v59  ;;  %v7436_v59 = vld [vmem:[%s10691_s0 + $0x194] sm:$0xf0] }
  0x93   :  { %3667 = vmatmul.bf16.gmra.mxu2 %v5812_v62  ;;  %v5861_v62 = vld [vmem:[%s10691_s0 + $0x158] sm:$0xf0]  ;;  %v7434_v60 = vld [vmem:[%s10691_s0 + $0x18c] sm:$0xf] }
  0x94   :  { %4166 = vmatmul.bf16.gmra.mxu3 %v5816_v63 }
  0x9e   :  { %v2635_v11 = vpop.f32.mrf.mxu0 }
  0x9f   :  { %v3134_v12 = vpop.f32.mrf.mxu1  ;;  %v2636_v15 = vadd.f32 %v8128_v0, %v2635_v11 }
  0xa1   :  { %2674 = vmatmul.bf16.gmra.mxu0 %v5820_v9  ;;  %v3135_v16 = vadd.f32 %v3134_v12, %v2636_v15  ;;  %v5864_v9 = vor.u32 %v7426_v61, %v5861_v62 }
  0xa2   :  { %3173 = vmatmul.bf16.gmra.mxu1 %v5824_v10 }
  0xa3   :  { %3672 = vmatmul.bf16.gmra.mxu2 %v5828_v13 }
  0xa4   :  { %4171 = vmatmul.bf16.gmra.mxu3 %v5832_v14 }
  0xa6   :  { %v3633_v17 = vpop.f32.mrf.mxu2  ;;  %v2637_v20 = vpop.f32.mrf.mxu0 }
  0xa7   :  { %v4132_v18 = vpop.f32.mrf.mxu3  ;;  %v3634_v19 = vadd.f32 %v3633_v17, %v3135_v16  ;;  %v3136_v21 = vpop.f32.mrf.mxu1  ;;  %v2638_v23 = vadd.f32 %v8128_v0, %v2637_v20 }
  0xa9   :  { %v4133_v22 = vadd.f32 %v4132_v18, %v3634_v19  ;;  %v3137_v33 = vadd.f32 %v3136_v21, %v2638_v23  ;;  %v5867_v21 = vld [vmem:[%s10691_s0 + $0x160] sm:$0xf]  ;;  %v7429_v23 = vld [vmem:[%s10691_s0 + $0x164] sm:$0xf] }
  0xab   :  { %v4622_v27 = vmax.f32 %v4133_v22, 0.0  ;;  %v7431_v22 = vld [vmem:[%s10691_s0 + $0x16c] sm:$0xf0] }
  0xad   :  { %4818 = vst [vmem:[#allocation2] sm:$0xff] %v4622_v27  ;;  %v7432_v27 = vld [vmem:[%s10691_s0 + $0x174] sm:$0xf0] }
  0xae   :  { %v3635_v34 = vpop.f32.mrf.mxu2  ;;  %v2640_v39 = vpop.f32.mrf.mxu0 }
  0xaf   :  { %v4134_v35 = vpop.f32.mrf.mxu3  ;;  %v3636_v38 = vadd.f32 %v3635_v34, %v3137_v33  ;;  %v3139_v40 = vpop.f32.mrf.mxu1  ;;  %v2641_v43 = vadd.f32 %v8128_v0, %v2640_v39  ;;  %v5868_v33 = vor.u32 %v7431_v22, %v5867_v21  ;;  %v5872_v34 = vor.u32 %v7429_v23, %v5869_v25 }
  0xb0   :  { %v5880_v39 = vor.u32 %v7430_v28, %v5877_v29 }
  0xb1   :  { %v4135_v44 = vadd.f32 %v4134_v35, %v3636_v38  ;;  %2679 = vmatmul.bf16.gmra.mxu0 %v5836_v36  ;;  %v3140_v46 = vadd.f32 %v3139_v40, %v2641_v43  ;;  %v5876_v38 = vor.u32 %v7432_v27, %v5875_v26 }
  0xb2   :  { %3178 = vmatmul.bf16.gmra.mxu1 %v5840_v37 }
  0xb3   :  { %v4623_v45 = vmax.f32 %v4135_v44, 0.0  ;;  %3677 = vmatmul.bf16.gmra.mxu2 %v5844_v41 }
  0xb4   :  { %4176 = vmatmul.bf16.gmra.mxu3 %v5848_v42 }
  0xb5   :  { %4819 = vst [vmem:[#allocation2 + $0x8] sm:$0xff] %v4623_v45 }
  0xb6   :  { %v3638_v47 = vpop.f32.mrf.mxu2  ;;  %v2642_v50 = vpop.f32.mrf.mxu0 }
  0xb7   :  { %v4137_v48 = vpop.f32.mrf.mxu3  ;;  %v3639_v49 = vadd.f32 %v3638_v47, %v3140_v46  ;;  %v3141_v51 = vpop.f32.mrf.mxu1  ;;  %v2643_v53 = vadd.f32 %v8128_v0, %v2642_v50 }
  0xb9   :  { %v4138_v52 = vadd.f32 %v4137_v48, %v3639_v49  ;;  %v3142_v63 = vadd.f32 %v3141_v51, %v2643_v53  ;;  %v5883_v53 = vld [vmem:[%s10691_s0 + $0x180] sm:$0xf] }
  0xbb   :  { %v4624_v57 = vmax.f32 %v4138_v52, 0.0 }
  0xbc   :  { %v5014_v49 = vld [vmem:[#allocation2] ss:$2 sm:$0xff]  ;;  %v5018_v50 = vld [vmem:[#allocation2 + $0x1] ss:$2 sm:$0xff] }
  0xbd   :  { %4820 = vst [vmem:[#allocation2 + $0x10] sm:$0xff] %v4624_v57  ;;  %v5891_v57 = vld [vmem:[%s10691_s0 + $0x188] sm:$0xf] }
  0xbe   :  { %v3640_v1 = vpop.f32.mrf.mxu2  ;;  %v2645_v6 = vpop.f32.mrf.mxu0 }
  0xbf   :  { %v4139_v2 = vpop.f32.mrf.mxu3  ;;  %v3641_v5 = vadd.f32 %v3640_v1, %v3142_v63  ;;  %v3144_v7 = vpop.f32.mrf.mxu1  ;;  %v2646_v10 = vadd.f32 %v8128_v0, %v2645_v6  ;;  %v5893_v63 = vld [vmem:[%s10691_s0 + $0x198] sm:$0xf0]  ;;  %v5029_v1 = vmax.f32 %v5014_v49, %v5018_v50  ;;  %v5884_v6 = vor.u32 %v7435_v54, %v5883_v53 }
  0xc1   :  { %v4140_v11 = vadd.f32 %v4139_v2, %v3641_v5  ;;  %2684 = vmatmul.bf16.gmra.mxu0 %v5852_v3  ;;  %v3145_v13 = vadd.f32 %v3144_v7, %v2646_v10  ;;  %v5888_v7 = vor.u32 %v7433_v55, %v5885_v56 }
  0xc2   :  { %3183 = vmatmul.bf16.gmra.mxu1 %v5856_v4 }
  0xc3   :  { %v4625_v12 = vmax.f32 %v4140_v11, 0.0  ;;  %3682 = vmatmul.bf16.gmra.mxu2 %v5860_v8 }
  0xc4   :  { %4181 = vmatmul.bf16.gmra.mxu3 %v5864_v9 }
  0xc5   :  { %4821 = vst [vmem:[#allocation2 + $0x18] sm:$0xff] %v4625_v12  ;;  %v5892_v12 = vor.u32 %v7436_v59, %v5891_v57 }
  0xc6   :  { %v3643_v14 = vpop.f32.mrf.mxu2  ;;  %v2647_v17 = vpop.f32.mrf.mxu0 }
  0xc7   :  { %v4142_v15 = vpop.f32.mrf.mxu3  ;;  %v3644_v16 = vadd.f32 %v3643_v14, %v3145_v13  ;;  %v3146_v18 = vpop.f32.mrf.mxu1  ;;  %v2648_v20 = vadd.f32 %v8128_v0, %v2647_v17  ;;  %v5896_v13 = vor.u32 %v7434_v60, %v5893_v63  ;;  %v7443_v63 = vld [vmem:[%s10691_s0 + $0x1cc] sm:$0xf0] }
  0xc9   :  { %v4143_v19 = vadd.f32 %v4142_v15, %v3644_v16  ;;  %v3147_v30 = vadd.f32 %v3146_v18, %v2648_v20 }
  0xcb   :  { %v4626_v24 = vmax.f32 %v4143_v19, 0.0 }
  0xcc   :  { %v5016_v16 = vld [vmem:[#allocation2 + $0x10] ss:$2 sm:$0x3f]  ;;  %v5020_v17 = vld [vmem:[#allocation2 + $0x11] ss:$2 sm:$0x3f] }
  0xcd   :  { %4822 = vst [vmem:[#allocation2 + $0x20] sm:$0xff] %v4626_v24  ;;  %v5030_v22 = vmax.f32 %v5016_v16, %v5020_v17 }
  0xce   :  { %v3645_v31 = vpop.f32.mrf.mxu2  ;;  %v2650_v36 = vpop.f32.mrf.mxu0 }
  0xcf   :  { %v4144_v32 = vpop.f32.mrf.mxu3  ;;  %v3646_v35 = vadd.f32 %v3645_v31, %v3147_v30  ;;  %v3149_v37 = vpop.f32.mrf.mxu1  ;;  %v2651_v40 = vadd.f32 %v8128_v0, %v2650_v36  ;;  %v5901_v36 = vld [vmem:[%s10691_s0 + $0x1b0] sm:$0xf0] }
  0xd1   :  { %v4145_v41 = vadd.f32 %v4144_v32, %v3646_v35  ;;  %2689 = vmatmul.bf16.gmra.mxu0 %v5868_v33  ;;  %v3150_v43 = vadd.f32 %v3149_v37, %v2651_v40  ;;  %v5899_v32 = vld [vmem:[%s10691_s0 + $0x1a0] sm:$0xf]  ;;  %v7439_v33 = vld [vmem:[%s10691_s0 + $0x1ac] sm:$0xf0]  ;;  %v5907_v37 = vld [vmem:[%s10691_s0 + $0x1a8] sm:$0xf] }
  0xd2   :  { %3188 = vmatmul.bf16.gmra.mxu1 %v5872_v34  ;;  %v7437_v34 = vld [vmem:[%s10691_s0 + $0x1a4] sm:$0xf]  ;;  %v5909_v40 = vld [vmem:[%s10691_s0 + $0x1b8] sm:$0xf0] }
  0xd3   :  { %v4627_v42 = vmax.f32 %v4145_v41, 0.0  ;;  %3687 = vmatmul.bf16.gmra.mxu2 %v5876_v38  ;;  %v7440_v38 = vld [vmem:[%s10691_s0 + $0x1b4] sm:$0xf0] }
  0xd4   :  { %4186 = vmatmul.bf16.gmra.mxu3 %v5880_v39  ;;  %v7438_v39 = vld [vmem:[%s10691_s0 + $0x1ac] sm:$0xf]  ;;  %v5908_v49 = vor.u32 %v7440_v38, %v5907_v37  ;;  %v5941_v37 = vld [vmem:[%s10691_s0 + $0x1f8] sm:$0xf0] }
  0xd5   :  { %4823 = vst [vmem:[#allocation2 + $0x28] sm:$0xff] %v4627_v42  ;;  %v5912_v50 = vor.u32 %v7438_v39, %v5909_v40 }
  0xd6   :  { %v3648_v44 = vpop.f32.mrf.mxu2  ;;  %v2652_v47 = vpop.f32.mrf.mxu0 }
  0xd7   :  { %v4147_v45 = vpop.f32.mrf.mxu3  ;;  %v3649_v46 = vadd.f32 %v3648_v44, %v3150_v43  ;;  %v3151_v48 = vpop.f32.mrf.mxu1  ;;  %v2653_v52 = vadd.f32 %v8128_v0, %v2652_v47  ;;  %v5900_v44 = vor.u32 %v7439_v33, %v5899_v32  ;;  %v5933_v33 = vld [vmem:[%s10691_s0 + $0x1f0] sm:$0xf0] }
  0xd9   :  { %v4148_v51 = vadd.f32 %v4147_v45, %v3649_v46  ;;  %v3152_v3 = vadd.f32 %v3151_v48, %v2653_v52  ;;  %v5904_v45 = vor.u32 %v7437_v34, %v5901_v36  ;;  %v5939_v34 = vld [vmem:[%s10691_s0 + $0x1e8] sm:$0xf]  ;;  %v7446_v36 = vld [vmem:[%s10691_s0 + $0x1ec] sm:$0xf] }
  0xdb   :  { %v4628_v58 = vmax.f32 %v4148_v51, 0.0 }
  0xdc   :  { %v5022_v61 = vld [vmem:[#allocation2 + $0x1c] ss:$2 sm:$0xff]  ;;  %v5026_v62 = vld [vmem:[#allocation2 + $0x1d] ss:$2 sm:$0xff] }
  0xdd   :  { %v5031_v2 = vmax.f32 %v5022_v61, %v5026_v62  ;;  %4824 = vst [vmem:[#allocation2 + $0x30] sm:$0xff] %v4628_v58  ;;  %v5915_v62 = vld [vmem:[%s10691_s0 + $0x1c0] sm:$0xf] }
  0xde   :  { %v3650_v4 = vpop.f32.mrf.mxu2  ;;  %v2655_v10 = vpop.f32.mrf.mxu0 }
  0xdf   :  { %v4149_v5 = vpop.f32.mrf.mxu3  ;;  %v5033_v8 = vmax.f32 %v5029_v1, %v5031_v2  ;;  %v3651_v9 = vadd.f32 %v3650_v4, %v3152_v3  ;;  %v3154_v11 = vpop.f32.mrf.mxu1  ;;  %v2656_v14 = vadd.f32 %v8128_v0, %v2655_v10  ;;  %v7441_v1 = vld [vmem:[%s10691_s0 + $0x1c4] sm:$0xf]  ;;  %v5917_v3 = vld [vmem:[%s10691_s0 + $0x1d0] sm:$0xf0]  ;;  %v5923_v4 = vld [vmem:[%s10691_s0 + $0x1c8] sm:$0xf] }
  0xe1   :  { %5035 = vst [vmem:[%s10692_s3] sm:$0xff] %v5033_v8  ;;  %v4150_v15 = vadd.f32 %v4149_v5, %v3651_v9  ;;  %2694 = vmatmul.bf16.gmra.mxu0 %v5884_v6  ;;  %v3155_v19 = vadd.f32 %v3154_v11, %v2656_v14  ;;  %v7444_v5 = vld [vmem:[%s10691_s0 + $0x1d4] sm:$0xf0]  ;;  %v7442_v6 = vld [vmem:[%s10691_s0 + $0x1cc] sm:$0xf]  ;;  %v5916_v11 = vor.u32 %v7443_v63, %v5915_v62 }
  0xe2   :  { %3193 = vmatmul.bf16.gmra.mxu1 %v5888_v7  ;;  %v5925_v7 = vld [vmem:[%s10691_s0 + $0x1d8] sm:$0xf0]  ;;  %v5924_v16 = vor.u32 %v7444_v5, %v5923_v4  ;;  %v7451_v4 = vld [vmem:[%s10691_s0 + $0x20c] sm:$0xf0]  ;;  %v7449_v5 = vld [vmem:[%s10691_s0 + $0x204] sm:$0xf] }
  0xe3   :  { %v4629_v18 = vmax.f32 %v4150_v15, 0.0  ;;  %3692 = vmatmul.bf16.gmra.mxu2 %v5892_v12  ;;  %v5920_v12 = vor.u32 %v7441_v1, %v5917_v3  ;;  %v5928_v17 = vor.u32 %v7442_v6, %v5925_v7  ;;  %v5947_v3 = vld [vmem:[%s10691_s0 + $0x200] sm:$0xf]  ;;  %v5949_v6 = vld [vmem:[%s10691_s0 + $0x210] sm:$0xf0] }
  0xe4   :  { %4191 = vmatmul.bf16.gmra.mxu3 %v5896_v13  ;;  %v5024_v20 = vld [vmem:[#allocation2 + $0x2c] ss:$2 sm:$0x3f]  ;;  %v5028_v21 = vld [vmem:[#allocation2 + $0x2d] ss:$2 sm:$0x3f] }
  0xe5   :  { %v5032_v23 = vmax.f32 %v5024_v20, %v5028_v21  ;;  %4825 = vst [vmem:[#allocation2 + $0x38] sm:$0xff] %v4629_v18 }
  0xe6   :  { %v3653_v24 = vpop.f32.mrf.mxu2  ;;  %v2657_v28 = vpop.f32.mrf.mxu0 }
  0xe7   :  { %v4152_v25 = vpop.f32.mrf.mxu3  ;;  %v5034_v26 = vmax.f32 %v5030_v22, %v5032_v23  ;;  %v3654_v27 = vadd.f32 %v3653_v24, %v3155_v19  ;;  %v3156_v29 = vpop.f32.mrf.mxu1  ;;  %v2658_v31 = vadd.f32 %v8128_v0, %v2657_v28 }
  0xe9   :  { %5036 = vst [vmem:[%s10692_s3 + $0x8] sm:$0x3f] %v5034_v26  ;;  %v4153_v30 = vadd.f32 %v4152_v25, %v3654_v27  ;;  %v3157_v41 = vadd.f32 %v3156_v29, %v2658_v31  ;;  %v5931_v29 = vld [vmem:[%s10691_s0 + $0x1e0] sm:$0xf]  ;;  %v7445_v31 = vld [vmem:[%s10691_s0 + $0x1e4] sm:$0xf] }
  0xeb   :  { %v4630_v35 = vmax.f32 %v4153_v30, 0.0  ;;  %v7447_v30 = vld [vmem:[%s10691_s0 + $0x1ec] sm:$0xf0] }
  0xed   :  { %4826 = vst [vmem:[#allocation2 + $0x40] sm:$0xff] %v4630_v35  ;;  %v7448_v35 = vld [vmem:[%s10691_s0 + $0x1f4] sm:$0xf0] }
  0xee   :  { %v3655_v42 = vpop.f32.mrf.mxu2  ;;  %v2660_v47 = vpop.f32.mrf.mxu0 }
  0xef   :  { %v4154_v43 = vpop.f32.mrf.mxu3  ;;  %v3656_v46 = vadd.f32 %v3655_v42, %v3157_v41  ;;  %v3159_v48 = vpop.f32.mrf.mxu1  ;;  %v2661_v51 = vadd.f32 %v8128_v0, %v2660_v47  ;;  %v5932_v41 = vor.u32 %v7447_v30, %v5931_v29  ;;  %v5936_v42 = vor.u32 %v7445_v31, %v5933_v33 }
  0xf0   :  { %v5944_v47 = vor.u32 %v7446_v36, %v5941_v37 }
  0xf1   :  { %v4155_v52 = vadd.f32 %v4154_v43, %v3656_v46  ;;  %2699 = vmatmul.bf16.gmra.mxu0 %v5900_v44  ;;  %v3160_v54 = vadd.f32 %v3159_v48, %v2661_v51  ;;  %v5940_v46 = vor.u32 %v7448_v35, %v5939_v34 }
  0xf2   :  { %3198 = vmatmul.bf16.gmra.mxu1 %v5904_v45 }
  0xf3   :  { %v4631_v53 = vmax.f32 %v4155_v52, 0.0  ;;  %3697 = vmatmul.bf16.gmra.mxu2 %v5908_v49 }
  0xf4   :  { %4196 = vmatmul.bf16.gmra.mxu3 %v5912_v50  ;;  %v5038_v50 = vld [vmem:[#allocation2 + $0x38] ss:$2 sm:$0xff]  ;;  %v5042_v51 = vld [vmem:[#allocation2 + $0x39] ss:$2 sm:$0xff] }
  0xf5   :  { %4827 = vst [vmem:[#allocation2 + $0x48] sm:$0xff] %v4631_v53 }
  0xf6   :  { %v3658_v55 = vpop.f32.mrf.mxu2  ;;  %v2662_v58 = vpop.f32.mrf.mxu0 }
  0xf7   :  { %v4157_v56 = vpop.f32.mrf.mxu3  ;;  %v3659_v57 = vadd.f32 %v3658_v55, %v3160_v54  ;;  %v3161_v59 = vpop.f32.mrf.mxu1  ;;  %v2663_v61 = vadd.f32 %v8128_v0, %v2662_v58 }
  0xf9   :  { %v4158_v60 = vadd.f32 %v4157_v56, %v3659_v57  ;;  %v3162_v8 = vadd.f32 %v3161_v59, %v2663_v61  ;;  %v5053_v56 = vmax.f32 %v5038_v50, %v5042_v51 }
  0xfb   :  { %v4632_v2 = vmax.f32 %v4158_v60, 0.0 }
  0xfd   :  { %4828 = vst [vmem:[#allocation2 + $0x50] sm:$0xff] %v4632_v2 }
  0xfe   :  { %v3660_v9 = vpop.f32.mrf.mxu2  ;;  %v2665_v14 = vpop.f32.mrf.mxu0 }
  0xff   :  { %v4159_v10 = vpop.f32.mrf.mxu3  ;;  %v3661_v13 = vadd.f32 %v3660_v9, %v3162_v8  ;;  %v3164_v15 = vpop.f32.mrf.mxu1  ;;  %v2666_v18 = vadd.f32 %v8128_v0, %v2665_v14  ;;  %v5955_v9 = vld [vmem:[%s10691_s0 + $0x208] sm:$0xf] }
 0x101   :  { %v4160_v19 = vadd.f32 %v4159_v10, %v3661_v13  ;;  %2704 = vmatmul.bf16.gmra.mxu0 %v5916_v11  ;;  %v3165_v21 = vadd.f32 %v3164_v15, %v2666_v18  ;;  %v7452_v10 = vld [vmem:[%s10691_s0 + $0x214] sm:$0xf0]  ;;  %v5957_v13 = vld [vmem:[%s10691_s0 + $0x218] sm:$0xf0] }
 0x102   :  { %3203 = vmatmul.bf16.gmra.mxu1 %v5920_v12  ;;  %v7450_v12 = vld [vmem:[%s10691_s0 + $0x20c] sm:$0xf] }
 0x103   :  { %v4633_v20 = vmax.f32 %v4160_v19, 0.0  ;;  %3702 = vmatmul.bf16.gmra.mxu2 %v5924_v16 }
 0x104   :  { %4201 = vmatmul.bf16.gmra.mxu3 %v5928_v17  ;;  %v5040_v7 = vld [vmem:[#allocation2 + $0x48] ss:$2 sm:$0x3f]  ;;  %v5044_v8 = vld [vmem:[#allocation2 + $0x49] ss:$2 sm:$0x3f] }
 0x105   :  { %4829 = vst [vmem:[#allocation2 + $0x58] sm:$0xff] %v4633_v20  ;;  %v5054_v16 = vmax.f32 %v5040_v7, %v5044_v8  ;;  %v5979_v7 = vld [vmem:[%s10691_s0 + $0x240] sm:$0xf]  ;;  %v7459_v8 = vld [vmem:[%s10691_s0 + $0x24c] sm:$0xf0] }
 0x106   :  { %v3663_v22 = vpop.f32.mrf.mxu2  ;;  %v2667_v25 = vpop.f32.mrf.mxu0 }
 0x107   :  { %v4162_v23 = vpop.f32.mrf.mxu3  ;;  %v3664_v24 = vadd.f32 %v3663_v22, %v3165_v21  ;;  %v3166_v26 = vpop.f32.mrf.mxu1  ;;  %v2668_v28 = vadd.f32 %v8128_v0, %v2667_v25  ;;  %v5948_v21 = vor.u32 %v7451_v4, %v5947_v3  ;;  %v5952_v22 = vor.u32 %v7449_v5, %v5949_v6 }
 0x109   :  { %v4163_v27 = vadd.f32 %v4162_v23, %v3664_v24  ;;  %v3167_v38 = vadd.f32 %v3166_v26, %v2668_v28  ;;  %v5960_v28 = vor.u32 %v7450_v12, %v5957_v13  ;;  %v5987_v12 = vld [vmem:[%s10691_s0 + $0x248] sm:$0xf]  ;;  %v7460_v13 = vld [vmem:[%s10691_s0 + $0x254] sm:$0xf0] }
 0x10b   :  { %v4634_v32 = vmax.f32 %v4163_v27, 0.0  ;;  %v5956_v27 = vor.u32 %v7452_v10, %v5955_v9  ;;  %v7457_v9 = vld [vmem:[%s10691_s0 + $0x244] sm:$0xf] }
 0x10d   :  { %4830 = vst [vmem:[#allocation2 + $0x60] sm:$0xff] %v4634_v32 }
 0x10e   :  { %v3665_v39 = vpop.f32.mrf.mxu2  ;;  %v2670_v44 = vpop.f32.mrf.mxu0 }
 0x10f   :  { %v4164_v40 = vpop.f32.mrf.mxu3  ;;  %v3666_v43 = vadd.f32 %v3665_v39, %v3167_v38  ;;  %v3169_v45 = vpop.f32.mrf.mxu1  ;;  %v2671_v48 = vadd.f32 %v8128_v0, %v2670_v44  ;;  %v5965_v44 = vld [vmem:[%s10691_s0 + $0x230] sm:$0xf0] }
 0x111   :  { %v4165_v49 = vadd.f32 %v4164_v40, %v3666_v43  ;;  %2709 = vmatmul.bf16.gmra.mxu0 %v5932_v41  ;;  %v3170_v53 = vadd.f32 %v3169_v45, %v2671_v48  ;;  %v5963_v40 = vld [vmem:[%s10691_s0 + $0x220] sm:$0xf]  ;;  %v7455_v41 = vld [vmem:[%s10691_s0 + $0x22c] sm:$0xf0]  ;;  %v5971_v45 = vld [vmem:[%s10691_s0 + $0x228] sm:$0xf] }
 0x112   :  { %3208 = vmatmul.bf16.gmra.mxu1 %v5936_v42  ;;  %v7453_v42 = vld [vmem:[%s10691_s0 + $0x224] sm:$0xf]  ;;  %v5973_v48 = vld [vmem:[%s10691_s0 + $0x238] sm:$0xf0] }
 0x113   :  { %v4635_v52 = vmax.f32 %v4165_v49, 0.0  ;;  %3707 = vmatmul.bf16.gmra.mxu2 %v5940_v46  ;;  %v7456_v46 = vld [vmem:[%s10691_s0 + $0x234] sm:$0xf0] }
 0x114   :  { %4206 = vmatmul.bf16.gmra.mxu3 %v5944_v47  ;;  %v5046_v54 = vld [vmem:[#allocation2 + $0x54] ss:$2 sm:$0xff]  ;;  %v5050_v55 = vld [vmem:[#allocation2 + $0x55] ss:$2 sm:$0xff]  ;;  %v7454_v47 = vld [vmem:[%s10691_s0 + $0x22c] sm:$0xf] }
 0x115   :  { %v5055_v57 = vmax.f32 %v5046_v54, %v5050_v55  ;;  %4831 = vst [vmem:[#allocation2 + $0x68] sm:$0xff] %v4635_v52  ;;  %v5964_v52 = vor.u32 %v7455_v41, %v5963_v40  ;;  %v7463_v40 = vld [vmem:[%s10691_s0 + $0x26c] sm:$0xf0]  ;;  %v7461_v41 = vld [vmem:[%s10691_s0 + $0x264] sm:$0xf] }
 0x116   :  { %v3668_v58 = vpop.f32.mrf.mxu2  ;;  %v2672_v62 = vpop.f32.mrf.mxu0 }
 0x117   :  { %v4167_v59 = vpop.f32.mrf.mxu3  ;;  %v5057_v60 = vmax.f32 %v5053_v56, %v5055_v57  ;;  %v3669_v61 = vadd.f32 %v3668_v58, %v3170_v53  ;;  %v3171_v63 = vpop.f32.mrf.mxu1  ;;  %v2673_v2 = vadd.f32 %v8128_v0, %v2672_v62  ;;  %v5968_v53 = vor.u32 %v7453_v42, %v5965_v44  ;;  %v5997_v42 = vld [vmem:[%s10691_s0 + $0x270] sm:$0xf0] }
 0x118   :  { %v5972_v57 = vor.u32 %v7456_v46, %v5971_v45  ;;  %v5976_v58 = vor.u32 %v7454_v47, %v5973_v48  ;;  %v7464_v45 = vld [vmem:[%s10691_s0 + $0x274] sm:$0xf0]  ;;  %v7462_v46 = vld [vmem:[%s10691_s0 + $0x26c] sm:$0xf] }
 0x119   :  { %5059 = vst [vmem:[%s10692_s3 + $0xe] sm:$0xff] %v5057_v60  ;;  %v4168_v1 = vadd.f32 %v4167_v59, %v3669_v61  ;;  %v3172_v18 = vadd.f32 %v3171_v63, %v2673_v2 }
 0x11b   :  { %v4636_v11 = vmax.f32 %v4168_v1, 0.0 }
 0x11c   :  { %v5048_v14 = vld [vmem:[#allocation2 + $0x64] ss:$2 sm:$0x3f]  ;;  %v5052_v15 = vld [vmem:[#allocation2 + $0x65] ss:$2 sm:$0x3f] }
 0x11d   :  { %v5056_v17 = vmax.f32 %v5048_v14, %v5052_v15  ;;  %4832 = vst [vmem:[#allocation2 + $0x70] sm:$0xff] %v4636_v11  ;;  %v5981_v11 = vld [vmem:[%s10691_s0 + $0x250] sm:$0xf0]  ;;  %v7458_v14 = vld [vmem:[%s10691_s0 + $0x24c] sm:$0xf] }
 0x11e   :  { %v3670_v19 = vpop.f32.mrf.mxu2  ;;  %v2675_v25 = vpop.f32.mrf.mxu0  ;;  %v5989_v15 = vld [vmem:[%s10691_s0 + $0x258] sm:$0xf0] }
 0x11f   :  { %v4169_v20 = vpop.f32.mrf.mxu3  ;;  %v5058_v23 = vmax.f32 %v5054_v16, %v5056_v17  ;;  %v3671_v24 = vadd.f32 %v3670_v19, %v3172_v18  ;;  %v3174_v26 = vpop.f32.mrf.mxu1  ;;  %v2676_v29 = vadd.f32 %v8128_v0, %v2675_v25  ;;  %v5980_v19 = vor.u32 %v7459_v8, %v5979_v7 }
 0x120   :  { %v5992_v25 = vor.u32 %v7458_v14, %v5989_v15 }
 0x121   :  { %5060 = vst [vmem:[%s10692_s3 + $0x16] sm:$0x3f] %v5058_v23  ;;  %v4170_v30 = vadd.f32 %v4169_v20, %v3671_v24  ;;  %2714 = vmatmul.bf16.gmra.mxu0 %v5948_v21  ;;  %v3175_v32 = vadd.f32 %v3174_v26, %v2676_v29  ;;  %v5984_v20 = vor.u32 %v7457_v9, %v5981_v11 }
 0x122   :  { %3213 = vmatmul.bf16.gmra.mxu1 %v5952_v22  ;;  %v5988_v24 = vor.u32 %v7460_v13, %v5987_v12 }
 0x123   :  { %v4637_v31 = vmax.f32 %v4170_v30, 0.0  ;;  %3712 = vmatmul.bf16.gmra.mxu2 %v5956_v27 }
 0x124   :  { %4211 = vmatmul.bf16.gmra.mxu3 %v5960_v28 }
 0x125   :  { %4833 = vst [vmem:[#allocation2 + $0x78] sm:$0xff] %v4637_v31 }
 0x126   :  { %v3673_v33 = vpop.f32.mrf.mxu2  ;;  %v2677_v36 = vpop.f32.mrf.mxu0 }
 0x127   :  { %v4172_v34 = vpop.f32.mrf.mxu3  ;;  %v3674_v35 = vadd.f32 %v3673_v33, %v3175_v32  ;;  %v3176_v37 = vpop.f32.mrf.mxu1  ;;  %v2678_v39 = vadd.f32 %v8128_v0, %v2677_v36 }
 0x129   :  { %v4173_v38 = vadd.f32 %v4172_v34, %v3674_v35  ;;  %v3177_v49 = vadd.f32 %v3176_v37, %v2678_v39  ;;  %v5995_v39 = vld [vmem:[%s10691_s0 + $0x260] sm:$0xf] }
 0x12b   :  { %v4638_v43 = vmax.f32 %v4173_v38, 0.0 }
 0x12c   :  { %v5062_v35 = vld [vmem:[#allocation2 + $0x70] ss:$2 sm:$0xff]  ;;  %v5066_v36 = vld [vmem:[#allocation2 + $0x71] ss:$2 sm:$0xff] }
 0x12d   :  { %4834 = vst [vmem:[#allocation2 + $0x80] sm:$0xff] %v4638_v43  ;;  %v6003_v43 = vld [vmem:[%s10691_s0 + $0x268] sm:$0xf] }
 0x12e   :  { %v3675_v50 = vpop.f32.mrf.mxu2  ;;  %v2680_v55 = vpop.f32.mrf.mxu0 }
 0x12f   :  { %v4174_v51 = vpop.f32.mrf.mxu3  ;;  %v3676_v54 = vadd.f32 %v3675_v50, %v3177_v49  ;;  %v3179_v56 = vpop.f32.mrf.mxu1  ;;  %v2681_v59 = vadd.f32 %v8128_v0, %v2680_v55  ;;  %v6005_v49 = vld [vmem:[%s10691_s0 + $0x278] sm:$0xf0]  ;;  %v5077_v50 = vmax.f32 %v5062_v35, %v5066_v36  ;;  %v5996_v55 = vor.u32 %v7463_v40, %v5995_v39 }
 0x131   :  { %v4175_v60 = vadd.f32 %v4174_v51, %v3676_v54  ;;  %2719 = vmatmul.bf16.gmra.mxu0 %v5964_v52  ;;  %v3180_v62 = vadd.f32 %v3179_v56, %v2681_v59  ;;  %v6000_v56 = vor.u32 %v7461_v41, %v5997_v42 }
 0x132   :  { %3218 = vmatmul.bf16.gmra.mxu1 %v5968_v53 }
 0x133   :  { %v4639_v61 = vmax.f32 %v4175_v60, 0.0  ;;  %3717 = vmatmul.bf16.gmra.mxu2 %v5972_v57 }
 0x134   :  { %4216 = vmatmul.bf16.gmra.mxu3 %v5976_v58 }
 0x135   :  { %4835 = vst [vmem:[#allocation2 + $0x88] sm:$0xff] %v4639_v61  ;;  %v6004_v61 = vor.u32 %v7464_v45, %v6003_v43 }
 0x136   :  { %v3678_v63 = vpop.f32.mrf.mxu2  ;;  %v2682_v3 = vpop.f32.mrf.mxu0 }
 0x137   :  { %v4177_v1 = vpop.f32.mrf.mxu3  ;;  %v3679_v2 = vadd.f32 %v3678_v63, %v3180_v62  ;;  %v3181_v4 = vpop.f32.mrf.mxu1  ;;  %v2683_v6 = vadd.f32 %v8128_v0, %v2682_v3  ;;  %v6008_v62 = vor.u32 %v7462_v46, %v6005_v49  ;;  %v7471_v49 = vld [vmem:[%s10691_s0 + $0x2ac] sm:$0xf0] }
 0x139   :  { %v4178_v5 = vadd.f32 %v4177_v1, %v3679_v2  ;;  %v3182_v16 = vadd.f32 %v3181_v4, %v2683_v6 }
 0x13b   :  { %v4640_v10 = vmax.f32 %v4178_v5, 0.0 }
 0x13c   :  { %v5064_v2 = vld [vmem:[#allocation2 + $0x80] ss:$2 sm:$0x3f]  ;;  %v5068_v3 = vld [vmem:[#allocation2 + $0x81] ss:$2 sm:$0x3f] }
 0x13d   :  { %4836 = vst [vmem:[#allocation2 + $0x90] sm:$0xff] %v4640_v10  ;;  %v5078_v8 = vmax.f32 %v5064_v2, %v5068_v3  ;;  %v8513_v3 = vld [vmem:[%s10690_s2] ss:$0 sm:$0xff] }
 0x13e   :  { %v3680_v17 = vpop.f32.mrf.mxu2  ;;  %v2685_v22 = vpop.f32.mrf.mxu0 }
 0x13f   :  { %v4179_v18 = vpop.f32.mrf.mxu3  ;;  %v3681_v21 = vadd.f32 %v3680_v17, %v3182_v16  ;;  %v3184_v23 = vpop.f32.mrf.mxu1  ;;  %v2686_v26 = vadd.f32 %v8128_v0, %v2685_v22  ;;  %v6013_v22 = vld [vmem:[%s10691_s0 + $0x290] sm:$0xf0] }
 0x141   :  { %v4180_v27 = vadd.f32 %v4179_v18, %v3681_v21  ;;  %2724 = vmatmul.bf16.gmra.mxu0 %v5980_v19  ;;  %v3185_v29 = vadd.f32 %v3184_v23, %v2686_v26  ;;  %v6011_v18 = vld [vmem:[%s10691_s0 + $0x280] sm:$0xf]  ;;  %v7467_v19 = vld [vmem:[%s10691_s0 + $0x28c] sm:$0xf0]  ;;  %v6019_v23 = vld [vmem:[%s10691_s0 + $0x288] sm:$0xf] }
 0x142   :  { %3223 = vmatmul.bf16.gmra.mxu1 %v5984_v20  ;;  %v7465_v20 = vld [vmem:[%s10691_s0 + $0x284] sm:$0xf]  ;;  %v6021_v26 = vld [vmem:[%s10691_s0 + $0x298] sm:$0xf0] }
 0x143   :  { %v4641_v28 = vmax.f32 %v4180_v27, 0.0  ;;  %3722 = vmatmul.bf16.gmra.mxu2 %v5988_v24  ;;  %v7468_v24 = vld [vmem:[%s10691_s0 + $0x294] sm:$0xf0] }
 0x144   :  { %4221 = vmatmul.bf16.gmra.mxu3 %v5992_v25  ;;  %v7466_v25 = vld [vmem:[%s10691_s0 + $0x28c] sm:$0xf]  ;;  %v6020_v35 = vor.u32 %v7468_v24, %v6019_v23  ;;  %v6053_v23 = vld [vmem:[%s10691_s0 + $0x2d8] sm:$0xf0] }
 0x145   :  { %4837 = vst [vmem:[#allocation2 + $0x98] sm:$0xff] %v4641_v28  ;;  %v6024_v36 = vor.u32 %v7466_v25, %v6021_v26 }
 0x146   :  { %v3683_v30 = vpop.f32.mrf.mxu2  ;;  %v2687_v33 = vpop.f32.mrf.mxu0 }
 0x147   :  { %v4182_v31 = vpop.f32.mrf.mxu3  ;;  %v3684_v32 = vadd.f32 %v3683_v30, %v3185_v29  ;;  %v3186_v34 = vpop.f32.mrf.mxu1  ;;  %v2688_v38 = vadd.f32 %v8128_v0, %v2687_v33  ;;  %v6012_v30 = vor.u32 %v7467_v19, %v6011_v18  ;;  %v6045_v19 = vld [vmem:[%s10691_s0 + $0x2d0] sm:$0xf0] }
 0x149   :  { %v4183_v37 = vadd.f32 %v4182_v31, %v3684_v32  ;;  %v3187_v52 = vadd.f32 %v3186_v34, %v2688_v38  ;;  %v6016_v31 = vor.u32 %v7465_v20, %v6013_v22  ;;  %v6051_v20 = vld [vmem:[%s10691_s0 + $0x2c8] sm:$0xf]  ;;  %v7474_v22 = vld [vmem:[%s10691_s0 + $0x2cc] sm:$0xf] }
 0x14b   :  { %v4642_v44 = vmax.f32 %v4183_v37, 0.0 }
 0x14c   :  { %v5070_v47 = vld [vmem:[#allocation2 + $0x8c] ss:$2 sm:$0xff]  ;;  %v5074_v48 = vld [vmem:[#allocation2 + $0x8d] ss:$2 sm:$0xff] }
 0x14d   :  { %v5079_v51 = vmax.f32 %v5070_v47, %v5074_v48  ;;  %4838 = vst [vmem:[#allocation2 + $0xa0] sm:$0xff] %v4642_v44  ;;  %v6027_v48 = vld [vmem:[%s10691_s0 + $0x2a0] sm:$0xf] }
 0x14e   :  { %v3685_v53 = vpop.f32.mrf.mxu2  ;;  %v2690_v59 = vpop.f32.mrf.mxu0 }
 0x14f   :  { %v4184_v54 = vpop.f32.mrf.mxu3  ;;  %v5081_v57 = vmax.f32 %v5077_v50, %v5079_v51  ;;  %v3686_v58 = vadd.f32 %v3685_v53, %v3187_v52  ;;  %v3189_v60 = vpop.f32.mrf.mxu1  ;;  %v2691_v63 = vadd.f32 %v8128_v0, %v2690_v59  ;;  %v7469_v50 = vld [vmem:[%s10691_s0 + $0x2a4] sm:$0xf]  ;;  %v6029_v52 = vld [vmem:[%s10691_s0 + $0x2b0] sm:$0xf0]  ;;  %v7472_v53 = vld [vmem:[%s10691_s0 + $0x2b4] sm:$0xf0]  ;;  %v6028_v59 = vor.u32 %v7471_v49, %v6027_v48 }
 0x151   :  { %5083 = vst [vmem:[%s10692_s3 + $0x1c] sm:$0xff] %v5081_v57  ;;  %v4185_v1 = vadd.f32 %v4184_v54, %v3686_v58  ;;  %2729 = vmatmul.bf16.gmra.mxu0 %v5996_v55  ;;  %v3190_v5 = vadd.f32 %v3189_v60, %v2691_v63  ;;  %v7470_v54 = vld [vmem:[%s10691_s0 + $0x2ac] sm:$0xf]  ;;  %v6037_v55 = vld [vmem:[%s10691_s0 + $0x2b8] sm:$0xf0]  ;;  %v6032_v60 = vor.u32 %v7469_v50, %v6029_v52 }
 0x152   :  { %3228 = vmatmul.bf16.gmra.mxu1 %v6000_v56  ;;  %v6040_v2 = vor.u32 %v7470_v54, %v6037_v55  ;;  %v6059_v52 = vld [vmem:[%s10691_s0 + $0x2e0] sm:$0xf]  ;;  %v6061_v54 = vld [vmem:[%s10691_s0 + $0x2f0] sm:$0xf0] }
 0x153   :  { %v4643_v4 = vmax.f32 %v4185_v1, 0.0  ;;  %3727 = vmatmul.bf16.gmra.mxu2 %v6004_v61 }
 0x154   :  { %4226 = vmatmul.bf16.gmra.mxu3 %v6008_v62  ;;  %v5072_v6 = vld [vmem:[#allocation2 + $0x9c] ss:$2 sm:$0x3f]  ;;  %v5076_v7 = vld [vmem:[#allocation2 + $0x9d] ss:$2 sm:$0x3f] }
 0x155   :  { %v5080_v9 = vmax.f32 %v5072_v6, %v5076_v7  ;;  %4839 = vst [vmem:[#allocation2 + $0xa8] sm:$0xff] %v4643_v4 }
 0x156   :  { %v3688_v10 = vpop.f32.mrf.mxu2  ;;  %v2692_v14 = vpop.f32.mrf.mxu0 }
 0x157   :  { %v4187_v11 = vpop.f32.mrf.mxu3  ;;  %v5082_v12 = vmax.f32 %v5078_v8, %v5080_v9  ;;  %v3689_v13 = vadd.f32 %v3688_v10, %v3190_v5  ;;  %v3191_v15 = vpop.f32.mrf.mxu1  ;;  %v2693_v17 = vadd.f32 %v8128_v0, %v2692_v14 }
 0x159   :  { %5084 = vst [vmem:[%s10692_s3 + $0x24] sm:$0x3f] %v5082_v12  ;;  %v4188_v16 = vadd.f32 %v4187_v11, %v3689_v13  ;;  %v3192_v27 = vadd.f32 %v3191_v15, %v2693_v17  ;;  %v6043_v15 = vld [vmem:[%s10691_s0 + $0x2c0] sm:$0xf]  ;;  %v7473_v17 = vld [vmem:[%s10691_s0 + $0x2c4] sm:$0xf] }
 0x15b   :  { %v4644_v21 = vmax.f32 %v4188_v16, 0.0  ;;  %v7475_v16 = vld [vmem:[%s10691_s0 + $0x2cc] sm:$0xf0] }
 0x15d   :  { %4840 = vst [vmem:[#allocation2 + $0xb0] sm:$0xff] %v4644_v21  ;;  %v7476_v21 = vld [vmem:[%s10691_s0 + $0x2d4] sm:$0xf0] }
 0x15e   :  { %v3690_v28 = vpop.f32.mrf.mxu2  ;;  %v2695_v33 = vpop.f32.mrf.mxu0 }
 0x15f   :  { %v4189_v29 = vpop.f32.mrf.mxu3  ;;  %v3691_v32 = vadd.f32 %v3690_v28, %v3192_v27  ;;  %v3194_v34 = vpop.f32.mrf.mxu1  ;;  %v2696_v37 = vadd.f32 %v8128_v0, %v2695_v33  ;;  %v6044_v27 = vor.u32 %v7475_v16, %v6043_v15  ;;  %v6048_v28 = vor.u32 %v7473_v17, %v6045_v19 }
 0x160   :  { %v6056_v33 = vor.u32 %v7474_v22, %v6053_v23 }
 0x161   :  { %v4190_v38 = vadd.f32 %v4189_v29, %v3691_v32  ;;  %2734 = vmatmul.bf16.gmra.mxu0 %v6012_v30  ;;  %v3195_v40 = vadd.f32 %v3194_v34, %v2696_v37  ;;  %v6052_v32 = vor.u32 %v7476_v21, %v6051_v20 }
 0x162   :  { %3233 = vmatmul.bf16.gmra.mxu1 %v6016_v31 }
 0x163   :  { %v4645_v39 = vmax.f32 %v4190_v38, 0.0  ;;  %3732 = vmatmul.bf16.gmra.mxu2 %v6020_v35 }
 0x164   :  { %4231 = vmatmul.bf16.gmra.mxu3 %v6024_v36  ;;  %v5086_v36 = vld [vmem:[#allocation2 + $0xa8] ss:$2 sm:$0xff]  ;;  %v5090_v37 = vld [vmem:[#allocation2 + $0xa9] ss:$2 sm:$0xff] }
 0x165   :  { %4841 = vst [vmem:[#allocation2 + $0xb8] sm:$0xff] %v4645_v39 }
 0x166   :  { %v3693_v41 = vpop.f32.mrf.mxu2  ;;  %v2697_v44 = vpop.f32.mrf.mxu0 }
 0x167   :  { %v4192_v42 = vpop.f32.mrf.mxu3  ;;  %v3694_v43 = vadd.f32 %v3693_v41, %v3195_v40  ;;  %v3196_v45 = vpop.f32.mrf.mxu1  ;;  %v2698_v47 = vadd.f32 %v8128_v0, %v2697_v44  ;;  %v6035_v0 = vld [vmem:[%s10691_s0 + $0x2a8] sm:$0xf] }
 0x168   :  { %v6036_v1 = vor.u32 %v7472_v53, %v6035_v0  ;;  %v7479_v0 = vld [vmem:[%s10691_s0 + $0x2ec] sm:$0xf0]  ;;  %v7477_v53 = vld [vmem:[%s10691_s0 + $0x2e4] sm:$0xf] }
 0x169   :  { %v4193_v46 = vadd.f32 %v4192_v42, %v3694_v43  ;;  %v3197_v56 = vadd.f32 %v3196_v45, %v2698_v47  ;;  %v5101_v42 = vmax.f32 %v5086_v36, %v5090_v37 }
 0x16b   :  { %v4646_v51 = vmax.f32 %v4193_v46, 0.0 }
 0x16d   :  { %4842 = vst [vmem:[#allocation2 + $0xc0] sm:$0xff] %v4646_v51 }
 0x16e   :  { %v3695_v57 = vpop.f32.mrf.mxu2  ;;  %v2700_v62 = vpop.f32.mrf.mxu0 }
 0x16f   :  { %v4194_v58 = vpop.f32.mrf.mxu3  ;;  %v3696_v61 = vadd.f32 %v3695_v57, %v3197_v56  ;;  %v3199_v63 = vpop.f32.mrf.mxu1  ;;  %v2701_v4 = vadd.f32 %v8513_v3, %v2700_v62  ;;  %v6067_v57 = vld [vmem:[%s10691_s0 + $0x2e8] sm:$0xf] }
 0x171   :  { %v4195_v5 = vadd.f32 %v4194_v58, %v3696_v61  ;;  %2739 = vmatmul.bf16.gmra.mxu0 %v6028_v59  ;;  %v3200_v7 = vadd.f32 %v3199_v63, %v2701_v4  ;;  %v7480_v58 = vld [vmem:[%s10691_s0 + $0x2f4] sm:$0xf0]  ;;  %v6069_v61 = vld [vmem:[%s10691_s0 + $0x2f8] sm:$0xf0] }
 0x172   :  { %3238 = vmatmul.bf16.gmra.mxu1 %v6032_v60  ;;  %v7478_v60 = vld [vmem:[%s10691_s0 + $0x2ec] sm:$0xf] }
 0x173   :  { %v4647_v6 = vmax.f32 %v4195_v5, 0.0  ;;  %3737 = vmatmul.bf16.gmra.mxu2 %v6036_v1 }
 0x174   :  { %4236 = vmatmul.bf16.gmra.mxu3 %v6040_v2  ;;  %v5088_v55 = vld [vmem:[#allocation2 + $0xb8] ss:$2 sm:$0x3f]  ;;  %v5092_v56 = vld [vmem:[#allocation2 + $0xb9] ss:$2 sm:$0x3f] }
 0x175   :  { %4843 = vst [vmem:[#allocation2 + $0xc8] sm:$0xff] %v4647_v6  ;;  %v5102_v1 = vmax.f32 %v5088_v55, %v5092_v56  ;;  %v6091_v55 = vld [vmem:[%s10691_s0 + $0x320] sm:$0xf]  ;;  %v7487_v56 = vld [vmem:[%s10691_s0 + $0x32c] sm:$0xf0] }
 0x176   :  { %v3698_v8 = vpop.f32.mrf.mxu2  ;;  %v2702_v11 = vpop.f32.mrf.mxu0 }
 0x177   :  { %v4197_v9 = vpop.f32.mrf.mxu3  ;;  %v3699_v10 = vadd.f32 %v3698_v8, %v3200_v7  ;;  %v3201_v12 = vpop.f32.mrf.mxu1  ;;  %v2703_v14 = vadd.f32 %v8513_v3, %v2702_v11  ;;  %v6060_v7 = vor.u32 %v7479_v0, %v6059_v52  ;;  %v6064_v8 = vor.u32 %v7477_v53, %v6061_v54 }
 0x179   :  { %v4198_v13 = vadd.f32 %v4197_v9, %v3699_v10  ;;  %v3202_v24 = vadd.f32 %v3201_v12, %v2703_v14  ;;  %v6072_v14 = vor.u32 %v7478_v60, %v6069_v61  ;;  %v6099_v60 = vld [vmem:[%s10691_s0 + $0x328] sm:$0xf]  ;;  %v7488_v61 = vld [vmem:[%s10691_s0 + $0x334] sm:$0xf0] }
 0x17b   :  { %v4648_v18 = vmax.f32 %v4198_v13, 0.0  ;;  %v6068_v13 = vor.u32 %v7480_v58, %v6067_v57  ;;  %v7485_v57 = vld [vmem:[%s10691_s0 + $0x324] sm:$0xf] }
 0x17d   :  { %4844 = vst [vmem:[#allocation2 + $0xd0] sm:$0xff] %v4648_v18 }
 0x17e   :  { %v3700_v25 = vpop.f32.mrf.mxu2  ;;  %v2705_v30 = vpop.f32.mrf.mxu0 }
 0x17f   :  { %v4199_v26 = vpop.f32.mrf.mxu3  ;;  %v3701_v29 = vadd.f32 %v3700_v25, %v3202_v24  ;;  %v3204_v31 = vpop.f32.mrf.mxu1  ;;  %v2706_v34 = vadd.f32 %v8513_v3, %v2705_v30  ;;  %v6077_v30 = vld [vmem:[%s10691_s0 + $0x310] sm:$0xf0] }
 0x181   :  { %v4200_v35 = vadd.f32 %v4199_v26, %v3701_v29  ;;  %2744 = vmatmul.bf16.gmra.mxu0 %v6044_v27  ;;  %v3205_v39 = vadd.f32 %v3204_v31, %v2706_v34  ;;  %v6075_v26 = vld [vmem:[%s10691_s0 + $0x300] sm:$0xf]  ;;  %v7483_v27 = vld [vmem:[%s10691_s0 + $0x30c] sm:$0xf0]  ;;  %v6083_v31 = vld [vmem:[%s10691_s0 + $0x308] sm:$0xf] }
 0x182   :  { %3243 = vmatmul.bf16.gmra.mxu1 %v6048_v28  ;;  %v7481_v28 = vld [vmem:[%s10691_s0 + $0x304] sm:$0xf]  ;;  %v6085_v34 = vld [vmem:[%s10691_s0 + $0x318] sm:$0xf0] }
 0x183   :  { %v4649_v38 = vmax.f32 %v4200_v35, 0.0  ;;  %3742 = vmatmul.bf16.gmra.mxu2 %v6052_v32  ;;  %v7484_v32 = vld [vmem:[%s10691_s0 + $0x314] sm:$0xf0] }
 0x184   :  { %4241 = vmatmul.bf16.gmra.mxu3 %v6056_v33  ;;  %v5094_v40 = vld [vmem:[#allocation2 + $0xc4] ss:$2 sm:$0xff]  ;;  %v5098_v41 = vld [vmem:[#allocation2 + $0xc5] ss:$2 sm:$0xff] }
 0x185   :  { %v5103_v43 = vmax.f32 %v5094_v40, %v5098_v41  ;;  %4845 = vst [vmem:[#allocation2 + $0xd8] sm:$0xff] %v4649_v38  ;;  %v7482_v33 = vld [vmem:[%s10691_s0 + $0x30c] sm:$0xf]  ;;  %v6076_v38 = vor.u32 %v7483_v27, %v6075_v26  ;;  %v7491_v26 = vld [vmem:[%s10691_s0 + $0x34c] sm:$0xf0] }
 0x186   :  { %v3703_v44 = vpop.f32.mrf.mxu2  ;;  %v2707_v48 = vpop.f32.mrf.mxu0  ;;  %v7489_v27 = vld [vmem:[%s10691_s0 + $0x344] sm:$0xf] }
 0x187   :  { %v4202_v45 = vpop.f32.mrf.mxu3  ;;  %v5105_v46 = vmax.f32 %v5101_v42, %v5103_v43  ;;  %v3704_v47 = vadd.f32 %v3703_v44, %v3205_v39  ;;  %v3206_v49 = vpop.f32.mrf.mxu1  ;;  %v2708_v51 = vadd.f32 %v8513_v3, %v2707_v48  ;;  %v6080_v39 = vor.u32 %v7481_v28, %v6077_v30  ;;  %v6109_v28 = vld [vmem:[%s10691_s0 + $0x350] sm:$0xf0] }
 0x188   :  { %v6084_v43 = vor.u32 %v7484_v32, %v6083_v31  ;;  %v6088_v44 = vor.u32 %v7482_v33, %v6085_v34  ;;  %v7492_v31 = vld [vmem:[%s10691_s0 + $0x354] sm:$0xf0]  ;;  %v7490_v32 = vld [vmem:[%s10691_s0 + $0x34c] sm:$0xf] }
 0x189   :  { %5107 = vst [vmem:[%s10692_s3 + $0x2a] sm:$0xff] %v5105_v46  ;;  %v4203_v50 = vadd.f32 %v4202_v45, %v3704_v47  ;;  %v3207_v4 = vadd.f32 %v3206_v49, %v2708_v51 }
 0x18b   :  { %v4650_v59 = vmax.f32 %v4203_v50, 0.0 }
 0x18c   :  { %v5096_v62 = vld [vmem:[#allocation2 + $0xd4] ss:$2 sm:$0x3f]  ;;  %v5100_v63 = vld [vmem:[#allocation2 + $0xd5] ss:$2 sm:$0x3f] }
 0x18d   :  { %v5104_v2 = vmax.f32 %v5096_v62, %v5100_v63  ;;  %4846 = vst [vmem:[#allocation2 + $0xe0] sm:$0xff] %v4650_v59  ;;  %v6093_v59 = vld [vmem:[%s10691_s0 + $0x330] sm:$0xf0]  ;;  %v7486_v62 = vld [vmem:[%s10691_s0 + $0x32c] sm:$0xf] }
 0x18e   :  { %v3705_v5 = vpop.f32.mrf.mxu2  ;;  %v2710_v11 = vpop.f32.mrf.mxu0  ;;  %v6101_v63 = vld [vmem:[%s10691_s0 + $0x338] sm:$0xf0] }
 0x18f   :  { %v4204_v6 = vpop.f32.mrf.mxu3  ;;  %v5106_v9 = vmax.f32 %v5102_v1, %v5104_v2  ;;  %v3706_v10 = vadd.f32 %v3705_v5, %v3207_v4  ;;  %v3209_v12 = vpop.f32.mrf.mxu1  ;;  %v2711_v15 = vadd.f32 %v8513_v3, %v2710_v11  ;;  %v6092_v5 = vor.u32 %v7487_v56, %v6091_v55 }
 0x190   :  { %v6104_v11 = vor.u32 %v7486_v62, %v6101_v63 }
 0x191   :  { %5108 = vst [vmem:[%s10692_s3 + $0x32] sm:$0x3f] %v5106_v9  ;;  %v4205_v16 = vadd.f32 %v4204_v6, %v3706_v10  ;;  %2749 = vmatmul.bf16.gmra.mxu0 %v6060_v7  ;;  %v3210_v18 = vadd.f32 %v3209_v12, %v2711_v15  ;;  %v6096_v6 = vor.u32 %v7485_v57, %v6093_v59 }
 0x192   :  { %3248 = vmatmul.bf16.gmra.mxu1 %v6064_v8  ;;  %v6100_v10 = vor.u32 %v7488_v61, %v6099_v60 }
 0x193   :  { %v4651_v17 = vmax.f32 %v4205_v16, 0.0  ;;  %3747 = vmatmul.bf16.gmra.mxu2 %v6068_v13 }
 0x194   :  { %4246 = vmatmul.bf16.gmra.mxu3 %v6072_v14 }
 0x195   :  { %4847 = vst [vmem:[#allocation2 + $0xe8] sm:$0xff] %v4651_v17 }
 0x196   :  { %v3708_v19 = vpop.f32.mrf.mxu2  ;;  %v2712_v22 = vpop.f32.mrf.mxu0 }
 0x197   :  { %v4207_v20 = vpop.f32.mrf.mxu3  ;;  %v3709_v21 = vadd.f32 %v3708_v19, %v3210_v18  ;;  %v3211_v23 = vpop.f32.mrf.mxu1  ;;  %v2713_v25 = vadd.f32 %v8513_v3, %v2712_v22 }
 0x199   :  { %v4208_v24 = vadd.f32 %v4207_v20, %v3709_v21  ;;  %v3212_v35 = vadd.f32 %v3211_v23, %v2713_v25  ;;  %v6107_v25 = vld [vmem:[%s10691_s0 + $0x340] sm:$0xf] }
 0x19b   :  { %v4652_v29 = vmax.f32 %v4208_v24, 0.0 }
 0x19c   :  { %v5110_v21 = vld [vmem:[#allocation2 + $0xe0] ss:$2 sm:$0xff]  ;;  %v5114_v22 = vld [vmem:[#allocation2 + $0xe1] ss:$2 sm:$0xff] }
 0x19d   :  { %4848 = vst [vmem:[#allocation2 + $0xf0] sm:$0xff] %v4652_v29  ;;  %v6115_v29 = vld [vmem:[%s10691_s0 + $0x348] sm:$0xf] }
 0x19e   :  { %v3710_v36 = vpop.f32.mrf.mxu2  ;;  %v2715_v41 = vpop.f32.mrf.mxu0 }
 0x19f   :  { %v4209_v37 = vpop.f32.mrf.mxu3  ;;  %v3711_v40 = vadd.f32 %v3710_v36, %v3212_v35  ;;  %v3214_v42 = vpop.f32.mrf.mxu1  ;;  %v2716_v45 = vadd.f32 %v8513_v3, %v2715_v41  ;;  %v6117_v35 = vld [vmem:[%s10691_s0 + $0x358] sm:$0xf0]  ;;  %v5125_v36 = vmax.f32 %v5110_v21, %v5114_v22  ;;  %v6108_v41 = vor.u32 %v7491_v26, %v6107_v25 }
 0x1a1   :  { %v4210_v46 = vadd.f32 %v4209_v37, %v3711_v40  ;;  %2754 = vmatmul.bf16.gmra.mxu0 %v6076_v38  ;;  %v3215_v48 = vadd.f32 %v3214_v42, %v2716_v45  ;;  %v6112_v42 = vor.u32 %v7489_v27, %v6109_v28 }
 0x1a2   :  { %3253 = vmatmul.bf16.gmra.mxu1 %v6080_v39 }
 0x1a3   :  { %v4653_v47 = vmax.f32 %v4210_v46, 0.0  ;;  %3752 = vmatmul.bf16.gmra.mxu2 %v6084_v43 }
 0x1a4   :  { %4251 = vmatmul.bf16.gmra.mxu3 %v6088_v44 }
 0x1a5   :  { %4849 = vst [vmem:[#allocation2 + $0xf8] sm:$0xff] %v4653_v47  ;;  %v6116_v47 = vor.u32 %v7492_v31, %v6115_v29 }
 0x1a6   :  { %v3713_v49 = vpop.f32.mrf.mxu2  ;;  %v2717_v52 = vpop.f32.mrf.mxu0 }
 0x1a7   :  { %v4212_v50 = vpop.f32.mrf.mxu3  ;;  %v3714_v51 = vadd.f32 %v3713_v49, %v3215_v48  ;;  %v3216_v0 = vpop.f32.mrf.mxu1  ;;  %v2718_v54 = vadd.f32 %v8513_v3, %v2717_v52  ;;  %v6120_v48 = vor.u32 %v7490_v32, %v6117_v35  ;;  %v7499_v35 = vld [vmem:[%s10691_s0 + $0x38c] sm:$0xf0] }
 0x1a9   :  { %v4213_v53 = vadd.f32 %v4212_v50, %v3714_v51  ;;  %v3217_v1 = vadd.f32 %v3216_v0, %v2718_v54 }
 0x1ab   :  { %v4654_v58 = vmax.f32 %v4213_v53, 0.0 }
 0x1ac   :  { %v5112_v51 = vld [vmem:[#allocation2 + $0xf0] ss:$2 sm:$0x3f]  ;;  %v5116_v52 = vld [vmem:[#allocation2 + $0xf1] ss:$2 sm:$0x3f] }
 0x1ad   :  { %4850 = vst [vmem:[#allocation2 + $0x100] sm:$0xff] %v4654_v58  ;;  %v5126_v56 = vmax.f32 %v5112_v51, %v5116_v52 }
 0x1ae   :  { %v3715_v2 = vpop.f32.mrf.mxu2  ;;  %v2720_v8 = vpop.f32.mrf.mxu0 }
 0x1af   :  { %v4214_v4 = vpop.f32.mrf.mxu3  ;;  %v3716_v7 = vadd.f32 %v3715_v2, %v3217_v1  ;;  %v3219_v9 = vpop.f32.mrf.mxu1  ;;  %v2721_v12 = vadd.f32 %v8513_v3, %v2720_v8  ;;  %v6125_v8 = vld [vmem:[%s10691_s0 + $0x370] sm:$0xf0] }
 0x1b1   :  { %v4215_v13 = vadd.f32 %v4214_v4, %v3716_v7  ;;  %2759 = vmatmul.bf16.gmra.mxu0 %v6092_v5  ;;  %v3220_v15 = vadd.f32 %v3219_v9, %v2721_v12  ;;  %v6123_v4 = vld [vmem:[%s10691_s0 + $0x360] sm:$0xf]  ;;  %v7495_v5 = vld [vmem:[%s10691_s0 + $0x36c] sm:$0xf0]  ;;  %v6131_v9 = vld [vmem:[%s10691_s0 + $0x368] sm:$0xf] }
 0x1b2   :  { %3258 = vmatmul.bf16.gmra.mxu1 %v6096_v6  ;;  %v7493_v6 = vld [vmem:[%s10691_s0 + $0x364] sm:$0xf]  ;;  %v6133_v12 = vld [vmem:[%s10691_s0 + $0x378] sm:$0xf0] }
 0x1b3   :  { %v4655_v14 = vmax.f32 %v4215_v13, 0.0  ;;  %3757 = vmatmul.bf16.gmra.mxu2 %v6100_v10  ;;  %v7496_v10 = vld [vmem:[%s10691_s0 + $0x374] sm:$0xf0] }
 0x1b4   :  { %4256 = vmatmul.bf16.gmra.mxu3 %v6104_v11  ;;  %v7494_v11 = vld [vmem:[%s10691_s0 + $0x36c] sm:$0xf]  ;;  %v6132_v21 = vor.u32 %v7496_v10, %v6131_v9  ;;  %v6165_v9 = vld [vmem:[%s10691_s0 + $0x3b8] sm:$0xf0] }
 0x1b5   :  { %4851 = vst [vmem:[#allocation2 + $0x108] sm:$0xff] %v4655_v14  ;;  %v6136_v22 = vor.u32 %v7494_v11, %v6133_v12 }
 0x1b6   :  { %v3718_v16 = vpop.f32.mrf.mxu2  ;;  %v2722_v19 = vpop.f32.mrf.mxu0 }
 0x1b7   :  { %v4217_v17 = vpop.f32.mrf.mxu3  ;;  %v3719_v18 = vadd.f32 %v3718_v16, %v3220_v15  ;;  %v3221_v20 = vpop.f32.mrf.mxu1  ;;  %v2723_v24 = vadd.f32 %v8513_v3, %v2722_v19  ;;  %v6124_v16 = vor.u32 %v7495_v5, %v6123_v4  ;;  %v6157_v5 = vld [vmem:[%s10691_s0 + $0x3b0] sm:$0xf0] }
 0x1b9   :  { %v4218_v23 = vadd.f32 %v4217_v17, %v3719_v18  ;;  %v3222_v38 = vadd.f32 %v3221_v20, %v2723_v24  ;;  %v6128_v17 = vor.u32 %v7493_v6, %v6125_v8  ;;  %v6163_v6 = vld [vmem:[%s10691_s0 + $0x3a8] sm:$0xf]  ;;  %v7502_v8 = vld [vmem:[%s10691_s0 + $0x3ac] sm:$0xf] }
 0x1bb   :  { %v4656_v30 = vmax.f32 %v4218_v23, 0.0 }
 0x1bc   :  { %v5118_v33 = vld [vmem:[#allocation2 + $0xfc] ss:$2 sm:$0xff]  ;;  %v5122_v34 = vld [vmem:[#allocation2 + $0xfd] ss:$2 sm:$0xff] }
 0x1bd   :  { %v5127_v37 = vmax.f32 %v5118_v33, %v5122_v34  ;;  %4852 = vst [vmem:[#allocation2 + $0x110] sm:$0xff] %v4656_v30  ;;  %v6139_v34 = vld [vmem:[%s10691_s0 + $0x380] sm:$0xf] }
 0x1be   :  { %v3720_v39 = vpop.f32.mrf.mxu2  ;;  %v2725_v45 = vpop.f32.mrf.mxu0 }
 0x1bf   :  { %v4219_v40 = vpop.f32.mrf.mxu3  ;;  %v5129_v43 = vmax.f32 %v5125_v36, %v5127_v37  ;;  %v3721_v44 = vadd.f32 %v3720_v39, %v3222_v38  ;;  %v3224_v46 = vpop.f32.mrf.mxu1  ;;  %v2726_v49 = vadd.f32 %v8513_v3, %v2725_v45  ;;  %v7497_v36 = vld [vmem:[%s10691_s0 + $0x384] sm:$0xf]  ;;  %v6141_v38 = vld [vmem:[%s10691_s0 + $0x390] sm:$0xf0]  ;;  %v6147_v39 = vld [vmem:[%s10691_s0 + $0x388] sm:$0xf] }
 0x1c1   :  { %5131 = vst [vmem:[%s10692_s3 + $0x38] sm:$0xff] %v5129_v43  ;;  %v4220_v50 = vadd.f32 %v4219_v40, %v3721_v44  ;;  %2764 = vmatmul.bf16.gmra.mxu0 %v6108_v41  ;;  %v3225_v53 = vadd.f32 %v3224_v46, %v2726_v49  ;;  %v7500_v40 = vld [vmem:[%s10691_s0 + $0x394] sm:$0xf0]  ;;  %v7498_v41 = vld [vmem:[%s10691_s0 + $0x38c] sm:$0xf]  ;;  %v6140_v46 = vor.u32 %v7499_v35, %v6139_v34 }
 0x1c2   :  { %3263 = vmatmul.bf16.gmra.mxu1 %v6112_v42  ;;  %v6149_v42 = vld [vmem:[%s10691_s0 + $0x398] sm:$0xf0]  ;;  %v6148_v51 = vor.u32 %v7500_v40, %v6147_v39  ;;  %v7507_v39 = vld [vmem:[%s10691_s0 + $0x3cc] sm:$0xf0]  ;;  %v7505_v40 = vld [vmem:[%s10691_s0 + $0x3c4] sm:$0xf] }
 0x1c3   :  { %v4657_v0 = vmax.f32 %v4220_v50, 0.0  ;;  %3762 = vmatmul.bf16.gmra.mxu2 %v6116_v47  ;;  %v6144_v47 = vor.u32 %v7497_v36, %v6141_v38  ;;  %v6152_v52 = vor.u32 %v7498_v41, %v6149_v42  ;;  %v6171_v38 = vld [vmem:[%s10691_s0 + $0x3c0] sm:$0xf]  ;;  %v6173_v41 = vld [vmem:[%s10691_s0 + $0x3d0] sm:$0xf0] }
 0x1c4   :  { %4261 = vmatmul.bf16.gmra.mxu3 %v6120_v48  ;;  %v5120_v54 = vld [vmem:[#allocation2 + $0x10c] ss:$2 sm:$0x3f]  ;;  %v5124_v55 = vld [vmem:[#allocation2 + $0x10d] ss:$2 sm:$0x3f] }
 0x1c5   :  { %v5128_v57 = vmax.f32 %v5120_v54, %v5124_v55  ;;  %4853 = vst [vmem:[#allocation2 + $0x118] sm:$0xff] %v4657_v0 }
 0x1c6   :  { %v3723_v58 = vpop.f32.mrf.mxu2  ;;  %v2727_v62 = vpop.f32.mrf.mxu0 }
 0x1c7   :  { %v4222_v59 = vpop.f32.mrf.mxu3  ;;  %v5130_v60 = vmax.f32 %v5126_v56, %v5128_v57  ;;  %v3724_v61 = vadd.f32 %v3723_v58, %v3225_v53  ;;  %v3226_v63 = vpop.f32.mrf.mxu1  ;;  %v2728_v2 = vadd.f32 %v8513_v3, %v2727_v62 }
 0x1c9   :  { %5132 = vst [vmem:[%s10692_s3 + $0x40] sm:$0x3f] %v5130_v60  ;;  %v4223_v1 = vadd.f32 %v4222_v59, %v3724_v61  ;;  %v3227_v13 = vadd.f32 %v3226_v63, %v2728_v2  ;;  %v6155_v63 = vld [vmem:[%s10691_s0 + $0x3a0] sm:$0xf]  ;;  %v7501_v2 = vld [vmem:[%s10691_s0 + $0x3a4] sm:$0xf] }
 0x1cb   :  { %v4658_v7 = vmax.f32 %v4223_v1, 0.0  ;;  %v7503_v1 = vld [vmem:[%s10691_s0 + $0x3ac] sm:$0xf0] }
 0x1cd   :  { %4854 = vst [vmem:[#allocation2 + $0x120] sm:$0xff] %v4658_v7  ;;  %v7504_v7 = vld [vmem:[%s10691_s0 + $0x3b4] sm:$0xf0] }
 0x1ce   :  { %v3725_v14 = vpop.f32.mrf.mxu2  ;;  %v2730_v19 = vpop.f32.mrf.mxu0 }
 0x1cf   :  { %v4224_v15 = vpop.f32.mrf.mxu3  ;;  %v3726_v18 = vadd.f32 %v3725_v14, %v3227_v13  ;;  %v3229_v20 = vpop.f32.mrf.mxu1  ;;  %v2731_v23 = vadd.f32 %v8513_v3, %v2730_v19  ;;  %v6156_v13 = vor.u32 %v7503_v1, %v6155_v63  ;;  %v6160_v14 = vor.u32 %v7501_v2, %v6157_v5 }
 0x1d0   :  { %v6168_v19 = vor.u32 %v7502_v8, %v6165_v9 }
 0x1d1   :  { %v4225_v24 = vadd.f32 %v4224_v15, %v3726_v18  ;;  %2769 = vmatmul.bf16.gmra.mxu0 %v6124_v16  ;;  %v3230_v26 = vadd.f32 %v3229_v20, %v2731_v23  ;;  %v6164_v18 = vor.u32 %v7504_v7, %v6163_v6 }
 0x1d2   :  { %3268 = vmatmul.bf16.gmra.mxu1 %v6128_v17 }
 0x1d3   :  { %v4659_v25 = vmax.f32 %v4225_v24, 0.0  ;;  %3767 = vmatmul.bf16.gmra.mxu2 %v6132_v21 }
 0x1d4   :  { %4266 = vmatmul.bf16.gmra.mxu3 %v6136_v22  ;;  %v5134_v22 = vld [vmem:[#allocation2 + $0x118] ss:$2 sm:$0xff]  ;;  %v5138_v23 = vld [vmem:[#allocation2 + $0x119] ss:$2 sm:$0xff] }
 0x1d5   :  { %4855 = vst [vmem:[#allocation2 + $0x128] sm:$0xff] %v4659_v25 }
 0x1d6   :  { %v3728_v27 = vpop.f32.mrf.mxu2  ;;  %v2732_v30 = vpop.f32.mrf.mxu0 }
 0x1d7   :  { %v4227_v28 = vpop.f32.mrf.mxu3  ;;  %v3729_v29 = vadd.f32 %v3728_v27, %v3230_v26  ;;  %v3231_v31 = vpop.f32.mrf.mxu1  ;;  %v2733_v33 = vadd.f32 %v8513_v3, %v2732_v30 }
 0x1d9   :  { %v4228_v32 = vadd.f32 %v4227_v28, %v3729_v29  ;;  %v3232_v43 = vadd.f32 %v3231_v31, %v2733_v33  ;;  %v5149_v28 = vmax.f32 %v5134_v22, %v5138_v23 }
 0x1db   :  { %v4660_v37 = vmax.f32 %v4228_v32, 0.0 }
 0x1dd   :  { %4856 = vst [vmem:[#allocation2 + $0x130] sm:$0xff] %v4660_v37 }
 0x1de   :  { %v3730_v44 = vpop.f32.mrf.mxu2  ;;  %v2735_v49 = vpop.f32.mrf.mxu0 }
 0x1df   :  { %v4229_v45 = vpop.f32.mrf.mxu3  ;;  %v3731_v48 = vadd.f32 %v3730_v44, %v3232_v43  ;;  %v3234_v50 = vpop.f32.mrf.mxu1  ;;  %v2736_v0 = vadd.f32 %v8513_v3, %v2735_v49  ;;  %v6179_v44 = vld [vmem:[%s10691_s0 + $0x3c8] sm:$0xf] }
 0x1e1   :  { %v4230_v53 = vadd.f32 %v4229_v45, %v3731_v48  ;;  %2774 = vmatmul.bf16.gmra.mxu0 %v6140_v46  ;;  %v3235_v55 = vadd.f32 %v3234_v50, %v2736_v0  ;;  %v7508_v45 = vld [vmem:[%s10691_s0 + $0x3d4] sm:$0xf0]  ;;  %v6181_v48 = vld [vmem:[%s10691_s0 + $0x3d8] sm:$0xf0] }
 0x1e2   :  { %3273 = vmatmul.bf16.gmra.mxu1 %v6144_v47  ;;  %v7506_v47 = vld [vmem:[%s10691_s0 + $0x3cc] sm:$0xf] }
 0x1e3   :  { %v4661_v54 = vmax.f32 %v4230_v53, 0.0  ;;  %3772 = vmatmul.bf16.gmra.mxu2 %v6148_v51 }
 0x1e4   :  { %4271 = vmatmul.bf16.gmra.mxu3 %v6152_v52  ;;  %v5136_v42 = vld [vmem:[#allocation2 + $0x128] ss:$2 sm:$0x3f]  ;;  %v5140_v43 = vld [vmem:[#allocation2 + $0x129] ss:$2 sm:$0x3f] }
 0x1e5   :  { %4857 = vst [vmem:[#allocation2 + $0x138] sm:$0xff] %v4661_v54  ;;  %v5150_v51 = vmax.f32 %v5136_v42, %v5140_v43  ;;  %v6203_v42 = vld [vmem:[%s10691_s0 + $0x400] sm:$0xf]  ;;  %v7515_v43 = vld [vmem:[%s10691_s0 + $0x40c] sm:$0xf0] }
 0x1e6   :  { %v3733_v56 = vpop.f32.mrf.mxu2  ;;  %v2737_v59 = vpop.f32.mrf.mxu0 }
 0x1e7   :  { %v4232_v57 = vpop.f32.mrf.mxu3  ;;  %v3734_v58 = vadd.f32 %v3733_v56, %v3235_v55  ;;  %v3236_v60 = vpop.f32.mrf.mxu1  ;;  %v2738_v62 = vadd.f32 %v8513_v3, %v2737_v59  ;;  %v6172_v55 = vor.u32 %v7507_v39, %v6171_v38  ;;  %v6176_v56 = vor.u32 %v7505_v40, %v6173_v41 }
 0x1e9   :  { %v4233_v61 = vadd.f32 %v4232_v57, %v3734_v58  ;;  %v3237_v10 = vadd.f32 %v3236_v60, %v2738_v62  ;;  %v6184_v62 = vor.u32 %v7506_v47, %v6181_v48  ;;  %v6211_v47 = vld [vmem:[%s10691_s0 + $0x408] sm:$0xf]  ;;  %v7516_v48 = vld [vmem:[%s10691_s0 + $0x414] sm:$0xf0] }
 0x1eb   :  { %v4662_v4 = vmax.f32 %v4233_v61, 0.0  ;;  %v6180_v61 = vor.u32 %v7508_v45, %v6179_v44  ;;  %v7513_v44 = vld [vmem:[%s10691_s0 + $0x404] sm:$0xf] }
 0x1ed   :  { %4858 = vst [vmem:[#allocation2 + $0x140] sm:$0xff] %v4662_v4 }
 0x1ee   :  { %v3735_v11 = vpop.f32.mrf.mxu2  ;;  %v2740_v16 = vpop.f32.mrf.mxu0 }
 0x1ef   :  { %v4234_v12 = vpop.f32.mrf.mxu3  ;;  %v3736_v15 = vadd.f32 %v3735_v11, %v3237_v10  ;;  %v3239_v17 = vpop.f32.mrf.mxu1  ;;  %v2741_v20 = vadd.f32 %v8513_v3, %v2740_v16  ;;  %v6189_v16 = vld [vmem:[%s10691_s0 + $0x3f0] sm:$0xf0] }
 0x1f1   :  { %v4235_v21 = vadd.f32 %v4234_v12, %v3736_v15  ;;  %2779 = vmatmul.bf16.gmra.mxu0 %v6156_v13  ;;  %v3240_v25 = vadd.f32 %v3239_v17, %v2741_v20  ;;  %v6187_v12 = vld [vmem:[%s10691_s0 + $0x3e0] sm:$0xf]  ;;  %v7511_v13 = vld [vmem:[%s10691_s0 + $0x3ec] sm:$0xf0]  ;;  %v6195_v17 = vld [vmem:[%s10691_s0 + $0x3e8] sm:$0xf] }
 0x1f2   :  { %3278 = vmatmul.bf16.gmra.mxu1 %v6160_v14  ;;  %v7509_v14 = vld [vmem:[%s10691_s0 + $0x3e4] sm:$0xf]  ;;  %v6197_v20 = vld [vmem:[%s10691_s0 + $0x3f8] sm:$0xf0] }
 0x1f3   :  { %v4663_v24 = vmax.f32 %v4235_v21, 0.0  ;;  %3777 = vmatmul.bf16.gmra.mxu2 %v6164_v18  ;;  %v7512_v18 = vld [vmem:[%s10691_s0 + $0x3f4] sm:$0xf0] }
 0x1f4   :  { %4276 = vmatmul.bf16.gmra.mxu3 %v6168_v19  ;;  %v5142_v26 = vld [vmem:[#allocation2 + $0x134] ss:$2 sm:$0xff]  ;;  %v5146_v27 = vld [vmem:[#allocation2 + $0x135] ss:$2 sm:$0xff]  ;;  %v7510_v19 = vld [vmem:[%s10691_s0 + $0x3ec] sm:$0xf] }
 0x1f5   :  { %v5151_v29 = vmax.f32 %v5142_v26, %v5146_v27  ;;  %4859 = vst [vmem:[#allocation2 + $0x148] sm:$0xff] %v4663_v24  ;;  %v6188_v24 = vor.u32 %v7511_v13, %v6187_v12  ;;  %v7519_v12 = vld [vmem:[%s10691_s0 + $0x42c] sm:$0xf0]  ;;  %v7517_v13 = vld [vmem:[%s10691_s0 + $0x424] sm:$0xf] }
 0x1f6   :  { %v3738_v30 = vpop.f32.mrf.mxu2  ;;  %v2742_v34 = vpop.f32.mrf.mxu0 }
 0x1f7   :  { %v4237_v31 = vpop.f32.mrf.mxu3  ;;  %v5153_v32 = vmax.f32 %v5149_v28, %v5151_v29  ;;  %v3739_v33 = vadd.f32 %v3738_v30, %v3240_v25  ;;  %v3241_v35 = vpop.f32.mrf.mxu1  ;;  %v2743_v37 = vadd.f32 %v8513_v3, %v2742_v34  ;;  %v6192_v25 = vor.u32 %v7509_v14, %v6189_v16  ;;  %v6221_v14 = vld [vmem:[%s10691_s0 + $0x430] sm:$0xf0] }
 0x1f8   :  { %v6196_v29 = vor.u32 %v7512_v18, %v6195_v17  ;;  %v6200_v30 = vor.u32 %v7510_v19, %v6197_v20  ;;  %v7520_v17 = vld [vmem:[%s10691_s0 + $0x434] sm:$0xf0]  ;;  %v7518_v18 = vld [vmem:[%s10691_s0 + $0x42c] sm:$0xf] }
 0x1f9   :  { %5155 = vst [vmem:[%s10692_s3 + $0x46] sm:$0xff] %v5153_v32  ;;  %v4238_v36 = vadd.f32 %v4237_v31, %v3739_v33  ;;  %v3242_v0 = vadd.f32 %v3241_v35, %v2743_v37 }
 0x1fb   :  { %v4664_v46 = vmax.f32 %v4238_v36, 0.0 }
 0x1fc   :  { %v5144_v49 = vld [vmem:[#allocation2 + $0x144] ss:$2 sm:$0x3f]  ;;  %v5148_v50 = vld [vmem:[#allocation2 + $0x145] ss:$2 sm:$0x3f] }
 0x1fd   :  { %v5152_v52 = vmax.f32 %v5144_v49, %v5148_v50  ;;  %4860 = vst [vmem:[#allocation2 + $0x150] sm:$0xff] %v4664_v46  ;;  %v6205_v46 = vld [vmem:[%s10691_s0 + $0x410] sm:$0xf0]  ;;  %v7514_v49 = vld [vmem:[%s10691_s0 + $0x40c] sm:$0xf] }
 0x1fe   :  { %v3740_v53 = vpop.f32.mrf.mxu2  ;;  %v2745_v59 = vpop.f32.mrf.mxu0  ;;  %v6213_v50 = vld [vmem:[%s10691_s0 + $0x418] sm:$0xf0] }
 0x1ff   :  { %v4239_v54 = vpop.f32.mrf.mxu3  ;;  %v5154_v57 = vmax.f32 %v5150_v51, %v5152_v52  ;;  %v3741_v58 = vadd.f32 %v3740_v53, %v3242_v0  ;;  %v3244_v60 = vpop.f32.mrf.mxu1  ;;  %v2746_v63 = vadd.f32 %v8513_v3, %v2745_v59  ;;  %v6204_v53 = vor.u32 %v7515_v43, %v6203_v42 }
 0x200   :  { %v6216_v59 = vor.u32 %v7514_v49, %v6213_v50 }
 0x201   :  { %5156 = vst [vmem:[%s10692_s3 + $0x4e] sm:$0x3f] %v5154_v57  ;;  %v4240_v1 = vadd.f32 %v4239_v54, %v3741_v58  ;;  %2784 = vmatmul.bf16.gmra.mxu0 %v6172_v55  ;;  %v3245_v4 = vadd.f32 %v3244_v60, %v2746_v63  ;;  %v6208_v54 = vor.u32 %v7513_v44, %v6205_v46 }
 0x202   :  { %3283 = vmatmul.bf16.gmra.mxu1 %v6176_v56  ;;  %v6212_v58 = vor.u32 %v7516_v48, %v6211_v47 }
 0x203   :  { %v4665_v2 = vmax.f32 %v4240_v1, 0.0  ;;  %3782 = vmatmul.bf16.gmra.mxu2 %v6180_v61 }
 0x204   :  { %4281 = vmatmul.bf16.gmra.mxu3 %v6184_v62 }
 0x205   :  { %4861 = vst [vmem:[#allocation2 + $0x158] sm:$0xff] %v4665_v2 }
 0x206   :  { %v3743_v5 = vpop.f32.mrf.mxu2  ;;  %v2747_v8 = vpop.f32.mrf.mxu0 }
 0x207   :  { %v4242_v6 = vpop.f32.mrf.mxu3  ;;  %v3744_v7 = vadd.f32 %v3743_v5, %v3245_v4  ;;  %v3246_v9 = vpop.f32.mrf.mxu1  ;;  %v2748_v11 = vadd.f32 %v8513_v3, %v2747_v8 }
 0x209   :  { %v4243_v10 = vadd.f32 %v4242_v6, %v3744_v7  ;;  %v3247_v21 = vadd.f32 %v3246_v9, %v2748_v11  ;;  %v6219_v11 = vld [vmem:[%s10691_s0 + $0x420] sm:$0xf] }
 0x20b   :  { %v4666_v15 = vmax.f32 %v4243_v10, 0.0 }
 0x20c   :  { %v5158_v7 = vld [vmem:[#allocation2 + $0x150] ss:$2 sm:$0xff]  ;;  %v5162_v8 = vld [vmem:[#allocation2 + $0x151] ss:$2 sm:$0xff] }
 0x20d   :  { %4862 = vst [vmem:[#allocation2 + $0x160] sm:$0xff] %v4666_v15  ;;  %v6227_v15 = vld [vmem:[%s10691_s0 + $0x428] sm:$0xf] }
 0x20e   :  { %v3745_v22 = vpop.f32.mrf.mxu2  ;;  %v2750_v27 = vpop.f32.mrf.mxu0 }
 0x20f   :  { %v4244_v23 = vpop.f32.mrf.mxu3  ;;  %v3746_v26 = vadd.f32 %v3745_v22, %v3247_v21  ;;  %v3249_v28 = vpop.f32.mrf.mxu1  ;;  %v2751_v31 = vadd.f32 %v8513_v3, %v2750_v27  ;;  %v6229_v21 = vld [vmem:[%s10691_s0 + $0x438] sm:$0xf0]  ;;  %v5173_v22 = vmax.f32 %v5158_v7, %v5162_v8  ;;  %v6220_v27 = vor.u32 %v7519_v12, %v6219_v11  ;;  %v8880_v8 = vld [vmem:[%s10690_s2] ss:$0 sm:$0xff] }
 0x211   :  { %v4245_v32 = vadd.f32 %v4244_v23, %v3746_v26  ;;  %2789 = vmatmul.bf16.gmra.mxu0 %v6188_v24  ;;  %v3250_v34 = vadd.f32 %v3249_v28, %v2751_v31  ;;  %v6224_v28 = vor.u32 %v7517_v13, %v6221_v14 }
 0x212   :  { %3288 = vmatmul.bf16.gmra.mxu1 %v6192_v25 }
 0x213   :  { %v4667_v33 = vmax.f32 %v4245_v32, 0.0  ;;  %3787 = vmatmul.bf16.gmra.mxu2 %v6196_v29 }
 0x214   :  { %4286 = vmatmul.bf16.gmra.mxu3 %v6200_v30 }
 0x215   :  { %4863 = vst [vmem:[#allocation2 + $0x168] sm:$0xff] %v4667_v33  ;;  %v6228_v33 = vor.u32 %v7520_v17, %v6227_v15 }
 0x216   :  { %v3748_v35 = vpop.f32.mrf.mxu2  ;;  %v2752_v38 = vpop.f32.mrf.mxu0 }
 0x217   :  { %v4247_v36 = vpop.f32.mrf.mxu3  ;;  %v3749_v37 = vadd.f32 %v3748_v35, %v3250_v34  ;;  %v3251_v39 = vpop.f32.mrf.mxu1  ;;  %v2753_v41 = vadd.f32 %v8513_v3, %v2752_v38  ;;  %v6232_v34 = vor.u32 %v7518_v18, %v6229_v21  ;;  %v7527_v21 = vld [vmem:[%s10691_s0 + $0x46c] sm:$0xf0] }
 0x219   :  { %v4248_v40 = vadd.f32 %v4247_v36, %v3749_v37  ;;  %v3252_v51 = vadd.f32 %v3251_v39, %v2753_v41 }
 0x21b   :  { %v4668_v45 = vmax.f32 %v4248_v40, 0.0 }
 0x21c   :  { %v5160_v37 = vld [vmem:[#allocation2 + $0x160] ss:$2 sm:$0x3f]  ;;  %v5164_v38 = vld [vmem:[#allocation2 + $0x161] ss:$2 sm:$0x3f] }
 0x21d   :  { %4864 = vst [vmem:[#allocation2 + $0x170] sm:$0xff] %v4668_v45  ;;  %v5174_v43 = vmax.f32 %v5160_v37, %v5164_v38 }
 0x21e   :  { %v3750_v52 = vpop.f32.mrf.mxu2  ;;  %v2755_v56 = vpop.f32.mrf.mxu0 }
 0x21f   :  { %v4249_v0 = vpop.f32.mrf.mxu3  ;;  %v3751_v55 = vadd.f32 %v3750_v52, %v3252_v51  ;;  %v3254_v57 = vpop.f32.mrf.mxu1  ;;  %v2756_v60 = vadd.f32 %v8513_v3, %v2755_v56  ;;  %v6237_v56 = vld [vmem:[%s10691_s0 + $0x450] sm:$0xf0] }
 0x221   :  { %v4250_v61 = vadd.f32 %v4249_v0, %v3751_v55  ;;  %2794 = vmatmul.bf16.gmra.mxu0 %v6204_v53  ;;  %v3255_v63 = vadd.f32 %v3254_v57, %v2756_v60  ;;  %v6235_v0 = vld [vmem:[%s10691_s0 + $0x440] sm:$0xf]  ;;  %v7523_v53 = vld [vmem:[%s10691_s0 + $0x44c] sm:$0xf0]  ;;  %v7524_v57 = vld [vmem:[%s10691_s0 + $0x454] sm:$0xf0] }
 0x222   :  { %3293 = vmatmul.bf16.gmra.mxu1 %v6208_v54  ;;  %v7521_v54 = vld [vmem:[%s10691_s0 + $0x444] sm:$0xf] }
 0x223   :  { %v4669_v62 = vmax.f32 %v4250_v61, 0.0  ;;  %3792 = vmatmul.bf16.gmra.mxu2 %v6212_v58  ;;  %v7522_v58 = vld [vmem:[%s10691_s0 + $0x44c] sm:$0xf] }
 0x224   :  { %4291 = vmatmul.bf16.gmra.mxu3 %v6216_v59  ;;  %v6245_v59 = vld [vmem:[%s10691_s0 + $0x458] sm:$0xf0] }
 0x225   :  { %4865 = vst [vmem:[#allocation2 + $0x178] sm:$0xff] %v4669_v62  ;;  %v6248_v7 = vor.u32 %v7522_v58, %v6245_v59 }
 0x226   :  { %v3753_v1 = vpop.f32.mrf.mxu2  ;;  %v2757_v5 = vpop.f32.mrf.mxu0 }
 0x227   :  { %v4252_v2 = vpop.f32.mrf.mxu3  ;;  %v3754_v4 = vadd.f32 %v3753_v1, %v3255_v63  ;;  %v3256_v6 = vpop.f32.mrf.mxu1  ;;  %v2758_v10 = vadd.f32 %v8513_v3, %v2757_v5  ;;  %v6236_v63 = vor.u32 %v7523_v53, %v6235_v0  ;;  %v6240_v1 = vor.u32 %v7521_v54, %v6237_v56  ;;  %v6269_v53 = vld [vmem:[%s10691_s0 + $0x490] sm:$0xf0]  ;;  %v6275_v54 = vld [vmem:[%s10691_s0 + $0x488] sm:$0xf]  ;;  %v7530_v56 = vld [vmem:[%s10691_s0 + $0x48c] sm:$0xf] }
 0x229   :  { %v4253_v9 = vadd.f32 %v4252_v2, %v3754_v4  ;;  %v3257_v24 = vadd.f32 %v3256_v6, %v2758_v10 }
 0x22b   :  { %v4670_v16 = vmax.f32 %v4253_v9, 0.0 }
 0x22c   :  { %v5166_v19 = vld [vmem:[#allocation2 + $0x16c] ss:$2 sm:$0xff]  ;;  %v5170_v20 = vld [vmem:[#allocation2 + $0x16d] ss:$2 sm:$0xff] }
 0x22d   :  { %v5175_v23 = vmax.f32 %v5166_v19, %v5170_v20  ;;  %4866 = vst [vmem:[#allocation2 + $0x180] sm:$0xff] %v4670_v16  ;;  %v6251_v20 = vld [vmem:[%s10691_s0 + $0x460] sm:$0xf] }
 0x22e   :  { %v3755_v25 = vpop.f32.mrf.mxu2  ;;  %v2760_v31 = vpop.f32.mrf.mxu0 }
 0x22f   :  { %v4254_v26 = vpop.f32.mrf.mxu3  ;;  %v5177_v29 = vmax.f32 %v5173_v22, %v5175_v23  ;;  %v3756_v30 = vadd.f32 %v3755_v25, %v3257_v24  ;;  %v3259_v32 = vpop.f32.mrf.mxu1  ;;  %v2761_v35 = vadd.f32 %v8513_v3, %v2760_v31  ;;  %v7525_v22 = vld [vmem:[%s10691_s0 + $0x464] sm:$0xf]  ;;  %v6253_v24 = vld [vmem:[%s10691_s0 + $0x470] sm:$0xf0]  ;;  %v6259_v25 = vld [vmem:[%s10691_s0 + $0x468] sm:$0xf] }
 0x231   :  { %5179 = vst [vmem:[%s10692_s3 + $0x54] sm:$0xff] %v5177_v29  ;;  %v4255_v36 = vadd.f32 %v4254_v26, %v3756_v30  ;;  %2799 = vmatmul.bf16.gmra.mxu0 %v6220_v27  ;;  %v3260_v40 = vadd.f32 %v3259_v32, %v2761_v35  ;;  %v7528_v26 = vld [vmem:[%s10691_s0 + $0x474] sm:$0xf0]  ;;  %v7526_v27 = vld [vmem:[%s10691_s0 + $0x46c] sm:$0xf]  ;;  %v6252_v32 = vor.u32 %v7527_v21, %v6251_v20 }
 0x232   :  { %3298 = vmatmul.bf16.gmra.mxu1 %v6224_v28  ;;  %v6261_v28 = vld [vmem:[%s10691_s0 + $0x478] sm:$0xf0]  ;;  %v6260_v37 = vor.u32 %v7528_v26, %v6259_v25  ;;  %v7535_v25 = vld [vmem:[%s10691_s0 + $0x4ac] sm:$0xf0]  ;;  %v7533_v26 = vld [vmem:[%s10691_s0 + $0x4a4] sm:$0xf] }
 0x233   :  { %v4671_v39 = vmax.f32 %v4255_v36, 0.0  ;;  %3797 = vmatmul.bf16.gmra.mxu2 %v6228_v33  ;;  %v6256_v33 = vor.u32 %v7525_v22, %v6253_v24  ;;  %v6264_v38 = vor.u32 %v7526_v27, %v6261_v28  ;;  %v6283_v24 = vld [vmem:[%s10691_s0 + $0x4a0] sm:$0xf]  ;;  %v6285_v27 = vld [vmem:[%s10691_s0 + $0x4b0] sm:$0xf0] }
 0x234   :  { %4296 = vmatmul.bf16.gmra.mxu3 %v6232_v34  ;;  %v5168_v41 = vld [vmem:[#allocation2 + $0x17c] ss:$2 sm:$0x3f]  ;;  %v5172_v42 = vld [vmem:[#allocation2 + $0x17d] ss:$2 sm:$0x3f] }
 0x235   :  { %v5176_v44 = vmax.f32 %v5168_v41, %v5172_v42  ;;  %4867 = vst [vmem:[#allocation2 + $0x188] sm:$0xff] %v4671_v39 }
 0x236   :  { %v3758_v45 = vpop.f32.mrf.mxu2  ;;  %v2762_v49 = vpop.f32.mrf.mxu0 }
 0x237   :  { %v4257_v46 = vpop.f32.mrf.mxu3  ;;  %v5178_v47 = vmax.f32 %v5174_v43, %v5176_v44  ;;  %v3759_v48 = vadd.f32 %v3758_v45, %v3260_v40  ;;  %v3261_v50 = vpop.f32.mrf.mxu1  ;;  %v2763_v52 = vadd.f32 %v8513_v3, %v2762_v49  ;;  %v6243_v3 = vld [vmem:[%s10691_s0 + $0x448] sm:$0xf] }
 0x238   :  { %v6244_v6 = vor.u32 %v7524_v57, %v6243_v3  ;;  %v6277_v3 = vld [vmem:[%s10691_s0 + $0x498] sm:$0xf0] }
 0x239   :  { %5180 = vst [vmem:[%s10692_s3 + $0x5c] sm:$0x3f] %v5178_v47  ;;  %v4258_v51 = vadd.f32 %v4257_v46, %v3759_v48  ;;  %v3262_v60 = vadd.f32 %v3261_v50, %v2763_v52  ;;  %v6267_v50 = vld [vmem:[%s10691_s0 + $0x480] sm:$0xf]  ;;  %v7529_v52 = vld [vmem:[%s10691_s0 + $0x484] sm:$0xf] }
 0x23b   :  { %v4672_v55 = vmax.f32 %v4258_v51, 0.0  ;;  %v7531_v51 = vld [vmem:[%s10691_s0 + $0x48c] sm:$0xf0] }
 0x23d   :  { %4868 = vst [vmem:[#allocation2 + $0x190] sm:$0xff] %v4672_v55  ;;  %v7532_v55 = vld [vmem:[%s10691_s0 + $0x494] sm:$0xf0] }
 0x23e   :  { %v3760_v61 = vpop.f32.mrf.mxu2  ;;  %v2765_v4 = vpop.f32.mrf.mxu0 }
 0x23f   :  { %v4259_v62 = vpop.f32.mrf.mxu3  ;;  %v3761_v2 = vadd.f32 %v3760_v61, %v3262_v60  ;;  %v3264_v5 = vpop.f32.mrf.mxu1  ;;  %v2766_v9 = vadd.f32 %v8880_v8, %v2765_v4  ;;  %v6268_v60 = vor.u32 %v7531_v51, %v6267_v50  ;;  %v6272_v61 = vor.u32 %v7529_v52, %v6269_v53 }
 0x240   :  { %v6280_v4 = vor.u32 %v7530_v56, %v6277_v3 }
 0x241   :  { %v4260_v10 = vadd.f32 %v4259_v62, %v3761_v2  ;;  %2804 = vmatmul.bf16.gmra.mxu0 %v6236_v63  ;;  %v3265_v12 = vadd.f32 %v3264_v5, %v2766_v9  ;;  %v6276_v2 = vor.u32 %v7532_v55, %v6275_v54 }
 0x242   :  { %3303 = vmatmul.bf16.gmra.mxu1 %v6240_v1 }
 0x243   :  { %v4673_v11 = vmax.f32 %v4260_v10, 0.0  ;;  %3802 = vmatmul.bf16.gmra.mxu2 %v6244_v6 }
 0x244   :  { %4301 = vmatmul.bf16.gmra.mxu3 %v6248_v7  ;;  %v5182_v7 = vld [vmem:[#allocation2 + $0x188] ss:$2 sm:$0xff]  ;;  %v5186_v9 = vld [vmem:[#allocation2 + $0x189] ss:$2 sm:$0xff] }
 0x245   :  { %4869 = vst [vmem:[#allocation2 + $0x198] sm:$0xff] %v4673_v11 }
 0x246   :  { %v3763_v13 = vpop.f32.mrf.mxu2  ;;  %v2767_v16 = vpop.f32.mrf.mxu0 }
 0x247   :  { %v4262_v14 = vpop.f32.mrf.mxu3  ;;  %v3764_v15 = vadd.f32 %v3763_v13, %v3265_v12  ;;  %v3266_v17 = vpop.f32.mrf.mxu1  ;;  %v2768_v19 = vadd.f32 %v8880_v8, %v2767_v16 }
 0x249   :  { %v4263_v18 = vadd.f32 %v4262_v14, %v3764_v15  ;;  %v3267_v29 = vadd.f32 %v3266_v17, %v2768_v19  ;;  %v5197_v14 = vmax.f32 %v5182_v7, %v5186_v9 }
 0x24b   :  { %v4674_v23 = vmax.f32 %v4263_v18, 0.0 }
 0x24d   :  { %4870 = vst [vmem:[#allocation2 + $0x1a0] sm:$0xff] %v4674_v23 }
 0x24e   :  { %v3765_v30 = vpop.f32.mrf.mxu2  ;;  %v2770_v35 = vpop.f32.mrf.mxu0 }
 0x24f   :  { %v4264_v31 = vpop.f32.mrf.mxu3  ;;  %v3766_v34 = vadd.f32 %v3765_v30, %v3267_v29  ;;  %v3269_v36 = vpop.f32.mrf.mxu1  ;;  %v2771_v39 = vadd.f32 %v8880_v8, %v2770_v35  ;;  %v6291_v30 = vld [vmem:[%s10691_s0 + $0x4a8] sm:$0xf] }
 0x251   :  { %v4265_v40 = vadd.f32 %v4264_v31, %v3766_v34  ;;  %2809 = vmatmul.bf16.gmra.mxu0 %v6252_v32  ;;  %v3270_v42 = vadd.f32 %v3269_v36, %v2771_v39  ;;  %v7536_v31 = vld [vmem:[%s10691_s0 + $0x4b4] sm:$0xf0]  ;;  %v6293_v34 = vld [vmem:[%s10691_s0 + $0x4b8] sm:$0xf0] }
 0x252   :  { %3308 = vmatmul.bf16.gmra.mxu1 %v6256_v33  ;;  %v7534_v33 = vld [vmem:[%s10691_s0 + $0x4ac] sm:$0xf] }
 0x253   :  { %v4675_v41 = vmax.f32 %v4265_v40, 0.0  ;;  %3807 = vmatmul.bf16.gmra.mxu2 %v6260_v37 }
 0x254   :  { %4306 = vmatmul.bf16.gmra.mxu3 %v6264_v38  ;;  %v5184_v28 = vld [vmem:[#allocation2 + $0x198] ss:$2 sm:$0x3f]  ;;  %v5188_v29 = vld [vmem:[#allocation2 + $0x199] ss:$2 sm:$0x3f] }
 0x255   :  { %4871 = vst [vmem:[#allocation2 + $0x1a8] sm:$0xff] %v4675_v41  ;;  %v5198_v37 = vmax.f32 %v5184_v28, %v5188_v29  ;;  %v6315_v28 = vld [vmem:[%s10691_s0 + $0x4e0] sm:$0xf]  ;;  %v7543_v29 = vld [vmem:[%s10691_s0 + $0x4ec] sm:$0xf0] }
 0x256   :  { %v3768_v43 = vpop.f32.mrf.mxu2  ;;  %v2772_v46 = vpop.f32.mrf.mxu0 }
 0x257   :  { %v4267_v44 = vpop.f32.mrf.mxu3  ;;  %v3769_v45 = vadd.f32 %v3768_v43, %v3270_v42  ;;  %v3271_v47 = vpop.f32.mrf.mxu1  ;;  %v2773_v49 = vadd.f32 %v8880_v8, %v2772_v46  ;;  %v6284_v42 = vor.u32 %v7535_v25, %v6283_v24  ;;  %v6288_v43 = vor.u32 %v7533_v26, %v6285_v27 }
 0x259   :  { %v4268_v48 = vadd.f32 %v4267_v44, %v3769_v45  ;;  %v3272_v57 = vadd.f32 %v3271_v47, %v2773_v49  ;;  %v6296_v49 = vor.u32 %v7534_v33, %v6293_v34  ;;  %v6323_v33 = vld [vmem:[%s10691_s0 + $0x4e8] sm:$0xf]  ;;  %v7544_v34 = vld [vmem:[%s10691_s0 + $0x4f4] sm:$0xf0] }
 0x25b   :  { %v4676_v0 = vmax.f32 %v4268_v48, 0.0  ;;  %v6292_v48 = vor.u32 %v7536_v31, %v6291_v30  ;;  %v7541_v30 = vld [vmem:[%s10691_s0 + $0x4e4] sm:$0xf] }
 0x25d   :  { %4872 = vst [vmem:[#allocation2 + $0x1b0] sm:$0xff] %v4676_v0 }
 0x25e   :  { %v3770_v58 = vpop.f32.mrf.mxu2  ;;  %v2775_v63 = vpop.f32.mrf.mxu0 }
 0x25f   :  { %v4269_v59 = vpop.f32.mrf.mxu3  ;;  %v3771_v62 = vadd.f32 %v3770_v58, %v3272_v57  ;;  %v3274_v1 = vpop.f32.mrf.mxu1  ;;  %v2776_v5 = vadd.f32 %v8880_v8, %v2775_v63  ;;  %v6301_v63 = vld [vmem:[%s10691_s0 + $0x4d0] sm:$0xf0] }
 0x261   :  { %v4270_v6 = vadd.f32 %v4269_v59, %v3771_v62  ;;  %2814 = vmatmul.bf16.gmra.mxu0 %v6268_v60  ;;  %v3275_v11 = vadd.f32 %v3274_v1, %v2776_v5  ;;  %v6299_v59 = vld [vmem:[%s10691_s0 + $0x4c0] sm:$0xf]  ;;  %v7539_v60 = vld [vmem:[%s10691_s0 + $0x4cc] sm:$0xf0]  ;;  %v6307_v1 = vld [vmem:[%s10691_s0 + $0x4c8] sm:$0xf] }
 0x262   :  { %3313 = vmatmul.bf16.gmra.mxu1 %v6272_v61  ;;  %v7537_v61 = vld [vmem:[%s10691_s0 + $0x4c4] sm:$0xf]  ;;  %v6309_v5 = vld [vmem:[%s10691_s0 + $0x4d8] sm:$0xf0] }
 0x263   :  { %v4677_v10 = vmax.f32 %v4270_v6, 0.0  ;;  %3812 = vmatmul.bf16.gmra.mxu2 %v6276_v2  ;;  %v7540_v2 = vld [vmem:[%s10691_s0 + $0x4d4] sm:$0xf0] }
 0x264   :  { %4311 = vmatmul.bf16.gmra.mxu3 %v6280_v4  ;;  %v5190_v12 = vld [vmem:[#allocation2 + $0x1a4] ss:$2 sm:$0xff]  ;;  %v5194_v13 = vld [vmem:[#allocation2 + $0x1a5] ss:$2 sm:$0xff] }
 0x265   :  { %v5199_v15 = vmax.f32 %v5190_v12, %v5194_v13  ;;  %4873 = vst [vmem:[#allocation2 + $0x1b8] sm:$0xff] %v4677_v10  ;;  %v7538_v4 = vld [vmem:[%s10691_s0 + $0x4cc] sm:$0xf]  ;;  %v6300_v10 = vor.u32 %v7539_v60, %v6299_v59  ;;  %v7547_v59 = vld [vmem:[%s10691_s0 + $0x50c] sm:$0xf0] }
 0x266   :  { %v3773_v16 = vpop.f32.mrf.mxu2  ;;  %v2777_v20 = vpop.f32.mrf.mxu0  ;;  %v7545_v60 = vld [vmem:[%s10691_s0 + $0x504] sm:$0xf] }
 0x267   :  { %v4272_v17 = vpop.f32.mrf.mxu3  ;;  %v5201_v18 = vmax.f32 %v5197_v14, %v5199_v15  ;;  %v3774_v19 = vadd.f32 %v3773_v16, %v3275_v11  ;;  %v3276_v21 = vpop.f32.mrf.mxu1  ;;  %v2778_v23 = vadd.f32 %v8880_v8, %v2777_v20  ;;  %v6304_v11 = vor.u32 %v7537_v61, %v6301_v63  ;;  %v6333_v61 = vld [vmem:[%s10691_s0 + $0x510] sm:$0xf0] }
 0x268   :  { %v6308_v15 = vor.u32 %v7540_v2, %v6307_v1  ;;  %v6312_v16 = vor.u32 %v7538_v4, %v6309_v5  ;;  %v7548_v1 = vld [vmem:[%s10691_s0 + $0x514] sm:$0xf0]  ;;  %v7546_v2 = vld [vmem:[%s10691_s0 + $0x50c] sm:$0xf] }
 0x269   :  { %5203 = vst [vmem:[%s10692_s3 + $0x62] sm:$0xff] %v5201_v18  ;;  %v4273_v22 = vadd.f32 %v4272_v17, %v3774_v19  ;;  %v3277_v39 = vadd.f32 %v3276_v21, %v2778_v23 }
 0x26b   :  { %v4678_v32 = vmax.f32 %v4273_v22, 0.0 }
 0x26c   :  { %v5192_v35 = vld [vmem:[#allocation2 + $0x1b4] ss:$2 sm:$0x3f]  ;;  %v5196_v36 = vld [vmem:[#allocation2 + $0x1b5] ss:$2 sm:$0x3f] }
 0x26d   :  { %v5200_v38 = vmax.f32 %v5192_v35, %v5196_v36  ;;  %4874 = vst [vmem:[#allocation2 + $0x1c0] sm:$0xff] %v4678_v32  ;;  %v6317_v32 = vld [vmem:[%s10691_s0 + $0x4f0] sm:$0xf0]  ;;  %v7542_v35 = vld [vmem:[%s10691_s0 + $0x4ec] sm:$0xf] }
 0x26e   :  { %v3775_v40 = vpop.f32.mrf.mxu2  ;;  %v2780_v46 = vpop.f32.mrf.mxu0  ;;  %v6325_v36 = vld [vmem:[%s10691_s0 + $0x4f8] sm:$0xf0] }
 0x26f   :  { %v4274_v41 = vpop.f32.mrf.mxu3  ;;  %v5202_v44 = vmax.f32 %v5198_v37, %v5200_v38  ;;  %v3776_v45 = vadd.f32 %v3775_v40, %v3277_v39  ;;  %v3279_v47 = vpop.f32.mrf.mxu1  ;;  %v2781_v50 = vadd.f32 %v8880_v8, %v2780_v46  ;;  %v6316_v40 = vor.u32 %v7543_v29, %v6315_v28 }
 0x270   :  { %v6328_v46 = vor.u32 %v7542_v35, %v6325_v36 }
 0x271   :  { %5204 = vst [vmem:[%s10692_s3 + $0x6a] sm:$0x3f] %v5202_v44  ;;  %v4275_v51 = vadd.f32 %v4274_v41, %v3776_v45  ;;  %2819 = vmatmul.bf16.gmra.mxu0 %v6284_v42  ;;  %v3280_v0 = vadd.f32 %v3279_v47, %v2781_v50  ;;  %v6320_v41 = vor.u32 %v7541_v30, %v6317_v32 }
 0x272   :  { %3318 = vmatmul.bf16.gmra.mxu1 %v6288_v43  ;;  %v6324_v45 = vor.u32 %v7544_v34, %v6323_v33 }
 0x273   :  { %v4679_v52 = vmax.f32 %v4275_v51, 0.0  ;;  %3817 = vmatmul.bf16.gmra.mxu2 %v6292_v48 }
 0x274   :  { %4316 = vmatmul.bf16.gmra.mxu3 %v6296_v49 }
 0x275   :  { %4875 = vst [vmem:[#allocation2 + $0x1c8] sm:$0xff] %v4679_v52 }
 0x276   :  { %v3778_v53 = vpop.f32.mrf.mxu2  ;;  %v2782_v56 = vpop.f32.mrf.mxu0 }
 0x277   :  { %v4277_v54 = vpop.f32.mrf.mxu3  ;;  %v3779_v55 = vadd.f32 %v3778_v53, %v3280_v0  ;;  %v3281_v3 = vpop.f32.mrf.mxu1  ;;  %v2783_v58 = vadd.f32 %v8880_v8, %v2782_v56 }
 0x279   :  { %v4278_v57 = vadd.f32 %v4277_v54, %v3779_v55  ;;  %v3282_v6 = vadd.f32 %v3281_v3, %v2783_v58  ;;  %v6331_v58 = vld [vmem:[%s10691_s0 + $0x500] sm:$0xf] }
 0x27b   :  { %v4680_v62 = vmax.f32 %v4278_v57, 0.0 }
 0x27c   :  { %v5206_v55 = vld [vmem:[#allocation2 + $0x1c0] ss:$2 sm:$0xff]  ;;  %v5210_v56 = vld [vmem:[#allocation2 + $0x1c1] ss:$2 sm:$0xff] }
 0x27d   :  { %4876 = vst [vmem:[#allocation2 + $0x1d0] sm:$0xff] %v4680_v62  ;;  %v6339_v62 = vld [vmem:[%s10691_s0 + $0x508] sm:$0xf] }
 0x27e   :  { %v3780_v7 = vpop.f32.mrf.mxu2  ;;  %v2785_v13 = vpop.f32.mrf.mxu0 }
 0x27f   :  { %v4279_v9 = vpop.f32.mrf.mxu3  ;;  %v3781_v12 = vadd.f32 %v3780_v7, %v3282_v6  ;;  %v3284_v14 = vpop.f32.mrf.mxu1  ;;  %v2786_v17 = vadd.f32 %v8880_v8, %v2785_v13  ;;  %v6341_v6 = vld [vmem:[%s10691_s0 + $0x518] sm:$0xf0]  ;;  %v5221_v7 = vmax.f32 %v5206_v55, %v5210_v56  ;;  %v6332_v13 = vor.u32 %v7547_v59, %v6331_v58 }
 0x281   :  { %v4280_v18 = vadd.f32 %v4279_v9, %v3781_v12  ;;  %2824 = vmatmul.bf16.gmra.mxu0 %v6300_v10  ;;  %v3285_v20 = vadd.f32 %v3284_v14, %v2786_v17  ;;  %v6336_v14 = vor.u32 %v7545_v60, %v6333_v61 }
 0x282   :  { %3323 = vmatmul.bf16.gmra.mxu1 %v6304_v11 }
 0x283   :  { %v4681_v19 = vmax.f32 %v4280_v18, 0.0  ;;  %3822 = vmatmul.bf16.gmra.mxu2 %v6308_v15 }
 0x284   :  { %4321 = vmatmul.bf16.gmra.mxu3 %v6312_v16 }
 0x285   :  { %4877 = vst [vmem:[#allocation2 + $0x1d8] sm:$0xff] %v4681_v19  ;;  %v6340_v19 = vor.u32 %v7548_v1, %v6339_v62 }
 0x286   :  { %v3783_v21 = vpop.f32.mrf.mxu2  ;;  %v2787_v24 = vpop.f32.mrf.mxu0 }
 0x287   :  { %v4282_v22 = vpop.f32.mrf.mxu3  ;;  %v3784_v23 = vadd.f32 %v3783_v21, %v3285_v20  ;;  %v3286_v25 = vpop.f32.mrf.mxu1  ;;  %v2788_v27 = vadd.f32 %v8880_v8, %v2787_v24  ;;  %v6344_v20 = vor.u32 %v7546_v2, %v6341_v6  ;;  %v7555_v6 = vld [vmem:[%s10691_s0 + $0x54c] sm:$0xf0] }
 0x289   :  { %v4283_v26 = vadd.f32 %v4282_v22, %v3784_v23  ;;  %v3287_v37 = vadd.f32 %v3286_v25, %v2788_v27 }
 0x28b   :  { %v4682_v31 = vmax.f32 %v4283_v26, 0.0 }
 0x28c   :  { %v5208_v23 = vld [vmem:[#allocation2 + $0x1d0] ss:$2 sm:$0x3f]  ;;  %v5212_v24 = vld [vmem:[#allocation2 + $0x1d1] ss:$2 sm:$0x3f] }
 0x28d   :  { %4878 = vst [vmem:[#allocation2 + $0x1e0] sm:$0xff] %v4682_v31  ;;  %v5222_v29 = vmax.f32 %v5208_v23, %v5212_v24 }
 0x28e   :  { %v3785_v38 = vpop.f32.mrf.mxu2  ;;  %v2790_v43 = vpop.f32.mrf.mxu0 }
 0x28f   :  { %v4284_v39 = vpop.f32.mrf.mxu3  ;;  %v3786_v42 = vadd.f32 %v3785_v38, %v3287_v37  ;;  %v3289_v44 = vpop.f32.mrf.mxu1  ;;  %v2791_v47 = vadd.f32 %v8880_v8, %v2790_v43  ;;  %v6349_v43 = vld [vmem:[%s10691_s0 + $0x530] sm:$0xf0] }
 0x291   :  { %v4285_v48 = vadd.f32 %v4284_v39, %v3786_v42  ;;  %2829 = vmatmul.bf16.gmra.mxu0 %v6316_v40  ;;  %v3290_v50 = vadd.f32 %v3289_v44, %v2791_v47  ;;  %v6347_v39 = vld [vmem:[%s10691_s0 + $0x520] sm:$0xf]  ;;  %v7551_v40 = vld [vmem:[%s10691_s0 + $0x52c] sm:$0xf0]  ;;  %v6355_v44 = vld [vmem:[%s10691_s0 + $0x528] sm:$0xf] }
 0x292   :  { %3328 = vmatmul.bf16.gmra.mxu1 %v6320_v41  ;;  %v7549_v41 = vld [vmem:[%s10691_s0 + $0x524] sm:$0xf]  ;;  %v6357_v47 = vld [vmem:[%s10691_s0 + $0x538] sm:$0xf0] }
 0x293   :  { %v4683_v49 = vmax.f32 %v4285_v48, 0.0  ;;  %3827 = vmatmul.bf16.gmra.mxu2 %v6324_v45  ;;  %v7552_v45 = vld [vmem:[%s10691_s0 + $0x534] sm:$0xf0] }
 0x294   :  { %4326 = vmatmul.bf16.gmra.mxu3 %v6328_v46  ;;  %v7550_v46 = vld [vmem:[%s10691_s0 + $0x52c] sm:$0xf]  ;;  %v6356_v55 = vor.u32 %v7552_v45, %v6355_v44  ;;  %v6389_v44 = vld [vmem:[%s10691_s0 + $0x578] sm:$0xf0] }
 0x295   :  { %4879 = vst [vmem:[#allocation2 + $0x1e8] sm:$0xff] %v4683_v49  ;;  %v6360_v56 = vor.u32 %v7550_v46, %v6357_v47 }
 0x296   :  { %v3788_v51 = vpop.f32.mrf.mxu2  ;;  %v2792_v53 = vpop.f32.mrf.mxu0 }
 0x297   :  { %v4287_v52 = vpop.f32.mrf.mxu3  ;;  %v3789_v0 = vadd.f32 %v3788_v51, %v3290_v50  ;;  %v3291_v54 = vpop.f32.mrf.mxu1  ;;  %v2793_v57 = vadd.f32 %v8880_v8, %v2792_v53  ;;  %v6348_v51 = vor.u32 %v7551_v40, %v6347_v39  ;;  %v6381_v40 = vld [vmem:[%s10691_s0 + $0x570] sm:$0xf0] }
 0x299   :  { %v4288_v3 = vadd.f32 %v4287_v52, %v3789_v0  ;;  %v3292_v10 = vadd.f32 %v3291_v54, %v2793_v57  ;;  %v6352_v52 = vor.u32 %v7549_v41, %v6349_v43  ;;  %v6387_v41 = vld [vmem:[%s10691_s0 + $0x568] sm:$0xf]  ;;  %v7558_v43 = vld [vmem:[%s10691_s0 + $0x56c] sm:$0xf] }
 0x29b   :  { %v4684_v63 = vmax.f32 %v4288_v3, 0.0 }
 0x29c   :  { %v5214_v4 = vld [vmem:[#allocation2 + $0x1dc] ss:$2 sm:$0xff]  ;;  %v5218_v5 = vld [vmem:[#allocation2 + $0x1dd] ss:$2 sm:$0xff] }
 0x29d   :  { %v5223_v9 = vmax.f32 %v5214_v4, %v5218_v5  ;;  %4880 = vst [vmem:[#allocation2 + $0x1f0] sm:$0xff] %v4684_v63  ;;  %v6363_v5 = vld [vmem:[%s10691_s0 + $0x540] sm:$0xf] }
 0x29e   :  { %v3790_v11 = vpop.f32.mrf.mxu2  ;;  %v2795_v17 = vpop.f32.mrf.mxu0 }
 0x29f   :  { %v4289_v12 = vpop.f32.mrf.mxu3  ;;  %v5225_v15 = vmax.f32 %v5221_v7, %v5223_v9  ;;  %v3791_v16 = vadd.f32 %v3790_v11, %v3292_v10  ;;  %v3294_v18 = vpop.f32.mrf.mxu1  ;;  %v2796_v21 = vadd.f32 %v8880_v8, %v2795_v17  ;;  %v7553_v7 = vld [vmem:[%s10691_s0 + $0x544] sm:$0xf]  ;;  %v6365_v10 = vld [vmem:[%s10691_s0 + $0x550] sm:$0xf0]  ;;  %v6371_v11 = vld [vmem:[%s10691_s0 + $0x548] sm:$0xf] }
 0x2a1   :  { %5227 = vst [vmem:[%s10692_s3 + $0x70] sm:$0xff] %v5225_v15  ;;  %v4290_v22 = vadd.f32 %v4289_v12, %v3791_v16  ;;  %2834 = vmatmul.bf16.gmra.mxu0 %v6332_v13  ;;  %v3295_v26 = vadd.f32 %v3294_v18, %v2796_v21  ;;  %v7556_v12 = vld [vmem:[%s10691_s0 + $0x554] sm:$0xf0]  ;;  %v7554_v13 = vld [vmem:[%s10691_s0 + $0x54c] sm:$0xf]  ;;  %v6364_v18 = vor.u32 %v7555_v6, %v6363_v5 }
 0x2a2   :  { %3333 = vmatmul.bf16.gmra.mxu1 %v6336_v14  ;;  %v6373_v14 = vld [vmem:[%s10691_s0 + $0x558] sm:$0xf0]  ;;  %v6372_v23 = vor.u32 %v7556_v12, %v6371_v11  ;;  %v7563_v11 = vld [vmem:[%s10691_s0 + $0x58c] sm:$0xf0]  ;;  %v7561_v12 = vld [vmem:[%s10691_s0 + $0x584] sm:$0xf] }
 0x2a3   :  { %v4685_v25 = vmax.f32 %v4290_v22, 0.0  ;;  %3832 = vmatmul.bf16.gmra.mxu2 %v6340_v19  ;;  %v6368_v19 = vor.u32 %v7553_v7, %v6365_v10  ;;  %v6376_v24 = vor.u32 %v7554_v13, %v6373_v14  ;;  %v6395_v10 = vld [vmem:[%s10691_s0 + $0x580] sm:$0xf]  ;;  %v6397_v13 = vld [vmem:[%s10691_s0 + $0x590] sm:$0xf0] }
 0x2a4   :  { %4331 = vmatmul.bf16.gmra.mxu3 %v6344_v20  ;;  %v5216_v27 = vld [vmem:[#allocation2 + $0x1ec] ss:$2 sm:$0x3f]  ;;  %v5220_v28 = vld [vmem:[#allocation2 + $0x1ed] ss:$2 sm:$0x3f] }
 0x2a5   :  { %v5224_v30 = vmax.f32 %v5216_v27, %v5220_v28  ;;  %4881 = vst [vmem:[#allocation2 + $0x1f8] sm:$0xff] %v4685_v25 }
 0x2a6   :  { %v3793_v31 = vpop.f32.mrf.mxu2  ;;  %v2797_v35 = vpop.f32.mrf.mxu0 }
 0x2a7   :  { %v4292_v32 = vpop.f32.mrf.mxu3  ;;  %v5226_v33 = vmax.f32 %v5222_v29, %v5224_v30  ;;  %v3794_v34 = vadd.f32 %v3793_v31, %v3295_v26  ;;  %v3296_v36 = vpop.f32.mrf.mxu1  ;;  %v2798_v38 = vadd.f32 %v8880_v8, %v2797_v35 }
 0x2a9   :  { %5228 = vst [vmem:[%s10692_s3 + $0x78] sm:$0x3f] %v5226_v33  ;;  %v4293_v37 = vadd.f32 %v4292_v32, %v3794_v34  ;;  %v3297_v48 = vadd.f32 %v3296_v36, %v2798_v38  ;;  %v6379_v36 = vld [vmem:[%s10691_s0 + $0x560] sm:$0xf]  ;;  %v7557_v38 = vld [vmem:[%s10691_s0 + $0x564] sm:$0xf] }
 0x2ab   :  { %v4686_v42 = vmax.f32 %v4293_v37, 0.0  ;;  %v7559_v37 = vld [vmem:[%s10691_s0 + $0x56c] sm:$0xf0] }
 0x2ad   :  { %4882 = vst [vmem:[#allocation2 + $0x200] sm:$0xff] %v4686_v42  ;;  %v7560_v42 = vld [vmem:[%s10691_s0 + $0x574] sm:$0xf0] }
 0x2ae   :  { %v3795_v49 = vpop.f32.mrf.mxu2  ;;  %v2800_v53 = vpop.f32.mrf.mxu0 }
 0x2af   :  { %v4294_v50 = vpop.f32.mrf.mxu3  ;;  %v3796_v0 = vadd.f32 %v3795_v49, %v3297_v48  ;;  %v3299_v54 = vpop.f32.mrf.mxu1  ;;  %v2801_v3 = vadd.f32 %v8880_v8, %v2800_v53  ;;  %v6380_v48 = vor.u32 %v7559_v37, %v6379_v36  ;;  %v6384_v49 = vor.u32 %v7557_v38, %v6381_v40 }
 0x2b0   :  { %v6392_v53 = vor.u32 %v7558_v43, %v6389_v44 }
 0x2b1   :  { %v4295_v57 = vadd.f32 %v4294_v50, %v3796_v0  ;;  %2839 = vmatmul.bf16.gmra.mxu0 %v6348_v51  ;;  %v3300_v59 = vadd.f32 %v3299_v54, %v2801_v3  ;;  %v6388_v0 = vor.u32 %v7560_v42, %v6387_v41 }
 0x2b2   :  { %3338 = vmatmul.bf16.gmra.mxu1 %v6352_v52 }
 0x2b3   :  { %v4687_v58 = vmax.f32 %v4295_v57, 0.0  ;;  %3837 = vmatmul.bf16.gmra.mxu2 %v6356_v55 }
 0x2b4   :  { %4336 = vmatmul.bf16.gmra.mxu3 %v6360_v56  ;;  %v5230_v56 = vld [vmem:[#allocation2 + $0x1f8] ss:$2 sm:$0xff]  ;;  %v5234_v3 = vld [vmem:[#allocation2 + $0x1f9] ss:$2 sm:$0xff] }
 0x2b5   :  { %4883 = vst [vmem:[#allocation2 + $0x208] sm:$0xff] %v4687_v58 }
 0x2b6   :  { %v3798_v60 = vpop.f32.mrf.mxu2  ;;  %v2802_v63 = vpop.f32.mrf.mxu0 }
 0x2b7   :  { %v4297_v61 = vpop.f32.mrf.mxu3  ;;  %v3799_v62 = vadd.f32 %v3798_v60, %v3300_v59  ;;  %v3301_v1 = vpop.f32.mrf.mxu1  ;;  %v2803_v4 = vadd.f32 %v8880_v8, %v2802_v63 }
 0x2b9   :  { %v4298_v2 = vadd.f32 %v4297_v61, %v3799_v62  ;;  %v3302_v15 = vadd.f32 %v3301_v1, %v2803_v4  ;;  %v5245_v61 = vmax.f32 %v5230_v56, %v5234_v3 }
 0x2bb   :  { %v4688_v9 = vmax.f32 %v4298_v2, 0.0 }
 0x2bd   :  { %4884 = vst [vmem:[#allocation2 + $0x210] sm:$0xff] %v4688_v9 }
 0x2be   :  { %v3800_v16 = vpop.f32.mrf.mxu2  ;;  %v2805_v21 = vpop.f32.mrf.mxu0 }
 0x2bf   :  { %v4299_v17 = vpop.f32.mrf.mxu3  ;;  %v3801_v20 = vadd.f32 %v3800_v16, %v3302_v15  ;;  %v3304_v22 = vpop.f32.mrf.mxu1  ;;  %v2806_v25 = vadd.f32 %v8880_v8, %v2805_v21  ;;  %v6403_v16 = vld [vmem:[%s10691_s0 + $0x588] sm:$0xf] }
 0x2c1   :  { %v4300_v26 = vadd.f32 %v4299_v17, %v3801_v20  ;;  %2844 = vmatmul.bf16.gmra.mxu0 %v6364_v18  ;;  %v3305_v28 = vadd.f32 %v3304_v22, %v2806_v25  ;;  %v7564_v17 = vld [vmem:[%s10691_s0 + $0x594] sm:$0xf0]  ;;  %v6405_v20 = vld [vmem:[%s10691_s0 + $0x598] sm:$0xf0] }
 0x2c2   :  { %3343 = vmatmul.bf16.gmra.mxu1 %v6368_v19  ;;  %v7562_v19 = vld [vmem:[%s10691_s0 + $0x58c] sm:$0xf] }
 0x2c3   :  { %v4689_v27 = vmax.f32 %v4300_v26, 0.0  ;;  %3842 = vmatmul.bf16.gmra.mxu2 %v6372_v23 }
 0x2c4   :  { %4341 = vmatmul.bf16.gmra.mxu3 %v6376_v24  ;;  %v5232_v14 = vld [vmem:[#allocation2 + $0x208] ss:$2 sm:$0x3f]  ;;  %v5236_v15 = vld [vmem:[#allocation2 + $0x209] ss:$2 sm:$0x3f] }
 0x2c5   :  { %4885 = vst [vmem:[#allocation2 + $0x218] sm:$0xff] %v4689_v27  ;;  %v5246_v23 = vmax.f32 %v5232_v14, %v5236_v15  ;;  %v6427_v14 = vld [vmem:[%s10691_s0 + $0x5c0] sm:$0xf]  ;;  %v7571_v15 = vld [vmem:[%s10691_s0 + $0x5cc] sm:$0xf0] }
 0x2c6   :  { %v3803_v29 = vpop.f32.mrf.mxu2  ;;  %v2807_v32 = vpop.f32.mrf.mxu0 }
 0x2c7   :  { %v4302_v30 = vpop.f32.mrf.mxu3  ;;  %v3804_v31 = vadd.f32 %v3803_v29, %v3305_v28  ;;  %v3306_v33 = vpop.f32.mrf.mxu1  ;;  %v2808_v35 = vadd.f32 %v8880_v8, %v2807_v32  ;;  %v6396_v28 = vor.u32 %v7563_v11, %v6395_v10  ;;  %v6400_v29 = vor.u32 %v7561_v12, %v6397_v13 }
 0x2c9   :  { %v4303_v34 = vadd.f32 %v4302_v30, %v3804_v31  ;;  %v3307_v45 = vadd.f32 %v3306_v33, %v2808_v35  ;;  %v6408_v35 = vor.u32 %v7562_v19, %v6405_v20  ;;  %v6435_v19 = vld [vmem:[%s10691_s0 + $0x5c8] sm:$0xf]  ;;  %v7572_v20 = vld [vmem:[%s10691_s0 + $0x5d4] sm:$0xf0] }
 0x2cb   :  { %v4690_v39 = vmax.f32 %v4303_v34, 0.0  ;;  %v6404_v34 = vor.u32 %v7564_v17, %v6403_v16  ;;  %v7569_v16 = vld [vmem:[%s10691_s0 + $0x5c4] sm:$0xf] }
 0x2cd   :  { %4886 = vst [vmem:[#allocation2 + $0x220] sm:$0xff] %v4690_v39 }
 0x2ce   :  { %v3805_v46 = vpop.f32.mrf.mxu2  ;;  %v2810_v51 = vpop.f32.mrf.mxu0 }
 0x2cf   :  { %v4304_v47 = vpop.f32.mrf.mxu3  ;;  %v3806_v50 = vadd.f32 %v3805_v46, %v3307_v45  ;;  %v3309_v52 = vpop.f32.mrf.mxu1  ;;  %v2811_v54 = vadd.f32 %v8880_v8, %v2810_v51  ;;  %v6413_v51 = vld [vmem:[%s10691_s0 + $0x5b0] sm:$0xf0] }
 0x2d1   :  { %v4305_v55 = vadd.f32 %v4304_v47, %v3806_v50  ;;  %2849 = vmatmul.bf16.gmra.mxu0 %v6380_v48  ;;  %v3310_v58 = vadd.f32 %v3309_v52, %v2811_v54  ;;  %v6411_v47 = vld [vmem:[%s10691_s0 + $0x5a0] sm:$0xf]  ;;  %v7567_v48 = vld [vmem:[%s10691_s0 + $0x5ac] sm:$0xf0]  ;;  %v6419_v52 = vld [vmem:[%s10691_s0 + $0x5a8] sm:$0xf] }
 0x2d2   :  { %3348 = vmatmul.bf16.gmra.mxu1 %v6384_v49  ;;  %v7565_v49 = vld [vmem:[%s10691_s0 + $0x5a4] sm:$0xf]  ;;  %v6421_v54 = vld [vmem:[%s10691_s0 + $0x5b8] sm:$0xf0] }
 0x2d3   :  { %v4691_v57 = vmax.f32 %v4305_v55, 0.0  ;;  %3847 = vmatmul.bf16.gmra.mxu2 %v6388_v0  ;;  %v7568_v0 = vld [vmem:[%s10691_s0 + $0x5b4] sm:$0xf0] }
 0x2d4   :  { %4346 = vmatmul.bf16.gmra.mxu3 %v6392_v53  ;;  %v5238_v59 = vld [vmem:[#allocation2 + $0x214] ss:$2 sm:$0xff]  ;;  %v5242_v60 = vld [vmem:[#allocation2 + $0x215] ss:$2 sm:$0xff]  ;;  %v7566_v53 = vld [vmem:[%s10691_s0 + $0x5ac] sm:$0xf] }
 0x2d5   :  { %v5247_v62 = vmax.f32 %v5238_v59, %v5242_v60  ;;  %4887 = vst [vmem:[#allocation2 + $0x228] sm:$0xff] %v4691_v57  ;;  %v6412_v57 = vor.u32 %v7567_v48, %v6411_v47  ;;  %v7575_v47 = vld [vmem:[%s10691_s0 + $0x5ec] sm:$0xf0]  ;;  %v7573_v48 = vld [vmem:[%s10691_s0 + $0x5e4] sm:$0xf] }
 0x2d6   :  { %v3808_v63 = vpop.f32.mrf.mxu2  ;;  %v2812_v5 = vpop.f32.mrf.mxu0 }
 0x2d7   :  { %v4307_v1 = vpop.f32.mrf.mxu3  ;;  %v5249_v2 = vmax.f32 %v5245_v61, %v5247_v62  ;;  %v3809_v4 = vadd.f32 %v3808_v63, %v3310_v58  ;;  %v3311_v6 = vpop.f32.mrf.mxu1  ;;  %v2813_v9 = vadd.f32 %v8880_v8, %v2812_v5  ;;  %v6416_v58 = vor.u32 %v7565_v49, %v6413_v51  ;;  %v6445_v49 = vld [vmem:[%s10691_s0 + $0x5f0] sm:$0xf0]  ;;  %v7576_v51 = vld [vmem:[%s10691_s0 + $0x5f4] sm:$0xf0] }
 0x2d8   :  { %v6420_v62 = vor.u32 %v7568_v0, %v6419_v52  ;;  %v6424_v63 = vor.u32 %v7566_v53, %v6421_v54  ;;  %v7574_v52 = vld [vmem:[%s10691_s0 + $0x5ec] sm:$0xf]  ;;  %v6453_v54 = vld [vmem:[%s10691_s0 + $0x5f8] sm:$0xf0] }
 0x2d9   :  { %5251 = vst [vmem:[%s10692_s3 + $0x7e] sm:$0xff] %v5249_v2  ;;  %v4308_v7 = vadd.f32 %v4307_v1, %v3809_v4  ;;  %v3312_v25 = vadd.f32 %v3311_v6, %v2813_v9 }
 0x2db   :  { %v4692_v18 = vmax.f32 %v4308_v7, 0.0 }
 0x2dc   :  { %v5240_v21 = vld [vmem:[#allocation2 + $0x224] ss:$2 sm:$0x3f]  ;;  %v5244_v22 = vld [vmem:[#allocation2 + $0x225] ss:$2 sm:$0x3f] }
 0x2dd   :  { %v5248_v24 = vmax.f32 %v5240_v21, %v5244_v22  ;;  %4888 = vst [vmem:[#allocation2 + $0x230] sm:$0xff] %v4692_v18  ;;  %v6429_v18 = vld [vmem:[%s10691_s0 + $0x5d0] sm:$0xf0]  ;;  %v7570_v21 = vld [vmem:[%s10691_s0 + $0x5cc] sm:$0xf] }
 0x2de   :  { %v3810_v26 = vpop.f32.mrf.mxu2  ;;  %v2815_v32 = vpop.f32.mrf.mxu0  ;;  %v6437_v22 = vld [vmem:[%s10691_s0 + $0x5d8] sm:$0xf0] }
 0x2df   :  { %v4309_v27 = vpop.f32.mrf.mxu3  ;;  %v5250_v30 = vmax.f32 %v5246_v23, %v5248_v24  ;;  %v3811_v31 = vadd.f32 %v3810_v26, %v3312_v25  ;;  %v3314_v33 = vpop.f32.mrf.mxu1  ;;  %v2816_v36 = vadd.f32 %v8880_v8, %v2815_v32  ;;  %v6428_v26 = vor.u32 %v7571_v15, %v6427_v14 }
 0x2e0   :  { %v6440_v32 = vor.u32 %v7570_v21, %v6437_v22 }
 0x2e1   :  { %5252 = vst [vmem:[%s10692_s3 + $0x86] sm:$0x3f] %v5250_v30  ;;  %v4310_v37 = vadd.f32 %v4309_v27, %v3811_v31  ;;  %2854 = vmatmul.bf16.gmra.mxu0 %v6396_v28  ;;  %v3315_v39 = vadd.f32 %v3314_v33, %v2816_v36  ;;  %v6432_v27 = vor.u32 %v7569_v16, %v6429_v18 }
 0x2e2   :  { %3353 = vmatmul.bf16.gmra.mxu1 %v6400_v29  ;;  %v6436_v31 = vor.u32 %v7572_v20, %v6435_v19 }
 0x2e3   :  { %v4693_v38 = vmax.f32 %v4310_v37, 0.0  ;;  %3852 = vmatmul.bf16.gmra.mxu2 %v6404_v34 }
 0x2e4   :  { %4351 = vmatmul.bf16.gmra.mxu3 %v6408_v35 }
 0x2e5   :  { %4889 = vst [vmem:[#allocation2 + $0x238] sm:$0xff] %v4693_v38 }
 0x2e6   :  { %v3813_v40 = vpop.f32.mrf.mxu2  ;;  %v2817_v43 = vpop.f32.mrf.mxu0 }
 0x2e7   :  { %v4312_v41 = vpop.f32.mrf.mxu3  ;;  %v3814_v42 = vadd.f32 %v3813_v40, %v3315_v39  ;;  %v3316_v44 = vpop.f32.mrf.mxu1  ;;  %v2818_v46 = vadd.f32 %v8880_v8, %v2817_v43 }
 0x2e9   :  { %v4313_v45 = vadd.f32 %v4312_v41, %v3814_v42  ;;  %v3317_v55 = vadd.f32 %v3316_v44, %v2818_v46  ;;  %v6443_v46 = vld [vmem:[%s10691_s0 + $0x5e0] sm:$0xf] }
 0x2eb   :  { %v4694_v50 = vmax.f32 %v4313_v45, 0.0 }
 0x2ec   :  { %v5254_v42 = vld [vmem:[#allocation2 + $0x230] ss:$2 sm:$0xff]  ;;  %v5258_v43 = vld [vmem:[#allocation2 + $0x231] ss:$2 sm:$0xff] }
 0x2ed   :  { %4890 = vst [vmem:[#allocation2 + $0x240] sm:$0xff] %v4694_v50 }
 0x2ee   :  { %v3815_v56 = vpop.f32.mrf.mxu2  ;;  %v2820_v60 = vpop.f32.mrf.mxu0 }
 0x2ef   :  { %v4314_v3 = vpop.f32.mrf.mxu3  ;;  %v3816_v59 = vadd.f32 %v3815_v56, %v3317_v55  ;;  %v3319_v61 = vpop.f32.mrf.mxu1  ;;  %v2821_v1 = vadd.f32 %v8880_v8, %v2820_v60  ;;  %v5269_v55 = vmax.f32 %v5254_v42, %v5258_v43  ;;  %v6448_v60 = vor.u32 %v7573_v48, %v6445_v49 }
 0x2f1   :  { %v4315_v2 = vadd.f32 %v4314_v3, %v3816_v59  ;;  %2859 = vmatmul.bf16.gmra.mxu0 %v6412_v57  ;;  %v3320_v5 = vadd.f32 %v3319_v61, %v2821_v1  ;;  %v6444_v59 = vor.u32 %v7575_v47, %v6443_v46 }
 0x2f2   :  { %3358 = vmatmul.bf16.gmra.mxu1 %v6416_v58 }
 0x2f3   :  { %v4695_v4 = vmax.f32 %v4315_v2, 0.0  ;;  %3857 = vmatmul.bf16.gmra.mxu2 %v6420_v62 }
 0x2f4   :  { %4356 = vmatmul.bf16.gmra.mxu3 %v6424_v63 }
 0x2f5   :  { %4891 = vst [vmem:[#allocation2 + $0x248] sm:$0xff] %v4695_v4  ;;  %v6456_v4 = vor.u32 %v7574_v52, %v6453_v54  ;;  %v7583_v54 = vld [vmem:[%s10691_s0 + $0x62c] sm:$0xf0] }
 0x2f6   :  { %v3818_v6 = vpop.f32.mrf.mxu2  ;;  %v2822_v10 = vpop.f32.mrf.mxu0 }
 0x2f7   :  { %v4317_v7 = vpop.f32.mrf.mxu3  ;;  %v3819_v9 = vadd.f32 %v3818_v6, %v3320_v5  ;;  %v3321_v11 = vpop.f32.mrf.mxu1  ;;  %v2823_v13 = vadd.f32 %v8880_v8, %v2822_v10  ;;  %v9241_v5 = vld [vmem:[%s10690_s2] ss:$0 sm:$0xff] }
 0x2f9   :  { %v4318_v12 = vadd.f32 %v4317_v7, %v3819_v9  ;;  %v3322_v23 = vadd.f32 %v3321_v11, %v2823_v13 }
 0x2fb   :  { %v4696_v17 = vmax.f32 %v4318_v12, 0.0 }
 0x2fc   :  { %v5256_v9 = vld [vmem:[#allocation2 + $0x240] ss:$2 sm:$0x3f]  ;;  %v5260_v10 = vld [vmem:[#allocation2 + $0x241] ss:$2 sm:$0x3f] }
 0x2fd   :  { %4892 = vst [vmem:[#allocation2 + $0x250] sm:$0xff] %v4696_v17  ;;  %v5270_v15 = vmax.f32 %v5256_v9, %v5260_v10 }
 0x2fe   :  { %v3820_v24 = vpop.f32.mrf.mxu2  ;;  %v2825_v29 = vpop.f32.mrf.mxu0 }
 0x2ff   :  { %v4319_v25 = vpop.f32.mrf.mxu3  ;;  %v3821_v28 = vadd.f32 %v3820_v24, %v3322_v23  ;;  %v3324_v30 = vpop.f32.mrf.mxu1  ;;  %v2826_v33 = vadd.f32 %v8880_v8, %v2825_v29  ;;  %v6461_v29 = vld [vmem:[%s10691_s0 + $0x610] sm:$0xf0] }
 0x301   :  { %v4320_v34 = vadd.f32 %v4319_v25, %v3821_v28  ;;  %2864 = vmatmul.bf16.gmra.mxu0 %v6428_v26  ;;  %v3325_v36 = vadd.f32 %v3324_v30, %v2826_v33  ;;  %v6459_v25 = vld [vmem:[%s10691_s0 + $0x600] sm:$0xf]  ;;  %v7579_v26 = vld [vmem:[%s10691_s0 + $0x60c] sm:$0xf0]  ;;  %v6467_v30 = vld [vmem:[%s10691_s0 + $0x608] sm:$0xf] }
 0x302   :  { %3363 = vmatmul.bf16.gmra.mxu1 %v6432_v27  ;;  %v7577_v27 = vld [vmem:[%s10691_s0 + $0x604] sm:$0xf]  ;;  %v6469_v33 = vld [vmem:[%s10691_s0 + $0x618] sm:$0xf0] }
 0x303   :  { %v4697_v35 = vmax.f32 %v4320_v34, 0.0  ;;  %3862 = vmatmul.bf16.gmra.mxu2 %v6436_v31  ;;  %v7580_v31 = vld [vmem:[%s10691_s0 + $0x614] sm:$0xf0] }
 0x304   :  { %4361 = vmatmul.bf16.gmra.mxu3 %v6440_v32  ;;  %v7578_v32 = vld [vmem:[%s10691_s0 + $0x60c] sm:$0xf]  ;;  %v6468_v42 = vor.u32 %v7580_v31, %v6467_v30  ;;  %v6501_v30 = vld [vmem:[%s10691_s0 + $0x658] sm:$0xf0] }
 0x305   :  { %4893 = vst [vmem:[#allocation2 + $0x258] sm:$0xff] %v4697_v35  ;;  %v6472_v43 = vor.u32 %v7578_v32, %v6469_v33 }
 0x306   :  { %v3823_v37 = vpop.f32.mrf.mxu2  ;;  %v2827_v40 = vpop.f32.mrf.mxu0 }
 0x307   :  { %v4322_v38 = vpop.f32.mrf.mxu3  ;;  %v3824_v39 = vadd.f32 %v3823_v37, %v3325_v36  ;;  %v3326_v41 = vpop.f32.mrf.mxu1  ;;  %v2828_v45 = vadd.f32 %v8880_v8, %v2827_v40  ;;  %v6451_v8 = vld [vmem:[%s10691_s0 + $0x5e8] sm:$0xf]  ;;  %v6460_v37 = vor.u32 %v7579_v26, %v6459_v25  ;;  %v6493_v26 = vld [vmem:[%s10691_s0 + $0x650] sm:$0xf0] }
 0x308   :  { %v6452_v2 = vor.u32 %v7576_v51, %v6451_v8 }
 0x309   :  { %v4323_v44 = vadd.f32 %v4322_v38, %v3824_v39  ;;  %v3327_v3 = vadd.f32 %v3326_v41, %v2828_v45  ;;  %v6464_v38 = vor.u32 %v7577_v27, %v6461_v29  ;;  %v6499_v27 = vld [vmem:[%s10691_s0 + $0x648] sm:$0xf]  ;;  %v7586_v29 = vld [vmem:[%s10691_s0 + $0x64c] sm:$0xf] }
 0x30b   :  { %v4698_v50 = vmax.f32 %v4323_v44, 0.0 }
 0x30c   :  { %v5262_v0 = vld [vmem:[#allocation2 + $0x24c] ss:$2 sm:$0xff]  ;;  %v5266_v53 = vld [vmem:[#allocation2 + $0x24d] ss:$2 sm:$0xff] }
 0x30d   :  { %v5271_v56 = vmax.f32 %v5262_v0, %v5266_v53  ;;  %4894 = vst [vmem:[#allocation2 + $0x260] sm:$0xff] %v4698_v50  ;;  %v6475_v53 = vld [vmem:[%s10691_s0 + $0x620] sm:$0xf] }
 0x30e   :  { %v3825_v57 = vpop.f32.mrf.mxu2  ;;  %v2830_v63 = vpop.f32.mrf.mxu0 }
 0x30f   :  { %v4324_v58 = vpop.f32.mrf.mxu3  ;;  %v5273_v61 = vmax.f32 %v5269_v55, %v5271_v56  ;;  %v3826_v62 = vadd.f32 %v3825_v57, %v3327_v3  ;;  %v3329_v1 = vpop.f32.mrf.mxu1  ;;  %v2831_v6 = vadd.f32 %v9241_v5, %v2830_v63  ;;  %v7581_v55 = vld [vmem:[%s10691_s0 + $0x624] sm:$0xf]  ;;  %v6477_v3 = vld [vmem:[%s10691_s0 + $0x630] sm:$0xf0]  ;;  %v6483_v57 = vld [vmem:[%s10691_s0 + $0x628] sm:$0xf] }
 0x311   :  { %5275 = vst [vmem:[%s10692_s3 + $0x8c] sm:$0xff] %v5273_v61  ;;  %v4325_v7 = vadd.f32 %v4324_v58, %v3826_v62  ;;  %2869 = vmatmul.bf16.gmra.mxu0 %v6444_v59  ;;  %v3330_v12 = vadd.f32 %v3329_v1, %v2831_v6  ;;  %v7584_v58 = vld [vmem:[%s10691_s0 + $0x634] sm:$0xf0]  ;;  %v7582_v59 = vld [vmem:[%s10691_s0 + $0x62c] sm:$0xf]  ;;  %v6476_v1 = vor.u32 %v7583_v54, %v6475_v53 }
 0x312   :  { %3368 = vmatmul.bf16.gmra.mxu1 %v6448_v60  ;;  %v6485_v60 = vld [vmem:[%s10691_s0 + $0x638] sm:$0xf0]  ;;  %v6484_v9 = vor.u32 %v7584_v58, %v6483_v57  ;;  %v7591_v57 = vld [vmem:[%s10691_s0 + $0x66c] sm:$0xf0]  ;;  %v7589_v58 = vld [vmem:[%s10691_s0 + $0x664] sm:$0xf] }
 0x313   :  { %v4699_v11 = vmax.f32 %v4325_v7, 0.0  ;;  %3867 = vmatmul.bf16.gmra.mxu2 %v6452_v2  ;;  %v6480_v2 = vor.u32 %v7581_v55, %v6477_v3  ;;  %v6488_v10 = vor.u32 %v7582_v59, %v6485_v60  ;;  %v6507_v3 = vld [vmem:[%s10691_s0 + $0x660] sm:$0xf]  ;;  %v6509_v59 = vld [vmem:[%s10691_s0 + $0x670] sm:$0xf0] }
 0x314   :  { %4366 = vmatmul.bf16.gmra.mxu3 %v6456_v4  ;;  %v5264_v13 = vld [vmem:[#allocation2 + $0x25c] ss:$2 sm:$0x3f]  ;;  %v5268_v14 = vld [vmem:[#allocation2 + $0x25d] ss:$2 sm:$0x3f] }
 0x315   :  { %v5272_v16 = vmax.f32 %v5264_v13, %v5268_v14  ;;  %4895 = vst [vmem:[#allocation2 + $0x268] sm:$0xff] %v4699_v11 }
 0x316   :  { %v3828_v17 = vpop.f32.mrf.mxu2  ;;  %v2832_v21 = vpop.f32.mrf.mxu0 }
 0x317   :  { %v4327_v18 = vpop.f32.mrf.mxu3  ;;  %v5274_v19 = vmax.f32 %v5270_v15, %v5272_v16  ;;  %v3829_v20 = vadd.f32 %v3828_v17, %v3330_v12  ;;  %v3331_v22 = vpop.f32.mrf.mxu1  ;;  %v2833_v24 = vadd.f32 %v9241_v5, %v2832_v21 }
 0x319   :  { %5276 = vst [vmem:[%s10692_s3 + $0x94] sm:$0x3f] %v5274_v19  ;;  %v4328_v23 = vadd.f32 %v4327_v18, %v3829_v20  ;;  %v3332_v34 = vadd.f32 %v3331_v22, %v2833_v24  ;;  %v6491_v22 = vld [vmem:[%s10691_s0 + $0x640] sm:$0xf]  ;;  %v7585_v24 = vld [vmem:[%s10691_s0 + $0x644] sm:$0xf] }
 0x31b   :  { %v4700_v28 = vmax.f32 %v4328_v23, 0.0  ;;  %v7587_v23 = vld [vmem:[%s10691_s0 + $0x64c] sm:$0xf0] }
 0x31d   :  { %4896 = vst [vmem:[#allocation2 + $0x270] sm:$0xff] %v4700_v28  ;;  %v7588_v28 = vld [vmem:[%s10691_s0 + $0x654] sm:$0xf0] }
 0x31e   :  { %v3830_v35 = vpop.f32.mrf.mxu2  ;;  %v2835_v40 = vpop.f32.mrf.mxu0 }
 0x31f   :  { %v4329_v36 = vpop.f32.mrf.mxu3  ;;  %v3831_v39 = vadd.f32 %v3830_v35, %v3332_v34  ;;  %v3334_v41 = vpop.f32.mrf.mxu1  ;;  %v2836_v44 = vadd.f32 %v9241_v5, %v2835_v40  ;;  %v6492_v34 = vor.u32 %v7587_v23, %v6491_v22  ;;  %v6496_v35 = vor.u32 %v7585_v24, %v6493_v26 }
 0x320   :  { %v6504_v40 = vor.u32 %v7586_v29, %v6501_v30 }
 0x321   :  { %v4330_v45 = vadd.f32 %v4329_v36, %v3831_v39  ;;  %2874 = vmatmul.bf16.gmra.mxu0 %v6460_v37  ;;  %v3335_v47 = vadd.f32 %v3334_v41, %v2836_v44  ;;  %v6500_v39 = vor.u32 %v7588_v28, %v6499_v27 }
 0x322   :  { %3373 = vmatmul.bf16.gmra.mxu1 %v6464_v38 }
 0x323   :  { %v4701_v46 = vmax.f32 %v4330_v45, 0.0  ;;  %3872 = vmatmul.bf16.gmra.mxu2 %v6468_v42 }
 0x324   :  { %4371 = vmatmul.bf16.gmra.mxu3 %v6472_v43  ;;  %v5278_v43 = vld [vmem:[#allocation2 + $0x268] ss:$2 sm:$0xff]  ;;  %v5282_v44 = vld [vmem:[#allocation2 + $0x269] ss:$2 sm:$0xff] }
 0x325   :  { %4897 = vst [vmem:[#allocation2 + $0x278] sm:$0xff] %v4701_v46 }
 0x326   :  { %v3833_v48 = vpop.f32.mrf.mxu2  ;;  %v2837_v50 = vpop.f32.mrf.mxu0 }
 0x327   :  { %v4332_v49 = vpop.f32.mrf.mxu3  ;;  %v3834_v8 = vadd.f32 %v3833_v48, %v3335_v47  ;;  %v3336_v51 = vpop.f32.mrf.mxu1  ;;  %v2838_v0 = vadd.f32 %v9241_v5, %v2837_v50 }
 0x329   :  { %v4333_v52 = vadd.f32 %v4332_v49, %v3834_v8  ;;  %v3337_v61 = vadd.f32 %v3336_v51, %v2838_v0  ;;  %v5293_v49 = vmax.f32 %v5278_v43, %v5282_v44 }
 0x32b   :  { %v4702_v56 = vmax.f32 %v4333_v52, 0.0 }
 0x32d   :  { %4898 = vst [vmem:[#allocation2 + $0x280] sm:$0xff] %v4702_v56 }
 0x32e   :  { %v3835_v62 = vpop.f32.mrf.mxu2  ;;  %v2840_v6 = vpop.f32.mrf.mxu0 }
 0x32f   :  { %v4334_v63 = vpop.f32.mrf.mxu3  ;;  %v3836_v4 = vadd.f32 %v3835_v62, %v3337_v61  ;;  %v3339_v7 = vpop.f32.mrf.mxu1  ;;  %v2841_v11 = vadd.f32 %v9241_v5, %v2840_v6  ;;  %v6515_v62 = vld [vmem:[%s10691_s0 + $0x668] sm:$0xf] }
 0x331   :  { %v4335_v12 = vadd.f32 %v4334_v63, %v3836_v4  ;;  %2879 = vmatmul.bf16.gmra.mxu0 %v6476_v1  ;;  %v3340_v14 = vadd.f32 %v3339_v7, %v2841_v11  ;;  %v7592_v63 = vld [vmem:[%s10691_s0 + $0x674] sm:$0xf0]  ;;  %v6517_v4 = vld [vmem:[%s10691_s0 + $0x678] sm:$0xf0] }
 0x332   :  { %3378 = vmatmul.bf16.gmra.mxu1 %v6480_v2  ;;  %v7590_v2 = vld [vmem:[%s10691_s0 + $0x66c] sm:$0xf] }
 0x333   :  { %v4703_v13 = vmax.f32 %v4335_v12, 0.0  ;;  %3877 = vmatmul.bf16.gmra.mxu2 %v6484_v9 }
 0x334   :  { %4376 = vmatmul.bf16.gmra.mxu3 %v6488_v10  ;;  %v5280_v60 = vld [vmem:[#allocation2 + $0x278] ss:$2 sm:$0x3f]  ;;  %v5284_v61 = vld [vmem:[#allocation2 + $0x279] ss:$2 sm:$0x3f] }
 0x335   :  { %4899 = vst [vmem:[#allocation2 + $0x288] sm:$0xff] %v4703_v13  ;;  %v5294_v9 = vmax.f32 %v5280_v60, %v5284_v61  ;;  %v6539_v60 = vld [vmem:[%s10691_s0 + $0x6a0] sm:$0xf]  ;;  %v7599_v61 = vld [vmem:[%s10691_s0 + $0x6ac] sm:$0xf0] }
 0x336   :  { %v3838_v15 = vpop.f32.mrf.mxu2  ;;  %v2842_v18 = vpop.f32.mrf.mxu0 }
 0x337   :  { %v4337_v16 = vpop.f32.mrf.mxu3  ;;  %v3839_v17 = vadd.f32 %v3838_v15, %v3340_v14  ;;  %v3341_v19 = vpop.f32.mrf.mxu1  ;;  %v2843_v21 = vadd.f32 %v9241_v5, %v2842_v18  ;;  %v6508_v14 = vor.u32 %v7591_v57, %v6507_v3  ;;  %v6512_v15 = vor.u32 %v7589_v58, %v6509_v59 }
 0x339   :  { %v4338_v20 = vadd.f32 %v4337_v16, %v3839_v17  ;;  %v3342_v31 = vadd.f32 %v3341_v19, %v2843_v21  ;;  %v6520_v21 = vor.u32 %v7590_v2, %v6517_v4  ;;  %v6547_v2 = vld [vmem:[%s10691_s0 + $0x6a8] sm:$0xf]  ;;  %v7600_v4 = vld [vmem:[%s10691_s0 + $0x6b4] sm:$0xf0] }
 0x33b   :  { %v4704_v25 = vmax.f32 %v4338_v20, 0.0  ;;  %v6516_v20 = vor.u32 %v7592_v63, %v6515_v62  ;;  %v7597_v62 = vld [vmem:[%s10691_s0 + $0x6a4] sm:$0xf] }
 0x33d   :  { %4900 = vst [vmem:[#allocation2 + $0x290] sm:$0xff] %v4704_v25 }
 0x33e   :  { %v3840_v32 = vpop.f32.mrf.mxu2  ;;  %v2845_v37 = vpop.f32.mrf.mxu0 }
 0x33f   :  { %v4339_v33 = vpop.f32.mrf.mxu3  ;;  %v3841_v36 = vadd.f32 %v3840_v32, %v3342_v31  ;;  %v3344_v38 = vpop.f32.mrf.mxu1  ;;  %v2846_v41 = vadd.f32 %v9241_v5, %v2845_v37  ;;  %v6525_v37 = vld [vmem:[%s10691_s0 + $0x690] sm:$0xf0] }
 0x341   :  { %v4340_v42 = vadd.f32 %v4339_v33, %v3841_v36  ;;  %2884 = vmatmul.bf16.gmra.mxu0 %v6492_v34  ;;  %v3345_v46 = vadd.f32 %v3344_v38, %v2846_v41  ;;  %v6523_v33 = vld [vmem:[%s10691_s0 + $0x680] sm:$0xf]  ;;  %v7595_v34 = vld [vmem:[%s10691_s0 + $0x68c] sm:$0xf0]  ;;  %v6531_v38 = vld [vmem:[%s10691_s0 + $0x688] sm:$0xf] }
 0x342   :  { %3383 = vmatmul.bf16.gmra.mxu1 %v6496_v35  ;;  %v7593_v35 = vld [vmem:[%s10691_s0 + $0x684] sm:$0xf]  ;;  %v6533_v41 = vld [vmem:[%s10691_s0 + $0x698] sm:$0xf0] }
 0x343   :  { %v4705_v45 = vmax.f32 %v4340_v42, 0.0  ;;  %3882 = vmatmul.bf16.gmra.mxu2 %v6500_v39  ;;  %v7596_v39 = vld [vmem:[%s10691_s0 + $0x694] sm:$0xf0] }
 0x344   :  { %4381 = vmatmul.bf16.gmra.mxu3 %v6504_v40  ;;  %v5286_v47 = vld [vmem:[#allocation2 + $0x284] ss:$2 sm:$0xff]  ;;  %v5290_v48 = vld [vmem:[#allocation2 + $0x285] ss:$2 sm:$0xff] }
 0x345   :  { %v5295_v8 = vmax.f32 %v5286_v47, %v5290_v48  ;;  %4901 = vst [vmem:[#allocation2 + $0x298] sm:$0xff] %v4705_v45  ;;  %v7594_v40 = vld [vmem:[%s10691_s0 + $0x68c] sm:$0xf]  ;;  %v6524_v45 = vor.u32 %v7595_v34, %v6523_v33  ;;  %v7603_v33 = vld [vmem:[%s10691_s0 + $0x6cc] sm:$0xf0] }
 0x346   :  { %v3843_v50 = vpop.f32.mrf.mxu2  ;;  %v2847_v53 = vpop.f32.mrf.mxu0  ;;  %v7601_v34 = vld [vmem:[%s10691_s0 + $0x6c4] sm:$0xf] }
 0x347   :  { %v4342_v51 = vpop.f32.mrf.mxu3  ;;  %v5297_v52 = vmax.f32 %v5293_v49, %v5295_v8  ;;  %v3844_v0 = vadd.f32 %v3843_v50, %v3345_v46  ;;  %v3346_v54 = vpop.f32.mrf.mxu1  ;;  %v2848_v56 = vadd.f32 %v9241_v5, %v2847_v53  ;;  %v6528_v46 = vor.u32 %v7593_v35, %v6525_v37  ;;  %v6557_v35 = vld [vmem:[%s10691_s0 + $0x6d0] sm:$0xf0] }
 0x348   :  { %v6532_v8 = vor.u32 %v7596_v39, %v6531_v38  ;;  %v6536_v50 = vor.u32 %v7594_v40, %v6533_v41  ;;  %v7604_v38 = vld [vmem:[%s10691_s0 + $0x6d4] sm:$0xf0]  ;;  %v7602_v39 = vld [vmem:[%s10691_s0 + $0x6cc] sm:$0xf] }
 0x349   :  { %5299 = vst [vmem:[%s10692_s3 + $0x9a] sm:$0xff] %v5297_v52  ;;  %v4343_v55 = vadd.f32 %v4342_v51, %v3844_v0  ;;  %v3347_v11 = vadd.f32 %v3346_v54, %v2848_v56 }
 0x34b   :  { %v4706_v1 = vmax.f32 %v4343_v55, 0.0 }
 0x34c   :  { %v5288_v6 = vld [vmem:[#allocation2 + $0x294] ss:$2 sm:$0x3f]  ;;  %v5292_v7 = vld [vmem:[#allocation2 + $0x295] ss:$2 sm:$0x3f] }
 0x34d   :  { %v5296_v10 = vmax.f32 %v5288_v6, %v5292_v7  ;;  %4902 = vst [vmem:[#allocation2 + $0x2a0] sm:$0xff] %v4706_v1  ;;  %v6541_v1 = vld [vmem:[%s10691_s0 + $0x6b0] sm:$0xf0]  ;;  %v7598_v6 = vld [vmem:[%s10691_s0 + $0x6ac] sm:$0xf] }
 0x34e   :  { %v3845_v12 = vpop.f32.mrf.mxu2  ;;  %v2850_v18 = vpop.f32.mrf.mxu0  ;;  %v6549_v7 = vld [vmem:[%s10691_s0 + $0x6b8] sm:$0xf0] }
 0x34f   :  { %v4344_v13 = vpop.f32.mrf.mxu3  ;;  %v5298_v16 = vmax.f32 %v5294_v9, %v5296_v10  ;;  %v3846_v17 = vadd.f32 %v3845_v12, %v3347_v11  ;;  %v3349_v19 = vpop.f32.mrf.mxu1  ;;  %v2851_v22 = vadd.f32 %v9241_v5, %v2850_v18  ;;  %v6540_v12 = vor.u32 %v7599_v61, %v6539_v60 }
 0x350   :  { %v6552_v18 = vor.u32 %v7598_v6, %v6549_v7 }
 0x351   :  { %5300 = vst [vmem:[%s10692_s3 + $0xa2] sm:$0x3f] %v5298_v16  ;;  %v4345_v23 = vadd.f32 %v4344_v13, %v3846_v17  ;;  %2889 = vmatmul.bf16.gmra.mxu0 %v6508_v14  ;;  %v3350_v25 = vadd.f32 %v3349_v19, %v2851_v22  ;;  %v6544_v13 = vor.u32 %v7597_v62, %v6541_v1 }
 0x352   :  { %3388 = vmatmul.bf16.gmra.mxu1 %v6512_v15  ;;  %v6548_v17 = vor.u32 %v7600_v4, %v6547_v2 }
 0x353   :  { %v4707_v24 = vmax.f32 %v4345_v23, 0.0  ;;  %3887 = vmatmul.bf16.gmra.mxu2 %v6516_v20 }
 0x354   :  { %4386 = vmatmul.bf16.gmra.mxu3 %v6520_v21 }
 0x355   :  { %4903 = vst [vmem:[#allocation2 + $0x2a8] sm:$0xff] %v4707_v24 }
 0x356   :  { %v3848_v26 = vpop.f32.mrf.mxu2  ;;  %v2852_v29 = vpop.f32.mrf.mxu0 }
 0x357   :  { %v4347_v27 = vpop.f32.mrf.mxu3  ;;  %v3849_v28 = vadd.f32 %v3848_v26, %v3350_v25  ;;  %v3351_v30 = vpop.f32.mrf.mxu1  ;;  %v2853_v32 = vadd.f32 %v9241_v5, %v2852_v29 }
 0x359   :  { %v4348_v31 = vadd.f32 %v4347_v27, %v3849_v28  ;;  %v3352_v42 = vadd.f32 %v3351_v30, %v2853_v32  ;;  %v6555_v32 = vld [vmem:[%s10691_s0 + $0x6c0] sm:$0xf] }
 0x35b   :  { %v4708_v36 = vmax.f32 %v4348_v31, 0.0 }
 0x35c   :  { %v5302_v28 = vld [vmem:[#allocation2 + $0x2a0] ss:$2 sm:$0xff]  ;;  %v5306_v29 = vld [vmem:[#allocation2 + $0x2a1] ss:$2 sm:$0xff] }
 0x35d   :  { %4904 = vst [vmem:[#allocation2 + $0x2b0] sm:$0xff] %v4708_v36  ;;  %v6563_v36 = vld [vmem:[%s10691_s0 + $0x6c8] sm:$0xf] }
 0x35e   :  { %v3850_v43 = vpop.f32.mrf.mxu2  ;;  %v2855_v48 = vpop.f32.mrf.mxu0 }
 0x35f   :  { %v4349_v44 = vpop.f32.mrf.mxu3  ;;  %v3851_v47 = vadd.f32 %v3850_v43, %v3352_v42  ;;  %v3354_v49 = vpop.f32.mrf.mxu1  ;;  %v2856_v51 = vadd.f32 %v9241_v5, %v2855_v48  ;;  %v6565_v42 = vld [vmem:[%s10691_s0 + $0x6d8] sm:$0xf0]  ;;  %v5317_v43 = vmax.f32 %v5302_v28, %v5306_v29  ;;  %v6556_v48 = vor.u32 %v7603_v33, %v6555_v32 }
 0x361   :  { %v4350_v52 = vadd.f32 %v4349_v44, %v3851_v47  ;;  %2894 = vmatmul.bf16.gmra.mxu0 %v6524_v45  ;;  %v3355_v53 = vadd.f32 %v3354_v49, %v2856_v51  ;;  %v6560_v49 = vor.u32 %v7601_v34, %v6557_v35 }
 0x362   :  { %3393 = vmatmul.bf16.gmra.mxu1 %v6528_v46 }
 0x363   :  { %v4709_v0 = vmax.f32 %v4350_v52, 0.0  ;;  %3892 = vmatmul.bf16.gmra.mxu2 %v6532_v8 }
 0x364   :  { %4391 = vmatmul.bf16.gmra.mxu3 %v6536_v50 }
 0x365   :  { %4905 = vst [vmem:[#allocation2 + $0x2b8] sm:$0xff] %v4709_v0  ;;  %v6564_v0 = vor.u32 %v7604_v38, %v6563_v36 }
 0x366   :  { %v3853_v54 = vpop.f32.mrf.mxu2  ;;  %v2857_v3 = vpop.f32.mrf.mxu0 }
 0x367   :  { %v4352_v55 = vpop.f32.mrf.mxu3  ;;  %v3854_v56 = vadd.f32 %v3853_v54, %v3355_v53  ;;  %v3356_v57 = vpop.f32.mrf.mxu1  ;;  %v2858_v59 = vadd.f32 %v9241_v5, %v2857_v3  ;;  %v6568_v53 = vor.u32 %v7602_v39, %v6565_v42  ;;  %v7611_v42 = vld [vmem:[%s10691_s0 + $0x70c] sm:$0xf0] }
 0x369   :  { %v4353_v58 = vadd.f32 %v4352_v55, %v3854_v56  ;;  %v3357_v9 = vadd.f32 %v3356_v57, %v2858_v59 }
 0x36b   :  { %v4710_v63 = vmax.f32 %v4353_v58, 0.0 }
 0x36c   :  { %v5304_v56 = vld [vmem:[#allocation2 + $0x2b0] ss:$2 sm:$0x3f]  ;;  %v5308_v3 = vld [vmem:[#allocation2 + $0x2b1] ss:$2 sm:$0x3f] }
 0x36d   :  { %4906 = vst [vmem:[#allocation2 + $0x2c0] sm:$0xff] %v4710_v63  ;;  %v5318_v61 = vmax.f32 %v5304_v56, %v5308_v3 }
 0x36e   :  { %v3855_v10 = vpop.f32.mrf.mxu2  ;;  %v2860_v15 = vpop.f32.mrf.mxu0 }
 0x36f   :  { %v4354_v11 = vpop.f32.mrf.mxu3  ;;  %v3856_v14 = vadd.f32 %v3855_v10, %v3357_v9  ;;  %v3359_v16 = vpop.f32.mrf.mxu1  ;;  %v2861_v19 = vadd.f32 %v9241_v5, %v2860_v15  ;;  %v6573_v15 = vld [vmem:[%s10691_s0 + $0x6f0] sm:$0xf0] }
 0x371   :  { %v4355_v20 = vadd.f32 %v4354_v11, %v3856_v14  ;;  %2899 = vmatmul.bf16.gmra.mxu0 %v6540_v12  ;;  %v3360_v22 = vadd.f32 %v3359_v16, %v2861_v19  ;;  %v6571_v11 = vld [vmem:[%s10691_s0 + $0x6e0] sm:$0xf]  ;;  %v7607_v12 = vld [vmem:[%s10691_s0 + $0x6ec] sm:$0xf0]  ;;  %v6579_v16 = vld [vmem:[%s10691_s0 + $0x6e8] sm:$0xf] }
 0x372   :  { %3398 = vmatmul.bf16.gmra.mxu1 %v6544_v13  ;;  %v7605_v13 = vld [vmem:[%s10691_s0 + $0x6e4] sm:$0xf]  ;;  %v6581_v19 = vld [vmem:[%s10691_s0 + $0x6f8] sm:$0xf0] }
 0x373   :  { %v4711_v21 = vmax.f32 %v4355_v20, 0.0  ;;  %3897 = vmatmul.bf16.gmra.mxu2 %v6548_v17  ;;  %v7608_v17 = vld [vmem:[%s10691_s0 + $0x6f4] sm:$0xf0] }
 0x374   :  { %4396 = vmatmul.bf16.gmra.mxu3 %v6552_v18  ;;  %v7606_v18 = vld [vmem:[%s10691_s0 + $0x6ec] sm:$0xf]  ;;  %v6580_v28 = vor.u32 %v7608_v17, %v6579_v16  ;;  %v6613_v16 = vld [vmem:[%s10691_s0 + $0x738] sm:$0xf0] }
 0x375   :  { %4907 = vst [vmem:[#allocation2 + $0x2c8] sm:$0xff] %v4711_v21  ;;  %v6584_v29 = vor.u32 %v7606_v18, %v6581_v19 }
 0x376   :  { %v3858_v23 = vpop.f32.mrf.mxu2  ;;  %v2862_v26 = vpop.f32.mrf.mxu0 }
 0x377   :  { %v4357_v24 = vpop.f32.mrf.mxu3  ;;  %v3859_v25 = vadd.f32 %v3858_v23, %v3360_v22  ;;  %v3361_v27 = vpop.f32.mrf.mxu1  ;;  %v2863_v31 = vadd.f32 %v9241_v5, %v2862_v26  ;;  %v6572_v23 = vor.u32 %v7607_v12, %v6571_v11  ;;  %v6605_v12 = vld [vmem:[%s10691_s0 + $0x730] sm:$0xf0] }
 0x379   :  { %v4358_v30 = vadd.f32 %v4357_v24, %v3859_v25  ;;  %v3362_v45 = vadd.f32 %v3361_v27, %v2863_v31  ;;  %v6576_v24 = vor.u32 %v7605_v13, %v6573_v15  ;;  %v6611_v13 = vld [vmem:[%s10691_s0 + $0x728] sm:$0xf]  ;;  %v7614_v15 = vld [vmem:[%s10691_s0 + $0x72c] sm:$0xf] }
 0x37b   :  { %v4712_v37 = vmax.f32 %v4358_v30, 0.0 }
 0x37c   :  { %v5310_v40 = vld [vmem:[#allocation2 + $0x2bc] ss:$2 sm:$0xff]  ;;  %v5314_v41 = vld [vmem:[#allocation2 + $0x2bd] ss:$2 sm:$0xff] }
 0x37d   :  { %v5319_v44 = vmax.f32 %v5310_v40, %v5314_v41  ;;  %4908 = vst [vmem:[#allocation2 + $0x2d0] sm:$0xff] %v4712_v37  ;;  %v6587_v41 = vld [vmem:[%s10691_s0 + $0x700] sm:$0xf] }
 0x37e   :  { %v3860_v46 = vpop.f32.mrf.mxu2  ;;  %v2865_v51 = vpop.f32.mrf.mxu0 }
 0x37f   :  { %v4359_v47 = vpop.f32.mrf.mxu3  ;;  %v5321_v8 = vmax.f32 %v5317_v43, %v5319_v44  ;;  %v3861_v50 = vadd.f32 %v3860_v46, %v3362_v45  ;;  %v3364_v52 = vpop.f32.mrf.mxu1  ;;  %v2866_v54 = vadd.f32 %v9241_v5, %v2865_v51  ;;  %v7609_v43 = vld [vmem:[%s10691_s0 + $0x704] sm:$0xf]  ;;  %v6589_v45 = vld [vmem:[%s10691_s0 + $0x710] sm:$0xf0]  ;;  %v6595_v46 = vld [vmem:[%s10691_s0 + $0x708] sm:$0xf] }
 0x381   :  { %5323 = vst [vmem:[%s10692_s3 + $0xa8] sm:$0xff] %v5321_v8  ;;  %v4360_v55 = vadd.f32 %v4359_v47, %v3861_v50  ;;  %2904 = vmatmul.bf16.gmra.mxu0 %v6556_v48  ;;  %v3365_v58 = vadd.f32 %v3364_v52, %v2866_v54  ;;  %v7612_v47 = vld [vmem:[%s10691_s0 + $0x714] sm:$0xf0]  ;;  %v7610_v48 = vld [vmem:[%s10691_s0 + $0x70c] sm:$0xf]  ;;  %v6588_v52 = vor.u32 %v7611_v42, %v6587_v41 }
 0x382   :  { %3403 = vmatmul.bf16.gmra.mxu1 %v6560_v49  ;;  %v6597_v49 = vld [vmem:[%s10691_s0 + $0x718] sm:$0xf0]  ;;  %v6596_v56 = vor.u32 %v7612_v47, %v6595_v46  ;;  %v7619_v46 = vld [vmem:[%s10691_s0 + $0x74c] sm:$0xf0]  ;;  %v7617_v47 = vld [vmem:[%s10691_s0 + $0x744] sm:$0xf] }
 0x383   :  { %v4713_v57 = vmax.f32 %v4360_v55, 0.0  ;;  %3902 = vmatmul.bf16.gmra.mxu2 %v6564_v0  ;;  %v6592_v0 = vor.u32 %v7609_v43, %v6589_v45  ;;  %v6600_v3 = vor.u32 %v7610_v48, %v6597_v49  ;;  %v6619_v45 = vld [vmem:[%s10691_s0 + $0x740] sm:$0xf]  ;;  %v6621_v48 = vld [vmem:[%s10691_s0 + $0x750] sm:$0xf0] }
 0x384   :  { %4401 = vmatmul.bf16.gmra.mxu3 %v6568_v53  ;;  %v5312_v59 = vld [vmem:[#allocation2 + $0x2cc] ss:$2 sm:$0x3f]  ;;  %v5316_v60 = vld [vmem:[#allocation2 + $0x2cd] ss:$2 sm:$0x3f] }
 0x385   :  { %v5320_v62 = vmax.f32 %v5312_v59, %v5316_v60  ;;  %4909 = vst [vmem:[#allocation2 + $0x2d8] sm:$0xff] %v4713_v57 }
 0x386   :  { %v3863_v63 = vpop.f32.mrf.mxu2  ;;  %v2867_v6 = vpop.f32.mrf.mxu0 }
 0x387   :  { %v4362_v1 = vpop.f32.mrf.mxu3  ;;  %v5322_v2 = vmax.f32 %v5318_v61, %v5320_v62  ;;  %v3864_v4 = vadd.f32 %v3863_v63, %v3365_v58  ;;  %v3366_v7 = vpop.f32.mrf.mxu1  ;;  %v2868_v10 = vadd.f32 %v9241_v5, %v2867_v6 }
 0x389   :  { %5324 = vst [vmem:[%s10692_s3 + $0xb0] sm:$0x3f] %v5322_v2  ;;  %v4363_v9 = vadd.f32 %v4362_v1, %v3864_v4  ;;  %v3367_v20 = vadd.f32 %v3366_v7, %v2868_v10  ;;  %v6603_v7 = vld [vmem:[%s10691_s0 + $0x720] sm:$0xf]  ;;  %v7613_v10 = vld [vmem:[%s10691_s0 + $0x724] sm:$0xf] }
 0x38b   :  { %v4714_v14 = vmax.f32 %v4363_v9, 0.0  ;;  %v7615_v9 = vld [vmem:[%s10691_s0 + $0x72c] sm:$0xf0] }
 0x38d   :  { %4910 = vst [vmem:[#allocation2 + $0x2e0] sm:$0xff] %v4714_v14  ;;  %v7616_v14 = vld [vmem:[%s10691_s0 + $0x734] sm:$0xf0] }
 0x38e   :  { %v3865_v21 = vpop.f32.mrf.mxu2  ;;  %v2870_v26 = vpop.f32.mrf.mxu0 }
 0x38f   :  { %v4364_v22 = vpop.f32.mrf.mxu3  ;;  %v3866_v25 = vadd.f32 %v3865_v21, %v3367_v20  ;;  %v3369_v27 = vpop.f32.mrf.mxu1  ;;  %v2871_v30 = vadd.f32 %v9241_v5, %v2870_v26  ;;  %v6604_v20 = vor.u32 %v7615_v9, %v6603_v7  ;;  %v6608_v21 = vor.u32 %v7613_v10, %v6605_v12 }
 0x390   :  { %v6616_v26 = vor.u32 %v7614_v15, %v6613_v16 }
 0x391   :  { %v4365_v31 = vadd.f32 %v4364_v22, %v3866_v25  ;;  %2909 = vmatmul.bf16.gmra.mxu0 %v6572_v23  ;;  %v3370_v33 = vadd.f32 %v3369_v27, %v2871_v30  ;;  %v6612_v25 = vor.u32 %v7616_v14, %v6611_v13 }
 0x392   :  { %3408 = vmatmul.bf16.gmra.mxu1 %v6576_v24 }
 0x393   :  { %v4715_v32 = vmax.f32 %v4365_v31, 0.0  ;;  %3907 = vmatmul.bf16.gmra.mxu2 %v6580_v28 }
 0x394   :  { %4406 = vmatmul.bf16.gmra.mxu3 %v6584_v29  ;;  %v5326_v29 = vld [vmem:[#allocation2 + $0x2d8] ss:$2 sm:$0xff]  ;;  %v5330_v30 = vld [vmem:[#allocation2 + $0x2d9] ss:$2 sm:$0xff] }
 0x395   :  { %4911 = vst [vmem:[#allocation2 + $0x2e8] sm:$0xff] %v4715_v32 }
 0x396   :  { %v3868_v34 = vpop.f32.mrf.mxu2  ;;  %v2872_v37 = vpop.f32.mrf.mxu0 }
 0x397   :  { %v4367_v35 = vpop.f32.mrf.mxu3  ;;  %v3869_v36 = vadd.f32 %v3868_v34, %v3370_v33  ;;  %v3371_v38 = vpop.f32.mrf.mxu1  ;;  %v2873_v40 = vadd.f32 %v9241_v5, %v2872_v37 }
 0x399   :  { %v4368_v39 = vadd.f32 %v4367_v35, %v3869_v36  ;;  %v3372_v8 = vadd.f32 %v3371_v38, %v2873_v40  ;;  %v5341_v35 = vmax.f32 %v5326_v29, %v5330_v30 }
 0x39b   :  { %v4716_v44 = vmax.f32 %v4368_v39, 0.0 }
 0x39d   :  { %4912 = vst [vmem:[#allocation2 + $0x2f0] sm:$0xff] %v4716_v44 }
 0x39e   :  { %v3870_v50 = vpop.f32.mrf.mxu2  ;;  %v2875_v54 = vpop.f32.mrf.mxu0 }
 0x39f   :  { %v4369_v51 = vpop.f32.mrf.mxu3  ;;  %v3871_v53 = vadd.f32 %v3870_v50, %v3372_v8  ;;  %v3374_v55 = vpop.f32.mrf.mxu1  ;;  %v2876_v57 = vadd.f32 %v9241_v5, %v2875_v54  ;;  %v6627_v50 = vld [vmem:[%s10691_s0 + $0x748] sm:$0xf] }
 0x3a1   :  { %v4370_v58 = vadd.f32 %v4369_v51, %v3871_v53  ;;  %2914 = vmatmul.bf16.gmra.mxu0 %v6588_v52  ;;  %v3375_v60 = vadd.f32 %v3374_v55, %v2876_v57  ;;  %v7620_v51 = vld [vmem:[%s10691_s0 + $0x754] sm:$0xf0]  ;;  %v6629_v53 = vld [vmem:[%s10691_s0 + $0x758] sm:$0xf0] }
 0x3a2   :  { %3413 = vmatmul.bf16.gmra.mxu1 %v6592_v0  ;;  %v7618_v0 = vld [vmem:[%s10691_s0 + $0x74c] sm:$0xf] }
 0x3a3   :  { %v4717_v59 = vmax.f32 %v4370_v58, 0.0  ;;  %3912 = vmatmul.bf16.gmra.mxu2 %v6596_v56 }
 0x3a4   :  { %4411 = vmatmul.bf16.gmra.mxu3 %v6600_v3  ;;  %v5328_v49 = vld [vmem:[#allocation2 + $0x2e8] ss:$2 sm:$0x3f]  ;;  %v5332_v8 = vld [vmem:[#allocation2 + $0x2e9] ss:$2 sm:$0x3f] }
 0x3a5   :  { %4913 = vst [vmem:[#allocation2 + $0x2f8] sm:$0xff] %v4717_v59  ;;  %v5342_v56 = vmax.f32 %v5328_v49, %v5332_v8  ;;  %v6651_v49 = vld [vmem:[%s10691_s0 + $0x780] sm:$0xf]  ;;  %v7627_v8 = vld [vmem:[%s10691_s0 + $0x78c] sm:$0xf0] }
 0x3a6   :  { %v3873_v61 = vpop.f32.mrf.mxu2  ;;  %v2877_v1 = vpop.f32.mrf.mxu0 }
 0x3a7   :  { %v4372_v62 = vpop.f32.mrf.mxu3  ;;  %v3874_v63 = vadd.f32 %v3873_v61, %v3375_v60  ;;  %v3376_v2 = vpop.f32.mrf.mxu1  ;;  %v2878_v6 = vadd.f32 %v9241_v5, %v2877_v1  ;;  %v6620_v60 = vor.u32 %v7619_v46, %v6619_v45  ;;  %v6624_v61 = vor.u32 %v7617_v47, %v6621_v48 }
 0x3a9   :  { %v4373_v4 = vadd.f32 %v4372_v62, %v3874_v63  ;;  %v3377_v17 = vadd.f32 %v3376_v2, %v2878_v6  ;;  %v6632_v6 = vor.u32 %v7618_v0, %v6629_v53  ;;  %v7628_v0 = vld [vmem:[%s10691_s0 + $0x794] sm:$0xf0]  ;;  %v7626_v53 = vld [vmem:[%s10691_s0 + $0x78c] sm:$0xf] }
 0x3ab   :  { %v4718_v11 = vmax.f32 %v4373_v4, 0.0  ;;  %v6628_v4 = vor.u32 %v7620_v51, %v6627_v50  ;;  %v7625_v50 = vld [vmem:[%s10691_s0 + $0x784] sm:$0xf] }
 0x3ad   :  { %4914 = vst [vmem:[#allocation2 + $0x300] sm:$0xff] %v4718_v11 }
 0x3ae   :  { %v3875_v18 = vpop.f32.mrf.mxu2  ;;  %v2880_v23 = vpop.f32.mrf.mxu0 }
 0x3af   :  { %v4374_v19 = vpop.f32.mrf.mxu3  ;;  %v3876_v22 = vadd.f32 %v3875_v18, %v3377_v17  ;;  %v3379_v24 = vpop.f32.mrf.mxu1  ;;  %v2881_v27 = vadd.f32 %v9241_v5, %v2880_v23  ;;  %v6637_v23 = vld [vmem:[%s10691_s0 + $0x770] sm:$0xf0] }
 0x3b1   :  { %v4375_v28 = vadd.f32 %v4374_v19, %v3876_v22  ;;  %2919 = vmatmul.bf16.gmra.mxu0 %v6604_v20  ;;  %v3380_v32 = vadd.f32 %v3379_v24, %v2881_v27  ;;  %v6635_v19 = vld [vmem:[%s10691_s0 + $0x760] sm:$0xf]  ;;  %v7623_v20 = vld [vmem:[%s10691_s0 + $0x76c] sm:$0xf0]  ;;  %v6643_v24 = vld [vmem:[%s10691_s0 + $0x768] sm:$0xf] }
 0x3b2   :  { %3418 = vmatmul.bf16.gmra.mxu1 %v6608_v21  ;;  %v7621_v21 = vld [vmem:[%s10691_s0 + $0x764] sm:$0xf]  ;;  %v6645_v27 = vld [vmem:[%s10691_s0 + $0x778] sm:$0xf0] }
 0x3b3   :  { %v4719_v31 = vmax.f32 %v4375_v28, 0.0  ;;  %3917 = vmatmul.bf16.gmra.mxu2 %v6612_v25  ;;  %v7624_v25 = vld [vmem:[%s10691_s0 + $0x774] sm:$0xf0] }
 0x3b4   :  { %4416 = vmatmul.bf16.gmra.mxu3 %v6616_v26  ;;  %v5334_v33 = vld [vmem:[#allocation2 + $0x2f4] ss:$2 sm:$0xff]  ;;  %v5338_v34 = vld [vmem:[#allocation2 + $0x2f5] ss:$2 sm:$0xff]  ;;  %v7622_v26 = vld [vmem:[%s10691_s0 + $0x76c] sm:$0xf] }
 0x3b5   :  { %v5343_v36 = vmax.f32 %v5334_v33, %v5338_v34  ;;  %4915 = vst [vmem:[#allocation2 + $0x308] sm:$0xff] %v4719_v31  ;;  %v6636_v31 = vor.u32 %v7623_v20, %v6635_v19  ;;  %v7631_v19 = vld [vmem:[%s10691_s0 + $0x7ac] sm:$0xf0]  ;;  %v7629_v20 = vld [vmem:[%s10691_s0 + $0x7a4] sm:$0xf] }
 0x3b6   :  { %v3878_v37 = vpop.f32.mrf.mxu2  ;;  %v2882_v41 = vpop.f32.mrf.mxu0 }
 0x3b7   :  { %v4377_v38 = vpop.f32.mrf.mxu3  ;;  %v5345_v39 = vmax.f32 %v5341_v35, %v5343_v36  ;;  %v3879_v40 = vadd.f32 %v3878_v37, %v3380_v32  ;;  %v3381_v42 = vpop.f32.mrf.mxu1  ;;  %v2883_v44 = vadd.f32 %v9241_v5, %v2882_v41  ;;  %v6640_v32 = vor.u32 %v7621_v21, %v6637_v23  ;;  %v6669_v21 = vld [vmem:[%s10691_s0 + $0x7b0] sm:$0xf0] }
 0x3b8   :  { %v6644_v36 = vor.u32 %v7624_v25, %v6643_v24  ;;  %v6648_v37 = vor.u32 %v7622_v26, %v6645_v27  ;;  %v7632_v24 = vld [vmem:[%s10691_s0 + $0x7b4] sm:$0xf0]  ;;  %v7630_v25 = vld [vmem:[%s10691_s0 + $0x7ac] sm:$0xf] }
 0x3b9   :  { %5347 = vst [vmem:[%s10692_s3 + $0xb6] sm:$0xff] %v5345_v39  ;;  %v4378_v43 = vadd.f32 %v4377_v38, %v3879_v40  ;;  %v3382_v57 = vadd.f32 %v3381_v42, %v2883_v44 }
 0x3bb   :  { %v4720_v52 = vmax.f32 %v4378_v43, 0.0 }
 0x3bc   :  { %v5336_v54 = vld [vmem:[#allocation2 + $0x304] ss:$2 sm:$0x3f]  ;;  %v5340_v55 = vld [vmem:[#allocation2 + $0x305] ss:$2 sm:$0x3f] }
 0x3bd   :  { %v5344_v3 = vmax.f32 %v5336_v54, %v5340_v55  ;;  %4916 = vst [vmem:[#allocation2 + $0x310] sm:$0xff] %v4720_v52  ;;  %v6653_v52 = vld [vmem:[%s10691_s0 + $0x790] sm:$0xf0]  ;;  %v6661_v54 = vld [vmem:[%s10691_s0 + $0x798] sm:$0xf0] }
 0x3be   :  { %v3880_v58 = vpop.f32.mrf.mxu2  ;;  %v2885_v1 = vpop.f32.mrf.mxu0 }
 0x3bf   :  { %v4379_v59 = vpop.f32.mrf.mxu3  ;;  %v5346_v62 = vmax.f32 %v5342_v56, %v5344_v3  ;;  %v3881_v63 = vadd.f32 %v3880_v58, %v3382_v57  ;;  %v3384_v2 = vpop.f32.mrf.mxu1  ;;  %v2886_v7 = vadd.f32 %v9241_v5, %v2885_v1  ;;  %v6652_v57 = vor.u32 %v7627_v8, %v6651_v49  ;;  %v9608_v1 = vld [vmem:[%s10690_s2] ss:$0 sm:$0xff] }
 0x3c0   :  { %v6656_v58 = vor.u32 %v7625_v50, %v6653_v52 }
 0x3c1   :  { %5348 = vst [vmem:[%s10692_s3 + $0xbe] sm:$0x3f] %v5346_v62  ;;  %v4380_v9 = vadd.f32 %v4379_v59, %v3881_v63  ;;  %2924 = vmatmul.bf16.gmra.mxu0 %v6620_v60  ;;  %v3385_v11 = vadd.f32 %v3384_v2, %v2886_v7  ;;  %v6664_v63 = vor.u32 %v7626_v53, %v6661_v54 }
 0x3c2   :  { %3423 = vmatmul.bf16.gmra.mxu1 %v6624_v61 }
 0x3c3   :  { %v4721_v10 = vmax.f32 %v4380_v9, 0.0  ;;  %3922 = vmatmul.bf16.gmra.mxu2 %v6628_v4 }
 0x3c4   :  { %4421 = vmatmul.bf16.gmra.mxu3 %v6632_v6 }
 0x3c5   :  { %4917 = vst [vmem:[#allocation2 + $0x318] sm:$0xff] %v4721_v10 }
 0x3c6   :  { %v3883_v12 = vpop.f32.mrf.mxu2  ;;  %v2887_v15 = vpop.f32.mrf.mxu0 }
 0x3c7   :  { %v4382_v13 = vpop.f32.mrf.mxu3  ;;  %v3884_v14 = vadd.f32 %v3883_v12, %v3385_v11  ;;  %v3386_v16 = vpop.f32.mrf.mxu1  ;;  %v2888_v18 = vadd.f32 %v9241_v5, %v2887_v15 }
 0x3c9   :  { %v4383_v17 = vadd.f32 %v4382_v13, %v3884_v14  ;;  %v3387_v28 = vadd.f32 %v3386_v16, %v2888_v18  ;;  %v6667_v18 = vld [vmem:[%s10691_s0 + $0x7a0] sm:$0xf] }
 0x3cb   :  { %v4722_v22 = vmax.f32 %v4383_v17, 0.0 }
 0x3cc   :  { %v5350_v14 = vld [vmem:[#allocation2 + $0x310] ss:$2 sm:$0xff]  ;;  %v5354_v15 = vld [vmem:[#allocation2 + $0x311] ss:$2 sm:$0xff] }
 0x3cd   :  { %4918 = vst [vmem:[#allocation2 + $0x320] sm:$0xff] %v4722_v22  ;;  %v6675_v22 = vld [vmem:[%s10691_s0 + $0x7a8] sm:$0xf] }
 0x3ce   :  { %v3885_v29 = vpop.f32.mrf.mxu2  ;;  %v2890_v34 = vpop.f32.mrf.mxu0 }
 0x3cf   :  { %v4384_v30 = vpop.f32.mrf.mxu3  ;;  %v3886_v33 = vadd.f32 %v3885_v29, %v3387_v28  ;;  %v3389_v35 = vpop.f32.mrf.mxu1  ;;  %v2891_v38 = vadd.f32 %v9241_v5, %v2890_v34  ;;  %v6677_v28 = vld [vmem:[%s10691_s0 + $0x7b8] sm:$0xf0]  ;;  %v5365_v29 = vmax.f32 %v5350_v14, %v5354_v15  ;;  %v6668_v34 = vor.u32 %v7631_v19, %v6667_v18 }
 0x3d1   :  { %v4385_v39 = vadd.f32 %v4384_v30, %v3886_v33  ;;  %2929 = vmatmul.bf16.gmra.mxu0 %v6636_v31  ;;  %v3390_v41 = vadd.f32 %v3389_v35, %v2891_v38  ;;  %v6672_v35 = vor.u32 %v7629_v20, %v6669_v21 }
 0x3d2   :  { %3428 = vmatmul.bf16.gmra.mxu1 %v6640_v32 }
 0x3d3   :  { %v4723_v40 = vmax.f32 %v4385_v39, 0.0  ;;  %3927 = vmatmul.bf16.gmra.mxu2 %v6644_v36 }
 0x3d4   :  { %4426 = vmatmul.bf16.gmra.mxu3 %v6648_v37 }
 0x3d5   :  { %4919 = vst [vmem:[#allocation2 + $0x328] sm:$0xff] %v4723_v40  ;;  %v6676_v40 = vor.u32 %v7632_v24, %v6675_v22 }
 0x3d6   :  { %v3888_v42 = vpop.f32.mrf.mxu2  ;;  %v2892_v45 = vpop.f32.mrf.mxu0 }
 0x3d7   :  { %v4387_v43 = vpop.f32.mrf.mxu3  ;;  %v3889_v44 = vadd.f32 %v3888_v42, %v3390_v41  ;;  %v3391_v46 = vpop.f32.mrf.mxu1  ;;  %v2893_v48 = vadd.f32 %v9241_v5, %v2892_v45  ;;  %v6659_v5 = vld [vmem:[%s10691_s0 + $0x788] sm:$0xf]  ;;  %v6680_v41 = vor.u32 %v7630_v25, %v6677_v28  ;;  %v7639_v28 = vld [vmem:[%s10691_s0 + $0x7ec] sm:$0xf0] }
 0x3d8   :  { %v6660_v62 = vor.u32 %v7628_v0, %v6659_v5 }
 0x3d9   :  { %v4388_v47 = vadd.f32 %v4387_v43, %v3889_v44  ;;  %v3392_v55 = vadd.f32 %v3391_v46, %v2893_v48 }
 0x3db   :  { %v4724_v51 = vmax.f32 %v4388_v47, 0.0 }
 0x3dc   :  { %v5352_v44 = vld [vmem:[#allocation2 + $0x320] ss:$2 sm:$0x3f]  ;;  %v5356_v45 = vld [vmem:[#allocation2 + $0x321] ss:$2 sm:$0x3f] }
 0x3dd   :  { %4920 = vst [vmem:[#allocation2 + $0x330] sm:$0xff] %v4724_v51  ;;  %v5366_v8 = vmax.f32 %v5352_v44, %v5356_v45 }
 0x3de   :  { %v3890_v56 = vpop.f32.mrf.mxu2  ;;  %v2895_v60 = vpop.f32.mrf.mxu0 }
 0x3df   :  { %v4389_v3 = vpop.f32.mrf.mxu3  ;;  %v3891_v59 = vadd.f32 %v3890_v56, %v3392_v55  ;;  %v3394_v61 = vpop.f32.mrf.mxu1  ;;  %v2896_v2 = vadd.f32 %v9608_v1, %v2895_v60  ;;  %v6685_v60 = vld [vmem:[%s10691_s0 + $0x7d0] sm:$0xf0] }
 0x3e1   :  { %v4390_v4 = vadd.f32 %v4389_v3, %v3891_v59  ;;  %2934 = vmatmul.bf16.gmra.mxu0 %v6652_v57  ;;  %v3395_v7 = vadd.f32 %v3394_v61, %v2896_v2  ;;  %v6683_v3 = vld [vmem:[%s10691_s0 + $0x7c0] sm:$0xf]  ;;  %v7635_v57 = vld [vmem:[%s10691_s0 + $0x7cc] sm:$0xf0]  ;;  %v6691_v61 = vld [vmem:[%s10691_s0 + $0x7c8] sm:$0xf] }
 0x3e2   :  { %3433 = vmatmul.bf16.gmra.mxu1 %v6656_v58  ;;  %v7633_v58 = vld [vmem:[%s10691_s0 + $0x7c4] sm:$0xf]  ;;  %v6693_v2 = vld [vmem:[%s10691_s0 + $0x7d8] sm:$0xf0] }
 0x3e3   :  { %v4725_v6 = vmax.f32 %v4390_v4, 0.0  ;;  %3932 = vmatmul.bf16.gmra.mxu2 %v6660_v62  ;;  %v7636_v62 = vld [vmem:[%s10691_s0 + $0x7d4] sm:$0xf0] }
 0x3e4   :  { %4431 = vmatmul.bf16.gmra.mxu3 %v6664_v63  ;;  %v7634_v63 = vld [vmem:[%s10691_s0 + $0x7cc] sm:$0xf]  ;;  %v6692_v14 = vor.u32 %v7636_v62, %v6691_v61  ;;  %v6725_v61 = vld [vmem:[%s10691_s0 + $0x818] sm:$0xf0] }
 0x3e5   :  { %4921 = vst [vmem:[#allocation2 + $0x338] sm:$0xff] %v4725_v6  ;;  %v6696_v15 = vor.u32 %v7634_v63, %v6693_v2 }
 0x3e6   :  { %v3893_v9 = vpop.f32.mrf.mxu2  ;;  %v2897_v12 = vpop.f32.mrf.mxu0 }
 0x3e7   :  { %v4392_v10 = vpop.f32.mrf.mxu3  ;;  %v3894_v11 = vadd.f32 %v3893_v9, %v3395_v7  ;;  %v3396_v13 = vpop.f32.mrf.mxu1  ;;  %v2898_v17 = vadd.f32 %v9608_v1, %v2897_v12  ;;  %v6684_v9 = vor.u32 %v7635_v57, %v6683_v3  ;;  %v6717_v57 = vld [vmem:[%s10691_s0 + $0x810] sm:$0xf0] }
 0x3e9   :  { %v4393_v16 = vadd.f32 %v4392_v10, %v3894_v11  ;;  %v3397_v31 = vadd.f32 %v3396_v13, %v2898_v17  ;;  %v6688_v10 = vor.u32 %v7633_v58, %v6685_v60  ;;  %v6723_v58 = vld [vmem:[%s10691_s0 + $0x808] sm:$0xf]  ;;  %v7642_v60 = vld [vmem:[%s10691_s0 + $0x80c] sm:$0xf] }
 0x3eb   :  { %v4726_v23 = vmax.f32 %v4393_v16, 0.0 }
 0x3ec   :  { %v5358_v26 = vld [vmem:[#allocation2 + $0x32c] ss:$2 sm:$0xff]  ;;  %v5362_v27 = vld [vmem:[#allocation2 + $0x32d] ss:$2 sm:$0xff] }
 0x3ed   :  { %v5367_v30 = vmax.f32 %v5358_v26, %v5362_v27  ;;  %4922 = vst [vmem:[#allocation2 + $0x340] sm:$0xff] %v4726_v23  ;;  %v6699_v27 = vld [vmem:[%s10691_s0 + $0x7e0] sm:$0xf] }
 0x3ee   :  { %v3895_v32 = vpop.f32.mrf.mxu2  ;;  %v2900_v38 = vpop.f32.mrf.mxu0 }
 0x3ef   :  { %v4394_v33 = vpop.f32.mrf.mxu3  ;;  %v5369_v36 = vmax.f32 %v5365_v29, %v5367_v30  ;;  %v3896_v37 = vadd.f32 %v3895_v32, %v3397_v31  ;;  %v3399_v39 = vpop.f32.mrf.mxu1  ;;  %v2901_v42 = vadd.f32 %v9608_v1, %v2900_v38  ;;  %v7637_v29 = vld [vmem:[%s10691_s0 + $0x7e4] sm:$0xf]  ;;  %v6701_v31 = vld [vmem:[%s10691_s0 + $0x7f0] sm:$0xf0]  ;;  %v6707_v32 = vld [vmem:[%s10691_s0 + $0x7e8] sm:$0xf] }
 0x3f1   :  { %5371 = vst [vmem:[%s10692_s3 + $0xc4] sm:$0xff] %v5369_v36  ;;  %v4395_v43 = vadd.f32 %v4394_v33, %v3896_v37  ;;  %2939 = vmatmul.bf16.gmra.mxu0 %v6668_v34  ;;  %v3400_v47 = vadd.f32 %v3399_v39, %v2901_v42  ;;  %v7640_v33 = vld [vmem:[%s10691_s0 + $0x7f4] sm:$0xf0]  ;;  %v7638_v34 = vld [vmem:[%s10691_s0 + $0x7ec] sm:$0xf]  ;;  %v6700_v39 = vor.u32 %v7639_v28, %v6699_v27 }
 0x3f2   :  { %3438 = vmatmul.bf16.gmra.mxu1 %v6672_v35  ;;  %v6709_v35 = vld [vmem:[%s10691_s0 + $0x7f8] sm:$0xf0]  ;;  %v6708_v44 = vor.u32 %v7640_v33, %v6707_v32  ;;  %v7647_v32 = vld [vmem:[%s10691_s0 + $0x82c] sm:$0xf0]  ;;  %v7645_v33 = vld [vmem:[%s10691_s0 + $0x824] sm:$0xf] }
 0x3f3   :  { %v4727_v46 = vmax.f32 %v4395_v43, 0.0  ;;  %3937 = vmatmul.bf16.gmra.mxu2 %v6676_v40  ;;  %v6704_v40 = vor.u32 %v7637_v29, %v6701_v31  ;;  %v6712_v45 = vor.u32 %v7638_v34, %v6709_v35  ;;  %v6731_v31 = vld [vmem:[%s10691_s0 + $0x820] sm:$0xf]  ;;  %v6733_v34 = vld [vmem:[%s10691_s0 + $0x830] sm:$0xf0] }
 0x3f4   :  { %4436 = vmatmul.bf16.gmra.mxu3 %v6680_v41  ;;  %v5360_v48 = vld [vmem:[#allocation2 + $0x33c] ss:$2 sm:$0x3f]  ;;  %v5364_v49 = vld [vmem:[#allocation2 + $0x33d] ss:$2 sm:$0x3f] }
 0x3f5   :  { %v5368_v50 = vmax.f32 %v5360_v48, %v5364_v49  ;;  %4923 = vst [vmem:[#allocation2 + $0x348] sm:$0xff] %v4727_v46 }
 0x3f6   :  { %v3898_v51 = vpop.f32.mrf.mxu2  ;;  %v2902_v53 = vpop.f32.mrf.mxu0 }
 0x3f7   :  { %v4397_v52 = vpop.f32.mrf.mxu3  ;;  %v5370_v5 = vmax.f32 %v5366_v8, %v5368_v50  ;;  %v3899_v0 = vadd.f32 %v3898_v51, %v3400_v47  ;;  %v3401_v54 = vpop.f32.mrf.mxu1  ;;  %v2903_v56 = vadd.f32 %v9608_v1, %v2902_v53 }
 0x3f9   :  { %5372 = vst [vmem:[%s10692_s3 + $0xcc] sm:$0x3f] %v5370_v5  ;;  %v4398_v55 = vadd.f32 %v4397_v52, %v3899_v0  ;;  %v3402_v4 = vadd.f32 %v3401_v54, %v2903_v56  ;;  %v6715_v54 = vld [vmem:[%s10691_s0 + $0x800] sm:$0xf]  ;;  %v7641_v56 = vld [vmem:[%s10691_s0 + $0x804] sm:$0xf] }
 0x3fb   :  { %v4728_v59 = vmax.f32 %v4398_v55, 0.0  ;;  %v7643_v55 = vld [vmem:[%s10691_s0 + $0x80c] sm:$0xf0] }
 0x3fd   :  { %4924 = vst [vmem:[#allocation2 + $0x350] sm:$0xff] %v4728_v59  ;;  %v7644_v59 = vld [vmem:[%s10691_s0 + $0x814] sm:$0xf0] }
 0x3fe   :  { %v3900_v6 = vpop.f32.mrf.mxu2  ;;  %v2905_v12 = vpop.f32.mrf.mxu0 }
 0x3ff   :  { %v4399_v7 = vpop.f32.mrf.mxu3  ;;  %v3901_v11 = vadd.f32 %v3900_v6, %v3402_v4  ;;  %v3404_v13 = vpop.f32.mrf.mxu1  ;;  %v2906_v16 = vadd.f32 %v9608_v1, %v2905_v12  ;;  %v6716_v4 = vor.u32 %v7643_v55, %v6715_v54  ;;  %v6720_v6 = vor.u32 %v7641_v56, %v6717_v57 }
 0x400   :  { %v6728_v12 = vor.u32 %v7642_v60, %v6725_v61 }
 0x401   :  { %v4400_v17 = vadd.f32 %v4399_v7, %v3901_v11  ;;  %2944 = vmatmul.bf16.gmra.mxu0 %v6684_v9  ;;  %v3405_v19 = vadd.f32 %v3404_v13, %v2906_v16  ;;  %v6724_v11 = vor.u32 %v7644_v59, %v6723_v58 }
 0x402   :  { %3443 = vmatmul.bf16.gmra.mxu1 %v6688_v10 }
 0x403   :  { %v4729_v18 = vmax.f32 %v4400_v17, 0.0  ;;  %3942 = vmatmul.bf16.gmra.mxu2 %v6692_v14 }
 0x404   :  { %4441 = vmatmul.bf16.gmra.mxu3 %v6696_v15  ;;  %v5374_v15 = vld [vmem:[#allocation2 + $0x348] ss:$2 sm:$0xff]  ;;  %v5378_v16 = vld [vmem:[#allocation2 + $0x349] ss:$2 sm:$0xff] }
 0x405   :  { %4925 = vst [vmem:[#allocation2 + $0x358] sm:$0xff] %v4729_v18 }
 0x406   :  { %v3903_v20 = vpop.f32.mrf.mxu2  ;;  %v2907_v23 = vpop.f32.mrf.mxu0 }
 0x407   :  { %v4402_v21 = vpop.f32.mrf.mxu3  ;;  %v3904_v22 = vadd.f32 %v3903_v20, %v3405_v19  ;;  %v3406_v24 = vpop.f32.mrf.mxu1  ;;  %v2908_v26 = vadd.f32 %v9608_v1, %v2907_v23 }
 0x409   :  { %v4403_v25 = vadd.f32 %v4402_v21, %v3904_v22  ;;  %v3407_v36 = vadd.f32 %v3406_v24, %v2908_v26  ;;  %v5389_v21 = vmax.f32 %v5374_v15, %v5378_v16 }
 0x40b   :  { %v4730_v30 = vmax.f32 %v4403_v25, 0.0 }
 0x40d   :  { %4926 = vst [vmem:[#allocation2 + $0x360] sm:$0xff] %v4730_v30 }
 0x40e   :  { %v3905_v37 = vpop.f32.mrf.mxu2  ;;  %v2910_v42 = vpop.f32.mrf.mxu0 }
 0x40f   :  { %v4404_v38 = vpop.f32.mrf.mxu3  ;;  %v3906_v41 = vadd.f32 %v3905_v37, %v3407_v36  ;;  %v3409_v43 = vpop.f32.mrf.mxu1  ;;  %v2911_v46 = vadd.f32 %v9608_v1, %v2910_v42  ;;  %v6739_v37 = vld [vmem:[%s10691_s0 + $0x828] sm:$0xf] }
 0x411   :  { %v4405_v47 = vadd.f32 %v4404_v38, %v3906_v41  ;;  %2949 = vmatmul.bf16.gmra.mxu0 %v6700_v39  ;;  %v3410_v49 = vadd.f32 %v3409_v43, %v2911_v46  ;;  %v7648_v38 = vld [vmem:[%s10691_s0 + $0x834] sm:$0xf0]  ;;  %v6741_v41 = vld [vmem:[%s10691_s0 + $0x838] sm:$0xf0] }
 0x412   :  { %3448 = vmatmul.bf16.gmra.mxu1 %v6704_v40  ;;  %v7646_v40 = vld [vmem:[%s10691_s0 + $0x82c] sm:$0xf] }
 0x413   :  { %v4731_v48 = vmax.f32 %v4405_v47, 0.0  ;;  %3947 = vmatmul.bf16.gmra.mxu2 %v6708_v44 }
 0x414   :  { %4446 = vmatmul.bf16.gmra.mxu3 %v6712_v45  ;;  %v5376_v35 = vld [vmem:[#allocation2 + $0x358] ss:$2 sm:$0x3f]  ;;  %v5380_v36 = vld [vmem:[#allocation2 + $0x359] ss:$2 sm:$0x3f] }
 0x415   :  { %4927 = vst [vmem:[#allocation2 + $0x368] sm:$0xff] %v4731_v48  ;;  %v5390_v44 = vmax.f32 %v5376_v35, %v5380_v36  ;;  %v6763_v35 = vld [vmem:[%s10691_s0 + $0x860] sm:$0xf]  ;;  %v7655_v36 = vld [vmem:[%s10691_s0 + $0x86c] sm:$0xf0] }
 0x416   :  { %v3908_v8 = vpop.f32.mrf.mxu2  ;;  %v2912_v52 = vpop.f32.mrf.mxu0 }
 0x417   :  { %v4407_v50 = vpop.f32.mrf.mxu3  ;;  %v3909_v51 = vadd.f32 %v3908_v8, %v3410_v49  ;;  %v3411_v5 = vpop.f32.mrf.mxu1  ;;  %v2913_v53 = vadd.f32 %v9608_v1, %v2912_v52  ;;  %v6732_v49 = vor.u32 %v7647_v32, %v6731_v31  ;;  %v6736_v8 = vor.u32 %v7645_v33, %v6733_v34 }
 0x419   :  { %v4408_v0 = vadd.f32 %v4407_v50, %v3909_v51  ;;  %v3412_v62 = vadd.f32 %v3411_v5, %v2913_v53  ;;  %v6744_v53 = vor.u32 %v7646_v40, %v6741_v41  ;;  %v6771_v40 = vld [vmem:[%s10691_s0 + $0x868] sm:$0xf]  ;;  %v7656_v41 = vld [vmem:[%s10691_s0 + $0x874] sm:$0xf0] }
 0x41b   :  { %v4732_v3 = vmax.f32 %v4408_v0, 0.0  ;;  %v6740_v0 = vor.u32 %v7648_v38, %v6739_v37  ;;  %v7653_v37 = vld [vmem:[%s10691_s0 + $0x864] sm:$0xf] }
 0x41d   :  { %4928 = vst [vmem:[#allocation2 + $0x370] sm:$0xff] %v4732_v3 }
 0x41e   :  { %v3910_v63 = vpop.f32.mrf.mxu2  ;;  %v2915_v9 = vpop.f32.mrf.mxu0 }
 0x41f   :  { %v4409_v2 = vpop.f32.mrf.mxu3  ;;  %v3911_v7 = vadd.f32 %v3910_v63, %v3412_v62  ;;  %v3414_v10 = vpop.f32.mrf.mxu1  ;;  %v2916_v13 = vadd.f32 %v9608_v1, %v2915_v9  ;;  %v6749_v9 = vld [vmem:[%s10691_s0 + $0x850] sm:$0xf0] }
 0x421   :  { %v4410_v14 = vadd.f32 %v4409_v2, %v3911_v7  ;;  %2954 = vmatmul.bf16.gmra.mxu0 %v6716_v4  ;;  %v3415_v18 = vadd.f32 %v3414_v10, %v2916_v13  ;;  %v6747_v2 = vld [vmem:[%s10691_s0 + $0x840] sm:$0xf]  ;;  %v7651_v4 = vld [vmem:[%s10691_s0 + $0x84c] sm:$0xf0]  ;;  %v6755_v10 = vld [vmem:[%s10691_s0 + $0x848] sm:$0xf] }
 0x422   :  { %3453 = vmatmul.bf16.gmra.mxu1 %v6720_v6  ;;  %v7649_v6 = vld [vmem:[%s10691_s0 + $0x844] sm:$0xf]  ;;  %v6757_v13 = vld [vmem:[%s10691_s0 + $0x858] sm:$0xf0] }
 0x423   :  { %v4733_v17 = vmax.f32 %v4410_v14, 0.0  ;;  %3952 = vmatmul.bf16.gmra.mxu2 %v6724_v11  ;;  %v7652_v11 = vld [vmem:[%s10691_s0 + $0x854] sm:$0xf0] }
 0x424   :  { %4451 = vmatmul.bf16.gmra.mxu3 %v6728_v12  ;;  %v5382_v19 = vld [vmem:[#allocation2 + $0x364] ss:$2 sm:$0xff]  ;;  %v5386_v20 = vld [vmem:[#allocation2 + $0x365] ss:$2 sm:$0xff] }
 0x425   :  { %v5391_v22 = vmax.f32 %v5382_v19, %v5386_v20  ;;  %4929 = vst [vmem:[#allocation2 + $0x378] sm:$0xff] %v4733_v17  ;;  %v7650_v12 = vld [vmem:[%s10691_s0 + $0x84c] sm:$0xf]  ;;  %v6748_v17 = vor.u32 %v7651_v4, %v6747_v2  ;;  %v7659_v2 = vld [vmem:[%s10691_s0 + $0x88c] sm:$0xf0] }
 0x426   :  { %v3913_v23 = vpop.f32.mrf.mxu2  ;;  %v2917_v27 = vpop.f32.mrf.mxu0  ;;  %v7657_v4 = vld [vmem:[%s10691_s0 + $0x884] sm:$0xf] }
 0x427   :  { %v4412_v24 = vpop.f32.mrf.mxu3  ;;  %v5393_v25 = vmax.f32 %v5389_v21, %v5391_v22  ;;  %v3914_v26 = vadd.f32 %v3913_v23, %v3415_v18  ;;  %v3416_v28 = vpop.f32.mrf.mxu1  ;;  %v2918_v30 = vadd.f32 %v9608_v1, %v2917_v27  ;;  %v6752_v18 = vor.u32 %v7649_v6, %v6749_v9  ;;  %v6781_v6 = vld [vmem:[%s10691_s0 + $0x890] sm:$0xf0] }
 0x428   :  { %v6756_v22 = vor.u32 %v7652_v11, %v6755_v10  ;;  %v6760_v23 = vor.u32 %v7650_v12, %v6757_v13  ;;  %v7660_v10 = vld [vmem:[%s10691_s0 + $0x894] sm:$0xf0]  ;;  %v7658_v11 = vld [vmem:[%s10691_s0 + $0x88c] sm:$0xf] }
 0x429   :  { %5395 = vst [vmem:[%s10692_s3 + $0xd2] sm:$0xff] %v5393_v25  ;;  %v4413_v29 = vadd.f32 %v4412_v24, %v3914_v26  ;;  %v3417_v46 = vadd.f32 %v3416_v28, %v2918_v30 }
 0x42b   :  { %v4734_v39 = vmax.f32 %v4413_v29, 0.0 }
 0x42c   :  { %v5384_v42 = vld [vmem:[#allocation2 + $0x374] ss:$2 sm:$0x3f]  ;;  %v5388_v43 = vld [vmem:[#allocation2 + $0x375] ss:$2 sm:$0x3f] }
 0x42d   :  { %v5392_v45 = vmax.f32 %v5384_v42, %v5388_v43  ;;  %4930 = vst [vmem:[#allocation2 + $0x380] sm:$0xff] %v4734_v39  ;;  %v6765_v39 = vld [vmem:[%s10691_s0 + $0x870] sm:$0xf0]  ;;  %v7654_v42 = vld [vmem:[%s10691_s0 + $0x86c] sm:$0xf] }
 0x42e   :  { %v3915_v47 = vpop.f32.mrf.mxu2  ;;  %v2920_v52 = vpop.f32.mrf.mxu0  ;;  %v6773_v43 = vld [vmem:[%s10691_s0 + $0x878] sm:$0xf0] }
 0x42f   :  { %v4414_v48 = vpop.f32.mrf.mxu3  ;;  %v5394_v50 = vmax.f32 %v5390_v44, %v5392_v45  ;;  %v3916_v51 = vadd.f32 %v3915_v47, %v3417_v46  ;;  %v3419_v5 = vpop.f32.mrf.mxu1  ;;  %v2921_v54 = vadd.f32 %v9608_v1, %v2920_v52  ;;  %v6764_v47 = vor.u32 %v7655_v36, %v6763_v35 }
 0x430   :  { %v6776_v52 = vor.u32 %v7654_v42, %v6773_v43 }
 0x431   :  { %5396 = vst [vmem:[%s10692_s3 + $0xda] sm:$0x3f] %v5394_v50  ;;  %v4415_v55 = vadd.f32 %v4414_v48, %v3916_v51  ;;  %2959 = vmatmul.bf16.gmra.mxu0 %v6732_v49  ;;  %v3420_v3 = vadd.f32 %v3419_v5, %v2921_v54  ;;  %v6768_v48 = vor.u32 %v7653_v37, %v6765_v39 }
 0x432   :  { %3458 = vmatmul.bf16.gmra.mxu1 %v6736_v8  ;;  %v6772_v51 = vor.u32 %v7656_v41, %v6771_v40 }
 0x433   :  { %v4735_v56 = vmax.f32 %v4415_v55, 0.0  ;;  %3957 = vmatmul.bf16.gmra.mxu2 %v6740_v0 }
 0x434   :  { %4456 = vmatmul.bf16.gmra.mxu3 %v6744_v53 }
 0x435   :  { %4931 = vst [vmem:[#allocation2 + $0x388] sm:$0xff] %v4735_v56 }
 0x436   :  { %v3918_v57 = vpop.f32.mrf.mxu2  ;;  %v2922_v60 = vpop.f32.mrf.mxu0 }
 0x437   :  { %v4417_v58 = vpop.f32.mrf.mxu3  ;;  %v3919_v59 = vadd.f32 %v3918_v57, %v3420_v3  ;;  %v3421_v61 = vpop.f32.mrf.mxu1  ;;  %v2923_v63 = vadd.f32 %v9608_v1, %v2922_v60 }
 0x439   :  { %v4418_v62 = vadd.f32 %v4417_v58, %v3919_v59  ;;  %v3422_v14 = vadd.f32 %v3421_v61, %v2923_v63  ;;  %v6779_v63 = vld [vmem:[%s10691_s0 + $0x880] sm:$0xf] }
 0x43b   :  { %v4736_v7 = vmax.f32 %v4418_v62, 0.0 }
 0x43c   :  { %v5398_v59 = vld [vmem:[#allocation2 + $0x380] ss:$2 sm:$0xff]  ;;  %v5402_v60 = vld [vmem:[#allocation2 + $0x381] ss:$2 sm:$0xff] }
 0x43d   :  { %4932 = vst [vmem:[#allocation2 + $0x390] sm:$0xff] %v4736_v7  ;;  %v6787_v7 = vld [vmem:[%s10691_s0 + $0x888] sm:$0xf] }
 0x43e   :  { %v3920_v15 = vpop.f32.mrf.mxu2  ;;  %v2925_v20 = vpop.f32.mrf.mxu0 }
 0x43f   :  { %v4419_v16 = vpop.f32.mrf.mxu3  ;;  %v3921_v19 = vadd.f32 %v3920_v15, %v3422_v14  ;;  %v3424_v21 = vpop.f32.mrf.mxu1  ;;  %v2926_v24 = vadd.f32 %v9608_v1, %v2925_v20  ;;  %v6789_v14 = vld [vmem:[%s10691_s0 + $0x898] sm:$0xf0]  ;;  %v5413_v15 = vmax.f32 %v5398_v59, %v5402_v60  ;;  %v6780_v20 = vor.u32 %v7659_v2, %v6779_v63 }
 0x441   :  { %v4420_v25 = vadd.f32 %v4419_v16, %v3921_v19  ;;  %2964 = vmatmul.bf16.gmra.mxu0 %v6748_v17  ;;  %v3425_v27 = vadd.f32 %v3424_v21, %v2926_v24  ;;  %v6784_v21 = vor.u32 %v7657_v4, %v6781_v6 }
 0x442   :  { %3463 = vmatmul.bf16.gmra.mxu1 %v6752_v18 }
 0x443   :  { %v4737_v26 = vmax.f32 %v4420_v25, 0.0  ;;  %3962 = vmatmul.bf16.gmra.mxu2 %v6756_v22 }
 0x444   :  { %4461 = vmatmul.bf16.gmra.mxu3 %v6760_v23 }
 0x445   :  { %4933 = vst [vmem:[#allocation2 + $0x398] sm:$0xff] %v4737_v26  ;;  %v6788_v26 = vor.u32 %v7660_v10, %v6787_v7 }
 0x446   :  { %v3923_v28 = vpop.f32.mrf.mxu2  ;;  %v2927_v31 = vpop.f32.mrf.mxu0 }
 0x447   :  { %v4422_v29 = vpop.f32.mrf.mxu3  ;;  %v3924_v30 = vadd.f32 %v3923_v28, %v3425_v27  ;;  %v3426_v32 = vpop.f32.mrf.mxu1  ;;  %v2928_v34 = vadd.f32 %v9608_v1, %v2927_v31  ;;  %v6792_v27 = vor.u32 %v7658_v11, %v6789_v14  ;;  %v7667_v14 = vld [vmem:[%s10691_s0 + $0x8cc] sm:$0xf0] }
 0x449   :  { %v4423_v33 = vadd.f32 %v4422_v29, %v3924_v30  ;;  %v3427_v44 = vadd.f32 %v3426_v32, %v2928_v34 }
 0x44b   :  { %v4738_v38 = vmax.f32 %v4423_v33, 0.0 }
 0x44c   :  { %v5400_v30 = vld [vmem:[#allocation2 + $0x390] ss:$2 sm:$0x3f]  ;;  %v5404_v31 = vld [vmem:[#allocation2 + $0x391] ss:$2 sm:$0x3f] }
 0x44d   :  { %4934 = vst [vmem:[#allocation2 + $0x3a0] sm:$0xff] %v4738_v38  ;;  %v5414_v36 = vmax.f32 %v5400_v30, %v5404_v31 }
 0x44e   :  { %v3925_v45 = vpop.f32.mrf.mxu2  ;;  %v2930_v8 = vpop.f32.mrf.mxu0 }
 0x44f   :  { %v4424_v46 = vpop.f32.mrf.mxu3  ;;  %v3926_v49 = vadd.f32 %v3925_v45, %v3427_v44  ;;  %v3429_v50 = vpop.f32.mrf.mxu1  ;;  %v2931_v5 = vadd.f32 %v9608_v1, %v2930_v8  ;;  %v6797_v8 = vld [vmem:[%s10691_s0 + $0x8b0] sm:$0xf0] }
 0x451   :  { %v4425_v0 = vadd.f32 %v4424_v46, %v3926_v49  ;;  %2969 = vmatmul.bf16.gmra.mxu0 %v6764_v47  ;;  %v3430_v54 = vadd.f32 %v3429_v50, %v2931_v5  ;;  %v6795_v46 = vld [vmem:[%s10691_s0 + $0x8a0] sm:$0xf]  ;;  %v7663_v47 = vld [vmem:[%s10691_s0 + $0x8ac] sm:$0xf0]  ;;  %v6803_v50 = vld [vmem:[%s10691_s0 + $0x8a8] sm:$0xf] }
 0x452   :  { %3468 = vmatmul.bf16.gmra.mxu1 %v6768_v48  ;;  %v7661_v48 = vld [vmem:[%s10691_s0 + $0x8a4] sm:$0xf]  ;;  %v6805_v5 = vld [vmem:[%s10691_s0 + $0x8b8] sm:$0xf0] }
 0x453   :  { %v4739_v53 = vmax.f32 %v4425_v0, 0.0  ;;  %3967 = vmatmul.bf16.gmra.mxu2 %v6772_v51  ;;  %v7664_v51 = vld [vmem:[%s10691_s0 + $0x8b4] sm:$0xf0] }
 0x454   :  { %4466 = vmatmul.bf16.gmra.mxu3 %v6776_v52  ;;  %v7662_v52 = vld [vmem:[%s10691_s0 + $0x8ac] sm:$0xf]  ;;  %v6804_v59 = vor.u32 %v7664_v51, %v6803_v50  ;;  %v6837_v50 = vld [vmem:[%s10691_s0 + $0x8f8] sm:$0xf0] }
 0x455   :  { %4935 = vst [vmem:[#allocation2 + $0x3a8] sm:$0xff] %v4739_v53  ;;  %v6808_v60 = vor.u32 %v7662_v52, %v6805_v5 }
 0x456   :  { %v3928_v55 = vpop.f32.mrf.mxu2  ;;  %v2932_v57 = vpop.f32.mrf.mxu0 }
 0x457   :  { %v4427_v56 = vpop.f32.mrf.mxu3  ;;  %v3929_v3 = vadd.f32 %v3928_v55, %v3430_v54  ;;  %v3431_v58 = vpop.f32.mrf.mxu1  ;;  %v2933_v62 = vadd.f32 %v9608_v1, %v2932_v57  ;;  %v6796_v55 = vor.u32 %v7663_v47, %v6795_v46  ;;  %v6829_v47 = vld [vmem:[%s10691_s0 + $0x8f0] sm:$0xf0] }
 0x459   :  { %v4428_v61 = vadd.f32 %v4427_v56, %v3929_v3  ;;  %v3432_v17 = vadd.f32 %v3431_v58, %v2933_v62  ;;  %v6800_v56 = vor.u32 %v7661_v48, %v6797_v8  ;;  %v6835_v48 = vld [vmem:[%s10691_s0 + $0x8e8] sm:$0xf]  ;;  %v7670_v8 = vld [vmem:[%s10691_s0 + $0x8ec] sm:$0xf] }
 0x45b   :  { %v4740_v9 = vmax.f32 %v4428_v61, 0.0 }
 0x45c   :  { %v5406_v12 = vld [vmem:[#allocation2 + $0x39c] ss:$2 sm:$0xff]  ;;  %v5410_v13 = vld [vmem:[#allocation2 + $0x39d] ss:$2 sm:$0xff] }
 0x45d   :  { %v5415_v16 = vmax.f32 %v5406_v12, %v5410_v13  ;;  %4936 = vst [vmem:[#allocation2 + $0x3b0] sm:$0xff] %v4740_v9  ;;  %v6811_v13 = vld [vmem:[%s10691_s0 + $0x8c0] sm:$0xf] }
 0x45e   :  { %v3930_v18 = vpop.f32.mrf.mxu2  ;;  %v2935_v24 = vpop.f32.mrf.mxu0 }
 0x45f   :  { %v4429_v19 = vpop.f32.mrf.mxu3  ;;  %v5417_v22 = vmax.f32 %v5413_v15, %v5415_v16  ;;  %v3931_v23 = vadd.f32 %v3930_v18, %v3432_v17  ;;  %v3434_v25 = vpop.f32.mrf.mxu1  ;;  %v2936_v28 = vadd.f32 %v9608_v1, %v2935_v24  ;;  %v7665_v15 = vld [vmem:[%s10691_s0 + $0x8c4] sm:$0xf]  ;;  %v6813_v17 = vld [vmem:[%s10691_s0 + $0x8d0] sm:$0xf0]  ;;  %v6819_v18 = vld [vmem:[%s10691_s0 + $0x8c8] sm:$0xf] }
 0x461   :  { %5419 = vst [vmem:[%s10692_s3 + $0xe0] sm:$0xff] %v5417_v22  ;;  %v4430_v29 = vadd.f32 %v4429_v19, %v3931_v23  ;;  %2974 = vmatmul.bf16.gmra.mxu0 %v6780_v20  ;;  %v3435_v33 = vadd.f32 %v3434_v25, %v2936_v28  ;;  %v7668_v19 = vld [vmem:[%s10691_s0 + $0x8d4] sm:$0xf0]  ;;  %v7666_v20 = vld [vmem:[%s10691_s0 + $0x8cc] sm:$0xf]  ;;  %v6812_v25 = vor.u32 %v7667_v14, %v6811_v13 }
 0x462   :  { %3473 = vmatmul.bf16.gmra.mxu1 %v6784_v21  ;;  %v6821_v21 = vld [vmem:[%s10691_s0 + $0x8d8] sm:$0xf0]  ;;  %v6820_v30 = vor.u32 %v7668_v19, %v6819_v18  ;;  %v7675_v18 = vld [vmem:[%s10691_s0 + $0x90c] sm:$0xf0]  ;;  %v7673_v19 = vld [vmem:[%s10691_s0 + $0x904] sm:$0xf] }
 0x463   :  { %v4741_v32 = vmax.f32 %v4430_v29, 0.0  ;;  %3972 = vmatmul.bf16.gmra.mxu2 %v6788_v26  ;;  %v6816_v26 = vor.u32 %v7665_v15, %v6813_v17  ;;  %v6824_v31 = vor.u32 %v7666_v20, %v6821_v21  ;;  %v6843_v17 = vld [vmem:[%s10691_s0 + $0x900] sm:$0xf]  ;;  %v6845_v20 = vld [vmem:[%s10691_s0 + $0x910] sm:$0xf0] }
 0x464   :  { %4471 = vmatmul.bf16.gmra.mxu3 %v6792_v27  ;;  %v5408_v34 = vld [vmem:[#allocation2 + $0x3ac] ss:$2 sm:$0x3f]  ;;  %v5412_v35 = vld [vmem:[#allocation2 + $0x3ad] ss:$2 sm:$0x3f] }
 0x465   :  { %v5416_v37 = vmax.f32 %v5408_v34, %v5412_v35  ;;  %4937 = vst [vmem:[#allocation2 + $0x3b8] sm:$0xff] %v4741_v32 }
 0x466   :  { %v3933_v38 = vpop.f32.mrf.mxu2  ;;  %v2937_v42 = vpop.f32.mrf.mxu0 }
 0x467   :  { %v4432_v39 = vpop.f32.mrf.mxu3  ;;  %v5418_v40 = vmax.f32 %v5414_v36, %v5416_v37  ;;  %v3934_v41 = vadd.f32 %v3933_v38, %v3435_v33  ;;  %v3436_v43 = vpop.f32.mrf.mxu1  ;;  %v2938_v45 = vadd.f32 %v9608_v1, %v2937_v42 }
 0x469   :  { %5420 = vst [vmem:[%s10692_s3 + $0xe8] sm:$0x3f] %v5418_v40  ;;  %v4433_v44 = vadd.f32 %v4432_v39, %v3934_v41  ;;  %v3437_v0 = vadd.f32 %v3436_v43, %v2938_v45  ;;  %v6827_v43 = vld [vmem:[%s10691_s0 + $0x8e0] sm:$0xf]  ;;  %v7669_v45 = vld [vmem:[%s10691_s0 + $0x8e4] sm:$0xf] }
 0x46b   :  { %v4742_v49 = vmax.f32 %v4433_v44, 0.0  ;;  %v7671_v44 = vld [vmem:[%s10691_s0 + $0x8ec] sm:$0xf0] }
 0x46d   :  { %4938 = vst [vmem:[#allocation2 + $0x3c0] sm:$0xff] %v4742_v49  ;;  %v7672_v49 = vld [vmem:[%s10691_s0 + $0x8f4] sm:$0xf0] }
 0x46e   :  { %v3935_v53 = vpop.f32.mrf.mxu2  ;;  %v2940_v57 = vpop.f32.mrf.mxu0 }
 0x46f   :  { %v4434_v54 = vpop.f32.mrf.mxu3  ;;  %v3936_v3 = vadd.f32 %v3935_v53, %v3437_v0  ;;  %v3439_v58 = vpop.f32.mrf.mxu1  ;;  %v2941_v61 = vadd.f32 %v9608_v1, %v2940_v57  ;;  %v6828_v0 = vor.u32 %v7671_v44, %v6827_v43  ;;  %v6832_v53 = vor.u32 %v7669_v45, %v6829_v47 }
 0x470   :  { %v6840_v57 = vor.u32 %v7670_v8, %v6837_v50 }
 0x471   :  { %v4435_v62 = vadd.f32 %v4434_v54, %v3936_v3  ;;  %2979 = vmatmul.bf16.gmra.mxu0 %v6796_v55  ;;  %v3440_v2 = vadd.f32 %v3439_v58, %v2941_v61  ;;  %v6836_v3 = vor.u32 %v7672_v49, %v6835_v48 }
 0x472   :  { %3478 = vmatmul.bf16.gmra.mxu1 %v6800_v56 }
 0x473   :  { %v4743_v63 = vmax.f32 %v4435_v62, 0.0  ;;  %3977 = vmatmul.bf16.gmra.mxu2 %v6804_v59 }
 0x474   :  { %4476 = vmatmul.bf16.gmra.mxu3 %v6808_v60  ;;  %v5422_v60 = vld [vmem:[#allocation2 + $0x3b8] ss:$2 sm:$0xff]  ;;  %v5426_v61 = vld [vmem:[#allocation2 + $0x3b9] ss:$2 sm:$0xff] }
 0x475   :  { %4939 = vst [vmem:[#allocation2 + $0x3c8] sm:$0xff] %v4743_v63 }
 0x476   :  { %v3938_v4 = vpop.f32.mrf.mxu2  ;;  %v2942_v9 = vpop.f32.mrf.mxu0 }
 0x477   :  { %v4437_v6 = vpop.f32.mrf.mxu3  ;;  %v3939_v7 = vadd.f32 %v3938_v4, %v3440_v2  ;;  %v3441_v10 = vpop.f32.mrf.mxu1  ;;  %v2943_v12 = vadd.f32 %v9608_v1, %v2942_v9 }
 0x479   :  { %v4438_v11 = vadd.f32 %v4437_v6, %v3939_v7  ;;  %v3442_v22 = vadd.f32 %v3441_v10, %v2943_v12  ;;  %v5437_v6 = vmax.f32 %v5422_v60, %v5426_v61 }
 0x47b   :  { %v4744_v16 = vmax.f32 %v4438_v11, 0.0 }
 0x47d   :  { %4940 = vst [vmem:[#allocation2 + $0x3d0] sm:$0xff] %v4744_v16 }
 0x47e   :  { %v3940_v23 = vpop.f32.mrf.mxu2  ;;  %v2945_v28 = vpop.f32.mrf.mxu0 }
 0x47f   :  { %v4439_v24 = vpop.f32.mrf.mxu3  ;;  %v3941_v27 = vadd.f32 %v3940_v23, %v3442_v22  ;;  %v3444_v29 = vpop.f32.mrf.mxu1  ;;  %v2946_v32 = vadd.f32 %v9608_v1, %v2945_v28  ;;  %v6851_v23 = vld [vmem:[%s10691_s0 + $0x908] sm:$0xf] }
 0x481   :  { %v4440_v33 = vadd.f32 %v4439_v24, %v3941_v27  ;;  %2984 = vmatmul.bf16.gmra.mxu0 %v6812_v25  ;;  %v3445_v35 = vadd.f32 %v3444_v29, %v2946_v32  ;;  %v7676_v24 = vld [vmem:[%s10691_s0 + $0x914] sm:$0xf0]  ;;  %v6853_v27 = vld [vmem:[%s10691_s0 + $0x918] sm:$0xf0] }
 0x482   :  { %3483 = vmatmul.bf16.gmra.mxu1 %v6816_v26  ;;  %v7674_v26 = vld [vmem:[%s10691_s0 + $0x90c] sm:$0xf] }
 0x483   :  { %v4745_v34 = vmax.f32 %v4440_v33, 0.0  ;;  %3982 = vmatmul.bf16.gmra.mxu2 %v6820_v30 }
 0x484   :  { %4481 = vmatmul.bf16.gmra.mxu3 %v6824_v31  ;;  %v5424_v21 = vld [vmem:[#allocation2 + $0x3c8] ss:$2 sm:$0x3f]  ;;  %v5428_v22 = vld [vmem:[#allocation2 + $0x3c9] ss:$2 sm:$0x3f] }
 0x485   :  { %4941 = vst [vmem:[#allocation2 + $0x3d8] sm:$0xff] %v4745_v34  ;;  %v5438_v30 = vmax.f32 %v5424_v21, %v5428_v22  ;;  %v6875_v21 = vld [vmem:[%s10691_s0 + $0x940] sm:$0xf]  ;;  %v7683_v22 = vld [vmem:[%s10691_s0 + $0x94c] sm:$0xf0] }
 0x486   :  { %v3943_v36 = vpop.f32.mrf.mxu2  ;;  %v2947_v39 = vpop.f32.mrf.mxu0 }
 0x487   :  { %v4442_v37 = vpop.f32.mrf.mxu3  ;;  %v3944_v38 = vadd.f32 %v3943_v36, %v3445_v35  ;;  %v3446_v40 = vpop.f32.mrf.mxu1  ;;  %v2948_v42 = vadd.f32 %v9608_v1, %v2947_v39  ;;  %v6844_v35 = vor.u32 %v7675_v18, %v6843_v17  ;;  %v6848_v36 = vor.u32 %v7673_v19, %v6845_v20 }
 0x489   :  { %v4443_v41 = vadd.f32 %v4442_v37, %v3944_v38  ;;  %v3447_v51 = vadd.f32 %v3446_v40, %v2948_v42  ;;  %v6856_v42 = vor.u32 %v7674_v26, %v6853_v27  ;;  %v6883_v26 = vld [vmem:[%s10691_s0 + $0x948] sm:$0xf]  ;;  %v7684_v27 = vld [vmem:[%s10691_s0 + $0x954] sm:$0xf0] }
 0x48b   :  { %v4746_v46 = vmax.f32 %v4443_v41, 0.0  ;;  %v6852_v41 = vor.u32 %v7676_v24, %v6851_v23  ;;  %v7681_v23 = vld [vmem:[%s10691_s0 + $0x944] sm:$0xf] }
 0x48d   :  { %4942 = vst [vmem:[#allocation2 + $0x3e0] sm:$0xff] %v4746_v46 }
 0x48e   :  { %v3945_v52 = vpop.f32.mrf.mxu2  ;;  %v2950_v55 = vpop.f32.mrf.mxu0 }
 0x48f   :  { %v4444_v5 = vpop.f32.mrf.mxu3  ;;  %v3946_v54 = vadd.f32 %v3945_v52, %v3447_v51  ;;  %v3449_v56 = vpop.f32.mrf.mxu1  ;;  %v2951_v58 = vadd.f32 %v9608_v1, %v2950_v55  ;;  %v6861_v55 = vld [vmem:[%s10691_s0 + $0x930] sm:$0xf0] }
 0x491   :  { %v4445_v59 = vadd.f32 %v4444_v5, %v3946_v54  ;;  %2989 = vmatmul.bf16.gmra.mxu0 %v6828_v0  ;;  %v3450_v63 = vadd.f32 %v3449_v56, %v2951_v58  ;;  %v6859_v5 = vld [vmem:[%s10691_s0 + $0x920] sm:$0xf]  ;;  %v7679_v0 = vld [vmem:[%s10691_s0 + $0x92c] sm:$0xf0]  ;;  %v7680_v56 = vld [vmem:[%s10691_s0 + $0x934] sm:$0xf0] }
 0x492   :  { %3488 = vmatmul.bf16.gmra.mxu1 %v6832_v53  ;;  %v7677_v53 = vld [vmem:[%s10691_s0 + $0x924] sm:$0xf]  ;;  %v6860_v61 = vor.u32 %v7679_v0, %v6859_v5  ;;  %v7687_v5 = vld [vmem:[%s10691_s0 + $0x96c] sm:$0xf0] }
 0x493   :  { %v4747_v62 = vmax.f32 %v4445_v59, 0.0  ;;  %3987 = vmatmul.bf16.gmra.mxu2 %v6836_v3  ;;  %v7678_v3 = vld [vmem:[%s10691_s0 + $0x92c] sm:$0xf]  ;;  %v7685_v0 = vld [vmem:[%s10691_s0 + $0x964] sm:$0xf] }
 0x494   :  { %4486 = vmatmul.bf16.gmra.mxu3 %v6840_v57  ;;  %v5430_v2 = vld [vmem:[#allocation2 + $0x3d4] ss:$2 sm:$0xff]  ;;  %v5434_v4 = vld [vmem:[#allocation2 + $0x3d5] ss:$2 sm:$0xff] }
 0x495   :  { %v5439_v7 = vmax.f32 %v5430_v2, %v5434_v4  ;;  %4943 = vst [vmem:[#allocation2 + $0x3e8] sm:$0xff] %v4747_v62  ;;  %v6869_v57 = vld [vmem:[%s10691_s0 + $0x938] sm:$0xf0]  ;;  %v6864_v62 = vor.u32 %v7677_v53, %v6861_v55  ;;  %v6893_v53 = vld [vmem:[%s10691_s0 + $0x970] sm:$0xf0] }
 0x496   :  { %v3948_v9 = vpop.f32.mrf.mxu2  ;;  %v2952_v13 = vpop.f32.mrf.mxu0 }
 0x497   :  { %v4447_v10 = vpop.f32.mrf.mxu3  ;;  %v5441_v11 = vmax.f32 %v5437_v6, %v5439_v7  ;;  %v3949_v12 = vadd.f32 %v3948_v9, %v3450_v63  ;;  %v3451_v14 = vpop.f32.mrf.mxu1  ;;  %v2953_v16 = vadd.f32 %v9608_v1, %v2952_v13  ;;  %v6872_v7 = vor.u32 %v7678_v3, %v6869_v57  ;;  %v9975_v9 = vld [vmem:[%s10690_s2] ss:$0 sm:$0xff] }
 0x499   :  { %5443 = vst [vmem:[%s10692_s3 + $0xee] sm:$0xff] %v5441_v11  ;;  %v4448_v15 = vadd.f32 %v4447_v10, %v3949_v12  ;;  %v3452_v32 = vadd.f32 %v3451_v14, %v2953_v16 }
 0x49b   :  { %v4748_v25 = vmax.f32 %v4448_v15, 0.0 }
 0x49c   :  { %v5432_v28 = vld [vmem:[#allocation2 + $0x3e4] ss:$2 sm:$0x3f]  ;;  %v5436_v29 = vld [vmem:[#allocation2 + $0x3e5] ss:$2 sm:$0x3f] }
 0x49d   :  { %v5440_v31 = vmax.f32 %v5432_v28, %v5436_v29  ;;  %4944 = vst [vmem:[#allocation2 + $0x3f0] sm:$0xff] %v4748_v25  ;;  %v6877_v25 = vld [vmem:[%s10691_s0 + $0x950] sm:$0xf0]  ;;  %v7682_v28 = vld [vmem:[%s10691_s0 + $0x94c] sm:$0xf] }
 0x49e   :  { %v3950_v33 = vpop.f32.mrf.mxu2  ;;  %v2955_v39 = vpop.f32.mrf.mxu0  ;;  %v6885_v29 = vld [vmem:[%s10691_s0 + $0x958] sm:$0xf0] }
 0x49f   :  { %v4449_v34 = vpop.f32.mrf.mxu3  ;;  %v5442_v37 = vmax.f32 %v5438_v30, %v5440_v31  ;;  %v3951_v38 = vadd.f32 %v3950_v33, %v3452_v32  ;;  %v3454_v40 = vpop.f32.mrf.mxu1  ;;  %v2956_v43 = vadd.f32 %v9608_v1, %v2955_v39  ;;  %v6876_v33 = vor.u32 %v7683_v22, %v6875_v21 }
 0x4a0   :  { %v6888_v39 = vor.u32 %v7682_v28, %v6885_v29 }
 0x4a1   :  { %5444 = vst [vmem:[%s10692_s3 + $0xf6] sm:$0x3f] %v5442_v37  ;;  %v4450_v44 = vadd.f32 %v4449_v34, %v3951_v38  ;;  %2994 = vmatmul.bf16.gmra.mxu0 %v6844_v35  ;;  %v3455_v46 = vadd.f32 %v3454_v40, %v2956_v43  ;;  %v6880_v34 = vor.u32 %v7681_v23, %v6877_v25 }
 0x4a2   :  { %3493 = vmatmul.bf16.gmra.mxu1 %v6848_v36  ;;  %v6884_v38 = vor.u32 %v7684_v27, %v6883_v26 }
 0x4a3   :  { %v4749_v45 = vmax.f32 %v4450_v44, 0.0  ;;  %3992 = vmatmul.bf16.gmra.mxu2 %v6852_v41 }
 0x4a4   :  { %4491 = vmatmul.bf16.gmra.mxu3 %v6856_v42 }
 0x4a5   :  { %4945 = vst [vmem:[#allocation2 + $0x3f8] sm:$0xff] %v4749_v45 }
 0x4a6   :  { %v3953_v47 = vpop.f32.mrf.mxu2  ;;  %v2957_v8 = vpop.f32.mrf.mxu0 }
 0x4a7   :  { %v4452_v48 = vpop.f32.mrf.mxu3  ;;  %v3954_v49 = vadd.f32 %v3953_v47, %v3455_v46  ;;  %v3456_v50 = vpop.f32.mrf.mxu1  ;;  %v2958_v52 = vadd.f32 %v9608_v1, %v2957_v8  ;;  %v6867_v1 = vld [vmem:[%s10691_s0 + $0x928] sm:$0xf] }
 0x4a8   :  { %v6868_v6 = vor.u32 %v7680_v56, %v6867_v1  ;;  %v7688_v1 = vld [vmem:[%s10691_s0 + $0x974] sm:$0xf0]  ;;  %v7686_v56 = vld [vmem:[%s10691_s0 + $0x96c] sm:$0xf] }
 0x4a9   :  { %v4453_v51 = vadd.f32 %v4452_v48, %v3954_v49  ;;  %v3457_v58 = vadd.f32 %v3456_v50, %v2958_v52  ;;  %v6891_v52 = vld [vmem:[%s10691_s0 + $0x960] sm:$0xf] }
 0x4ab   :  { %v4750_v54 = vmax.f32 %v4453_v51, 0.0 }
 0x4ac   :  { %v5446_v49 = vld [vmem:[#allocation2 + $0x3f0] ss:$2 sm:$0xff]  ;;  %v5450_v8 = vld [vmem:[#allocation2 + $0x3f1] ss:$2 sm:$0xff] }
 0x4ad   :  { %4946 = vst [vmem:[#allocation2 + $0x400] sm:$0xff] %v4750_v54  ;;  %v6899_v54 = vld [vmem:[%s10691_s0 + $0x968] sm:$0xf] }
 0x4ae   :  { %v3955_v59 = vpop.f32.mrf.mxu2  ;;  %v2960_v2 = vpop.f32.mrf.mxu0 }
 0x4af   :  { %v4454_v60 = vpop.f32.mrf.mxu3  ;;  %v3956_v63 = vadd.f32 %v3955_v59, %v3457_v58  ;;  %v3459_v4 = vpop.f32.mrf.mxu1  ;;  %v2961_v10 = vadd.f32 %v9975_v9, %v2960_v2  ;;  %v6901_v58 = vld [vmem:[%s10691_s0 + $0x978] sm:$0xf0]  ;;  %v5461_v59 = vmax.f32 %v5446_v49, %v5450_v8  ;;  %v6892_v2 = vor.u32 %v7687_v5, %v6891_v52 }
 0x4b1   :  { %v4455_v11 = vadd.f32 %v4454_v60, %v3956_v63  ;;  %2999 = vmatmul.bf16.gmra.mxu0 %v6860_v61  ;;  %v3460_v13 = vadd.f32 %v3459_v4, %v2961_v10  ;;  %v6896_v4 = vor.u32 %v7685_v0, %v6893_v53 }
 0x4b2   :  { %3498 = vmatmul.bf16.gmra.mxu1 %v6864_v62 }
 0x4b3   :  { %v4751_v12 = vmax.f32 %v4455_v11, 0.0  ;;  %3997 = vmatmul.bf16.gmra.mxu2 %v6868_v6 }
 0x4b4   :  { %4496 = vmatmul.bf16.gmra.mxu3 %v6872_v7 }
 0x4b5   :  { %4947 = vst [vmem:[#allocation2 + $0x408] sm:$0xff] %v4751_v12  ;;  %v6900_v12 = vor.u32 %v7688_v1, %v6899_v54 }
 0x4b6   :  { %v3958_v14 = vpop.f32.mrf.mxu2  ;;  %v2962_v17 = vpop.f32.mrf.mxu0 }
 0x4b7   :  { %v4457_v15 = vpop.f32.mrf.mxu3  ;;  %v3959_v16 = vadd.f32 %v3958_v14, %v3460_v13  ;;  %v3461_v18 = vpop.f32.mrf.mxu1  ;;  %v2963_v20 = vadd.f32 %v9975_v9, %v2962_v17  ;;  %v6904_v13 = vor.u32 %v7686_v56, %v6901_v58  ;;  %v7695_v58 = vld [vmem:[%s10691_s0 + $0x9ac] sm:$0xf0] }
 0x4b9   :  { %v4458_v19 = vadd.f32 %v4457_v15, %v3959_v16  ;;  %v3462_v30 = vadd.f32 %v3461_v18, %v2963_v20 }
 0x4bb   :  { %v4752_v24 = vmax.f32 %v4458_v19, 0.0 }
 0x4bc   :  { %v5448_v16 = vld [vmem:[#allocation2 + $0x400] ss:$2 sm:$0x3f]  ;;  %v5452_v17 = vld [vmem:[#allocation2 + $0x401] ss:$2 sm:$0x3f] }
 0x4bd   :  { %4948 = vst [vmem:[#allocation2 + $0x410] sm:$0xff] %v4752_v24  ;;  %v5462_v22 = vmax.f32 %v5448_v16, %v5452_v17 }
 0x4be   :  { %v3960_v31 = vpop.f32.mrf.mxu2  ;;  %v2965_v36 = vpop.f32.mrf.mxu0 }
 0x4bf   :  { %v4459_v32 = vpop.f32.mrf.mxu3  ;;  %v3961_v35 = vadd.f32 %v3960_v31, %v3462_v30  ;;  %v3464_v37 = vpop.f32.mrf.mxu1  ;;  %v2966_v40 = vadd.f32 %v9975_v9, %v2965_v36  ;;  %v6909_v36 = vld [vmem:[%s10691_s0 + $0x990] sm:$0xf0] }
 0x4c1   :  { %v4460_v41 = vadd.f32 %v4459_v32, %v3961_v35  ;;  %3004 = vmatmul.bf16.gmra.mxu0 %v6876_v33  ;;  %v3465_v43 = vadd.f32 %v3464_v37, %v2966_v40  ;;  %v6907_v32 = vld [vmem:[%s10691_s0 + $0x980] sm:$0xf]  ;;  %v7691_v33 = vld [vmem:[%s10691_s0 + $0x98c] sm:$0xf0]  ;;  %v6915_v37 = vld [vmem:[%s10691_s0 + $0x988] sm:$0xf] }
 0x4c2   :  { %3503 = vmatmul.bf16.gmra.mxu1 %v6880_v34  ;;  %v7689_v34 = vld [vmem:[%s10691_s0 + $0x984] sm:$0xf]  ;;  %v6917_v40 = vld [vmem:[%s10691_s0 + $0x998] sm:$0xf0] }
 0x4c3   :  { %v4753_v42 = vmax.f32 %v4460_v41, 0.0  ;;  %4002 = vmatmul.bf16.gmra.mxu2 %v6884_v38  ;;  %v7692_v38 = vld [vmem:[%s10691_s0 + $0x994] sm:$0xf0] }
 0x4c4   :  { %4501 = vmatmul.bf16.gmra.mxu3 %v6888_v39  ;;  %v7690_v39 = vld [vmem:[%s10691_s0 + $0x98c] sm:$0xf]  ;;  %v6916_v49 = vor.u32 %v7692_v38, %v6915_v37  ;;  %v6949_v37 = vld [vmem:[%s10691_s0 + $0x9d8] sm:$0xf0] }
 0x4c5   :  { %4949 = vst [vmem:[#allocation2 + $0x418] sm:$0xff] %v4753_v42  ;;  %v6920_v8 = vor.u32 %v7690_v39, %v6917_v40 }
 0x4c6   :  { %v3963_v44 = vpop.f32.mrf.mxu2  ;;  %v2967_v47 = vpop.f32.mrf.mxu0 }
 0x4c7   :  { %v4462_v45 = vpop.f32.mrf.mxu3  ;;  %v3964_v46 = vadd.f32 %v3963_v44, %v3465_v43  ;;  %v3466_v48 = vpop.f32.mrf.mxu1  ;;  %v2968_v51 = vadd.f32 %v9975_v9, %v2967_v47  ;;  %v6908_v44 = vor.u32 %v7691_v33, %v6907_v32  ;;  %v6941_v33 = vld [vmem:[%s10691_s0 + $0x9d0] sm:$0xf0] }
 0x4c9   :  { %v4463_v50 = vadd.f32 %v4462_v45, %v3964_v46  ;;  %v3467_v61 = vadd.f32 %v3466_v48, %v2968_v51  ;;  %v6912_v45 = vor.u32 %v7689_v34, %v6909_v36  ;;  %v6947_v34 = vld [vmem:[%s10691_s0 + $0x9c8] sm:$0xf]  ;;  %v7698_v36 = vld [vmem:[%s10691_s0 + $0x9cc] sm:$0xf] }
 0x4cb   :  { %v4754_v55 = vmax.f32 %v4463_v50, 0.0 }
 0x4cc   :  { %v5454_v3 = vld [vmem:[#allocation2 + $0x40c] ss:$2 sm:$0xff]  ;;  %v5458_v57 = vld [vmem:[#allocation2 + $0x40d] ss:$2 sm:$0xff] }
 0x4cd   :  { %v5463_v60 = vmax.f32 %v5454_v3, %v5458_v57  ;;  %4950 = vst [vmem:[#allocation2 + $0x420] sm:$0xff] %v4754_v55  ;;  %v6923_v57 = vld [vmem:[%s10691_s0 + $0x9a0] sm:$0xf] }
 0x4ce   :  { %v3965_v62 = vpop.f32.mrf.mxu2  ;;  %v2970_v10 = vpop.f32.mrf.mxu0 }
 0x4cf   :  { %v4464_v63 = vpop.f32.mrf.mxu3  ;;  %v5465_v6 = vmax.f32 %v5461_v59, %v5463_v60  ;;  %v3966_v7 = vadd.f32 %v3965_v62, %v3467_v61  ;;  %v3469_v11 = vpop.f32.mrf.mxu1  ;;  %v2971_v14 = vadd.f32 %v9975_v9, %v2970_v10  ;;  %v7693_v59 = vld [vmem:[%s10691_s0 + $0x9a4] sm:$0xf]  ;;  %v6925_v61 = vld [vmem:[%s10691_s0 + $0x9b0] sm:$0xf0]  ;;  %v6931_v62 = vld [vmem:[%s10691_s0 + $0x9a8] sm:$0xf] }
 0x4d1   :  { %5467 = vst [vmem:[%s10692_s3 + $0xfc] sm:$0xff] %v5465_v6  ;;  %v4465_v15 = vadd.f32 %v4464_v63, %v3966_v7  ;;  %3009 = vmatmul.bf16.gmra.mxu0 %v6892_v2  ;;  %v3470_v19 = vadd.f32 %v3469_v11, %v2971_v14  ;;  %v7696_v63 = vld [vmem:[%s10691_s0 + $0x9b4] sm:$0xf0]  ;;  %v7694_v2 = vld [vmem:[%s10691_s0 + $0x9ac] sm:$0xf]  ;;  %v6924_v11 = vor.u32 %v7695_v58, %v6923_v57 }
 0x4d2   :  { %3508 = vmatmul.bf16.gmra.mxu1 %v6896_v4  ;;  %v6933_v4 = vld [vmem:[%s10691_s0 + $0x9b8] sm:$0xf0]  ;;  %v6932_v16 = vor.u32 %v7696_v63, %v6931_v62  ;;  %v7703_v62 = vld [vmem:[%s10691_s0 + $0x9ec] sm:$0xf0]  ;;  %v7701_v63 = vld [vmem:[%s10691_s0 + $0x9e4] sm:$0xf] }
 0x4d3   :  { %v4755_v18 = vmax.f32 %v4465_v15, 0.0  ;;  %4007 = vmatmul.bf16.gmra.mxu2 %v6900_v12  ;;  %v6928_v12 = vor.u32 %v7693_v59, %v6925_v61  ;;  %v6936_v17 = vor.u32 %v7694_v2, %v6933_v4  ;;  %v6955_v61 = vld [vmem:[%s10691_s0 + $0x9e0] sm:$0xf]  ;;  %v6957_v2 = vld [vmem:[%s10691_s0 + $0x9f0] sm:$0xf0] }
 0x4d4   :  { %4506 = vmatmul.bf16.gmra.mxu3 %v6904_v13  ;;  %v5456_v20 = vld [vmem:[#allocation2 + $0x41c] ss:$2 sm:$0x3f]  ;;  %v5460_v21 = vld [vmem:[#allocation2 + $0x41d] ss:$2 sm:$0x3f] }
 0x4d5   :  { %v5464_v23 = vmax.f32 %v5456_v20, %v5460_v21  ;;  %4951 = vst [vmem:[#allocation2 + $0x428] sm:$0xff] %v4755_v18 }
 0x4d6   :  { %v3968_v24 = vpop.f32.mrf.mxu2  ;;  %v2972_v28 = vpop.f32.mrf.mxu0 }
 0x4d7   :  { %v4467_v25 = vpop.f32.mrf.mxu3  ;;  %v5466_v26 = vmax.f32 %v5462_v22, %v5464_v23  ;;  %v3969_v27 = vadd.f32 %v3968_v24, %v3470_v19  ;;  %v3471_v29 = vpop.f32.mrf.mxu1  ;;  %v2973_v31 = vadd.f32 %v9975_v9, %v2972_v28 }
 0x4d9   :  { %5468 = vst [vmem:[%s10692_s3 + $0x104] sm:$0x3f] %v5466_v26  ;;  %v4468_v30 = vadd.f32 %v4467_v25, %v3969_v27  ;;  %v3472_v41 = vadd.f32 %v3471_v29, %v2973_v31  ;;  %v6939_v29 = vld [vmem:[%s10691_s0 + $0x9c0] sm:$0xf]  ;;  %v7697_v31 = vld [vmem:[%s10691_s0 + $0x9c4] sm:$0xf] }
 0x4db   :  { %v4756_v35 = vmax.f32 %v4468_v30, 0.0  ;;  %v7699_v30 = vld [vmem:[%s10691_s0 + $0x9cc] sm:$0xf0] }
 0x4dd   :  { %4952 = vst [vmem:[#allocation2 + $0x430] sm:$0xff] %v4756_v35  ;;  %v7700_v35 = vld [vmem:[%s10691_s0 + $0x9d4] sm:$0xf0] }
 0x4de   :  { %v3970_v42 = vpop.f32.mrf.mxu2  ;;  %v2975_v47 = vpop.f32.mrf.mxu0 }
 0x4df   :  { %v4469_v43 = vpop.f32.mrf.mxu3  ;;  %v3971_v46 = vadd.f32 %v3970_v42, %v3472_v41  ;;  %v3474_v48 = vpop.f32.mrf.mxu1  ;;  %v2976_v50 = vadd.f32 %v9975_v9, %v2975_v47  ;;  %v6940_v41 = vor.u32 %v7699_v30, %v6939_v29  ;;  %v6944_v42 = vor.u32 %v7697_v31, %v6941_v33 }
 0x4e0   :  { %v6952_v47 = vor.u32 %v7698_v36, %v6949_v37 }
 0x4e1   :  { %v4470_v51 = vadd.f32 %v4469_v43, %v3971_v46  ;;  %3014 = vmatmul.bf16.gmra.mxu0 %v6908_v44  ;;  %v3475_v5 = vadd.f32 %v3474_v48, %v2976_v50  ;;  %v6948_v46 = vor.u32 %v7700_v35, %v6947_v34 }
 0x4e2   :  { %3513 = vmatmul.bf16.gmra.mxu1 %v6912_v45 }
 0x4e3   :  { %v4757_v52 = vmax.f32 %v4470_v51, 0.0  ;;  %4012 = vmatmul.bf16.gmra.mxu2 %v6916_v49 }
 0x4e4   :  { %4511 = vmatmul.bf16.gmra.mxu3 %v6920_v8  ;;  %v5470_v8 = vld [vmem:[#allocation2 + $0x428] ss:$2 sm:$0xff]  ;;  %v5474_v50 = vld [vmem:[#allocation2 + $0x429] ss:$2 sm:$0xff] }
 0x4e5   :  { %4953 = vst [vmem:[#allocation2 + $0x438] sm:$0xff] %v4757_v52 }
 0x4e6   :  { %v3973_v0 = vpop.f32.mrf.mxu2  ;;  %v2977_v55 = vpop.f32.mrf.mxu0 }
 0x4e7   :  { %v4472_v53 = vpop.f32.mrf.mxu3  ;;  %v3974_v54 = vadd.f32 %v3973_v0, %v3475_v5  ;;  %v3476_v1 = vpop.f32.mrf.mxu1  ;;  %v2978_v3 = vadd.f32 %v9975_v9, %v2977_v55 }
 0x4e9   :  { %v4473_v56 = vadd.f32 %v4472_v53, %v3974_v54  ;;  %v3477_v6 = vadd.f32 %v3476_v1, %v2978_v3  ;;  %v5485_v53 = vmax.f32 %v5470_v8, %v5474_v50 }
 0x4eb   :  { %v4758_v60 = vmax.f32 %v4473_v56, 0.0 }
 0x4ed   :  { %4954 = vst [vmem:[#allocation2 + $0x440] sm:$0xff] %v4758_v60 }
 0x4ee   :  { %v3975_v7 = vpop.f32.mrf.mxu2  ;;  %v2980_v14 = vpop.f32.mrf.mxu0 }
 0x4ef   :  { %v4474_v10 = vpop.f32.mrf.mxu3  ;;  %v3976_v13 = vadd.f32 %v3975_v7, %v3477_v6  ;;  %v3479_v15 = vpop.f32.mrf.mxu1  ;;  %v2981_v18 = vadd.f32 %v9975_v9, %v2980_v14  ;;  %v6963_v7 = vld [vmem:[%s10691_s0 + $0x9e8] sm:$0xf] }
 0x4f1   :  { %v4475_v19 = vadd.f32 %v4474_v10, %v3976_v13  ;;  %3019 = vmatmul.bf16.gmra.mxu0 %v6924_v11  ;;  %v3480_v21 = vadd.f32 %v3479_v15, %v2981_v18  ;;  %v7704_v10 = vld [vmem:[%s10691_s0 + $0x9f4] sm:$0xf0]  ;;  %v6965_v13 = vld [vmem:[%s10691_s0 + $0x9f8] sm:$0xf0] }
 0x4f2   :  { %3518 = vmatmul.bf16.gmra.mxu1 %v6928_v12  ;;  %v7702_v12 = vld [vmem:[%s10691_s0 + $0x9ec] sm:$0xf] }
 0x4f3   :  { %v4759_v20 = vmax.f32 %v4475_v19, 0.0  ;;  %4017 = vmatmul.bf16.gmra.mxu2 %v6932_v16 }
 0x4f4   :  { %4516 = vmatmul.bf16.gmra.mxu3 %v6936_v17  ;;  %v5472_v4 = vld [vmem:[#allocation2 + $0x438] ss:$2 sm:$0x3f]  ;;  %v5476_v6 = vld [vmem:[#allocation2 + $0x439] ss:$2 sm:$0x3f] }
 0x4f5   :  { %4955 = vst [vmem:[#allocation2 + $0x448] sm:$0xff] %v4759_v20  ;;  %v5486_v16 = vmax.f32 %v5472_v4, %v5476_v6  ;;  %v6987_v4 = vld [vmem:[%s10691_s0 + $0xa20] sm:$0xf]  ;;  %v7711_v6 = vld [vmem:[%s10691_s0 + $0xa2c] sm:$0xf0] }
 0x4f6   :  { %v3978_v22 = vpop.f32.mrf.mxu2  ;;  %v2982_v25 = vpop.f32.mrf.mxu0 }
 0x4f7   :  { %v4477_v23 = vpop.f32.mrf.mxu3  ;;  %v3979_v24 = vadd.f32 %v3978_v22, %v3480_v21  ;;  %v3481_v26 = vpop.f32.mrf.mxu1  ;;  %v2983_v28 = vadd.f32 %v9975_v9, %v2982_v25  ;;  %v6956_v21 = vor.u32 %v7703_v62, %v6955_v61  ;;  %v6960_v22 = vor.u32 %v7701_v63, %v6957_v2 }
 0x4f9   :  { %v4478_v27 = vadd.f32 %v4477_v23, %v3979_v24  ;;  %v3482_v38 = vadd.f32 %v3481_v26, %v2983_v28  ;;  %v6968_v28 = vor.u32 %v7702_v12, %v6965_v13  ;;  %v6995_v12 = vld [vmem:[%s10691_s0 + $0xa28] sm:$0xf]  ;;  %v7712_v13 = vld [vmem:[%s10691_s0 + $0xa34] sm:$0xf0] }
 0x4fb   :  { %v4760_v32 = vmax.f32 %v4478_v27, 0.0  ;;  %v6964_v27 = vor.u32 %v7704_v10, %v6963_v7  ;;  %v7709_v7 = vld [vmem:[%s10691_s0 + $0xa24] sm:$0xf] }
 0x4fd   :  { %4956 = vst [vmem:[#allocation2 + $0x450] sm:$0xff] %v4760_v32 }
 0x4fe   :  { %v3980_v39 = vpop.f32.mrf.mxu2  ;;  %v2985_v44 = vpop.f32.mrf.mxu0 }
 0x4ff   :  { %v4479_v40 = vpop.f32.mrf.mxu3  ;;  %v3981_v43 = vadd.f32 %v3980_v39, %v3482_v38  ;;  %v3484_v45 = vpop.f32.mrf.mxu1  ;;  %v2986_v48 = vadd.f32 %v9975_v9, %v2985_v44  ;;  %v6973_v44 = vld [vmem:[%s10691_s0 + $0xa10] sm:$0xf0] }
 0x501   :  { %v4480_v49 = vadd.f32 %v4479_v40, %v3981_v43  ;;  %3024 = vmatmul.bf16.gmra.mxu0 %v6940_v41  ;;  %v3485_v52 = vadd.f32 %v3484_v45, %v2986_v48  ;;  %v6971_v40 = vld [vmem:[%s10691_s0 + $0xa00] sm:$0xf]  ;;  %v7707_v41 = vld [vmem:[%s10691_s0 + $0xa0c] sm:$0xf0]  ;;  %v6979_v45 = vld [vmem:[%s10691_s0 + $0xa08] sm:$0xf] }
 0x502   :  { %3523 = vmatmul.bf16.gmra.mxu1 %v6944_v42  ;;  %v7705_v42 = vld [vmem:[%s10691_s0 + $0xa04] sm:$0xf]  ;;  %v6981_v48 = vld [vmem:[%s10691_s0 + $0xa18] sm:$0xf0] }
 0x503   :  { %v4761_v51 = vmax.f32 %v4480_v49, 0.0  ;;  %4022 = vmatmul.bf16.gmra.mxu2 %v6948_v46  ;;  %v7708_v46 = vld [vmem:[%s10691_s0 + $0xa14] sm:$0xf0] }
 0x504   :  { %4521 = vmatmul.bf16.gmra.mxu3 %v6952_v47  ;;  %v5478_v5 = vld [vmem:[#allocation2 + $0x444] ss:$2 sm:$0xff]  ;;  %v5482_v0 = vld [vmem:[#allocation2 + $0x445] ss:$2 sm:$0xff] }
 0x505   :  { %v5487_v54 = vmax.f32 %v5478_v5, %v5482_v0  ;;  %4957 = vst [vmem:[#allocation2 + $0x458] sm:$0xff] %v4761_v51  ;;  %v7706_v47 = vld [vmem:[%s10691_s0 + $0xa0c] sm:$0xf]  ;;  %v6972_v51 = vor.u32 %v7707_v41, %v6971_v40  ;;  %v7715_v40 = vld [vmem:[%s10691_s0 + $0xa4c] sm:$0xf0] }
 0x506   :  { %v3983_v55 = vpop.f32.mrf.mxu2  ;;  %v2987_v57 = vpop.f32.mrf.mxu0  ;;  %v7713_v41 = vld [vmem:[%s10691_s0 + $0xa44] sm:$0xf] }
 0x507   :  { %v4482_v1 = vpop.f32.mrf.mxu3  ;;  %v5489_v56 = vmax.f32 %v5485_v53, %v5487_v54  ;;  %v3984_v3 = vadd.f32 %v3983_v55, %v3485_v52  ;;  %v3486_v58 = vpop.f32.mrf.mxu1  ;;  %v2988_v60 = vadd.f32 %v9975_v9, %v2987_v57  ;;  %v6976_v52 = vor.u32 %v7705_v42, %v6973_v44  ;;  %v7005_v42 = vld [vmem:[%s10691_s0 + $0xa50] sm:$0xf0] }
 0x508   :  { %v6980_v54 = vor.u32 %v7708_v46, %v6979_v45  ;;  %v6984_v55 = vor.u32 %v7706_v47, %v6981_v48  ;;  %v7716_v45 = vld [vmem:[%s10691_s0 + $0xa54] sm:$0xf0]  ;;  %v7714_v46 = vld [vmem:[%s10691_s0 + $0xa4c] sm:$0xf] }
 0x509   :  { %5491 = vst [vmem:[%s10692_s3 + $0x10a] sm:$0xff] %v5489_v56  ;;  %v4483_v59 = vadd.f32 %v4482_v1, %v3984_v3  ;;  %v3487_v18 = vadd.f32 %v3486_v58, %v2988_v60 }
 0x50b   :  { %v4762_v11 = vmax.f32 %v4483_v59, 0.0 }
 0x50c   :  { %v5480_v14 = vld [vmem:[#allocation2 + $0x454] ss:$2 sm:$0x3f]  ;;  %v5484_v15 = vld [vmem:[#allocation2 + $0x455] ss:$2 sm:$0x3f] }
 0x50d   :  { %v5488_v17 = vmax.f32 %v5480_v14, %v5484_v15  ;;  %4958 = vst [vmem:[#allocation2 + $0x460] sm:$0xff] %v4762_v11  ;;  %v6989_v11 = vld [vmem:[%s10691_s0 + $0xa30] sm:$0xf0]  ;;  %v7710_v14 = vld [vmem:[%s10691_s0 + $0xa2c] sm:$0xf] }
 0x50e   :  { %v3985_v19 = vpop.f32.mrf.mxu2  ;;  %v2990_v25 = vpop.f32.mrf.mxu0  ;;  %v6997_v15 = vld [vmem:[%s10691_s0 + $0xa38] sm:$0xf0] }
 0x50f   :  { %v4484_v20 = vpop.f32.mrf.mxu3  ;;  %v5490_v23 = vmax.f32 %v5486_v16, %v5488_v17  ;;  %v3986_v24 = vadd.f32 %v3985_v19, %v3487_v18  ;;  %v3489_v26 = vpop.f32.mrf.mxu1  ;;  %v2991_v29 = vadd.f32 %v9975_v9, %v2990_v25  ;;  %v6988_v19 = vor.u32 %v7711_v6, %v6987_v4 }
 0x510   :  { %v7000_v25 = vor.u32 %v7710_v14, %v6997_v15 }
 0x511   :  { %5492 = vst [vmem:[%s10692_s3 + $0x112] sm:$0x3f] %v5490_v23  ;;  %v4485_v30 = vadd.f32 %v4484_v20, %v3986_v24  ;;  %3029 = vmatmul.bf16.gmra.mxu0 %v6956_v21  ;;  %v3490_v32 = vadd.f32 %v3489_v26, %v2991_v29  ;;  %v6992_v20 = vor.u32 %v7709_v7, %v6989_v11 }
 0x512   :  { %3528 = vmatmul.bf16.gmra.mxu1 %v6960_v22  ;;  %v6996_v24 = vor.u32 %v7712_v13, %v6995_v12 }
 0x513   :  { %v4763_v31 = vmax.f32 %v4485_v30, 0.0  ;;  %4027 = vmatmul.bf16.gmra.mxu2 %v6964_v27 }
 0x514   :  { %4526 = vmatmul.bf16.gmra.mxu3 %v6968_v28 }
 0x515   :  { %4959 = vst [vmem:[#allocation2 + $0x468] sm:$0xff] %v4763_v31 }
 0x516   :  { %v3988_v33 = vpop.f32.mrf.mxu2  ;;  %v2992_v36 = vpop.f32.mrf.mxu0 }
 0x517   :  { %v4487_v34 = vpop.f32.mrf.mxu3  ;;  %v3989_v35 = vadd.f32 %v3988_v33, %v3490_v32  ;;  %v3491_v37 = vpop.f32.mrf.mxu1  ;;  %v2993_v39 = vadd.f32 %v9975_v9, %v2992_v36 }
 0x519   :  { %v4488_v38 = vadd.f32 %v4487_v34, %v3989_v35  ;;  %v3492_v49 = vadd.f32 %v3491_v37, %v2993_v39  ;;  %v7003_v39 = vld [vmem:[%s10691_s0 + $0xa40] sm:$0xf] }
 0x51b   :  { %v4764_v43 = vmax.f32 %v4488_v38, 0.0 }
 0x51c   :  { %v5494_v35 = vld [vmem:[#allocation2 + $0x460] ss:$2 sm:$0xff]  ;;  %v5498_v36 = vld [vmem:[#allocation2 + $0x461] ss:$2 sm:$0xff] }
 0x51d   :  { %4960 = vst [vmem:[#allocation2 + $0x470] sm:$0xff] %v4764_v43  ;;  %v7011_v43 = vld [vmem:[%s10691_s0 + $0xa48] sm:$0xf] }
 0x51e   :  { %v3990_v8 = vpop.f32.mrf.mxu2  ;;  %v2995_v0 = vpop.f32.mrf.mxu0 }
 0x51f   :  { %v4489_v50 = vpop.f32.mrf.mxu3  ;;  %v3991_v5 = vadd.f32 %v3990_v8, %v3492_v49  ;;  %v3494_v53 = vpop.f32.mrf.mxu1  ;;  %v2996_v1 = vadd.f32 %v9975_v9, %v2995_v0  ;;  %v7013_v49 = vld [vmem:[%s10691_s0 + $0xa58] sm:$0xf0]  ;;  %v5509_v8 = vmax.f32 %v5494_v35, %v5498_v36  ;;  %v7004_v0 = vor.u32 %v7715_v40, %v7003_v39 }
 0x521   :  { %v4490_v56 = vadd.f32 %v4489_v50, %v3991_v5  ;;  %3034 = vmatmul.bf16.gmra.mxu0 %v6972_v51  ;;  %v3495_v57 = vadd.f32 %v3494_v53, %v2996_v1  ;;  %v7008_v53 = vor.u32 %v7713_v41, %v7005_v42 }
 0x522   :  { %3533 = vmatmul.bf16.gmra.mxu1 %v6976_v52 }
 0x523   :  { %v4765_v3 = vmax.f32 %v4490_v56, 0.0  ;;  %4032 = vmatmul.bf16.gmra.mxu2 %v6980_v54 }
 0x524   :  { %4531 = vmatmul.bf16.gmra.mxu3 %v6984_v55 }
 0x525   :  { %4961 = vst [vmem:[#allocation2 + $0x478] sm:$0xff] %v4765_v3  ;;  %v7012_v3 = vor.u32 %v7716_v45, %v7011_v43 }
 0x526   :  { %v3993_v58 = vpop.f32.mrf.mxu2  ;;  %v2997_v61 = vpop.f32.mrf.mxu0 }
 0x527   :  { %v4492_v59 = vpop.f32.mrf.mxu3  ;;  %v3994_v60 = vadd.f32 %v3993_v58, %v3495_v57  ;;  %v3496_v62 = vpop.f32.mrf.mxu1  ;;  %v2998_v2 = vadd.f32 %v9975_v9, %v2997_v61  ;;  %v7016_v57 = vor.u32 %v7714_v46, %v7013_v49  ;;  %v7723_v49 = vld [vmem:[%s10691_s0 + $0xa8c] sm:$0xf0] }
 0x529   :  { %v4493_v63 = vadd.f32 %v4492_v59, %v3994_v60  ;;  %v3497_v16 = vadd.f32 %v3496_v62, %v2998_v2 }
 0x52b   :  { %v4766_v10 = vmax.f32 %v4493_v63, 0.0 }
 0x52c   :  { %v5496_v60 = vld [vmem:[#allocation2 + $0x470] ss:$2 sm:$0x3f]  ;;  %v5500_v61 = vld [vmem:[#allocation2 + $0x471] ss:$2 sm:$0x3f] }
 0x52d   :  { %4962 = vst [vmem:[#allocation2 + $0x480] sm:$0xff] %v4766_v10  ;;  %v5510_v6 = vmax.f32 %v5496_v60, %v5500_v61 }
 0x52e   :  { %v3995_v17 = vpop.f32.mrf.mxu2  ;;  %v3000_v22 = vpop.f32.mrf.mxu0 }
 0x52f   :  { %v4494_v18 = vpop.f32.mrf.mxu3  ;;  %v3996_v21 = vadd.f32 %v3995_v17, %v3497_v16  ;;  %v3499_v23 = vpop.f32.mrf.mxu1  ;;  %v3001_v26 = vadd.f32 %v9975_v9, %v3000_v22  ;;  %v7021_v22 = vld [vmem:[%s10691_s0 + $0xa70] sm:$0xf0] }
 0x531   :  { %v4495_v27 = vadd.f32 %v4494_v18, %v3996_v21  ;;  %3039 = vmatmul.bf16.gmra.mxu0 %v6988_v19  ;;  %v3500_v29 = vadd.f32 %v3499_v23, %v3001_v26  ;;  %v7019_v18 = vld [vmem:[%s10691_s0 + $0xa60] sm:$0xf]  ;;  %v7719_v19 = vld [vmem:[%s10691_s0 + $0xa6c] sm:$0xf0]  ;;  %v7027_v23 = vld [vmem:[%s10691_s0 + $0xa68] sm:$0xf] }
 0x532   :  { %3538 = vmatmul.bf16.gmra.mxu1 %v6992_v20  ;;  %v7717_v20 = vld [vmem:[%s10691_s0 + $0xa64] sm:$0xf]  ;;  %v7029_v26 = vld [vmem:[%s10691_s0 + $0xa78] sm:$0xf0] }
 0x533   :  { %v4767_v28 = vmax.f32 %v4495_v27, 0.0  ;;  %4037 = vmatmul.bf16.gmra.mxu2 %v6996_v24  ;;  %v7720_v24 = vld [vmem:[%s10691_s0 + $0xa74] sm:$0xf0] }
 0x534   :  { %4536 = vmatmul.bf16.gmra.mxu3 %v7000_v25  ;;  %v7718_v25 = vld [vmem:[%s10691_s0 + $0xa6c] sm:$0xf]  ;;  %v7028_v35 = vor.u32 %v7720_v24, %v7027_v23  ;;  %v7061_v23 = vld [vmem:[%s10691_s0 + $0xab8] sm:$0xf0] }
 0x535   :  { %4963 = vst [vmem:[#allocation2 + $0x488] sm:$0xff] %v4767_v28  ;;  %v7032_v36 = vor.u32 %v7718_v25, %v7029_v26 }
 0x536   :  { %v3998_v30 = vpop.f32.mrf.mxu2  ;;  %v3002_v33 = vpop.f32.mrf.mxu0 }
 0x537   :  { %v4497_v31 = vpop.f32.mrf.mxu3  ;;  %v3999_v32 = vadd.f32 %v3998_v30, %v3500_v29  ;;  %v3501_v34 = vpop.f32.mrf.mxu1  ;;  %v3003_v38 = vadd.f32 %v9975_v9, %v3002_v33  ;;  %v7020_v30 = vor.u32 %v7719_v19, %v7019_v18  ;;  %v7053_v19 = vld [vmem:[%s10691_s0 + $0xab0] sm:$0xf0] }
 0x539   :  { %v4498_v37 = vadd.f32 %v4497_v31, %v3999_v32  ;;  %v3502_v51 = vadd.f32 %v3501_v34, %v3003_v38  ;;  %v7024_v31 = vor.u32 %v7717_v20, %v7021_v22  ;;  %v7059_v20 = vld [vmem:[%s10691_s0 + $0xaa8] sm:$0xf]  ;;  %v7726_v22 = vld [vmem:[%s10691_s0 + $0xaac] sm:$0xf] }
 0x53b   :  { %v4768_v44 = vmax.f32 %v4498_v37, 0.0 }
 0x53c   :  { %v5502_v47 = vld [vmem:[#allocation2 + $0x47c] ss:$2 sm:$0xff]  ;;  %v5506_v48 = vld [vmem:[#allocation2 + $0x47d] ss:$2 sm:$0xff] }
 0x53d   :  { %v5511_v50 = vmax.f32 %v5502_v47, %v5506_v48  ;;  %4964 = vst [vmem:[#allocation2 + $0x490] sm:$0xff] %v4768_v44  ;;  %v7035_v48 = vld [vmem:[%s10691_s0 + $0xa80] sm:$0xf] }
 0x53e   :  { %v4000_v52 = vpop.f32.mrf.mxu2  ;;  %v3005_v1 = vpop.f32.mrf.mxu0 }
 0x53f   :  { %v4499_v5 = vpop.f32.mrf.mxu3  ;;  %v5513_v54 = vmax.f32 %v5509_v8, %v5511_v50  ;;  %v4001_v55 = vadd.f32 %v4000_v52, %v3502_v51  ;;  %v3504_v56 = vpop.f32.mrf.mxu1  ;;  %v3006_v58 = vadd.f32 %v9975_v9, %v3005_v1  ;;  %v7721_v8 = vld [vmem:[%s10691_s0 + $0xa84] sm:$0xf]  ;;  %v7037_v51 = vld [vmem:[%s10691_s0 + $0xa90] sm:$0xf0]  ;;  %v7043_v52 = vld [vmem:[%s10691_s0 + $0xa88] sm:$0xf] }
 0x541   :  { %5515 = vst [vmem:[%s10692_s3 + $0x118] sm:$0xff] %v5513_v54  ;;  %v4500_v59 = vadd.f32 %v4499_v5, %v4001_v55  ;;  %3044 = vmatmul.bf16.gmra.mxu0 %v7004_v0  ;;  %v3505_v63 = vadd.f32 %v3504_v56, %v3006_v58  ;;  %v7724_v5 = vld [vmem:[%s10691_s0 + $0xa94] sm:$0xf0]  ;;  %v7722_v0 = vld [vmem:[%s10691_s0 + $0xa8c] sm:$0xf]  ;;  %v7036_v56 = vor.u32 %v7723_v49, %v7035_v48 }
 0x542   :  { %3543 = vmatmul.bf16.gmra.mxu1 %v7008_v53  ;;  %v7045_v53 = vld [vmem:[%s10691_s0 + $0xa98] sm:$0xf0]  ;;  %v7044_v60 = vor.u32 %v7724_v5, %v7043_v52  ;;  %v7731_v52 = vld [vmem:[%s10691_s0 + $0xacc] sm:$0xf0]  ;;  %v7729_v5 = vld [vmem:[%s10691_s0 + $0xac4] sm:$0xf] }
 0x543   :  { %v4769_v62 = vmax.f32 %v4500_v59, 0.0  ;;  %4042 = vmatmul.bf16.gmra.mxu2 %v7012_v3  ;;  %v7040_v3 = vor.u32 %v7721_v8, %v7037_v51  ;;  %v7048_v61 = vor.u32 %v7722_v0, %v7045_v53  ;;  %v7067_v51 = vld [vmem:[%s10691_s0 + $0xac0] sm:$0xf]  ;;  %v7069_v0 = vld [vmem:[%s10691_s0 + $0xad0] sm:$0xf0] }
 0x544   :  { %4541 = vmatmul.bf16.gmra.mxu3 %v7016_v57  ;;  %v5504_v2 = vld [vmem:[#allocation2 + $0x48c] ss:$2 sm:$0x3f]  ;;  %v5508_v4 = vld [vmem:[#allocation2 + $0x48d] ss:$2 sm:$0x3f] }
 0x545   :  { %v5512_v7 = vmax.f32 %v5504_v2, %v5508_v4  ;;  %4965 = vst [vmem:[#allocation2 + $0x498] sm:$0xff] %v4769_v62 }
 0x546   :  { %v4003_v10 = vpop.f32.mrf.mxu2  ;;  %v3007_v14 = vpop.f32.mrf.mxu0 }
 0x547   :  { %v4502_v11 = vpop.f32.mrf.mxu3  ;;  %v5514_v12 = vmax.f32 %v5510_v6, %v5512_v7  ;;  %v4004_v13 = vadd.f32 %v4003_v10, %v3505_v63  ;;  %v3506_v15 = vpop.f32.mrf.mxu1  ;;  %v3008_v17 = vadd.f32 %v9975_v9, %v3007_v14 }
 0x549   :  { %5516 = vst [vmem:[%s10692_s3 + $0x120] sm:$0x3f] %v5514_v12  ;;  %v4503_v16 = vadd.f32 %v4502_v11, %v4004_v13  ;;  %v3507_v27 = vadd.f32 %v3506_v15, %v3008_v17  ;;  %v7051_v15 = vld [vmem:[%s10691_s0 + $0xaa0] sm:$0xf]  ;;  %v7725_v17 = vld [vmem:[%s10691_s0 + $0xaa4] sm:$0xf] }
 0x54b   :  { %v4770_v21 = vmax.f32 %v4503_v16, 0.0  ;;  %v7727_v16 = vld [vmem:[%s10691_s0 + $0xaac] sm:$0xf0] }
 0x54d   :  { %4966 = vst [vmem:[#allocation2 + $0x4a0] sm:$0xff] %v4770_v21  ;;  %v7728_v21 = vld [vmem:[%s10691_s0 + $0xab4] sm:$0xf0] }
 0x54e   :  { %v4005_v28 = vpop.f32.mrf.mxu2  ;;  %v3010_v33 = vpop.f32.mrf.mxu0 }
 0x54f   :  { %v4504_v29 = vpop.f32.mrf.mxu3  ;;  %v4006_v32 = vadd.f32 %v4005_v28, %v3507_v27  ;;  %v3509_v34 = vpop.f32.mrf.mxu1  ;;  %v3011_v37 = vadd.f32 %v9975_v9, %v3010_v33  ;;  %v7052_v27 = vor.u32 %v7727_v16, %v7051_v15  ;;  %v7056_v28 = vor.u32 %v7725_v17, %v7053_v19 }
 0x550   :  { %v7064_v33 = vor.u32 %v7726_v22, %v7061_v23 }
 0x551   :  { %v4505_v38 = vadd.f32 %v4504_v29, %v4006_v32  ;;  %3049 = vmatmul.bf16.gmra.mxu0 %v7020_v30  ;;  %v3510_v40 = vadd.f32 %v3509_v34, %v3011_v37  ;;  %v7060_v32 = vor.u32 %v7728_v21, %v7059_v20 }
 0x552   :  { %3548 = vmatmul.bf16.gmra.mxu1 %v7024_v31 }
 0x553   :  { %v4771_v39 = vmax.f32 %v4505_v38, 0.0  ;;  %4047 = vmatmul.bf16.gmra.mxu2 %v7028_v35 }
 0x554   :  { %4546 = vmatmul.bf16.gmra.mxu3 %v7032_v36  ;;  %v5518_v36 = vld [vmem:[#allocation2 + $0x498] ss:$2 sm:$0xff]  ;;  %v5522_v37 = vld [vmem:[#allocation2 + $0x499] ss:$2 sm:$0xff] }
 0x555   :  { %4967 = vst [vmem:[#allocation2 + $0x4a8] sm:$0xff] %v4771_v39 }
 0x556   :  { %v4008_v41 = vpop.f32.mrf.mxu2  ;;  %v3012_v44 = vpop.f32.mrf.mxu0 }
 0x557   :  { %v4507_v42 = vpop.f32.mrf.mxu3  ;;  %v4009_v43 = vadd.f32 %v4008_v41, %v3510_v40  ;;  %v3511_v45 = vpop.f32.mrf.mxu1  ;;  %v3013_v47 = vadd.f32 %v9975_v9, %v3012_v44 }
 0x559   :  { %v4508_v46 = vadd.f32 %v4507_v42, %v4009_v43  ;;  %v3512_v54 = vadd.f32 %v3511_v45, %v3013_v47  ;;  %v5533_v42 = vmax.f32 %v5518_v36, %v5522_v37 }
 0x55b   :  { %v4772_v50 = vmax.f32 %v4508_v46, 0.0 }
 0x55d   :  { %4968 = vst [vmem:[#allocation2 + $0x4b0] sm:$0xff] %v4772_v50 }
 0x55e   :  { %v4010_v55 = vpop.f32.mrf.mxu2  ;;  %v3015_v58 = vpop.f32.mrf.mxu0 }
 0x55f   :  { %v4509_v1 = vpop.f32.mrf.mxu3  ;;  %v4011_v57 = vadd.f32 %v4010_v55, %v3512_v54  ;;  %v3514_v59 = vpop.f32.mrf.mxu1  ;;  %v3016_v62 = vadd.f32 %v9975_v9, %v3015_v58  ;;  %v7732_v55 = vld [vmem:[%s10691_s0 + $0xad4] sm:$0xf0] }
 0x561   :  { %v4510_v63 = vadd.f32 %v4509_v1, %v4011_v57  ;;  %3054 = vmatmul.bf16.gmra.mxu0 %v7036_v56  ;;  %v3515_v4 = vadd.f32 %v3514_v59, %v3016_v62  ;;  %v7730_v56 = vld [vmem:[%s10691_s0 + $0xacc] sm:$0xf] }
 0x562   :  { %3553 = vmatmul.bf16.gmra.mxu1 %v7040_v3  ;;  %v7077_v3 = vld [vmem:[%s10691_s0 + $0xad8] sm:$0xf0] }
 0x563   :  { %v4773_v2 = vmax.f32 %v4510_v63, 0.0  ;;  %4052 = vmatmul.bf16.gmra.mxu2 %v7044_v60 }
 0x564   :  { %4551 = vmatmul.bf16.gmra.mxu3 %v7048_v61  ;;  %v5520_v53 = vld [vmem:[#allocation2 + $0x4a8] ss:$2 sm:$0x3f]  ;;  %v5524_v54 = vld [vmem:[#allocation2 + $0x4a9] ss:$2 sm:$0x3f] }
 0x565   :  { %4969 = vst [vmem:[#allocation2 + $0x4b8] sm:$0xff] %v4773_v2  ;;  %v5534_v59 = vmax.f32 %v5520_v53, %v5524_v54  ;;  %v7068_v2 = vor.u32 %v7731_v52, %v7067_v51  ;;  %v7099_v53 = vld [vmem:[%s10691_s0 + $0xb00] sm:$0xf]  ;;  %v7739_v54 = vld [vmem:[%s10691_s0 + $0xb0c] sm:$0xf0] }
 0x566   :  { %v4013_v6 = vpop.f32.mrf.mxu2  ;;  %v3017_v11 = vpop.f32.mrf.mxu0 }
 0x567   :  { %v4512_v7 = vpop.f32.mrf.mxu3  ;;  %v4014_v10 = vadd.f32 %v4013_v6, %v3515_v4  ;;  %v3516_v12 = vpop.f32.mrf.mxu1  ;;  %v3018_v14 = vadd.f32 %v9975_v9, %v3017_v11  ;;  %v7072_v4 = vor.u32 %v7729_v5, %v7069_v0 }
 0x569   :  { %v4513_v13 = vadd.f32 %v4512_v7, %v4014_v10  ;;  %v3517_v24 = vadd.f32 %v3516_v12, %v3018_v14  ;;  %v10339_v14 = vld [vmem:[%s10690_s2] ss:$0 sm:$0xff] }
 0x56b   :  { %v4774_v18 = vmax.f32 %v4513_v13, 0.0  ;;  %v7080_v13 = vor.u32 %v7730_v56, %v7077_v3  ;;  %v7107_v56 = vld [vmem:[%s10691_s0 + $0xb08] sm:$0xf]  ;;  %v7740_v3 = vld [vmem:[%s10691_s0 + $0xb14] sm:$0xf0] }
 0x56d   :  { %4970 = vst [vmem:[#allocation2 + $0x4c0] sm:$0xff] %v4774_v18 }
 0x56e   :  { %v4015_v25 = vpop.f32.mrf.mxu2  ;;  %v3020_v30 = vpop.f32.mrf.mxu0 }
 0x56f   :  { %v4514_v26 = vpop.f32.mrf.mxu3  ;;  %v4016_v29 = vadd.f32 %v4015_v25, %v3517_v24  ;;  %v3519_v31 = vpop.f32.mrf.mxu1  ;;  %v3021_v34 = vadd.f32 %v9975_v9, %v3020_v30  ;;  %v7085_v30 = vld [vmem:[%s10691_s0 + $0xaf0] sm:$0xf0] }
 0x571   :  { %v4515_v35 = vadd.f32 %v4514_v26, %v4016_v29  ;;  %3059 = vmatmul.bf16.gmra.mxu0 %v7052_v27  ;;  %v3520_v39 = vadd.f32 %v3519_v31, %v3021_v34  ;;  %v7083_v26 = vld [vmem:[%s10691_s0 + $0xae0] sm:$0xf]  ;;  %v7735_v27 = vld [vmem:[%s10691_s0 + $0xaec] sm:$0xf0]  ;;  %v7091_v31 = vld [vmem:[%s10691_s0 + $0xae8] sm:$0xf] }
 0x572   :  { %3558 = vmatmul.bf16.gmra.mxu1 %v7056_v28  ;;  %v7733_v28 = vld [vmem:[%s10691_s0 + $0xae4] sm:$0xf]  ;;  %v7093_v34 = vld [vmem:[%s10691_s0 + $0xaf8] sm:$0xf0] }
 0x573   :  { %v4775_v38 = vmax.f32 %v4515_v35, 0.0  ;;  %4057 = vmatmul.bf16.gmra.mxu2 %v7060_v32  ;;  %v7736_v32 = vld [vmem:[%s10691_s0 + $0xaf4] sm:$0xf0] }
 0x574   :  { %4556 = vmatmul.bf16.gmra.mxu3 %v7064_v33  ;;  %v5526_v40 = vld [vmem:[#allocation2 + $0x4b4] ss:$2 sm:$0xff]  ;;  %v5530_v41 = vld [vmem:[#allocation2 + $0x4b5] ss:$2 sm:$0xff]  ;;  %v7734_v33 = vld [vmem:[%s10691_s0 + $0xaec] sm:$0xf] }
 0x575   :  { %v5535_v43 = vmax.f32 %v5526_v40, %v5530_v41  ;;  %4971 = vst [vmem:[#allocation2 + $0x4c8] sm:$0xff] %v4775_v38  ;;  %v7084_v38 = vor.u32 %v7735_v27, %v7083_v26  ;;  %v7743_v26 = vld [vmem:[%s10691_s0 + $0xb2c] sm:$0xf0]  ;;  %v7741_v27 = vld [vmem:[%s10691_s0 + $0xb24] sm:$0xf] }
 0x576   :  { %v4018_v44 = vpop.f32.mrf.mxu2  ;;  %v3022_v48 = vpop.f32.mrf.mxu0 }
 0x577   :  { %v4517_v45 = vpop.f32.mrf.mxu3  ;;  %v5537_v46 = vmax.f32 %v5533_v42, %v5535_v43  ;;  %v4019_v47 = vadd.f32 %v4018_v44, %v3520_v39  ;;  %v3521_v49 = vpop.f32.mrf.mxu1  ;;  %v3023_v50 = vadd.f32 %v9975_v9, %v3022_v48  ;;  %v7075_v9 = vld [vmem:[%s10691_s0 + $0xac8] sm:$0xf]  ;;  %v7088_v39 = vor.u32 %v7733_v28, %v7085_v30  ;;  %v7117_v28 = vld [vmem:[%s10691_s0 + $0xb30] sm:$0xf0] }
 0x578   :  { %v7076_v12 = vor.u32 %v7732_v55, %v7075_v9  ;;  %v7092_v43 = vor.u32 %v7736_v32, %v7091_v31  ;;  %v7096_v44 = vor.u32 %v7734_v33, %v7093_v34  ;;  %v7737_v9 = vld [vmem:[%s10691_s0 + $0xb04] sm:$0xf]  ;;  %v7744_v31 = vld [vmem:[%s10691_s0 + $0xb34] sm:$0xf0]  ;;  %v7742_v32 = vld [vmem:[%s10691_s0 + $0xb2c] sm:$0xf] }
 0x579   :  { %5539 = vst [vmem:[%s10692_s3 + $0x126] sm:$0xff] %v5537_v46  ;;  %v4518_v8 = vadd.f32 %v4517_v45, %v4019_v47  ;;  %v3522_v61 = vadd.f32 %v3521_v49, %v3023_v50 }
 0x57b   :  { %v4776_v1 = vmax.f32 %v4518_v8, 0.0 }
 0x57c   :  { %v5528_v57 = vld [vmem:[#allocation2 + $0x4c4] ss:$2 sm:$0x3f]  ;;  %v5532_v58 = vld [vmem:[#allocation2 + $0x4c5] ss:$2 sm:$0x3f] }
 0x57d   :  { %v5536_v60 = vmax.f32 %v5528_v57, %v5532_v58  ;;  %4972 = vst [vmem:[#allocation2 + $0x4d0] sm:$0xff] %v4776_v1  ;;  %v7101_v1 = vld [vmem:[%s10691_s0 + $0xb10] sm:$0xf0]  ;;  %v7738_v57 = vld [vmem:[%s10691_s0 + $0xb0c] sm:$0xf] }
 0x57e   :  { %v4020_v62 = vpop.f32.mrf.mxu2  ;;  %v3025_v10 = vpop.f32.mrf.mxu0  ;;  %v7109_v58 = vld [vmem:[%s10691_s0 + $0xb18] sm:$0xf0] }
 0x57f   :  { %v4519_v63 = vpop.f32.mrf.mxu3  ;;  %v5538_v6 = vmax.f32 %v5534_v59, %v5536_v60  ;;  %v4021_v7 = vadd.f32 %v4020_v62, %v3522_v61  ;;  %v3524_v11 = vpop.f32.mrf.mxu1  ;;  %v3026_v15 = vadd.f32 %v10339_v14, %v3025_v10  ;;  %v7100_v62 = vor.u32 %v7739_v54, %v7099_v53 }
 0x580   :  { %v7112_v10 = vor.u32 %v7738_v57, %v7109_v58 }
 0x581   :  { %5540 = vst [vmem:[%s10692_s3 + $0x12e] sm:$0x3f] %v5538_v6  ;;  %v4520_v16 = vadd.f32 %v4519_v63, %v4021_v7  ;;  %3064 = vmatmul.bf16.gmra.mxu0 %v7068_v2  ;;  %v3525_v18 = vadd.f32 %v3524_v11, %v3026_v15  ;;  %v7104_v63 = vor.u32 %v7737_v9, %v7101_v1 }
 0x582   :  { %3563 = vmatmul.bf16.gmra.mxu1 %v7072_v4  ;;  %v7108_v7 = vor.u32 %v7740_v3, %v7107_v56 }
 0x583   :  { %v4777_v17 = vmax.f32 %v4520_v16, 0.0  ;;  %4062 = vmatmul.bf16.gmra.mxu2 %v7076_v12 }
 0x584   :  { %4561 = vmatmul.bf16.gmra.mxu3 %v7080_v13 }
 0x585   :  { %4973 = vst [vmem:[#allocation2 + $0x4d8] sm:$0xff] %v4777_v17 }
 0x586   :  { %v4023_v19 = vpop.f32.mrf.mxu2  ;;  %v3027_v22 = vpop.f32.mrf.mxu0 }
 0x587   :  { %v4522_v20 = vpop.f32.mrf.mxu3  ;;  %v4024_v21 = vadd.f32 %v4023_v19, %v3525_v18  ;;  %v3526_v23 = vpop.f32.mrf.mxu1  ;;  %v3028_v25 = vadd.f32 %v10339_v14, %v3027_v22 }
 0x589   :  { %v4523_v24 = vadd.f32 %v4522_v20, %v4024_v21  ;;  %v3527_v35 = vadd.f32 %v3526_v23, %v3028_v25  ;;  %v7115_v25 = vld [vmem:[%s10691_s0 + $0xb20] sm:$0xf] }
 0x58b   :  { %v4778_v29 = vmax.f32 %v4523_v24, 0.0 }
 0x58c   :  { %v5542_v21 = vld [vmem:[#allocation2 + $0x4d0] ss:$2 sm:$0xff]  ;;  %v5546_v22 = vld [vmem:[#allocation2 + $0x4d1] ss:$2 sm:$0xff] }
 0x58d   :  { %4974 = vst [vmem:[#allocation2 + $0x4e0] sm:$0xff] %v4778_v29  ;;  %v7123_v29 = vld [vmem:[%s10691_s0 + $0xb28] sm:$0xf] }
 0x58e   :  { %v4025_v36 = vpop.f32.mrf.mxu2  ;;  %v3030_v41 = vpop.f32.mrf.mxu0 }
 0x58f   :  { %v4524_v37 = vpop.f32.mrf.mxu3  ;;  %v4026_v40 = vadd.f32 %v4025_v36, %v3527_v35  ;;  %v3529_v42 = vpop.f32.mrf.mxu1  ;;  %v3031_v45 = vadd.f32 %v10339_v14, %v3030_v41  ;;  %v7125_v35 = vld [vmem:[%s10691_s0 + $0xb38] sm:$0xf0]  ;;  %v5557_v36 = vmax.f32 %v5542_v21, %v5546_v22  ;;  %v7116_v41 = vor.u32 %v7743_v26, %v7115_v25 }
 0x591   :  { %v4525_v46 = vadd.f32 %v4524_v37, %v4026_v40  ;;  %3069 = vmatmul.bf16.gmra.mxu0 %v7084_v38  ;;  %v3530_v48 = vadd.f32 %v3529_v42, %v3031_v45  ;;  %v7120_v42 = vor.u32 %v7741_v27, %v7117_v28 }
 0x592   :  { %3568 = vmatmul.bf16.gmra.mxu1 %v7088_v39 }
 0x593   :  { %v4779_v47 = vmax.f32 %v4525_v46, 0.0  ;;  %4067 = vmatmul.bf16.gmra.mxu2 %v7092_v43 }
 0x594   :  { %4566 = vmatmul.bf16.gmra.mxu3 %v7096_v44 }
 0x595   :  { %4975 = vst [vmem:[#allocation2 + $0x4e8] sm:$0xff] %v4779_v47  ;;  %v7124_v47 = vor.u32 %v7744_v31, %v7123_v29 }
 0x596   :  { %v4028_v49 = vpop.f32.mrf.mxu2  ;;  %v3032_v51 = vpop.f32.mrf.mxu0 }
 0x597   :  { %v4527_v8 = vpop.f32.mrf.mxu3  ;;  %v4029_v50 = vadd.f32 %v4028_v49, %v3530_v48  ;;  %v3531_v52 = vpop.f32.mrf.mxu1  ;;  %v3033_v0 = vadd.f32 %v10339_v14, %v3032_v51  ;;  %v7128_v48 = vor.u32 %v7742_v32, %v7125_v35  ;;  %v7751_v35 = vld [vmem:[%s10691_s0 + $0xb6c] sm:$0xf0] }
 0x599   :  { %v4528_v5 = vadd.f32 %v4527_v8, %v4029_v50  ;;  %v3532_v59 = vadd.f32 %v3531_v52, %v3033_v0 }
 0x59b   :  { %v4780_v55 = vmax.f32 %v4528_v5, 0.0 }
 0x59c   :  { %v5544_v50 = vld [vmem:[#allocation2 + $0x4e0] ss:$2 sm:$0x3f]  ;;  %v5548_v51 = vld [vmem:[#allocation2 + $0x4e1] ss:$2 sm:$0x3f] }
 0x59d   :  { %4976 = vst [vmem:[#allocation2 + $0x4f0] sm:$0xff] %v4780_v55  ;;  %v5558_v54 = vmax.f32 %v5544_v50, %v5548_v51 }
 0x59e   :  { %v4030_v60 = vpop.f32.mrf.mxu2  ;;  %v3035_v4 = vpop.f32.mrf.mxu0 }
 0x59f   :  { %v4529_v61 = vpop.f32.mrf.mxu3  ;;  %v4031_v2 = vadd.f32 %v4030_v60, %v3532_v59  ;;  %v3534_v6 = vpop.f32.mrf.mxu1  ;;  %v3036_v11 = vadd.f32 %v10339_v14, %v3035_v4  ;;  %v7133_v4 = vld [vmem:[%s10691_s0 + $0xb50] sm:$0xf0] }
 0x5a1   :  { %v4530_v12 = vadd.f32 %v4529_v61, %v4031_v2  ;;  %3074 = vmatmul.bf16.gmra.mxu0 %v7100_v62  ;;  %v3535_v15 = vadd.f32 %v3534_v6, %v3036_v11  ;;  %v7131_v61 = vld [vmem:[%s10691_s0 + $0xb40] sm:$0xf]  ;;  %v7747_v62 = vld [vmem:[%s10691_s0 + $0xb4c] sm:$0xf0]  ;;  %v7139_v6 = vld [vmem:[%s10691_s0 + $0xb48] sm:$0xf] }
 0x5a2   :  { %3573 = vmatmul.bf16.gmra.mxu1 %v7104_v63  ;;  %v7745_v63 = vld [vmem:[%s10691_s0 + $0xb44] sm:$0xf]  ;;  %v7141_v11 = vld [vmem:[%s10691_s0 + $0xb58] sm:$0xf0] }
 0x5a3   :  { %v4781_v13 = vmax.f32 %v4530_v12, 0.0  ;;  %4072 = vmatmul.bf16.gmra.mxu2 %v7108_v7  ;;  %v7748_v7 = vld [vmem:[%s10691_s0 + $0xb54] sm:$0xf0] }
 0x5a4   :  { %4571 = vmatmul.bf16.gmra.mxu3 %v7112_v10  ;;  %v7746_v10 = vld [vmem:[%s10691_s0 + $0xb4c] sm:$0xf]  ;;  %v7140_v21 = vor.u32 %v7748_v7, %v7139_v6  ;;  %v7173_v6 = vld [vmem:[%s10691_s0 + $0xb98] sm:$0xf0] }
 0x5a5   :  { %4977 = vst [vmem:[#allocation2 + $0x4f8] sm:$0xff] %v4781_v13  ;;  %v7144_v22 = vor.u32 %v7746_v10, %v7141_v11 }
 0x5a6   :  { %v4033_v16 = vpop.f32.mrf.mxu2  ;;  %v3037_v19 = vpop.f32.mrf.mxu0 }
 0x5a7   :  { %v4532_v17 = vpop.f32.mrf.mxu3  ;;  %v4034_v18 = vadd.f32 %v4033_v16, %v3535_v15  ;;  %v3536_v20 = vpop.f32.mrf.mxu1  ;;  %v3038_v24 = vadd.f32 %v10339_v14, %v3037_v19  ;;  %v7132_v16 = vor.u32 %v7747_v62, %v7131_v61  ;;  %v7165_v62 = vld [vmem:[%s10691_s0 + $0xb90] sm:$0xf0] }
 0x5a9   :  { %v4533_v23 = vadd.f32 %v4532_v17, %v4034_v18  ;;  %v3537_v38 = vadd.f32 %v3536_v20, %v3038_v24  ;;  %v7136_v17 = vor.u32 %v7745_v63, %v7133_v4  ;;  %v7171_v63 = vld [vmem:[%s10691_s0 + $0xb88] sm:$0xf]  ;;  %v7754_v4 = vld [vmem:[%s10691_s0 + $0xb8c] sm:$0xf] }
 0x5ab   :  { %v4782_v30 = vmax.f32 %v4533_v23, 0.0 }
 0x5ac   :  { %v5550_v33 = vld [vmem:[#allocation2 + $0x4ec] ss:$2 sm:$0xff]  ;;  %v5554_v34 = vld [vmem:[#allocation2 + $0x4ed] ss:$2 sm:$0xff] }
 0x5ad   :  { %v5559_v37 = vmax.f32 %v5550_v33, %v5554_v34  ;;  %4978 = vst [vmem:[#allocation2 + $0x500] sm:$0xff] %v4782_v30  ;;  %v7147_v34 = vld [vmem:[%s10691_s0 + $0xb60] sm:$0xf] }
 0x5ae   :  { %v4035_v39 = vpop.f32.mrf.mxu2  ;;  %v3040_v45 = vpop.f32.mrf.mxu0 }
 0x5af   :  { %v4534_v40 = vpop.f32.mrf.mxu3  ;;  %v5561_v43 = vmax.f32 %v5557_v36, %v5559_v37  ;;  %v4036_v44 = vadd.f32 %v4035_v39, %v3537_v38  ;;  %v3539_v46 = vpop.f32.mrf.mxu1  ;;  %v3041_v49 = vadd.f32 %v10339_v14, %v3040_v45  ;;  %v7749_v36 = vld [vmem:[%s10691_s0 + $0xb64] sm:$0xf]  ;;  %v7149_v38 = vld [vmem:[%s10691_s0 + $0xb70] sm:$0xf0]  ;;  %v7155_v39 = vld [vmem:[%s10691_s0 + $0xb68] sm:$0xf] }
 0x5b1   :  { %5563 = vst [vmem:[%s10692_s3 + $0x134] sm:$0xff] %v5561_v43  ;;  %v4535_v8 = vadd.f32 %v4534_v40, %v4036_v44  ;;  %3079 = vmatmul.bf16.gmra.mxu0 %v7116_v41  ;;  %v3540_v5 = vadd.f32 %v3539_v46, %v3041_v49  ;;  %v7752_v40 = vld [vmem:[%s10691_s0 + $0xb74] sm:$0xf0]  ;;  %v7750_v41 = vld [vmem:[%s10691_s0 + $0xb6c] sm:$0xf]  ;;  %v7148_v46 = vor.u32 %v7751_v35, %v7147_v34 }
 0x5b2   :  { %3578 = vmatmul.bf16.gmra.mxu1 %v7120_v42  ;;  %v7157_v42 = vld [vmem:[%s10691_s0 + $0xb78] sm:$0xf0]  ;;  %v7156_v50 = vor.u32 %v7752_v40, %v7155_v39  ;;  %v7759_v39 = vld [vmem:[%s10691_s0 + $0xbac] sm:$0xf0]  ;;  %v7757_v40 = vld [vmem:[%s10691_s0 + $0xba4] sm:$0xf] }
 0x5b3   :  { %v4783_v52 = vmax.f32 %v4535_v8, 0.0  ;;  %4077 = vmatmul.bf16.gmra.mxu2 %v7124_v47  ;;  %v7152_v47 = vor.u32 %v7749_v36, %v7149_v38  ;;  %v7160_v51 = vor.u32 %v7750_v41, %v7157_v42  ;;  %v7179_v38 = vld [vmem:[%s10691_s0 + $0xba0] sm:$0xf]  ;;  %v7181_v41 = vld [vmem:[%s10691_s0 + $0xbb0] sm:$0xf0] }
 0x5b4   :  { %4576 = vmatmul.bf16.gmra.mxu3 %v7128_v48  ;;  %v5552_v0 = vld [vmem:[#allocation2 + $0x4fc] ss:$2 sm:$0x3f]  ;;  %v5556_v53 = vld [vmem:[#allocation2 + $0x4fd] ss:$2 sm:$0x3f] }
 0x5b5   :  { %v5560_v9 = vmax.f32 %v5552_v0, %v5556_v53  ;;  %4979 = vst [vmem:[#allocation2 + $0x508] sm:$0xff] %v4783_v52 }
 0x5b6   :  { %v4038_v55 = vpop.f32.mrf.mxu2  ;;  %v3042_v57 = vpop.f32.mrf.mxu0 }
 0x5b7   :  { %v4537_v1 = vpop.f32.mrf.mxu3  ;;  %v5562_v56 = vmax.f32 %v5558_v54, %v5560_v9  ;;  %v4039_v3 = vadd.f32 %v4038_v55, %v3540_v5  ;;  %v3541_v58 = vpop.f32.mrf.mxu1  ;;  %v3043_v60 = vadd.f32 %v10339_v14, %v3042_v57 }
 0x5b9   :  { %5564 = vst [vmem:[%s10692_s3 + $0x13c] sm:$0x3f] %v5562_v56  ;;  %v4538_v59 = vadd.f32 %v4537_v1, %v4039_v3  ;;  %v3542_v12 = vadd.f32 %v3541_v58, %v3043_v60  ;;  %v7163_v58 = vld [vmem:[%s10691_s0 + $0xb80] sm:$0xf]  ;;  %v7753_v60 = vld [vmem:[%s10691_s0 + $0xb84] sm:$0xf] }
 0x5bb   :  { %v4784_v2 = vmax.f32 %v4538_v59, 0.0  ;;  %v7755_v59 = vld [vmem:[%s10691_s0 + $0xb8c] sm:$0xf0] }
 0x5bd   :  { %4980 = vst [vmem:[#allocation2 + $0x510] sm:$0xff] %v4784_v2  ;;  %v7756_v2 = vld [vmem:[%s10691_s0 + $0xb94] sm:$0xf0] }
 0x5be   :  { %v4040_v13 = vpop.f32.mrf.mxu2  ;;  %v3045_v19 = vpop.f32.mrf.mxu0 }
 0x5bf   :  { %v4539_v15 = vpop.f32.mrf.mxu3  ;;  %v4041_v18 = vadd.f32 %v4040_v13, %v3542_v12  ;;  %v3544_v20 = vpop.f32.mrf.mxu1  ;;  %v3046_v23 = vadd.f32 %v10339_v14, %v3045_v19  ;;  %v7164_v12 = vor.u32 %v7755_v59, %v7163_v58  ;;  %v7168_v13 = vor.u32 %v7753_v60, %v7165_v62 }
 0x5c0   :  { %v7176_v19 = vor.u32 %v7754_v4, %v7173_v6 }
 0x5c1   :  { %v4540_v24 = vadd.f32 %v4539_v15, %v4041_v18  ;;  %3084 = vmatmul.bf16.gmra.mxu0 %v7132_v16  ;;  %v3545_v26 = vadd.f32 %v3544_v20, %v3046_v23  ;;  %v7172_v18 = vor.u32 %v7756_v2, %v7171_v63 }
 0x5c2   :  { %3583 = vmatmul.bf16.gmra.mxu1 %v7136_v17 }
 0x5c3   :  { %v4785_v25 = vmax.f32 %v4540_v24, 0.0  ;;  %4082 = vmatmul.bf16.gmra.mxu2 %v7140_v21 }
 0x5c4   :  { %4581 = vmatmul.bf16.gmra.mxu3 %v7144_v22  ;;  %v5566_v22 = vld [vmem:[#allocation2 + $0x508] ss:$2 sm:$0xff]  ;;  %v5570_v23 = vld [vmem:[#allocation2 + $0x509] ss:$2 sm:$0xff] }
 0x5c5   :  { %4981 = vst [vmem:[#allocation2 + $0x518] sm:$0xff] %v4785_v25 }
 0x5c6   :  { %v4043_v27 = vpop.f32.mrf.mxu2  ;;  %v3047_v30 = vpop.f32.mrf.mxu0 }
 0x5c7   :  { %v4542_v28 = vpop.f32.mrf.mxu3  ;;  %v4044_v29 = vadd.f32 %v4043_v27, %v3545_v26  ;;  %v3546_v31 = vpop.f32.mrf.mxu1  ;;  %v3048_v33 = vadd.f32 %v10339_v14, %v3047_v30 }
 0x5c9   :  { %v4543_v32 = vadd.f32 %v4542_v28, %v4044_v29  ;;  %v3547_v43 = vadd.f32 %v3546_v31, %v3048_v33  ;;  %v5581_v28 = vmax.f32 %v5566_v22, %v5570_v23 }
 0x5cb   :  { %v4786_v37 = vmax.f32 %v4543_v32, 0.0 }
 0x5cd   :  { %4982 = vst [vmem:[#allocation2 + $0x520] sm:$0xff] %v4786_v37 }
 0x5ce   :  { %v4045_v44 = vpop.f32.mrf.mxu2  ;;  %v3050_v49 = vpop.f32.mrf.mxu0 }
 0x5cf   :  { %v4544_v45 = vpop.f32.mrf.mxu3  ;;  %v4046_v48 = vadd.f32 %v4045_v44, %v3547_v43  ;;  %v3549_v8 = vpop.f32.mrf.mxu1  ;;  %v3051_v52 = vadd.f32 %v10339_v14, %v3050_v49  ;;  %v7187_v44 = vld [vmem:[%s10691_s0 + $0xba8] sm:$0xf] }
 0x5d1   :  { %v4545_v5 = vadd.f32 %v4544_v45, %v4046_v48  ;;  %3089 = vmatmul.bf16.gmra.mxu0 %v7148_v46  ;;  %v3550_v53 = vadd.f32 %v3549_v8, %v3051_v52  ;;  %v7760_v45 = vld [vmem:[%s10691_s0 + $0xbb4] sm:$0xf0]  ;;  %v7189_v48 = vld [vmem:[%s10691_s0 + $0xbb8] sm:$0xf0] }
 0x5d2   :  { %3588 = vmatmul.bf16.gmra.mxu1 %v7152_v47  ;;  %v7758_v47 = vld [vmem:[%s10691_s0 + $0xbac] sm:$0xf] }
 0x5d3   :  { %v4787_v0 = vmax.f32 %v4545_v5, 0.0  ;;  %4087 = vmatmul.bf16.gmra.mxu2 %v7156_v50 }
 0x5d4   :  { %4586 = vmatmul.bf16.gmra.mxu3 %v7160_v51  ;;  %v5568_v42 = vld [vmem:[#allocation2 + $0x518] ss:$2 sm:$0x3f]  ;;  %v5572_v43 = vld [vmem:[#allocation2 + $0x519] ss:$2 sm:$0x3f] }
 0x5d5   :  { %4983 = vst [vmem:[#allocation2 + $0x528] sm:$0xff] %v4787_v0  ;;  %v5582_v50 = vmax.f32 %v5568_v42, %v5572_v43  ;;  %v7211_v42 = vld [vmem:[%s10691_s0 + $0xbe0] sm:$0xf]  ;;  %v7767_v43 = vld [vmem:[%s10691_s0 + $0xbec] sm:$0xf0] }
 0x5d6   :  { %v4048_v54 = vpop.f32.mrf.mxu2  ;;  %v3052_v1 = vpop.f32.mrf.mxu0 }
 0x5d7   :  { %v4547_v9 = vpop.f32.mrf.mxu3  ;;  %v4049_v55 = vadd.f32 %v4048_v54, %v3550_v53  ;;  %v3551_v56 = vpop.f32.mrf.mxu1  ;;  %v3053_v57 = vadd.f32 %v10339_v14, %v3052_v1  ;;  %v7180_v53 = vor.u32 %v7759_v39, %v7179_v38  ;;  %v7184_v54 = vor.u32 %v7757_v40, %v7181_v41 }
 0x5d9   :  { %v4548_v3 = vadd.f32 %v4547_v9, %v4049_v55  ;;  %v3552_v7 = vadd.f32 %v3551_v56, %v3053_v57  ;;  %v7192_v57 = vor.u32 %v7758_v47, %v7189_v48  ;;  %v7219_v47 = vld [vmem:[%s10691_s0 + $0xbe8] sm:$0xf]  ;;  %v7768_v48 = vld [vmem:[%s10691_s0 + $0xbf4] sm:$0xf0] }
 0x5db   :  { %v4788_v61 = vmax.f32 %v4548_v3, 0.0  ;;  %v7188_v3 = vor.u32 %v7760_v45, %v7187_v44  ;;  %v7765_v44 = vld [vmem:[%s10691_s0 + $0xbe4] sm:$0xf] }
 0x5dd   :  { %4984 = vst [vmem:[#allocation2 + $0x530] sm:$0xff] %v4788_v61 }
 0x5de   :  { %v4050_v10 = vpop.f32.mrf.mxu2  ;;  %v3055_v16 = vpop.f32.mrf.mxu0 }
 0x5df   :  { %v4549_v11 = vpop.f32.mrf.mxu3  ;;  %v4051_v15 = vadd.f32 %v4050_v10, %v3552_v7  ;;  %v3554_v17 = vpop.f32.mrf.mxu1  ;;  %v3056_v20 = vadd.f32 %v10339_v14, %v3055_v16  ;;  %v7197_v16 = vld [vmem:[%s10691_s0 + $0xbd0] sm:$0xf0] }
 0x5e1   :  { %v4550_v21 = vadd.f32 %v4549_v11, %v4051_v15  ;;  %3094 = vmatmul.bf16.gmra.mxu0 %v7164_v12  ;;  %v3555_v25 = vadd.f32 %v3554_v17, %v3056_v20  ;;  %v7195_v11 = vld [vmem:[%s10691_s0 + $0xbc0] sm:$0xf]  ;;  %v7763_v12 = vld [vmem:[%s10691_s0 + $0xbcc] sm:$0xf0]  ;;  %v7203_v17 = vld [vmem:[%s10691_s0 + $0xbc8] sm:$0xf] }
 0x5e2   :  { %3593 = vmatmul.bf16.gmra.mxu1 %v7168_v13  ;;  %v7761_v13 = vld [vmem:[%s10691_s0 + $0xbc4] sm:$0xf]  ;;  %v7205_v20 = vld [vmem:[%s10691_s0 + $0xbd8] sm:$0xf0] }
 0x5e3   :  { %v4789_v24 = vmax.f32 %v4550_v21, 0.0  ;;  %4092 = vmatmul.bf16.gmra.mxu2 %v7172_v18  ;;  %v7764_v18 = vld [vmem:[%s10691_s0 + $0xbd4] sm:$0xf0] }
 0x5e4   :  { %4591 = vmatmul.bf16.gmra.mxu3 %v7176_v19  ;;  %v5574_v26 = vld [vmem:[#allocation2 + $0x524] ss:$2 sm:$0xff]  ;;  %v5578_v27 = vld [vmem:[#allocation2 + $0x525] ss:$2 sm:$0xff] }
 0x5e5   :  { %v5583_v29 = vmax.f32 %v5574_v26, %v5578_v27  ;;  %4985 = vst [vmem:[#allocation2 + $0x538] sm:$0xff] %v4789_v24  ;;  %v7762_v19 = vld [vmem:[%s10691_s0 + $0xbcc] sm:$0xf]  ;;  %v7196_v24 = vor.u32 %v7763_v12, %v7195_v11  ;;  %v7771_v11 = vld [vmem:[%s10691_s0 + $0xc0c] sm:$0xf0] }
 0x5e6   :  { %v4053_v30 = vpop.f32.mrf.mxu2  ;;  %v3057_v34 = vpop.f32.mrf.mxu0  ;;  %v7769_v12 = vld [vmem:[%s10691_s0 + $0xc04] sm:$0xf] }
 0x5e7   :  { %v4552_v31 = vpop.f32.mrf.mxu3  ;;  %v5585_v32 = vmax.f32 %v5581_v28, %v5583_v29  ;;  %v4054_v33 = vadd.f32 %v4053_v30, %v3555_v25  ;;  %v3556_v35 = vpop.f32.mrf.mxu1  ;;  %v3058_v37 = vadd.f32 %v10339_v14, %v3057_v34  ;;  %v7200_v25 = vor.u32 %v7761_v13, %v7197_v16  ;;  %v7229_v13 = vld [vmem:[%s10691_s0 + $0xc10] sm:$0xf0] }
 0x5e8   :  { %v7204_v29 = vor.u32 %v7764_v18, %v7203_v17  ;;  %v7208_v30 = vor.u32 %v7762_v19, %v7205_v20  ;;  %v7772_v17 = vld [vmem:[%s10691_s0 + $0xc14] sm:$0xf0]  ;;  %v7770_v18 = vld [vmem:[%s10691_s0 + $0xc0c] sm:$0xf] }
 0x5e9   :  { %5587 = vst [vmem:[%s10692_s3 + $0x142] sm:$0xff] %v5585_v32  ;;  %v4553_v36 = vadd.f32 %v4552_v31, %v4054_v33  ;;  %v3557_v52 = vadd.f32 %v3556_v35, %v3058_v37 }
 0x5eb   :  { %v4790_v46 = vmax.f32 %v4553_v36, 0.0 }
 0x5ec   :  { %v5576_v49 = vld [vmem:[#allocation2 + $0x534] ss:$2 sm:$0x3f]  ;;  %v5580_v8 = vld [vmem:[#allocation2 + $0x535] ss:$2 sm:$0x3f] }
 0x5ed   :  { %v5584_v51 = vmax.f32 %v5576_v49, %v5580_v8  ;;  %4986 = vst [vmem:[#allocation2 + $0x540] sm:$0xff] %v4790_v46  ;;  %v7213_v46 = vld [vmem:[%s10691_s0 + $0xbf0] sm:$0xf0]  ;;  %v7766_v49 = vld [vmem:[%s10691_s0 + $0xbec] sm:$0xf] }
 0x5ee   :  { %v4055_v5 = vpop.f32.mrf.mxu2  ;;  %v3060_v1 = vpop.f32.mrf.mxu0  ;;  %v7221_v8 = vld [vmem:[%s10691_s0 + $0xbf8] sm:$0xf0] }
 0x5ef   :  { %v4554_v0 = vpop.f32.mrf.mxu3  ;;  %v5586_v9 = vmax.f32 %v5582_v50, %v5584_v51  ;;  %v4056_v55 = vadd.f32 %v4055_v5, %v3557_v52  ;;  %v3559_v56 = vpop.f32.mrf.mxu1  ;;  %v3061_v58 = vadd.f32 %v10339_v14, %v3060_v1  ;;  %v7212_v5 = vor.u32 %v7767_v43, %v7211_v42 }
 0x5f0   :  { %v7224_v1 = vor.u32 %v7766_v49, %v7221_v8 }
 0x5f1   :  { %5588 = vst [vmem:[%s10692_s3 + $0x14a] sm:$0x3f] %v5586_v9  ;;  %v4555_v59 = vadd.f32 %v4554_v0, %v4056_v55  ;;  %3099 = vmatmul.bf16.gmra.mxu0 %v7180_v53  ;;  %v3560_v61 = vadd.f32 %v3559_v56, %v3061_v58  ;;  %v7216_v0 = vor.u32 %v7765_v44, %v7213_v46 }
 0x5f2   :  { %3598 = vmatmul.bf16.gmra.mxu1 %v7184_v54  ;;  %v7220_v55 = vor.u32 %v7768_v48, %v7219_v47 }
 0x5f3   :  { %v4791_v60 = vmax.f32 %v4555_v59, 0.0  ;;  %4097 = vmatmul.bf16.gmra.mxu2 %v7188_v3 }
 0x5f4   :  { %4596 = vmatmul.bf16.gmra.mxu3 %v7192_v57 }
 0x5f5   :  { %4987 = vst [vmem:[#allocation2 + $0x548] sm:$0xff] %v4791_v60 }
 0x5f6   :  { %v4058_v62 = vpop.f32.mrf.mxu2  ;;  %v3062_v4 = vpop.f32.mrf.mxu0 }
 0x5f7   :  { %v4557_v63 = vpop.f32.mrf.mxu3  ;;  %v4059_v2 = vadd.f32 %v4058_v62, %v3560_v61  ;;  %v3561_v6 = vpop.f32.mrf.mxu1  ;;  %v3063_v10 = vadd.f32 %v10339_v14, %v3062_v4 }
 0x5f9   :  { %v4558_v7 = vadd.f32 %v4557_v63, %v4059_v2  ;;  %v3562_v21 = vadd.f32 %v3561_v6, %v3063_v10  ;;  %v7227_v10 = vld [vmem:[%s10691_s0 + $0xc00] sm:$0xf] }
 0x5fb   :  { %v4792_v15 = vmax.f32 %v4558_v7, 0.0 }
 0x5fc   :  { %v5590_v2 = vld [vmem:[#allocation2 + $0x540] ss:$2 sm:$0xff]  ;;  %v5594_v4 = vld [vmem:[#allocation2 + $0x541] ss:$2 sm:$0xff] }
 0x5fd   :  { %4988 = vst [vmem:[#allocation2 + $0x550] sm:$0xff] %v4792_v15  ;;  %v7235_v15 = vld [vmem:[%s10691_s0 + $0xc08] sm:$0xf] }
 0x5fe   :  { %v4060_v22 = vpop.f32.mrf.mxu2  ;;  %v3065_v27 = vpop.f32.mrf.mxu0 }
 0x5ff   :  { %v4559_v23 = vpop.f32.mrf.mxu3  ;;  %v4061_v26 = vadd.f32 %v4060_v22, %v3562_v21  ;;  %v3564_v28 = vpop.f32.mrf.mxu1  ;;  %v3066_v31 = vadd.f32 %v10339_v14, %v3065_v27  ;;  %v7237_v21 = vld [vmem:[%s10691_s0 + $0xc18] sm:$0xf0]  ;;  %v5605_v22 = vmax.f32 %v5590_v2, %v5594_v4  ;;  %v7228_v27 = vor.u32 %v7771_v11, %v7227_v10 }
 0x601   :  { %v4560_v32 = vadd.f32 %v4559_v23, %v4061_v26  ;;  %3104 = vmatmul.bf16.gmra.mxu0 %v7196_v24  ;;  %v3565_v34 = vadd.f32 %v3564_v28, %v3066_v31  ;;  %v7232_v28 = vor.u32 %v7769_v12, %v7229_v13 }
 0x602   :  { %3603 = vmatmul.bf16.gmra.mxu1 %v7200_v25 }
 0x603   :  { %v4793_v33 = vmax.f32 %v4560_v32, 0.0  ;;  %4102 = vmatmul.bf16.gmra.mxu2 %v7204_v29 }
 0x604   :  { %4601 = vmatmul.bf16.gmra.mxu3 %v7208_v30 }
 0x605   :  { %4989 = vst [vmem:[#allocation2 + $0x558] sm:$0xff] %v4793_v33  ;;  %v7236_v33 = vor.u32 %v7772_v17, %v7235_v15 }
 0x606   :  { %v4063_v35 = vpop.f32.mrf.mxu2  ;;  %v3067_v38 = vpop.f32.mrf.mxu0 }
 0x607   :  { %v4562_v36 = vpop.f32.mrf.mxu3  ;;  %v4064_v37 = vadd.f32 %v4063_v35, %v3565_v34  ;;  %v3566_v39 = vpop.f32.mrf.mxu1  ;;  %v3068_v41 = vadd.f32 %v10339_v14, %v3067_v38  ;;  %v7240_v34 = vor.u32 %v7770_v18, %v7237_v21 }
 0x609   :  { %v4563_v40 = vadd.f32 %v4562_v36, %v4064_v37  ;;  %v3567_v50 = vadd.f32 %v3566_v39, %v3068_v41 }
 0x60b   :  { %v4794_v45 = vmax.f32 %v4563_v40, 0.0 }
 0x60c   :  { %v5592_v37 = vld [vmem:[#allocation2 + $0x550] ss:$2 sm:$0x3f]  ;;  %v5596_v38 = vld [vmem:[#allocation2 + $0x551] ss:$2 sm:$0x3f] }
 0x60d   :  { %4990 = vst [vmem:[#allocation2 + $0x560] sm:$0xff] %v4794_v45  ;;  %v5606_v43 = vmax.f32 %v5592_v37, %v5596_v38 }
 0x60e   :  { %v4065_v51 = vpop.f32.mrf.mxu2  ;;  %v3070_v54 = vpop.f32.mrf.mxu0 }
 0x60f   :  { %v4564_v52 = vpop.f32.mrf.mxu3  ;;  %v4066_v53 = vadd.f32 %v4065_v51, %v3567_v50  ;;  %v3569_v9 = vpop.f32.mrf.mxu1  ;;  %v3071_v56 = vadd.f32 %v10339_v14, %v3070_v54  ;;  %v7245_v54 = vld [vmem:[%s10691_s0 + $0xc30] sm:$0xf0] }
 0x611   :  { %v4565_v3 = vadd.f32 %v4564_v52, %v4066_v53  ;;  %3109 = vmatmul.bf16.gmra.mxu0 %v7212_v5  ;;  %v3570_v58 = vadd.f32 %v3569_v9, %v3071_v56  ;;  %v7243_v52 = vld [vmem:[%s10691_s0 + $0xc20] sm:$0xf]  ;;  %v7775_v5 = vld [vmem:[%s10691_s0 + $0xc2c] sm:$0xf0]  ;;  %v7251_v9 = vld [vmem:[%s10691_s0 + $0xc28] sm:$0xf] }
 0x612   :  { %3608 = vmatmul.bf16.gmra.mxu1 %v7216_v0  ;;  %v7773_v0 = vld [vmem:[%s10691_s0 + $0xc24] sm:$0xf]  ;;  %v7253_v56 = vld [vmem:[%s10691_s0 + $0xc38] sm:$0xf0] }
 0x613   :  { %v4795_v57 = vmax.f32 %v4565_v3, 0.0  ;;  %4107 = vmatmul.bf16.gmra.mxu2 %v7220_v55  ;;  %v7776_v55 = vld [vmem:[%s10691_s0 + $0xc34] sm:$0xf0] }
 0x614   :  { %4606 = vmatmul.bf16.gmra.mxu3 %v7224_v1  ;;  %v7774_v1 = vld [vmem:[%s10691_s0 + $0xc2c] sm:$0xf]  ;;  %v7252_v2 = vor.u32 %v7776_v55, %v7251_v9 }
 0x615   :  { %4991 = vst [vmem:[#allocation2 + $0x568] sm:$0xff] %v4795_v57  ;;  %v7256_v4 = vor.u32 %v7774_v1, %v7253_v56 }
 0x616   :  { %v4068_v59 = vpop.f32.mrf.mxu2  ;;  %v3072_v62 = vpop.f32.mrf.mxu0 }
 0x617   :  { %v4567_v60 = vpop.f32.mrf.mxu3  ;;  %v4069_v61 = vadd.f32 %v4068_v59, %v3570_v58  ;;  %v3571_v63 = vpop.f32.mrf.mxu1  ;;  %v3073_v7 = vadd.f32 %v10339_v14, %v3072_v62  ;;  %v7244_v59 = vor.u32 %v7775_v5, %v7243_v52 }
 0x619   :  { %v4568_v6 = vadd.f32 %v4567_v60, %v4069_v61  ;;  %v3572_v24 = vadd.f32 %v3571_v63, %v3073_v7  ;;  %v7248_v60 = vor.u32 %v7773_v0, %v7245_v54 }
 0x61b   :  { %v4796_v16 = vmax.f32 %v4568_v6, 0.0 }
 0x61c   :  { %v5598_v19 = vld [vmem:[#allocation2 + $0x55c] ss:$2 sm:$0xff]  ;;  %v5602_v20 = vld [vmem:[#allocation2 + $0x55d] ss:$2 sm:$0xff] }
 0x61d   :  { %v5607_v23 = vmax.f32 %v5598_v19, %v5602_v20  ;;  %4992 = vst [vmem:[#allocation2 + $0x570] sm:$0xff] %v4796_v16 }
 0x61e   :  { %v4070_v25 = vpop.f32.mrf.mxu2  ;;  %v3075_v31 = vpop.f32.mrf.mxu0 }
 0x61f   :  { %v4569_v26 = vpop.f32.mrf.mxu3  ;;  %v5609_v29 = vmax.f32 %v5605_v22, %v5607_v23  ;;  %v4071_v30 = vadd.f32 %v4070_v25, %v3572_v24  ;;  %v3574_v32 = vpop.f32.mrf.mxu1  ;;  %v3076_v35 = vadd.f32 %v10339_v14, %v3075_v31 }
 0x621   :  { %5611 = vst [vmem:[%s10692_s3 + $0x150] sm:$0xff] %v5609_v29  ;;  %v4570_v36 = vadd.f32 %v4569_v26, %v4071_v30  ;;  %3114 = vmatmul.bf16.gmra.mxu0 %v7228_v27  ;;  %v3575_v40 = vadd.f32 %v3574_v32, %v3076_v35 }
 0x622   :  { %3613 = vmatmul.bf16.gmra.mxu1 %v7232_v28 }
 0x623   :  { %v4797_v39 = vmax.f32 %v4570_v36, 0.0  ;;  %4112 = vmatmul.bf16.gmra.mxu2 %v7236_v33 }
 0x624   :  { %4611 = vmatmul.bf16.gmra.mxu3 %v7240_v34  ;;  %v5600_v41 = vld [vmem:[#allocation2 + $0x56c] ss:$2 sm:$0x3f]  ;;  %v5604_v42 = vld [vmem:[#allocation2 + $0x56d] ss:$2 sm:$0x3f] }
 0x625   :  { %v5608_v44 = vmax.f32 %v5600_v41, %v5604_v42  ;;  %4993 = vst [vmem:[#allocation2 + $0x578] sm:$0xff] %v4797_v39 }
 0x626   :  { %v4073_v45 = vpop.f32.mrf.mxu2  ;;  %v3077_v49 = vpop.f32.mrf.mxu0 }
 0x627   :  { %v4572_v46 = vpop.f32.mrf.mxu3  ;;  %v5610_v47 = vmax.f32 %v5606_v43, %v5608_v44  ;;  %v4074_v48 = vadd.f32 %v4073_v45, %v3575_v40  ;;  %v3576_v8 = vpop.f32.mrf.mxu1  ;;  %v3078_v51 = vadd.f32 %v10339_v14, %v3077_v49 }
 0x629   :  { %5612 = vst [vmem:[%s10692_s3 + $0x158] sm:$0x3f] %v5610_v47  ;;  %v4573_v50 = vadd.f32 %v4572_v46, %v4074_v48  ;;  %v3577_v3 = vadd.f32 %v3576_v8, %v3078_v51 }
 0x62b   :  { %v4798_v53 = vmax.f32 %v4573_v50, 0.0 }
 0x62d   :  { %4994 = vst [vmem:[#allocation2 + $0x580] sm:$0xff] %v4798_v53 }
 0x62e   :  { %v4075_v57 = vpop.f32.mrf.mxu2  ;;  %v3080_v62 = vpop.f32.mrf.mxu0 }
 0x62f   :  { %v4574_v58 = vpop.f32.mrf.mxu3  ;;  %v4076_v61 = vadd.f32 %v4075_v57, %v3577_v3  ;;  %v3579_v63 = vpop.f32.mrf.mxu1  ;;  %v3081_v6 = vadd.f32 %v10339_v14, %v3080_v62 }
 0x631   :  { %v4575_v7 = vadd.f32 %v4574_v58, %v4076_v61  ;;  %3119 = vmatmul.bf16.gmra.mxu0 %v7244_v59  ;;  %v3580_v11 = vadd.f32 %v3579_v63, %v3081_v6 }
 0x632   :  { %3618 = vmatmul.bf16.gmra.mxu1 %v7248_v60 }
 0x633   :  { %v4799_v10 = vmax.f32 %v4575_v7, 0.0  ;;  %4117 = vmatmul.bf16.gmra.mxu2 %v7252_v2 }
 0x634   :  { %4616 = vmatmul.bf16.gmra.mxu3 %v7256_v4  ;;  %v5614_v47 = vld [vmem:[#allocation2 + $0x578] ss:$2 sm:$0xff]  ;;  %v5618_v48 = vld [vmem:[#allocation2 + $0x579] ss:$2 sm:$0xff] }
 0x635   :  { %4995 = vst [vmem:[#allocation2 + $0x588] sm:$0xff] %v4799_v10  ;;  %v5629_v52 = vmax.f32 %v5614_v47, %v5618_v48 }
 0x636   :  { %v4078_v12 = vpop.f32.mrf.mxu2  ;;  %v3082_v16 = vpop.f32.mrf.mxu0 }
 0x637   :  { %v4577_v13 = vpop.f32.mrf.mxu3  ;;  %v4079_v15 = vadd.f32 %v4078_v12, %v3580_v11  ;;  %v3581_v17 = vpop.f32.mrf.mxu1  ;;  %v3083_v19 = vadd.f32 %v10339_v14, %v3082_v16 }
 0x639   :  { %v4578_v18 = vadd.f32 %v4577_v13, %v4079_v15  ;;  %v3582_v21 = vadd.f32 %v3581_v17, %v3083_v19  ;;  %v10660_v13 = vld [vmem:[%s10690_s2] ss:$0 sm:$0xff] }
 0x63b   :  { %v4800_v20 = vmax.f32 %v4578_v18, 0.0 }
 0x63d   :  { %4996 = vst [vmem:[#allocation2 + $0x590] sm:$0xff] %v4800_v20 }
 0x63e   :  { %v4080_v22 = vpop.f32.mrf.mxu2  ;;  %v3085_v25 = vpop.f32.mrf.mxu0 }
 0x63f   :  { %v4579_v23 = vpop.f32.mrf.mxu3  ;;  %v4081_v24 = vadd.f32 %v4080_v22, %v3582_v21  ;;  %v3584_v26 = vpop.f32.mrf.mxu1  ;;  %v3086_v27 = vadd.f32 %v10339_v14, %v3085_v25 }
 0x641   :  { %v4580_v28 = vadd.f32 %v4579_v23, %v4081_v24  ;;  %v3585_v30 = vadd.f32 %v3584_v26, %v3086_v27 }
 0x643   :  { %v4801_v29 = vmax.f32 %v4580_v28, 0.0 }
 0x644   :  { %v5616_v57 = vld [vmem:[#allocation2 + $0x588] ss:$2 sm:$0x3f]  ;;  %v5620_v58 = vld [vmem:[#allocation2 + $0x589] ss:$2 sm:$0x3f] }
 0x645   :  { %4997 = vst [vmem:[#allocation2 + $0x598] sm:$0xff] %v4801_v29  ;;  %v5630_v62 = vmax.f32 %v5616_v57, %v5620_v58 }
 0x646   :  { %v4083_v31 = vpop.f32.mrf.mxu2  ;;  %v3087_v34 = vpop.f32.mrf.mxu0 }
 0x647   :  { %v4582_v32 = vpop.f32.mrf.mxu3  ;;  %v4084_v33 = vadd.f32 %v4083_v31, %v3585_v30  ;;  %v3586_v35 = vpop.f32.mrf.mxu1  ;;  %v3088_v37 = vadd.f32 %v10339_v14, %v3087_v34 }
 0x649   :  { %v4583_v36 = vadd.f32 %v4582_v32, %v4084_v33  ;;  %v3587_v39 = vadd.f32 %v3586_v35, %v3088_v37 }
 0x64b   :  { %v4802_v38 = vmax.f32 %v4583_v36, 0.0 }
 0x64d   :  { %4998 = vst [vmem:[#allocation2 + $0x5a0] sm:$0xff] %v4802_v38 }
 0x64e   :  { %v4085_v40 = vpop.f32.mrf.mxu2  ;;  %v3090_v43 = vpop.f32.mrf.mxu0 }
 0x64f   :  { %v4584_v41 = vpop.f32.mrf.mxu3  ;;  %v4086_v42 = vadd.f32 %v4085_v40, %v3587_v39  ;;  %v3589_v44 = vpop.f32.mrf.mxu1  ;;  %v3091_v45 = vadd.f32 %v10339_v14, %v3090_v43 }
 0x651   :  { %v4585_v46 = vadd.f32 %v4584_v41, %v4086_v42  ;;  %v3590_v8 = vadd.f32 %v3589_v44, %v3091_v45 }
 0x653   :  { %v4803_v49 = vmax.f32 %v4585_v46, 0.0 }
 0x654   :  { %v5622_v50 = vld [vmem:[#allocation2 + $0x594] ss:$2 sm:$0xff]  ;;  %v5626_v51 = vld [vmem:[#allocation2 + $0x595] ss:$2 sm:$0xff] }
 0x655   :  { %v5631_v5 = vmax.f32 %v5622_v50, %v5626_v51  ;;  %4999 = vst [vmem:[#allocation2 + $0x5a8] sm:$0xff] %v4803_v49 }
 0x656   :  { %v4088_v0 = vpop.f32.mrf.mxu2  ;;  %v3092_v55 = vpop.f32.mrf.mxu0 }
 0x657   :  { %v4587_v53 = vpop.f32.mrf.mxu3  ;;  %v5633_v54 = vmax.f32 %v5629_v52, %v5631_v5  ;;  %v4089_v9 = vadd.f32 %v4088_v0, %v3590_v8  ;;  %v3591_v1 = vpop.f32.mrf.mxu1  ;;  %v3093_v3 = vadd.f32 %v10339_v14, %v3092_v55 }
 0x659   :  { %5635 = vst [vmem:[%s10692_s3 + $0x15e] sm:$0xff] %v5633_v54  ;;  %v4588_v56 = vadd.f32 %v4587_v53, %v4089_v9  ;;  %v3592_v2 = vadd.f32 %v3591_v1, %v3093_v3 }
 0x65b   :  { %v4804_v59 = vmax.f32 %v4588_v56, 0.0 }
 0x65c   :  { %v5624_v60 = vld [vmem:[#allocation2 + $0x5a4] ss:$2 sm:$0x3f]  ;;  %v5628_v61 = vld [vmem:[#allocation2 + $0x5a5] ss:$2 sm:$0x3f] }
 0x65d   :  { %v5632_v63 = vmax.f32 %v5624_v60, %v5628_v61  ;;  %5000 = vst [vmem:[#allocation2 + $0x5b0] sm:$0xff] %v4804_v59 }
 0x65e   :  { %v4090_v4 = vpop.f32.mrf.mxu2  ;;  %v3095_v11 = vpop.f32.mrf.mxu0 }
 0x65f   :  { %v4589_v6 = vpop.f32.mrf.mxu3  ;;  %v5634_v7 = vmax.f32 %v5630_v62, %v5632_v63  ;;  %v4091_v10 = vadd.f32 %v4090_v4, %v3592_v2  ;;  %v3594_v12 = vpop.f32.mrf.mxu1  ;;  %v3096_v14 = vadd.f32 %v10660_v13, %v3095_v11 }
 0x661   :  { %5636 = vst [vmem:[%s10692_s3 + $0x166] sm:$0x3f] %v5634_v7  ;;  %v4590_v15 = vadd.f32 %v4589_v6, %v4091_v10  ;;  %v3595_v17 = vadd.f32 %v3594_v12, %v3096_v14 }
 0x663   :  { %v4805_v16 = vmax.f32 %v4590_v15, 0.0 }
 0x665   :  { %5001 = vst [vmem:[#allocation2 + $0x5b8] sm:$0xff] %v4805_v16 }
 0x666   :  { %v4093_v18 = vpop.f32.mrf.mxu2  ;;  %v3097_v21 = vpop.f32.mrf.mxu0 }
 0x667   :  { %v4592_v19 = vpop.f32.mrf.mxu3  ;;  %v4094_v20 = vadd.f32 %v4093_v18, %v3595_v17  ;;  %v3596_v22 = vpop.f32.mrf.mxu1  ;;  %v3098_v24 = vadd.f32 %v10660_v13, %v3097_v21 }
 0x669   :  { %v4593_v23 = vadd.f32 %v4592_v19, %v4094_v20  ;;  %v3597_v26 = vadd.f32 %v3596_v22, %v3098_v24 }
 0x66b   :  { %v4806_v25 = vmax.f32 %v4593_v23, 0.0 }
 0x66c   :  { %v5638_v56 = vld [vmem:[#allocation2 + $0x5b0] ss:$2 sm:$0xff]  ;;  %v5642_v3 = vld [vmem:[#allocation2 + $0x5b1] ss:$2 sm:$0xff] }
 0x66d   :  { %5002 = vst [vmem:[#allocation2 + $0x5c0] sm:$0xff] %v4806_v25  ;;  %v5653_v60 = vmax.f32 %v5638_v56, %v5642_v3 }
 0x66e   :  { %v4095_v27 = vpop.f32.mrf.mxu2  ;;  %v3100_v30 = vpop.f32.mrf.mxu0 }
 0x66f   :  { %v4594_v28 = vpop.f32.mrf.mxu3  ;;  %v4096_v29 = vadd.f32 %v4095_v27, %v3597_v26  ;;  %v3599_v31 = vpop.f32.mrf.mxu1  ;;  %v3101_v32 = vadd.f32 %v10660_v13, %v3100_v30 }
 0x671   :  { %v4595_v33 = vadd.f32 %v4594_v28, %v4096_v29  ;;  %v3600_v35 = vadd.f32 %v3599_v31, %v3101_v32 }
 0x673   :  { %v4807_v34 = vmax.f32 %v4595_v33, 0.0 }
 0x675   :  { %5003 = vst [vmem:[#allocation2 + $0x5c8] sm:$0xff] %v4807_v34 }
 0x676   :  { %v4098_v36 = vpop.f32.mrf.mxu2  ;;  %v3102_v39 = vpop.f32.mrf.mxu0 }
 0x677   :  { %v4597_v37 = vpop.f32.mrf.mxu3  ;;  %v4099_v38 = vadd.f32 %v4098_v36, %v3600_v35  ;;  %v3601_v40 = vpop.f32.mrf.mxu1  ;;  %v3103_v42 = vadd.f32 %v10660_v13, %v3102_v39 }
 0x679   :  { %v4598_v41 = vadd.f32 %v4597_v37, %v4099_v38  ;;  %v3602_v44 = vadd.f32 %v3601_v40, %v3103_v42 }
 0x67b   :  { %v4808_v43 = vmax.f32 %v4598_v41, 0.0 }
 0x67c   :  { %v5640_v14 = vld [vmem:[#allocation2 + $0x5c0] ss:$2 sm:$0x3f]  ;;  %v5644_v15 = vld [vmem:[#allocation2 + $0x5c1] ss:$2 sm:$0x3f] }
 0x67d   :  { %5004 = vst [vmem:[#allocation2 + $0x5d0] sm:$0xff] %v4808_v43  ;;  %v5654_v20 = vmax.f32 %v5640_v14, %v5644_v15 }
 0x67e   :  { %v4100_v45 = vpop.f32.mrf.mxu2  ;;  %v3105_v48 = vpop.f32.mrf.mxu0 }
 0x67f   :  { %v4599_v46 = vpop.f32.mrf.mxu3  ;;  %v4101_v47 = vadd.f32 %v4100_v45, %v3602_v44  ;;  %v3604_v49 = vpop.f32.mrf.mxu1  ;;  %v3106_v8 = vadd.f32 %v10660_v13, %v3105_v48 }
 0x681   :  { %v4600_v50 = vadd.f32 %v4599_v46, %v4101_v47  ;;  %v3605_v52 = vadd.f32 %v3604_v49, %v3106_v8 }
 0x683   :  { %v4809_v51 = vmax.f32 %v4600_v50, 0.0 }
 0x685   :  { %5005 = vst [vmem:[#allocation2 + $0x5d8] sm:$0xff] %v4809_v51 }
 0x686   :  { %v4103_v5 = vpop.f32.mrf.mxu2  ;;  %v3107_v54 = vpop.f32.mrf.mxu0 }
 0x687   :  { %v4602_v0 = vpop.f32.mrf.mxu3  ;;  %v4104_v53 = vadd.f32 %v4103_v5, %v3605_v52  ;;  %v3606_v9 = vpop.f32.mrf.mxu1  ;;  %v3108_v1 = vadd.f32 %v10660_v13, %v3107_v54 }
 0x689   :  { %v4603_v55 = vadd.f32 %v4602_v0, %v4104_v53  ;;  %v3607_v62 = vadd.f32 %v3606_v9, %v3108_v1 }
 0x68b   :  { %v4810_v57 = vmax.f32 %v4603_v55, 0.0 }
 0x68c   :  { %v5646_v58 = vld [vmem:[#allocation2 + $0x5cc] ss:$2 sm:$0xff]  ;;  %v5650_v59 = vld [vmem:[#allocation2 + $0x5cd] ss:$2 sm:$0xff] }
 0x68d   :  { %v5655_v61 = vmax.f32 %v5646_v58, %v5650_v59  ;;  %5006 = vst [vmem:[#allocation2 + $0x5e0] sm:$0xff] %v4810_v57 }
 0x68e   :  { %v4105_v63 = vpop.f32.mrf.mxu2  ;;  %v3110_v7 = vpop.f32.mrf.mxu0 }
 0x68f   :  { %v4604_v2 = vpop.f32.mrf.mxu3  ;;  %v5657_v4 = vmax.f32 %v5653_v60, %v5655_v61  ;;  %v4106_v6 = vadd.f32 %v4105_v63, %v3607_v62  ;;  %v3609_v10 = vpop.f32.mrf.mxu1  ;;  %v3111_v11 = vadd.f32 %v10660_v13, %v3110_v7 }
 0x691   :  { %5659 = vst [vmem:[%s10692_s3 + $0x16c] sm:$0xff] %v5657_v4  ;;  %v4605_v12 = vadd.f32 %v4604_v2, %v4106_v6  ;;  %v3610_v17 = vadd.f32 %v3609_v10, %v3111_v11 }
 0x693   :  { %v4811_v16 = vmax.f32 %v4605_v12, 0.0 }
 0x694   :  { %v5648_v18 = vld [vmem:[#allocation2 + $0x5dc] ss:$2 sm:$0x3f]  ;;  %v5652_v19 = vld [vmem:[#allocation2 + $0x5dd] ss:$2 sm:$0x3f] }
 0x695   :  { %v5656_v21 = vmax.f32 %v5648_v18, %v5652_v19  ;;  %5007 = vst [vmem:[#allocation2 + $0x5e8] sm:$0xff] %v4811_v16 }
 0x696   :  { %v4108_v22 = vpop.f32.mrf.mxu2  ;;  %v3112_v26 = vpop.f32.mrf.mxu0 }
 0x697   :  { %v4607_v23 = vpop.f32.mrf.mxu3  ;;  %v5658_v24 = vmax.f32 %v5654_v20, %v5656_v21  ;;  %v4109_v25 = vadd.f32 %v4108_v22, %v3610_v17  ;;  %v3611_v27 = vpop.f32.mrf.mxu1  ;;  %v3113_v29 = vadd.f32 %v10660_v13, %v3112_v26 }
 0x699   :  { %5660 = vst [vmem:[%s10692_s3 + $0x174] sm:$0x3f] %v5658_v24  ;;  %v4608_v28 = vadd.f32 %v4607_v23, %v4109_v25  ;;  %v3612_v31 = vadd.f32 %v3611_v27, %v3113_v29 }
 0x69b   :  { %v4812_v30 = vmax.f32 %v4608_v28, 0.0 }
 0x69d   :  { %5008 = vst [vmem:[#allocation2 + $0x5f0] sm:$0xff] %v4812_v30 }
 0x69e   :  { %v4110_v32 = vpop.f32.mrf.mxu2  ;;  %v3115_v35 = vpop.f32.mrf.mxu0 }
 0x69f   :  { %v4609_v33 = vpop.f32.mrf.mxu3  ;;  %v4111_v34 = vadd.f32 %v4110_v32, %v3612_v31  ;;  %v3614_v36 = vpop.f32.mrf.mxu1  ;;  %v3116_v37 = vadd.f32 %v10660_v13, %v3115_v35 }
 0x6a1   :  { %v4610_v38 = vadd.f32 %v4609_v33, %v4111_v34  ;;  %v3615_v40 = vadd.f32 %v3614_v36, %v3116_v37 }
 0x6a3   :  { %v4813_v39 = vmax.f32 %v4610_v38, 0.0 }
 0x6a4   :  { %v5662_v6 = vld [vmem:[#allocation2 + $0x5e8] ss:$2 sm:$0xff]  ;;  %v5666_v7 = vld [vmem:[#allocation2 + $0x5e9] ss:$2 sm:$0xff] }
 0x6a5   :  { %5009 = vst [vmem:[#allocation2 + $0x5f8] sm:$0xff] %v4813_v39  ;;  %v5677_v14 = vmax.f32 %v5662_v6, %v5666_v7 }
 0x6a6   :  { %v4113_v41 = vpop.f32.mrf.mxu2  ;;  %v3117_v44 = vpop.f32.mrf.mxu0 }
 0x6a7   :  { %v4612_v42 = vpop.f32.mrf.mxu3  ;;  %v4114_v43 = vadd.f32 %v4113_v41, %v3615_v40  ;;  %v3616_v45 = vpop.f32.mrf.mxu1  ;;  %v3118_v47 = vadd.f32 %v10660_v13, %v3117_v44 }
 0x6a9   :  { %v4613_v46 = vadd.f32 %v4612_v42, %v4114_v43  ;;  %v3617_v49 = vadd.f32 %v3616_v45, %v3118_v47 }
 0x6ab   :  { %v4814_v48 = vmax.f32 %v4613_v46, 0.0 }
 0x6ad   :  { %5010 = vst [vmem:[#allocation2 + $0x600] sm:$0xff] %v4814_v48 }
 0x6ae   :  { %v4115_v8 = vpop.f32.mrf.mxu2  ;;  %v3120_v52 = vpop.f32.mrf.mxu0 }
 0x6af   :  { %v4614_v50 = vpop.f32.mrf.mxu3  ;;  %v4116_v51 = vadd.f32 %v4115_v8, %v3617_v49  ;;  %v3121_v5 = vadd.f32 %v10660_v13, %v3120_v52  ;;  %v3619_v53 = vpop.f32.mrf.mxu1 }
 0x6b1   :  { %v4615_v0 = vadd.f32 %v4614_v50, %v4116_v51  ;;  %v3620_v9 = vadd.f32 %v3619_v53, %v3121_v5 }
 0x6b3   :  { %v4815_v54 = vmax.f32 %v4615_v0, 0.0 }
 0x6b4   :  { %v5668_v17 = vld [vmem:[#allocation2 + $0x5f9] ss:$2 sm:$0x3f] }
 0x6b5   :  { %5011 = vst [vmem:[#allocation2 + $0x608] sm:$0xff] %v4815_v54 }
 0x6b6   :  { %v4118_v55 = vpop.f32.mrf.mxu2  ;;  %v3122_v3 = vpop.f32.mrf.mxu0 }
 0x6b7   :  { %v4617_v1 = vpop.f32.mrf.mxu3  ;;  %v4119_v56 = vadd.f32 %v4118_v55, %v3620_v9  ;;  %v3123_v58 = vadd.f32 %v10660_v13, %v3122_v3  ;;  %v3621_v60 = vpop.f32.mrf.mxu1  ;;  %v5664_v13 = vld [vmem:[#allocation2 + $0x5f8] ss:$2 sm:$0x3f] }
 0x6b8   :  { %v5678_v20 = vmax.f32 %v5664_v13, %v5668_v17 }
 0x6b9   :  { %v4618_v57 = vadd.f32 %v4617_v1, %v4119_v56  ;;  %v3622_v61 = vadd.f32 %v3621_v60, %v3123_v58 }
 0x6bb   :  { %v4816_v59 = vmax.f32 %v4618_v57, 0.0 }
 0x6bd   :  { %5012 = vst [vmem:[#allocation2 + $0x610] sm:$0xff] %v4816_v59 }
 0x6be   :  { %v4120_v62 = vpop.f32.mrf.mxu2 }
 0x6bf   :  { %v4121_v63 = vadd.f32 %v4120_v62, %v3622_v61  ;;  %v4619_v2 = vpop.f32.mrf.mxu3 }
 0x6c1   :  { %v4620_v4 = vadd.f32 %v4619_v2, %v4121_v63 }
 0x6c3   :  { %v4817_v10 = vmax.f32 %v4620_v4, 0.0 }
 0x6c4   :  { %v5670_v11 = vld [vmem:[#allocation2 + $0x604] ss:$2 sm:$0xff]  ;;  %v5674_v12 = vld [vmem:[#allocation2 + $0x605] ss:$2 sm:$0xff] }
 0x6c5   :  { %v5679_v15 = vmax.f32 %v5670_v11, %v5674_v12  ;;  %5013 = vst [vmem:[#allocation2 + $0x618] sm:$0xff] %v4817_v10 }
 0x6c7   :  { %v5681_v16 = vmax.f32 %v5677_v14, %v5679_v15 }
 0x6c9   :  { %5683 = vst [vmem:[%s10692_s3 + $0x17a] sm:$0xff] %v5681_v16 }
 0x6cc   :  { %v5672_v18 = vld [vmem:[#allocation2 + $0x614] ss:$2 sm:$0x3f]  ;;  %v5676_v19 = vld [vmem:[#allocation2 + $0x615] ss:$2 sm:$0x3f] }
 0x6cd   :  { %v5680_v21 = vmax.f32 %v5672_v18, %v5676_v19 }
 0x6cf   :  { %v5682_v22 = vmax.f32 %v5678_v20, %v5680_v21 }
 0x6d1   :  { %5684 = vst [vmem:[%s10692_s3 + $0x182] sm:$0x3f] %v5682_v22 }

// kernel: lenet_mergeconv_forward.6
= control target key start
LH: loop header
LB: loop body
LE: loop exit
PB: predicated region body
PF: predicated region fallthrough
CT: control target
= control target key end

     0   :  { %s1115_s1 = inlined_call_operand.vmem [shape: bf16[256,128], index: 1, kind: input, shape index: {}]   ;;  %s1116_s2 = inlined_call_operand.vmem [shape: f32[1,128], index: 2, kind: input, shape index: {}]   ;;  %s1117_s0 = inlined_call_operand.vmem [shape: bf16[200,256], index: 0, kind: input, shape index: {}]   ;;  %s1118_s3 = inlined_call_operand.vmem [shape: f32[50,128], index: 3, kind: output, shape index: {}]  }
   0x1   :  { %v808_v0 = vld [vmem:[%s1115_s1 + $0x38] sm:$0xff]  ;;  %v807_v2 = vld [vmem:[%s1115_s1 + $0x30] sm:$0xff]  ;;  %v806_v4 = vld [vmem:[%s1115_s1 + $0x28] sm:$0xff] }
   0x2   :  { %v816_v1 = vld [vmem:[%s1115_s1 + $0x78] sm:$0xff]  ;;  %298 = vmatpush.bf16.msra.mxu0 %v808_v0  ;;  %817 = vmatpush.bf16.msra.mxu2 %v808_v0  ;;  %v815_v3 = vld [vmem:[%s1115_s1 + $0x70] sm:$0xff]  ;;  %v814_v5 = vld [vmem:[%s1115_s1 + $0x68] sm:$0xff] }
   0x3   :  { %371 = vmatpush.bf16.msra.mxu1 %v816_v1  ;;  %825 = vmatpush.bf16.msra.mxu3 %v816_v1  ;;  %v805_v6 = vld [vmem:[%s1115_s1 + $0x20] sm:$0xff]  ;;  %v804_v8 = vld [vmem:[%s1115_s1 + $0x18] sm:$0xff]  ;;  %v803_v10 = vld [vmem:[%s1115_s1 + $0x10] sm:$0xff] }
   0x4   :  { %v813_v7 = vld [vmem:[%s1115_s1 + $0x60] sm:$0xff]  ;;  %v812_v9 = vld [vmem:[%s1115_s1 + $0x58] sm:$0xff]  ;;  %v811_v11 = vld [vmem:[%s1115_s1 + $0x50] sm:$0xff] }
   0x5   :  { %v802_v12 = vld [vmem:[%s1115_s1 + $0x8] sm:$0xff]  ;;  %v801_v14 = vld [vmem:[%s1115_s1] sm:$0xff]  ;;  %v791_v22 = vld [vmem:[%s1117_s0 + $0x74] sm:$0xf] }
   0x6   :  { %299 = vmatpush.bf16.msra.mxu0 %v807_v2  ;;  %818 = vmatpush.bf16.msra.mxu2 %v807_v2  ;;  %v810_v13 = vld [vmem:[%s1115_s1 + $0x48] sm:$0xff]  ;;  %v809_v15 = vld [vmem:[%s1115_s1 + $0x40] sm:$0xff]  ;;  %v677_v23 = vld [vmem:[%s1117_s0 + $0x78] sm:$0xf0] }
   0x7   :  { %372 = vmatpush.bf16.msra.mxu1 %v815_v3  ;;  %826 = vmatpush.bf16.msra.mxu3 %v815_v3  ;;  %v619_v16 = vld [vmem:[%s1117_s0] sm:$0xf]  ;;  %v778_v17 = vld [vmem:[%s1117_s0 + $0x4] sm:$0xf0]  ;;  %v777_v20 = vld [vmem:[%s1117_s0 + $0x4] sm:$0xf]  ;;  %v680_v27 = vor.u32 %v791_v22, %v677_v23 }
   0x8   :  { %v667_v18 = vld [vmem:[%s1117_s0 + $0x60] sm:$0xf]  ;;  %v790_v19 = vld [vmem:[%s1117_s0 + $0x64] sm:$0xf0]  ;;  %v621_v21 = vld [vmem:[%s1117_s0 + $0x8] sm:$0xf0]  ;;  %v620_v24 = vor.u32 %v778_v17, %v619_v16 }
   0x9   :  { %v668_v25 = vor.u32 %v790_v19, %v667_v18  ;;  %v624_v26 = vor.u32 %v777_v20, %v621_v21  ;;  %v627_v28 = vld [vmem:[%s1117_s0 + $0x10] sm:$0xf]  ;;  %v780_v29 = vld [vmem:[%s1117_s0 + $0x14] sm:$0xf0]  ;;  %v779_v32 = vld [vmem:[%s1117_s0 + $0x14] sm:$0xf] }
   0xa   :  { %300 = vmatpush.bf16.msra.mxu0 %v806_v4  ;;  %819 = vmatpush.bf16.msra.mxu2 %v806_v4  ;;  %v675_v30 = vld [vmem:[%s1117_s0 + $0x70] sm:$0xf]  ;;  %v792_v31 = vld [vmem:[%s1117_s0 + $0x74] sm:$0xf0]  ;;  %v629_v33 = vld [vmem:[%s1117_s0 + $0x18] sm:$0xf0]  ;;  %v628_v36 = vor.u32 %v780_v29, %v627_v28 }
   0xb   :  { %373 = vmatpush.bf16.msra.mxu1 %v814_v5  ;;  %827 = vmatpush.bf16.msra.mxu3 %v814_v5  ;;  %v793_v34 = vld [vmem:[%s1117_s0 + $0x84] sm:$0xf]  ;;  %v685_v35 = vld [vmem:[%s1117_s0 + $0x88] sm:$0xf0]  ;;  %v676_v37 = vor.u32 %v792_v31, %v675_v30  ;;  %v632_v38 = vor.u32 %v779_v32, %v629_v33  ;;  %v635_v40 = vld [vmem:[%s1117_s0 + $0x20] sm:$0xf] }
   0xc   :  { %v688_v39 = vor.u32 %v793_v34, %v685_v35  ;;  %v782_v41 = vld [vmem:[%s1117_s0 + $0x24] sm:$0xf0]  ;;  %v683_v42 = vld [vmem:[%s1117_s0 + $0x80] sm:$0xf]  ;;  %v781_v44 = vld [vmem:[%s1117_s0 + $0x24] sm:$0xf] }
   0xd   :  { %v794_v43 = vld [vmem:[%s1117_s0 + $0x84] sm:$0xf0]  ;;  %v637_v45 = vld [vmem:[%s1117_s0 + $0x28] sm:$0xf0]  ;;  %v795_v46 = vld [vmem:[%s1117_s0 + $0x94] sm:$0xf]  ;;  %v636_v48 = vor.u32 %v782_v41, %v635_v40 }
   0xe   :  { %301 = vmatpush.bf16.msra.mxu0 %v805_v6  ;;  %820 = vmatpush.bf16.msra.mxu2 %v805_v6  ;;  %v693_v47 = vld [vmem:[%s1117_s0 + $0x98] sm:$0xf0]  ;;  %v684_v49 = vor.u32 %v794_v43, %v683_v42  ;;  %v640_v50 = vor.u32 %v781_v44, %v637_v45  ;;  %v643_v52 = vld [vmem:[%s1117_s0 + $0x30] sm:$0xf]  ;;  %v784_v53 = vld [vmem:[%s1117_s0 + $0x34] sm:$0xf0] }
   0xf   :  { %374 = vmatpush.bf16.msra.mxu1 %v813_v7  ;;  %828 = vmatpush.bf16.msra.mxu3 %v813_v7  ;;  %v696_v51 = vor.u32 %v795_v46, %v693_v47  ;;  %v691_v54 = vld [vmem:[%s1117_s0 + $0x90] sm:$0xf]  ;;  %v796_v55 = vld [vmem:[%s1117_s0 + $0x94] sm:$0xf0]  ;;  %v783_v56 = vld [vmem:[%s1117_s0 + $0x34] sm:$0xf]  ;;  %v644_v60 = vor.u32 %v784_v53, %v643_v52 }
  0x10   :  { %v645_v57 = vld [vmem:[%s1117_s0 + $0x38] sm:$0xf0]  ;;  %v797_v58 = vld [vmem:[%s1117_s0 + $0xa4] sm:$0xf]  ;;  %v701_v59 = vld [vmem:[%s1117_s0 + $0xa8] sm:$0xf0]  ;;  %v692_v61 = vor.u32 %v796_v55, %v691_v54 }
  0x11   :  { %v648_v62 = vor.u32 %v783_v56, %v645_v57  ;;  %v704_v63 = vor.u32 %v797_v58, %v701_v59  ;;  %v651_v0 = vld [vmem:[%s1117_s0 + $0x40] sm:$0xf]  ;;  %v786_v1 = vld [vmem:[%s1117_s0 + $0x44] sm:$0xf0]  ;;  %v785_v4 = vld [vmem:[%s1117_s0 + $0x44] sm:$0xf] }
  0x12   :  { %302 = vmatpush.bf16.msra.mxu0 %v804_v8  ;;  %821 = vmatpush.bf16.msra.mxu2 %v804_v8  ;;  %v699_v2 = vld [vmem:[%s1117_s0 + $0xa0] sm:$0xf]  ;;  %v798_v3 = vld [vmem:[%s1117_s0 + $0xa4] sm:$0xf0]  ;;  %v653_v5 = vld [vmem:[%s1117_s0 + $0x48] sm:$0xf0]  ;;  %v652_v8 = vor.u32 %v786_v1, %v651_v0 }
  0x13   :  { %375 = vmatpush.bf16.msra.mxu1 %v812_v9  ;;  %829 = vmatpush.bf16.msra.mxu3 %v812_v9  ;;  %v799_v6 = vld [vmem:[%s1117_s0 + $0xb4] sm:$0xf]  ;;  %v709_v7 = vld [vmem:[%s1117_s0 + $0xb8] sm:$0xf0]  ;;  %v700_v9 = vor.u32 %v798_v3, %v699_v2  ;;  %v800_v16 = vld [vmem:[%s1117_s0 + $0xb4] sm:$0xf0] }
  0x14   :  { %v787_v18 = vld [vmem:[%s1117_s0 + $0x54] sm:$0xf]  ;;  %v661_v19 = vld [vmem:[%s1117_s0 + $0x58] sm:$0xf0]  ;;  %v1052_v29 = vld [vmem:[%s1116_s2] ss:$0 sm:$0xff] }
  0x15   :  { %v664_v22 = vor.u32 %v787_v18, %v661_v19 }
  0x16   :  { %303 = vmatpush.bf16.msra.mxu0 %v803_v10  ;;  %822 = vmatpush.bf16.msra.mxu2 %v803_v10  ;;  %v656_v10 = vor.u32 %v785_v4, %v653_v5 }
  0x17   :  { %376 = vmatpush.bf16.msra.mxu1 %v811_v11  ;;  %830 = vmatpush.bf16.msra.mxu3 %v811_v11  ;;  %v712_v11 = vor.u32 %v799_v6, %v709_v7 }
  0x1a   :  { %304 = vmatpush.bf16.msra.mxu0 %v802_v12  ;;  %823 = vmatpush.bf16.msra.mxu2 %v802_v12  ;;  %v38_v12 = vld [vmem:[%s1117_s0 + $0xc0] sm:$0xff] }
  0x1b   :  { %377 = vmatpush.bf16.msra.mxu1 %v810_v13  ;;  %831 = vmatpush.bf16.msra.mxu3 %v810_v13  ;;  %v659_v13 = vld [vmem:[%s1117_s0 + $0x50] sm:$0xf]  ;;  %v149_v17 = vunpack.c.h.b16 %v38_v12 }
  0x1d   :  { %v175_v23 = vpack.c.b16 %v149_v17, %v149_v17 }
  0x1e   :  { %305 = vmatpush.bf16.msra.mxu0 %v801_v14  ;;  %824 = vmatpush.bf16.msra.mxu2 %v801_v14  ;;  %v788_v14 = vld [vmem:[%s1117_s0 + $0x54] sm:$0xf0] }
  0x1f   :  { %378 = vmatpush.bf16.msra.mxu1 %v809_v15  ;;  %832 = vmatpush.bf16.msra.mxu3 %v809_v15  ;;  %v707_v15 = vld [vmem:[%s1117_s0 + $0xb0] sm:$0xf]  ;;  %v660_v20 = vor.u32 %v788_v14, %v659_v13 }
  0x20   :  { %v708_v21 = vor.u32 %v800_v16, %v707_v15 }
  0x21   :  { %306 = vmatmul.bf16.vlgmr.msra.gmra.mxu0 %v620_v24  ;;  %336 = vmatmul.bf16.vlgmr.msra.gmra.mxu2 %v668_v25  ;;  %v148_v24 = vunpack.c.l.b16 %v38_v12  ;;  %v789_v25 = vld [vmem:[%s1117_s0 + $0x64] sm:$0xf] }
  0x22   :  { %379 = vmatmul.bf16.vlgmr.msra.gmra.mxu1 %v624_v26  ;;  %414 = vmatmul.bf16.vlgmr.msra.gmra.mxu3 %v680_v27  ;;  %v669_v26 = vld [vmem:[%s1117_s0 + $0x68] sm:$0xf0] }
  0x23   :  { %v174_v27 = vpack.c.b16 %v148_v24, %v148_v24  ;;  %v672_v28 = vor.u32 %v789_v25, %v669_v26 }
  0x31   :  { %311 = vmatmul.bf16.gmra.mxu0 %v628_v36  ;;  %341 = vmatmul.bf16.gmra.mxu2 %v676_v37 }
  0x32   :  { %384 = vmatmul.bf16.gmra.mxu1 %v632_v38  ;;  %419 = vmatmul.bf16.gmra.mxu3 %v688_v39 }
  0x41   :  { %316 = vmatmul.bf16.gmra.mxu0 %v636_v48  ;;  %346 = vmatmul.bf16.gmra.mxu2 %v684_v49 }
  0x42   :  { %389 = vmatmul.bf16.gmra.mxu1 %v640_v50  ;;  %424 = vmatmul.bf16.gmra.mxu3 %v696_v51 }
  0x51   :  { %321 = vmatmul.bf16.gmra.mxu0 %v644_v60  ;;  %351 = vmatmul.bf16.gmra.mxu2 %v692_v61 }
  0x52   :  { %394 = vmatmul.bf16.gmra.mxu1 %v648_v62  ;;  %429 = vmatmul.bf16.gmra.mxu3 %v704_v63 }
  0x61   :  { %326 = vmatmul.bf16.gmra.mxu0 %v652_v8  ;;  %356 = vmatmul.bf16.gmra.mxu2 %v700_v9 }
  0x62   :  { %399 = vmatmul.bf16.gmra.mxu1 %v656_v10  ;;  %434 = vmatmul.bf16.gmra.mxu3 %v712_v11 }
  0x71   :  { %331 = vmatmul.bf16.gmra.mxu0 %v660_v20  ;;  %361 = vmatmul.bf16.gmra.mxu2 %v708_v21 }
  0x72   :  { %404 = vmatmul.bf16.gmra.mxu1 %v664_v22  ;;  %439 = vmatmul.bf16.gmra.mxu3 %v175_v23 }
  0x81   :  { %366 = vmatmul.bf16.gmra.mxu2 %v174_v27 }
  0x82   :  { %409 = vmatmul.bf16.gmra.mxu1 %v672_v28 }
  0x9e   :  { %v307_v30 = vpop.f32.mrf.mxu0 }
  0x9f   :  { %v308_v31 = vadd.f32 %v1052_v29, %v307_v30  ;;  %v380_v32 = vpop.f32.mrf.mxu1 }
  0xa1   :  { %v381_v33 = vadd.f32 %v380_v32, %v308_v31 }
  0xa3   :  { %v444_v34 = vmax.f32 %v381_v33, 0.0 }
  0xa4   :  { %v1055_v35 = vpop.f32.mrf.mxu2 }
  0xa5   :  { %469 = vst [vmem:[#allocation2] sm:$0xff] %v444_v34  ;;  %v415_v36 = vpop.f32.mrf.mxu3 }
  0xa6   :  { %v309_v37 = vpop.f32.mrf.mxu0 }
  0xa7   :  { %v310_v38 = vadd.f32 %v1052_v29, %v309_v37  ;;  %v382_v39 = vpop.f32.mrf.mxu1 }
  0xa9   :  { %v383_v40 = vadd.f32 %v382_v39, %v310_v38 }
  0xab   :  { %v445_v41 = vmax.f32 %v383_v40, 0.0 }
  0xac   :  { %v1058_v42 = vpop.f32.mrf.mxu2 }
  0xad   :  { %470 = vst [vmem:[#allocation2 + $0x8] sm:$0xff] %v445_v41  ;;  %v417_v43 = vpop.f32.mrf.mxu3 }
  0xae   :  { %v312_v44 = vpop.f32.mrf.mxu0 }
  0xaf   :  { %v313_v45 = vadd.f32 %v1052_v29, %v312_v44  ;;  %v385_v46 = vpop.f32.mrf.mxu1 }
  0xb1   :  { %v386_v47 = vadd.f32 %v385_v46, %v313_v45 }
  0xb3   :  { %v446_v48 = vmax.f32 %v386_v47, 0.0 }
  0xb4   :  { %v342_v49 = vpop.f32.mrf.mxu2  ;;  %v494_v58 = vld [vmem:[#allocation2] ss:$2 sm:$0x1f]  ;;  %v496_v59 = vld [vmem:[#allocation2 + $0x1] ss:$2 sm:$0x1f] }
  0xb5   :  { %471 = vst [vmem:[#allocation2 + $0x10] sm:$0xff] %v446_v48  ;;  %v343_v50 = vadd.f32 %v1052_v29, %v342_v49  ;;  %v420_v51 = vpop.f32.mrf.mxu3  ;;  %v501_v0 = vmax.f32 %v494_v58, %v496_v59 }
  0xb6   :  { %v314_v52 = vpop.f32.mrf.mxu0 }
  0xb7   :  { %v416_v53 = vadd.f32 %v415_v36, %v343_v50  ;;  %v315_v54 = vadd.f32 %v1052_v29, %v314_v52  ;;  %v387_v55 = vpop.f32.mrf.mxu1 }
  0xb9   :  { %v458_v56 = vmax.f32 %v416_v53, 0.0  ;;  %v388_v57 = vadd.f32 %v387_v55, %v315_v54 }
  0xbb   :  { %483 = vst [vmem:[#allocation2 + $0x70] sm:$0xff] %v458_v56  ;;  %v447_v60 = vmax.f32 %v388_v57, 0.0 }
  0xbc   :  { %v498_v61 = vld [vmem:[#allocation2 + $0xa] ss:$2 sm:$0x1f]  ;;  %v500_v62 = vld [vmem:[#allocation2 + $0xb] ss:$2 sm:$0x1f]  ;;  %v344_v63 = vpop.f32.mrf.mxu2 }
  0xbd   :  { %v502_v1 = vmax.f32 %v498_v61, %v500_v62  ;;  %472 = vst [vmem:[#allocation2 + $0x18] sm:$0xff] %v447_v60  ;;  %v345_v2 = vadd.f32 %v1052_v29, %v344_v63  ;;  %v422_v3 = vpop.f32.mrf.mxu3 }
  0xbe   :  { %v317_v4 = vpop.f32.mrf.mxu0 }
  0xbf   :  { %v503_v5 = vmax.f32 %v501_v0, %v502_v1  ;;  %v418_v6 = vadd.f32 %v417_v43, %v345_v2  ;;  %v318_v7 = vadd.f32 %v1052_v29, %v317_v4  ;;  %v390_v8 = vpop.f32.mrf.mxu1 }
  0xc1   :  { %504 = vst [vmem:[%s1118_s3] sm:$0x1f] %v503_v5  ;;  %v459_v9 = vmax.f32 %v418_v6, 0.0  ;;  %v391_v10 = vadd.f32 %v390_v8, %v318_v7 }
  0xc3   :  { %484 = vst [vmem:[#allocation2 + $0x78] sm:$0xff] %v459_v9  ;;  %v448_v11 = vmax.f32 %v391_v10, 0.0 }
  0xc4   :  { %v347_v12 = vpop.f32.mrf.mxu2  ;;  %v506_v21 = vld [vmem:[#allocation2 + $0x14] ss:$2 sm:$0x1f]  ;;  %v508_v22 = vld [vmem:[#allocation2 + $0x15] ss:$2 sm:$0x1f] }
  0xc5   :  { %473 = vst [vmem:[#allocation2 + $0x20] sm:$0xff] %v448_v11  ;;  %v348_v13 = vadd.f32 %v1052_v29, %v347_v12  ;;  %v425_v14 = vpop.f32.mrf.mxu3  ;;  %v513_v27 = vmax.f32 %v506_v21, %v508_v22 }
  0xc6   :  { %v319_v15 = vpop.f32.mrf.mxu0 }
  0xc7   :  { %v421_v16 = vadd.f32 %v420_v51, %v348_v13  ;;  %v320_v17 = vadd.f32 %v1052_v29, %v319_v15  ;;  %v392_v18 = vpop.f32.mrf.mxu1 }
  0xc9   :  { %v460_v19 = vmax.f32 %v421_v16, 0.0  ;;  %v393_v20 = vadd.f32 %v392_v18, %v320_v17 }
  0xcb   :  { %485 = vst [vmem:[#allocation2 + $0x80] sm:$0xff] %v460_v19  ;;  %v449_v23 = vmax.f32 %v393_v20, 0.0 }
  0xcc   :  { %v510_v24 = vld [vmem:[#allocation2 + $0x1e] ss:$2 sm:$0x1f]  ;;  %v512_v25 = vld [vmem:[#allocation2 + $0x1f] ss:$2 sm:$0x1f]  ;;  %v349_v26 = vpop.f32.mrf.mxu2 }
  0xcd   :  { %v514_v28 = vmax.f32 %v510_v24, %v512_v25  ;;  %474 = vst [vmem:[#allocation2 + $0x28] sm:$0xff] %v449_v23  ;;  %v350_v30 = vadd.f32 %v1052_v29, %v349_v26  ;;  %v427_v31 = vpop.f32.mrf.mxu3 }
  0xce   :  { %v322_v32 = vpop.f32.mrf.mxu0 }
  0xcf   :  { %v515_v33 = vmax.f32 %v513_v27, %v514_v28  ;;  %v423_v34 = vadd.f32 %v422_v3, %v350_v30  ;;  %v323_v36 = vadd.f32 %v1052_v29, %v322_v32  ;;  %v395_v37 = vpop.f32.mrf.mxu1 }
  0xd1   :  { %516 = vst [vmem:[%s1118_s3 + $0x5] sm:$0x1f] %v515_v33  ;;  %v461_v38 = vmax.f32 %v423_v34, 0.0  ;;  %v396_v39 = vadd.f32 %v395_v37, %v323_v36 }
  0xd2   :  { %v566_v49 = vld [vmem:[#allocation2 + $0x78] ss:$2 sm:$0x1f]  ;;  %v568_v50 = vld [vmem:[#allocation2 + $0x79] ss:$2 sm:$0x1f] }
  0xd3   :  { %486 = vst [vmem:[#allocation2 + $0x88] sm:$0xff] %v461_v38  ;;  %v450_v40 = vmax.f32 %v396_v39, 0.0  ;;  %v573_v55 = vmax.f32 %v566_v49, %v568_v50 }
  0xd4   :  { %v352_v41 = vpop.f32.mrf.mxu2 }
  0xd5   :  { %475 = vst [vmem:[#allocation2 + $0x30] sm:$0xff] %v450_v40  ;;  %v353_v43 = vadd.f32 %v1052_v29, %v352_v41  ;;  %v430_v44 = vpop.f32.mrf.mxu3 }
  0xd6   :  { %v324_v45 = vpop.f32.mrf.mxu0 }
  0xd7   :  { %v426_v46 = vadd.f32 %v425_v14, %v353_v43  ;;  %v325_v47 = vadd.f32 %v1052_v29, %v324_v45  ;;  %v397_v48 = vpop.f32.mrf.mxu1 }
  0xd9   :  { %v462_v51 = vmax.f32 %v426_v46, 0.0  ;;  %v398_v52 = vadd.f32 %v397_v48, %v325_v47 }
  0xda   :  { %v570_v53 = vld [vmem:[#allocation2 + $0x82] ss:$2 sm:$0x1f]  ;;  %v572_v54 = vld [vmem:[#allocation2 + $0x83] ss:$2 sm:$0x1f] }
  0xdb   :  { %v574_v56 = vmax.f32 %v570_v53, %v572_v54  ;;  %487 = vst [vmem:[#allocation2 + $0x90] sm:$0xff] %v462_v51  ;;  %v451_v57 = vmax.f32 %v398_v52, 0.0 }
  0xdc   :  { %v354_v58 = vpop.f32.mrf.mxu2  ;;  %v518_v4 = vld [vmem:[#allocation2 + $0x28] ss:$2 sm:$0x1f]  ;;  %v520_v5 = vld [vmem:[#allocation2 + $0x29] ss:$2 sm:$0x1f] }
  0xdd   :  { %v575_v59 = vmax.f32 %v573_v55, %v574_v56  ;;  %476 = vst [vmem:[#allocation2 + $0x38] sm:$0xff] %v451_v57  ;;  %v355_v60 = vadd.f32 %v1052_v29, %v354_v58  ;;  %v432_v61 = vpop.f32.mrf.mxu3  ;;  %v525_v10 = vmax.f32 %v518_v4, %v520_v5 }
  0xde   :  { %v327_v62 = vpop.f32.mrf.mxu0 }
  0xdf   :  { %576 = vst [vmem:[%s1118_s3 + $0x1e] sm:$0x1f] %v575_v59  ;;  %v428_v63 = vadd.f32 %v427_v31, %v355_v60  ;;  %v328_v0 = vadd.f32 %v1052_v29, %v327_v62  ;;  %v400_v1 = vpop.f32.mrf.mxu1  ;;  %v338_v62 = vadd.f32 %v1052_v29, %v1055_v35  ;;  %v340_v35 = vadd.f32 %v1052_v29, %v1058_v42 }
  0xe1   :  { %v463_v2 = vmax.f32 %v428_v63, 0.0  ;;  %v401_v3 = vadd.f32 %v400_v1, %v328_v0 }
  0xe2   :  { %v578_v19 = vld [vmem:[#allocation2 + $0x8c] ss:$2 sm:$0x1f]  ;;  %v580_v20 = vld [vmem:[#allocation2 + $0x8d] ss:$2 sm:$0x1f] }
  0xe3   :  { %488 = vst [vmem:[#allocation2 + $0x98] sm:$0xff] %v463_v2  ;;  %v452_v6 = vmax.f32 %v401_v3, 0.0  ;;  %v585_v25 = vmax.f32 %v578_v19, %v580_v20 }
  0xe4   :  { %v522_v7 = vld [vmem:[#allocation2 + $0x32] ss:$2 sm:$0x1f]  ;;  %v524_v8 = vld [vmem:[#allocation2 + $0x33] ss:$2 sm:$0x1f]  ;;  %v357_v9 = vpop.f32.mrf.mxu2 }
  0xe5   :  { %v526_v11 = vmax.f32 %v522_v7, %v524_v8  ;;  %477 = vst [vmem:[#allocation2 + $0x40] sm:$0xff] %v452_v6  ;;  %v358_v12 = vadd.f32 %v1052_v29, %v357_v9  ;;  %v435_v13 = vpop.f32.mrf.mxu3 }
  0xe6   :  { %v329_v14 = vpop.f32.mrf.mxu0 }
  0xe7   :  { %v527_v15 = vmax.f32 %v525_v10, %v526_v11  ;;  %v431_v16 = vadd.f32 %v430_v44, %v358_v12  ;;  %v330_v17 = vadd.f32 %v1052_v29, %v329_v14  ;;  %v402_v18 = vpop.f32.mrf.mxu1 }
  0xe9   :  { %528 = vst [vmem:[%s1118_s3 + $0xa] sm:$0x1f] %v527_v15  ;;  %v464_v21 = vmax.f32 %v431_v16, 0.0  ;;  %v403_v22 = vadd.f32 %v402_v18, %v330_v17 }
  0xea   :  { %v582_v23 = vld [vmem:[#allocation2 + $0x96] ss:$2 sm:$0x1f]  ;;  %v584_v24 = vld [vmem:[#allocation2 + $0x97] ss:$2 sm:$0x1f] }
  0xeb   :  { %v586_v26 = vmax.f32 %v582_v23, %v584_v24  ;;  %489 = vst [vmem:[#allocation2 + $0xa0] sm:$0xff] %v464_v21  ;;  %v453_v27 = vmax.f32 %v403_v22, 0.0 }
  0xec   :  { %v359_v28 = vpop.f32.mrf.mxu2  ;;  %v530_v40 = vld [vmem:[#allocation2 + $0x3c] ss:$2 sm:$0x1f]  ;;  %v532_v41 = vld [vmem:[#allocation2 + $0x3d] ss:$2 sm:$0x1f] }
  0xed   :  { %v587_v30 = vmax.f32 %v585_v25, %v586_v26  ;;  %478 = vst [vmem:[#allocation2 + $0x48] sm:$0xff] %v453_v27  ;;  %v360_v31 = vadd.f32 %v1052_v29, %v359_v28  ;;  %v437_v32 = vpop.f32.mrf.mxu3  ;;  %v537_v47 = vmax.f32 %v530_v40, %v532_v41 }
  0xee   :  { %v332_v33 = vpop.f32.mrf.mxu0 }
  0xef   :  { %588 = vst [vmem:[%s1118_s3 + $0x23] sm:$0x1f] %v587_v30  ;;  %v433_v34 = vadd.f32 %v432_v61, %v360_v31  ;;  %v333_v36 = vadd.f32 %v1052_v29, %v332_v33  ;;  %v405_v37 = vpop.f32.mrf.mxu1 }
  0xf1   :  { %v465_v38 = vmax.f32 %v433_v34, 0.0  ;;  %v406_v39 = vadd.f32 %v405_v37, %v333_v36 }
  0xf3   :  { %490 = vst [vmem:[#allocation2 + $0xa8] sm:$0xff] %v465_v38  ;;  %v454_v43 = vmax.f32 %v406_v39, 0.0 }
  0xf4   :  { %v534_v44 = vld [vmem:[#allocation2 + $0x46] ss:$2 sm:$0x1f]  ;;  %v536_v45 = vld [vmem:[#allocation2 + $0x47] ss:$2 sm:$0x1f]  ;;  %v362_v46 = vpop.f32.mrf.mxu2 }
  0xf5   :  { %v538_v48 = vmax.f32 %v534_v44, %v536_v45  ;;  %479 = vst [vmem:[#allocation2 + $0x50] sm:$0xff] %v454_v43  ;;  %v363_v49 = vadd.f32 %v1052_v29, %v362_v46  ;;  %v440_v50 = vpop.f32.mrf.mxu3 }
  0xf6   :  { %v334_v51 = vpop.f32.mrf.mxu0 }
  0xf7   :  { %v539_v52 = vmax.f32 %v537_v47, %v538_v48  ;;  %v436_v53 = vadd.f32 %v435_v13, %v363_v49  ;;  %v335_v54 = vadd.f32 %v1052_v29, %v334_v51  ;;  %v407_v55 = vpop.f32.mrf.mxu1 }
  0xf9   :  { %540 = vst [vmem:[%s1118_s3 + $0xf] sm:$0x1f] %v539_v52  ;;  %v466_v56 = vmax.f32 %v436_v53, 0.0  ;;  %v408_v57 = vadd.f32 %v407_v55, %v335_v54 }
  0xfa   :  { %v590_v1 = vld [vmem:[#allocation2 + $0xa0] ss:$2 sm:$0x1f]  ;;  %v592_v2 = vld [vmem:[#allocation2 + $0xa1] ss:$2 sm:$0x1f] }
  0xfb   :  { %491 = vst [vmem:[#allocation2 + $0xb0] sm:$0xff] %v466_v56  ;;  %v455_v58 = vmax.f32 %v408_v57, 0.0  ;;  %v597_v7 = vmax.f32 %v590_v1, %v592_v2 }
  0xfc   :  { %v364_v59 = vpop.f32.mrf.mxu2 }
  0xfd   :  { %480 = vst [vmem:[#allocation2 + $0x58] sm:$0xff] %v455_v58  ;;  %v365_v60 = vadd.f32 %v1052_v29, %v364_v59  ;;  %v442_v61 = vpop.f32.mrf.mxu3 }
  0xff   :  { %v438_v63 = vadd.f32 %v437_v32, %v365_v60  ;;  %v410_v0 = vpop.f32.mrf.mxu1 }
 0x100   :  { %v411_v3 = vadd.f32 %v410_v0, %v338_v62 }
 0x101   :  { %v467_v4 = vmax.f32 %v438_v63, 0.0 }
 0x102   :  { %v594_v5 = vld [vmem:[#allocation2 + $0xaa] ss:$2 sm:$0x1f]  ;;  %v596_v6 = vld [vmem:[#allocation2 + $0xab] ss:$2 sm:$0x1f] }
 0x103   :  { %v598_v8 = vmax.f32 %v594_v5, %v596_v6  ;;  %492 = vst [vmem:[#allocation2 + $0xb8] sm:$0xff] %v467_v4  ;;  %v456_v9 = vmax.f32 %v411_v3, 0.0 }
 0x104   :  { %v367_v10 = vpop.f32.mrf.mxu2  ;;  %v542_v17 = vld [vmem:[#allocation2 + $0x50] ss:$2 sm:$0x1f]  ;;  %v544_v18 = vld [vmem:[#allocation2 + $0x51] ss:$2 sm:$0x1f] }
 0x105   :  { %v599_v11 = vmax.f32 %v597_v7, %v598_v8  ;;  %481 = vst [vmem:[#allocation2 + $0x60] sm:$0xff] %v456_v9  ;;  %v368_v12 = vadd.f32 %v1052_v29, %v367_v10  ;;  %v549_v23 = vmax.f32 %v542_v17, %v544_v18 }
 0x107   :  { %600 = vst [vmem:[%s1118_s3 + $0x28] sm:$0x1f] %v599_v11  ;;  %v441_v13 = vadd.f32 %v440_v50, %v368_v12  ;;  %v412_v14 = vpop.f32.mrf.mxu1 }
 0x108   :  { %v413_v15 = vadd.f32 %v412_v14, %v340_v35 }
 0x109   :  { %v468_v16 = vmax.f32 %v441_v13, 0.0 }
 0x10a   :  { %v457_v19 = vmax.f32 %v413_v15, 0.0  ;;  %v602_v29 = vld [vmem:[#allocation2 + $0xb4] ss:$2 sm:$0x1f] }
 0x10b   :  { %493 = vst [vmem:[#allocation2 + $0xc0] sm:$0xff] %v468_v16  ;;  %v604_v42 = vld [vmem:[#allocation2 + $0xb5] ss:$2 sm:$0x1f] }
 0x10c   :  { %v546_v20 = vld [vmem:[#allocation2 + $0x5a] ss:$2 sm:$0x1f]  ;;  %v548_v21 = vld [vmem:[#allocation2 + $0x5b] ss:$2 sm:$0x1f]  ;;  %v369_v22 = vpop.f32.mrf.mxu2  ;;  %v609_v28 = vmax.f32 %v602_v29, %v604_v42 }
 0x10d   :  { %v550_v24 = vmax.f32 %v546_v20, %v548_v21  ;;  %482 = vst [vmem:[#allocation2 + $0x68] sm:$0xff] %v457_v19 }
 0x10f   :  { %v551_v25 = vmax.f32 %v549_v23, %v550_v24 }
 0x111   :  { %552 = vst [vmem:[%s1118_s3 + $0x14] sm:$0x1f] %v551_v25 }
 0x112   :  { %v606_v26 = vld [vmem:[#allocation2 + $0xbe] ss:$2 sm:$0x1f]  ;;  %v608_v27 = vld [vmem:[#allocation2 + $0xbf] ss:$2 sm:$0x1f] }
 0x113   :  { %v610_v30 = vmax.f32 %v606_v26, %v608_v27 }
 0x114   :  { %v554_v31 = vld [vmem:[#allocation2 + $0x64] ss:$2 sm:$0x1f]  ;;  %v556_v32 = vld [vmem:[#allocation2 + $0x65] ss:$2 sm:$0x1f] }
 0x115   :  { %v611_v33 = vmax.f32 %v609_v28, %v610_v30  ;;  %v558_v34 = vld [vmem:[#allocation2 + $0x6e] ss:$2 sm:$0x1f]  ;;  %v560_v36 = vld [vmem:[#allocation2 + $0x6f] ss:$2 sm:$0x1f]  ;;  %v561_v37 = vmax.f32 %v554_v31, %v556_v32 }
 0x116   :  { %v562_v38 = vmax.f32 %v558_v34, %v560_v36 }
 0x117   :  { %612 = vst [vmem:[%s1118_s3 + $0x2d] sm:$0x1f] %v611_v33 }
 0x118   :  { %v563_v39 = vmax.f32 %v561_v37, %v562_v38 }
 0x11a   :  { %564 = vst [vmem:[%s1118_s3 + $0x19] sm:$0x1f] %v563_v39 }

// kernel: lenet_mergeconv_forward.7
= control target key start
LH: loop header
LB: loop body
LE: loop exit
PB: predicated region body
PF: predicated region fallthrough
CT: control target
= control target key end

     0   :  { %s1001_s0 = inlined_call_operand.vmem [shape: bf16[2,512], index: 0, kind: input, shape index: {}]   ;;  %s1002_s1 = inlined_call_operand.vmem [shape: bf16[512,128], index: 1, kind: input, shape index: {}]   ;;  %s1003_s2 = inlined_call_operand.vmem [shape: f32[1,128], index: 2, kind: input, shape index: {}]   ;;  %s1004_s3 = inlined_call_operand.vmem [shape: bf16[128,128], index: 3, kind: input, shape index: {}]   ;;  %s1005_s4 = inlined_call_operand.vmem [shape: f32[1,128], index: 4, kind: input, shape index: {}]   ;;  %s1006_s5 = inlined_call_operand.vmem [shape: bf16[128,128], index: 5, kind: input, shape index: {}]   ;;  %s1007_s6 = inlined_call_operand.vmem [shape: f32[1,128], index: 6, kind: input, shape index: {}]   ;;  %s1008_s7 = inlined_call_operand.hbm [shape: f32[2,128], index: 7, kind: output, shape index: {}]  }
   0x1   :  { %v730_v0 = vld [vmem:[%s1002_s1 + $0x38] sm:$0xff]  ;;  %v729_v4 = vld [vmem:[%s1002_s1 + $0x30] sm:$0xff]  ;;  %v728_v8 = vld [vmem:[%s1002_s1 + $0x28] sm:$0xff] }
   0x2   :  { %v738_v1 = vld [vmem:[%s1002_s1 + $0x78] sm:$0xff]  ;;  %298 = vmatpush.bf16.msra.mxu0 %v730_v0  ;;  %v737_v5 = vld [vmem:[%s1002_s1 + $0x70] sm:$0xff]  ;;  %v736_v9 = vld [vmem:[%s1002_s1 + $0x68] sm:$0xff] }
   0x3   :  { %v746_v2 = vld [vmem:[%s1002_s1 + $0xb8] sm:$0xff]  ;;  %311 = vmatpush.bf16.msra.mxu1 %v738_v1  ;;  %v745_v6 = vld [vmem:[%s1002_s1 + $0xb0] sm:$0xff]  ;;  %v744_v10 = vld [vmem:[%s1002_s1 + $0xa8] sm:$0xff] }
   0x4   :  { %v754_v3 = vld [vmem:[%s1002_s1 + $0xf8] sm:$0xff]  ;;  %324 = vmatpush.bf16.msra.mxu2 %v746_v2  ;;  %v753_v7 = vld [vmem:[%s1002_s1 + $0xf0] sm:$0xff]  ;;  %v752_v11 = vld [vmem:[%s1002_s1 + $0xe8] sm:$0xff] }
   0x5   :  { %337 = vmatpush.bf16.msra.mxu3 %v754_v3  ;;  %v727_v12 = vld [vmem:[%s1002_s1 + $0x20] sm:$0xff] }
   0x6   :  { %299 = vmatpush.bf16.msra.mxu0 %v729_v4  ;;  %v735_v13 = vld [vmem:[%s1002_s1 + $0x60] sm:$0xff] }
   0x7   :  { %312 = vmatpush.bf16.msra.mxu1 %v737_v5  ;;  %v27_v14 = vld [vmem:[%s1001_s0] sm:$0xf] }
   0x8   :  { %325 = vmatpush.bf16.msra.mxu2 %v745_v6  ;;  %v743_v15 = vld [vmem:[%s1002_s1 + $0xa0] sm:$0xff]  ;;  %97 = vst [vmem:[#allocation1] ss:$9 sm:$0xff] %v27_v14 }
   0x9   :  { %338 = vmatpush.bf16.msra.mxu3 %v753_v7  ;;  %v751_v16 = vld [vmem:[%s1002_s1 + $0xe0] sm:$0xff] }
   0xa   :  { %300 = vmatpush.bf16.msra.mxu0 %v728_v8 }
   0xb   :  { %313 = vmatpush.bf16.msra.mxu1 %v736_v9 }
   0xc   :  { %326 = vmatpush.bf16.msra.mxu2 %v744_v10 }
   0xd   :  { %339 = vmatpush.bf16.msra.mxu3 %v752_v11 }
   0xe   :  { %12 = vsyncpa [#allocation3], 0  ;;  %301 = vmatpush.bf16.msra.mxu0 %v727_v12  ;;  %v726_v17 = vld [vmem:[%s1002_s1 + $0x18] sm:$0xff]  ;;  %v725_v21 = vld [vmem:[%s1002_s1 + $0x10] sm:$0xff]  ;;  %s801_s29 = smov [#allocation2]  }
   0xf   :  { %314 = vmatpush.bf16.msra.mxu1 %v735_v13  ;;  %v734_v18 = vld [vmem:[%s1002_s1 + $0x58] sm:$0xff]  ;;  %v733_v22 = vld [vmem:[%s1002_s1 + $0x50] sm:$0xff]  ;;  %v724_v25 = vld [vmem:[%s1002_s1 + $0x8] sm:$0xff]  ;;  %s520_s30 = sshll.u32 %s801_s29, 4  ;;  %s521_s30 = int_to_ptr.vmem [resolvable:$true] %s520_s30 }
  0x10   :  { %327 = vmatpush.bf16.msra.mxu2 %v743_v15  ;;  %v742_v19 = vld [vmem:[%s1002_s1 + $0x98] sm:$0xff]  ;;  %v741_v23 = vld [vmem:[%s1002_s1 + $0x90] sm:$0xff]  ;;  %v732_v26 = vld [vmem:[%s1002_s1 + $0x48] sm:$0xff] }
  0x11   :  { %340 = vmatpush.bf16.msra.mxu3 %v751_v16  ;;  %v750_v20 = vld [vmem:[%s1002_s1 + $0xd8] sm:$0xff]  ;;  %v749_v24 = vld [vmem:[%s1002_s1 + $0xd0] sm:$0xff]  ;;  %v740_v27 = vld [vmem:[%s1002_s1 + $0x88] sm:$0xff] }
  0x12   :  { %302 = vmatpush.bf16.msra.mxu0 %v726_v17  ;;  %v748_v28 = vld [vmem:[%s1002_s1 + $0xc8] sm:$0xff]  ;;  %v723_v29 = vld [vmem:[%s1002_s1] sm:$0xff]  ;;  %v762_v33 = vld [vmem:[%s1004_s3 + $0x38] sm:$0xff] }
  0x13   :  { %315 = vmatpush.bf16.msra.mxu1 %v734_v18  ;;  %v731_v30 = vld [vmem:[%s1002_s1 + $0x40] sm:$0xff]  ;;  %v99_v35 = vld [vmem:[#allocation1 + $0x9] sm:$0xff]  ;;  %v100_v36 = vld [vmem:[#allocation1 + $0x12] sm:$0xff] }
  0x14   :  { %328 = vmatpush.bf16.msra.mxu2 %v742_v19  ;;  %v739_v31 = vld [vmem:[%s1002_s1 + $0x80] sm:$0xff]  ;;  %v761_v38 = vld [vmem:[%s1004_s3 + $0x30] sm:$0xff]  ;;  %v760_v39 = vld [vmem:[%s1004_s3 + $0x28] sm:$0xff] }
  0x15   :  { %341 = vmatpush.bf16.msra.mxu3 %v750_v20  ;;  %v747_v32 = vld [vmem:[%s1002_s1 + $0xc0] sm:$0xff]  ;;  %v758_v41 = vld [vmem:[%s1004_s3 + $0x18] sm:$0xff]  ;;  %v757_v42 = vld [vmem:[%s1004_s3 + $0x10] sm:$0xff] }
  0x16   :  { %303 = vmatpush.bf16.msra.mxu0 %v725_v21  ;;  %v98_v34 = vld [vmem:[#allocation1] sm:$0xff]  ;;  %v756_v43 = vld [vmem:[%s1004_s3 + $0x8] sm:$0xff]  ;;  %v770_v45 = vld [vmem:[%s1006_s5 + $0x38] sm:$0xff] }
  0x17   :  { %316 = vmatpush.bf16.msra.mxu1 %v733_v22  ;;  %v101_v37 = vld [vmem:[#allocation1 + $0x1b] sm:$0xff]  ;;  %v769_v46 = vld [vmem:[%s1006_s5 + $0x30] sm:$0xff]  ;;  %v768_v47 = vld [vmem:[%s1006_s5 + $0x28] sm:$0xff] }
  0x18   :  { %329 = vmatpush.bf16.msra.mxu2 %v741_v23  ;;  %v759_v40 = vld [vmem:[%s1004_s3 + $0x20] sm:$0xff]  ;;  %v766_v50 = vld [vmem:[%s1006_s5 + $0x18] sm:$0xff]  ;;  %v765_v54 = vld [vmem:[%s1006_s5 + $0x10] sm:$0xff] }
  0x19   :  { %342 = vmatpush.bf16.msra.mxu3 %v749_v24  ;;  %v755_v44 = vld [vmem:[%s1004_s3] sm:$0xff]  ;;  %v764_v56 = vld [vmem:[%s1006_s5 + $0x8] sm:$0xff] }
  0x1a   :  { %304 = vmatpush.bf16.msra.mxu0 %v724_v25  ;;  %v767_v48 = vld [vmem:[%s1006_s5 + $0x20] sm:$0xff] }
  0x1b   :  { %317 = vmatpush.bf16.msra.mxu1 %v732_v26  ;;  %v772_v49 = vld [vmem:[%s1003_s2] ss:$0 sm:$0xff] }
  0x1c   :  { %330 = vmatpush.bf16.msra.mxu2 %v740_v27  ;;  %v763_v2 = vld [vmem:[%s1006_s5] sm:$0xff]  ;;  %s522_s5 = sshll.u32 %s1008_s7, 4  ;;  %s523_s5 = int_to_ptr.hbm [resolvable:$true] %s522_s5 }
  0x1d   :  { %343 = vmatpush.bf16.msra.mxu3 %v748_v28  ;;  %v773_v3 = vld [vmem:[%s1005_s4] ss:$0 sm:$0xff] }
  0x1e   :  { %305 = vmatpush.bf16.msra.mxu0 %v723_v29  ;;  %v774_v8 = vld [vmem:[%s1007_s6] ss:$0 sm:$0xff] }
  0x1f   :  { %318 = vmatpush.bf16.msra.mxu1 %v731_v30 }
  0x20   :  { %331 = vmatpush.bf16.msra.mxu2 %v739_v31 }
  0x21   :  { %344 = vmatpush.bf16.msra.mxu3 %v747_v32  ;;  %306 = vmatmul.bf16.vlgmr.msra.gmra.mxu0 %v98_v34 }
  0x22   :  { %419 = vmatpush.bf16.msrb.mxu0 %v762_v33  ;;  %319 = vmatmul.bf16.vlgmr.msra.gmra.mxu1 %v99_v35 }
  0x23   :  { %332 = vmatmul.bf16.vlgmr.msra.gmra.mxu2 %v100_v36  ;;  %501 = vmatpush.bf16.msrb.mxu1 %v770_v45 }
  0x24   :  { %345 = vmatmul.bf16.vlgmr.msra.gmra.mxu3 %v101_v37 }
  0x26   :  { %420 = vmatpush.bf16.msrb.mxu0 %v761_v38 }
  0x27   :  { %502 = vmatpush.bf16.msrb.mxu1 %v769_v46 }
  0x2a   :  { %421 = vmatpush.bf16.msrb.mxu0 %v760_v39 }
  0x2b   :  { %503 = vmatpush.bf16.msrb.mxu1 %v768_v47 }
  0x2e   :  { %422 = vmatpush.bf16.msrb.mxu0 %v759_v40 }
  0x2f   :  { %504 = vmatpush.bf16.msrb.mxu1 %v767_v48 }
  0x32   :  { %423 = vmatpush.bf16.msrb.mxu0 %v758_v41 }
  0x33   :  { %505 = vmatpush.bf16.msrb.mxu1 %v766_v50 }
  0x36   :  { %424 = vmatpush.bf16.msrb.mxu0 %v757_v42 }
  0x37   :  { %506 = vmatpush.bf16.msrb.mxu1 %v765_v54 }
  0x3a   :  { %425 = vmatpush.bf16.msrb.mxu0 %v756_v43 }
  0x3b   :  { %507 = vmatpush.bf16.msrb.mxu1 %v764_v56 }
  0x3e   :  { %426 = vmatpush.bf16.msrb.mxu0 %v755_v44 }
  0x3f   :  { %508 = vmatpush.bf16.msrb.mxu1 %v763_v2 }
  0x9e   :  { %v307_v51 = vpop.f32.mrf.mxu0 }
  0x9f   :  { %v320_v52 = vpop.f32.mrf.mxu1  ;;  %v308_v53 = vadd.f32 %v772_v49, %v307_v51 }
  0xa1   :  { %v321_v55 = vadd.f32 %v320_v52, %v308_v53 }
  0xa6   :  { %v333_v57 = vpop.f32.mrf.mxu2  ;;  %v309_v60 = vpop.f32.mrf.mxu0 }
  0xa7   :  { %v346_v58 = vpop.f32.mrf.mxu3  ;;  %v334_v59 = vadd.f32 %v333_v57, %v321_v55  ;;  %v322_v61 = vpop.f32.mrf.mxu1 }
  0xa9   :  { %v347_v62 = vadd.f32 %v346_v58, %v334_v59 }
  0xab   :  { %v350_v63 = vpack.c.bf16 %v347_v62, %v347_v62 }
  0xad   :  { %427 = vmatmul.bf16.vlgmr.msrb.gmra.mxu0 %v350_v63 }
  0xae   :  { %v335_v0 = vpop.f32.mrf.mxu2 }
  0xaf   :  { %v348_v1 = vpop.f32.mrf.mxu3 }
 0x12a   :  { %v428_v4 = vpop.f32.mrf.mxu0 }
 0x12b   :  { %v429_v5 = vadd.f32 %v773_v3, %v428_v4 }
 0x12d   :  { %v432_v6 = vpack.c.bf16 %v429_v5, %v429_v5 }
 0x12f   :  { %509 = vmatmul.bf16.vlgmr.msrb.gmra.mxu1 %v432_v6 }
 0x132   :  { %v430_v7 = vpop.f32.mrf.mxu0 }
 0x1ac   :  { %v510_v9 = vpop.f32.mrf.mxu1 }
 0x1ad   :  { %v511_v10 = vadd.f32 %v774_v8, %v510_v9 }
 0x1af   :  { %514 = vst [vmem:[#allocation2] sm:$0x3] %v511_v10 }
 0x1b0   :  { %525 = dma.vmem_to_hbm [thread:$0]  %s521_s30, 32, %s523_s5, [#allocation3]  }
 0x1b4   :  { %v512_v11 = vpop.f32.mrf.mxu1 }
 0x1b5   :  { %799 = dma.done.wait [#allocation3], 32  }
 0x1b6   :  { %800 = vsyncadd [#allocation3], 4294967264 }
 0x1b7   :  { %530 = vsyncpa [#allocation3], 1 }

</bundles_post_ra>
